<compile_context>
chip_gen: v7x
topology: tpu7x:2x2x1
jax: 0.10.0
libtpu: 0.0.40
codegen_flags: <defaults>
</compile_context>

<pallas_src>
import math
import functools

import jax
import jax.numpy as jnp
from jax.experimental import pallas as pl
from jax.experimental.pallas import tpu as pltpu

_MB = 1024 * 1024


# --------------------------------------------------------------- tiling utils
def _round_up(x, m):
    return ((x + m - 1) // m) * m


def _pick_tile(dim, pref):
    """Largest power-of-two tile <= pref (>=128) dividing round_up(dim,128)."""
    r = _round_up(dim, 128)
    t = pref
    while t > 128 and r % t != 0:
        t //= 2
    return t, r


def _pick_row_tile(rows, max_rows):
    """Largest multiple-of-8 divisor of `rows` <= max_rows, else `rows`."""
    if rows <= max_rows:
        return rows
    best = rows
    for t in range(8, max_rows + 1, 8):
        if rows % t == 0:
            best = t
    return best if best <= max_rows else rows


# ------------------------------------------------------------------ kernel 1
# Tiled MXU matmul, bf16 operands/output, f32 accumulation, fused bias + ReLU.
def _matmul_kernel_acc(a_ref, b_ref, bias_ref, o_ref, acc_ref, *, relu):
    @pl.when(pl.program_id(2) == 0)
    def _():
        acc_ref[...] = jnp.zeros_like(acc_ref)

    acc_ref[...] += jnp.dot(a_ref[...], b_ref[...],
                            preferred_element_type=jnp.float32)

    @pl.when(pl.program_id(2) == pl.num_programs(2) - 1)
    def _():
        y = acc_ref[...] + bias_ref[...]          # (1, tn) broadcasts over rows
        if relu:
            y = jnp.maximum(y, 0.0)
        o_ref[...] = y.astype(o_ref.dtype)


def _matmul_kernel_1k(a_ref, b_ref, bias_ref, o_ref, *, relu):
    # Single-K-tile fast path: no f32 scratch, no init/finalize predicates.
    y = jnp.dot(a_ref[...], b_ref[...],
                preferred_element_type=jnp.float32) + bias_ref[...]
    if relu:
        y = jnp.maximum(y, 0.0)
    o_ref[...] = y.astype(o_ref.dtype)


def pallas_matmul(a, b, bias=None, relu=False, out_dtype=jnp.bfloat16):
    """a:(M,K) x b:(K,N) on the MXU in bf16 with fused bias/ReLU epilogue."""
    M, K = a.shape
    K2, N = b.shape
    assert K == K2
    tn, Np = _pick_tile(N, 256)
    # Tall-skinny outputs (Cout <= 256, i.e. almost every conv here): a big M
    # tile amortizes per-grid-step overhead and keeps stores lane-dense.
    tm, Mp = _pick_tile(M, 512 if Np <= 256 else 256)
    tk, Kp = _pick_tile(K, 512)

    a = a.astype(jnp.bfloat16)
    b = b.astype(jnp.bfloat16)
    if (Mp, Kp) != (M, K):
        a = jnp.pad(a, ((0, Mp - M), (0, Kp - K)))
    if (Kp, Np) != (K, N):
        b = jnp.pad(b, ((0, Kp - K), (0, Np - N)))
    if bias is None:
        bias_p = jnp.zeros((1, Np), jnp.float32)
    else:
        bias_p = jnp.pad(bias.astype(jnp.float32).reshape(1, N),
                         ((0, 0), (0, Np - N)))

    single_k = (Kp // tk) == 1
    out_bytes = jnp.dtype(out_dtype).itemsize
    vmem = (2 * (tm * tk + tk * tn) * 2 + 2 * tm * tn * out_bytes
            + (0 if single_k else tm * tn * 4) + 2 * Np * 4)
    vmem_limit = int(min(48 * _MB, max(4 * _MB, 2 * vmem)))

    if single_k:
        out = pl.pallas_call(
            functools.partial(_matmul_kernel_1k, relu=relu),
            out_shape=jax.ShapeDtypeStruct((Mp, Np), out_dtype),
            grid_spec=pltpu.PrefetchScalarGridSpec(
                num_scalar_prefetch=0,
                grid=(Mp // tm, Np // tn),
                in_specs=[pl.BlockSpec((tm, Kp), lambda i, j: (i, 0)),
                          pl.BlockSpec((Kp, tn), lambda i, j: (0, j)),
                          pl.BlockSpec((1, tn), lambda i, j: (0, j))],
                out_specs=pl.BlockSpec((tm, tn), lambda i, j: (i, j))),
            compiler_params=pltpu.CompilerParams(
                dimension_semantics=("parallel", "parallel"),
                vmem_limit_bytes=vmem_limit),
        )(a, b, bias_p)
    else:
        out = pl.pallas_call(
            functools.partial(_matmul_kernel_acc, relu=relu),
            out_shape=jax.ShapeDtypeStruct((Mp, Np), out_dtype),
            grid_spec=pltpu.PrefetchScalarGridSpec(
                num_scalar_prefetch=0,
                grid=(Mp // tm, Np // tn, Kp // tk),
                in_specs=[pl.BlockSpec((tm, tk), lambda i, j, k: (i, k)),
                          pl.BlockSpec((tk, tn), lambda i, j, k: (k, j)),
                          pl.BlockSpec((1, tn), lambda i, j, k: (0, j))],
                out_specs=pl.BlockSpec((tm, tn), lambda i, j, k: (i, j)),
                scratch_shapes=[pltpu.VMEM((tm, tn), jnp.float32)]),
            compiler_params=pltpu.CompilerParams(
                dimension_semantics=("parallel", "parallel", "arbitrary"),
                vmem_limit_bytes=vmem_limit),
        )(a, b, bias_p)
    if (Mp, Np) != (M, N):
        out = out[:M, :N]
    return out


# --------------------------------------------------------- conv glue (im2col)
# TODO(synk): stream shifted taps inside one Pallas conv kernel instead of
#             materializing the (bf16) im2col matrix in HBM for the remaining
#             2-D / 3-D convolutions.
def conv2d(x, w, b=None, stride=1, padding=0, relu=False):
    B, H, W, C = x.shape
    kh, kw, _, Cout = w.shape
    xp = jnp.pad(x.astype(jnp.bfloat16),
                 ((0, 0), (padding, padding), (padding, padding), (0, 0)))
    Ho = (H + 2 * padding - kh) // stride + 1
    Wo = (W + 2 * padding - kw) // stride + 1
    if kh == 1 and kw == 1 and stride == 1:
        mat = xp.reshape(B * Ho * Wo, C)
    else:
        cols = [xp[:, i:i + Ho * stride:stride, j:j + Wo * stride:stride, :]
                for i in range(kh) for j in range(kw)]
        mat = jnp.concatenate(cols, axis=-1).reshape(B * Ho * Wo, kh * kw * C)
    y = pallas_matmul(mat, w.reshape(kh * kw * C, Cout), bias=b, relu=relu)
    return y.reshape(B, Ho, Wo, Cout)


def deconv2d_s2(x, w, b=None, relu=False):
    """ConvTranspose2d (k=4, stride=2, pad=1) via 4 sub-pixel phase convs."""
    B, H, W, C = x.shape
    kh, kw, Cin, Cout = w.shape
    assert kh == 4 and kw == 4
    xpad = jnp.pad(x.astype(jnp.bfloat16), ((0, 0), (1, 1), (1, 1), (0, 0)))
    phases = []
    for py in range(2):
        for px in range(2):
            cols, wsub = [], []
            for a in range(2):
                for c in range(2):
                    cols.append(xpad[:, py + a:py + a + H, px + c:px + c + W, :])
                    wsub.append(w[py + 2 * a, px + 2 * c])          # (Cin, Cout)
            mat = jnp.concatenate(cols, axis=-1).reshape(B * H * W, 4 * Cin)
            wmat = jnp.concatenate(wsub, axis=0)                    # (4*Cin, Cout)
            y = pallas_matmul(mat, wmat, bias=b, relu=relu)
            phases.append(y.reshape(B, H, W, Cout))
    # TODO(synk): write each phase straight into the strided full-res output.
    ph = jnp.stack(phases, axis=0).reshape(2, 2, B, H, W, Cout)
    out = jnp.transpose(ph, (2, 3, 0, 4, 1, 5)).reshape(B, 2 * H, 2 * W, Cout)
    return out


def conv3d(x, w, b=None, stride=1, padding=0, relu=False):
    B, D, H, W, C = x.shape
    kd, kh, kw, _, Cout = w.shape
    xp = jnp.pad(x.astype(jnp.bfloat16),
                 ((0, 0), (padding, padding), (padding, padding),
                  (padding, padding), (0, 0)))
    Do = (D + 2 * padding - kd) // stride + 1
    Ho = (H + 2 * padding - kh) // stride + 1
    Wo = (W + 2 * padding - kw) // stride + 1
    cols = [xp[:, a:a + Do * stride:stride, i:i + Ho * stride:stride,
               j:j + Wo * stride:stride, :]
            for a in range(kd) for i in range(kh) for j in range(kw)]
    mat = jnp.concatenate(cols, axis=-1).reshape(B * Do * Ho * Wo, kd * kh * kw * C)
    y = pallas_matmul(mat, w.reshape(kd * kh * kw * C, Cout), bias=b, relu=relu)
    return y.reshape(B, Do, Ho, Wo, Cout)


# ------------------------------------------------------------------ kernel 2
def norm_correlation_volume(left, right, D, max_rows=64):
    """left/right: (B, H, W, C) bf16 -> (B, D, H, W) bf16 cosine correlation.

    Normalization is computed once per row-tile (right image cached in VMEM
    scratch so live ranges stay bounded); disparity shifts are static slices;
    the output stays lane-dense in W."""
    B, H, W, C = left.shape
    left = left.astype(jnp.bfloat16)
    r_pad = jnp.pad(right.astype(jnp.bfloat16),
                    ((0, 0), (0, 0), (D - 1, 0), (0, 0)))
    tH = _pick_row_tile(H, max_rows)
    inv_c = 1.0 / float(C)

    def kernel(l_ref, r_ref, o_ref, rn_ref):
        l = l_ref[0].astype(jnp.float32)                           # (tH, W, C)
        ln = l * pl.reciprocal(
            jnp.sqrt(jnp.sum(l * l, axis=-1, keepdims=True)) + 1e-5, approx=True)
        r = r_ref[0].astype(jnp.float32)                           # (tH, W+D-1, C)
        rn_ref[...] = r * pl.reciprocal(
            jnp.sqrt(jnp.sum(r * r, axis=-1, keepdims=True)) + 1e-5, approx=True)
        for d in range(D):                       # static unroll, scratch-backed
            s = (D - 1) - d
            rs = rn_ref[:, s:s + W, :]
            o_ref[0, d] = (jnp.sum(ln * rs, axis=-1) * inv_c).astype(o_ref.dtype)

    return pl.pallas_call(
        kernel,
        out_shape=jax.ShapeDtypeStruct((B, D, H, W), jnp.bfloat16),
        grid=(B, H // tH),
        in_specs=[pl.BlockSpec((1, tH, W, C), lambda b, h: (b, h, 0, 0)),
                  pl.BlockSpec((1, tH, W + D - 1, C), lambda b, h: (b, h, 0, 0))],
        out_specs=pl.BlockSpec((1, D, tH, W), lambda b, h: (b, 0, h, 0)),
        scratch_shapes=[pltpu.VMEM((tH, W + D - 1, C), jnp.float32)],
        compiler_params=pltpu.CompilerParams(
            dimension_semantics=("parallel", "parallel")),
    )(left, r_pad)


# ------------------------------------------------------------------ kernel 3
# Fused hg2 (3x3x3, Cin->1) aggregation conv + top-2 soft-argmax regression.
def _hg2_regress_kernel(w_ref, x0_ref, x1_ref, x2_ref, o_ref,
                        m1_s, i1_s, m2_s, i2_s, *, cin):
    d = pl.program_id(1)
    H, W = o_ref.shape[1], o_ref.shape[2]

    @pl.when(d == 0)
    def _():
        m1_s[...] = jnp.full_like(m1_s, -1e30)
        m2_s[...] = jnp.full_like(m2_s, -1e30)
        i1_s[...] = jnp.zeros_like(i1_s)
        i2_s[...] = jnp.zeros_like(i2_s)

    refs = (x0_ref, x1_ref, x2_ref)               # depth slices d, d+1, d+2

    def chan_body(c, acc):
        for a in range(3):
            plane = refs[a][0, 0, c].astype(jnp.float32)          # (H+2, W+2)
            for i in range(3):
                for j in range(3):
                    wv = w_ref[((a * 3 + i) * 3 + j) * cin + c]    # SMEM scalar
                    acc = acc + plane[i:i + H, j:j + W] * wv
        return acc

    v = jax.lax.fori_loop(0, cin, chan_body, jnp.zeros((H, W), jnp.float32))

    # single-pass running top-2 over the D grid axis
    m1, i1 = m1_s[...], i1_s[...]
    m2, i2 = m2_s[...], i2_s[...]
    df = d.astype(jnp.float32)
    b1 = v > m1
    b2 = jnp.logical_and(v > m2, jnp.logical_not(b1))
    m2_s[...] = jnp.where(b1, m1, jnp.where(b2, v, m2))
    i2_s[...] = jnp.where(b1, i1, jnp.where(b2, df, i2))
    m1_s[...] = jnp.where(b1, v, m1)
    i1_s[...] = jnp.where(b1, df, i1)

    @pl.when(d == pl.num_programs(1) - 1)
    def _():
        e2 = jnp.exp(m2_s[...] - m1_s[...])
        o_ref[0] = ((i1_s[...] + i2_s[...] * e2)
                    * pl.reciprocal(1.0 + e2, approx=True))


def hg2_regression_top2(cost, w):
    """cost: (B, D, H, W, Cin) bf16, w: (3,3,3,Cin,1) -> (B, H, W) f32.

    The Cout=1 aggregation conv is a VPU tap-sum (weights in SMEM) fused with
    the disparity regression, so the cost volume is read exactly once.
    TODO(synk): fold the channel-major transpose into the producing conv."""
    B, D, H, W, Cin = cost.shape
    cm = jnp.transpose(cost, (0, 1, 4, 2, 3))             # (B, D, Cin, H, W)
    cm = jnp.pad(cm, ((0, 0), (1, 1), (0, 0), (1, 1), (1, 1)))
    wflat = w.reshape(27 * Cin).astype(jnp.float32)

    return pl.pallas_call(
        functools.partial(_hg2_regress_kernel, cin=Cin),
        out_shape=jax.ShapeDtypeStruct((B, H, W), jnp.float32),
        grid=(B, D),
        in_specs=[pl.BlockSpec(memory_space=pltpu.MemorySpace.SMEM),
                  pl.BlockSpec((1, 1, Cin, H + 2, W + 2),
                               lambda b, d: (b, d, 0, 0, 0)),
                  pl.BlockSpec((1, 1, Cin, H + 2, W + 2),
                               lambda b, d: (b, d + 1, 0, 0, 0)),
                  pl.BlockSpec((1, 1, Cin, H + 2, W + 2),
                               lambda b, d: (b, d + 2, 0, 0, 0))],
        out_specs=pl.BlockSpec((1, H, W), lambda b, d: (b, 0, 0)),
        scratch_shapes=[pltpu.VMEM((H, W), jnp.float32)] * 4,
        compiler_params=pltpu.CompilerParams(
            dimension_semantics=("parallel", "arbitrary")),
    )(wflat, cm, cm, cm)


# ------------------------------------------------------------------ kernel 4
def context_upsample_pallas(vals, logits, max_rows=128):
    """softmax(logits, axis=1)-weighted sum of vals; both (B,9,H,W) -> (B,H,W)."""
    B, K, H, W = vals.shape
    tH = _pick_row_tile(H, max_rows)

    def kernel(v_ref, l_ref, o_ref):
        lg = l_ref[0].astype(jnp.float32)                          # (K, tH, W)
        m = jnp.max(lg, axis=0, keepdims=True)
        e = jnp.exp(lg - m)
        denom = jnp.sum(e, axis=0)
        num = jnp.sum(e * v_ref[0].astype(jnp.float32), axis=0)
        o_ref[0] = num * pl.reciprocal(denom, approx=True)

    return pl.pallas_call(
        kernel,
        out_shape=jax.ShapeDtypeStruct((B, H, W), jnp.float32),
        grid=(B, H // tH),
        in_specs=[pl.BlockSpec((1, K, tH, W), lambda b, h: (b, 0, h, 0)),
                  pl.BlockSpec((1, K, tH, W), lambda b, h: (b, 0, h, 0))],
        out_specs=pl.BlockSpec((1, tH, W), lambda b, h: (b, h, 0)),
        compiler_params=pltpu.CompilerParams(
            dimension_semantics=("parallel", "parallel")),
    )(vals, logits)


# --------------------------------------------------------------- misc glue
def unfold3x3_nearest_up4(pred):
    """pred: (B, h, w) -> 3x3 unfold, nearest x4 upsample: (B, 9, 4h, 4w).

    TODO(synk): fold the x4 nearest replication into the context-upsample
    kernel to avoid this 16x-inflated intermediate at production sizes."""
    B, h, w = pred.shape
    p = jnp.pad(pred, ((0, 0), (1, 1), (1, 1)))
    cols = [p[:, i:i + h, j:j + w] for i in range(3) for j in range(3)]
    u = jnp.stack(cols, axis=1)                                   # (B, 9, h, w)
    u = jnp.repeat(jnp.repeat(u, 4, axis=2), 4, axis=3)
    return u


# ----------------------------------------------------------- parameter init
class ParamGen:
    def __init__(self, key):
        self.key = key
        self.count = 0

    def _key(self):
        self.count += 1
        return jax.random.fold_in(self.key, self.count)

    def conv2d(self, kh, kw, cin, cout):
        n = kh * kw * cout
        return (jax.random.normal(self._key(), (kh, kw, cin, cout), jnp.float32)
                * math.sqrt(2.0 / n))

    def conv3d(self, kd, kh, kw, cin, cout):
        n = kd * kh * kw * cout
        return (jax.random.normal(self._key(), (kd, kh, kw, cin, cout),
                                  jnp.float32) * math.sqrt(2.0 / n))


def init_params(key):
    pg = ParamGen(key)
    p = {}
    # TODO(synk): stand-in for timm MobileNetV2 backbone + FeatUp (48-ch 1/4-res feature).
    p['feat_c1'] = pg.conv2d(3, 3, 3, 24)
    p['feat_c2'] = pg.conv2d(3, 3, 24, 48)
    p['s2a'] = pg.conv2d(3, 3, 3, 32)
    p['s2b'] = pg.conv2d(3, 3, 32, 32)
    p['s4a'] = pg.conv2d(3, 3, 32, 48)
    p['s4b'] = pg.conv2d(3, 3, 48, 48)
    p['aspp'] = pg.conv2d(3, 3, 48, 48)          # TODO(synk): full ASPP pyramid
    p['group'] = pg.conv2d(3, 3, 96, 48)
    p['conv'] = pg.conv2d(3, 3, 96, 48)
    p['desc_w'] = pg.conv2d(1, 1, 48, 48)
    p['desc_b'] = jnp.zeros((48,), jnp.float32)
    p['att1'] = pg.conv2d(1, 1, 96, 48)
    p['att2_w'] = pg.conv2d(1, 1, 48, 8)
    p['att2_b'] = jnp.zeros((8,), jnp.float32)
    p['corr_stem'] = pg.conv3d(3, 3, 3, 1, 8)
    p['hg1'] = pg.conv3d(3, 3, 3, 8, 16)         # TODO(synk): full hourglass_att
    p['hg2'] = pg.conv3d(3, 3, 3, 16, 1)
    p['spx4a'] = pg.conv2d(3, 3, 96, 24)
    p['spx4b'] = pg.conv2d(3, 3, 24, 24)
    p['spx2_de'] = pg.conv2d(4, 4, 24, 32)
    p['spx2_c'] = pg.conv2d(3, 3, 64, 64)
    p['spx_de'] = pg.conv2d(4, 4, 64, 9)
    p['spx_b'] = jnp.zeros((9,), jnp.float32)
    return p


# ------------------------------------------------------------- CoEx forward
def coex_forward(params, left, right, maxdisp):
    D = maxdisp // 4

    def feat(img):
        x = conv2d(img, params['feat_c1'], stride=2, padding=1, relu=True)
        x = conv2d(x, params['feat_c2'], stride=2, padding=1, relu=True)
        return x                                                  # (B, H/4, W/4, 48)

    featL4, featR4 = feat(left), feat(right)

    def stem2(img):
        x = conv2d(img, params['s2a'], stride=2, padding=1, relu=True)
        return conv2d(x, params['s2b'], stride=1, padding=1, relu=True)

    def stem4(x):
        x = conv2d(x, params['s4a'], stride=2, padding=1, relu=True)
        return conv2d(x, params['s4b'], stride=1, padding=1, relu=True)

    stem_2x = stem2(left)
    stem_4x = stem4(stem_2x)
    stem_2y = stem2(right)
    stem_4y = stem4(stem_2y)

    def axial_aspp_group(s4):
        axial = s4                                                # TODO(synk): BlockAxial
        aspp = conv2d(s4, params['aspp'], stride=1, padding=1, relu=True)
        cat = jnp.concatenate([axial, aspp], axis=-1)             # 96 ch
        return conv2d(cat, params['group'], stride=1, padding=1, relu=True)

    g4x, g4y = axial_aspp_group(stem_4x), axial_aspp_group(stem_4y)

    fl0 = jnp.concatenate([featL4, g4x], axis=-1)                 # 96 ch @ 1/4 res
    fr0 = jnp.concatenate([featR4, g4y], axis=-1)

    def match(f):
        x = conv2d(f, params['conv'], stride=1, padding=1, relu=True)
        return conv2d(x, params['desc_w'], b=params['desc_b'],
                      stride=1, padding=0, relu=False)

    match_left, match_right = match(fl0), match(fr0)

    # ---- correlation volume + 3-D aggregation ----
    corr = norm_correlation_volume(match_left, match_right, D)    # (B,D,h,w) bf16
    cv = conv3d(corr[..., None], params['corr_stem'],
                stride=1, padding=1, relu=True)                    # (B,D,h,w,8) bf16

    att = conv2d(fl0, params['att1'], stride=1, padding=0, relu=True)
    att = conv2d(att, params['att2_w'], b=params['att2_b'],
                 stride=1, padding=0, relu=False)                  # (B,h,w,8) bf16
    # channelAtt gate: plain jnp so XLA fuses it into hg1's im2col gather
    # (no extra HBM round trip of the cost volume).
    gate = jax.nn.sigmoid(att.astype(jnp.float32)).astype(jnp.bfloat16)
    cost = gate[:, None] * cv                                      # (B,D,h,w,8)

    cost = conv3d(cost, params['hg1'], stride=1, padding=1, relu=True)  # ->16 ch
    # hg2 (Cout=1) fused with top-2 disparity regression.
    pred = hg2_regression_top2(cost, params['hg2'])                # (B,h,w) f32

    # ---- superpixel weights ----
    xspx = conv2d(fl0, params['spx4a'], stride=1, padding=1, relu=True)
    xspx = conv2d(xspx, params['spx4b'], stride=1, padding=1, relu=True)
    up = deconv2d_s2(xspx, params['spx2_de'], relu=True)
    up = jnp.concatenate([up, stem_2x], axis=-1)                   # 64 ch @ 1/2
    up = conv2d(up, params['spx2_c'], stride=1, padding=1, relu=True)
    spx_logits = deconv2d_s2(up, params['spx_de'], b=params['spx_b'],
                             relu=False)                           # (B,H,W,9) bf16
    spx_logits = jnp.transpose(spx_logits, (0, 3, 1, 2))           # (B,9,H,W)

    # ---- context upsample of the regressed disparity ----
    vals = unfold3x3_nearest_up4(pred)                             # (B,9,H,W) f32
    pred_up = context_upsample_pallas(vals, spx_logits)            # (B,H,W) f32

    # TODO(synk): trilinear cost upsample, disparity_variance, sigmoid confidence
    #             and ContextAdjustmentLayer refinement are not implemented.
    return pred_up * 4.0


# --------------------------------------------------------------------- main
if __name__ == "__main__":
    key = jax.random.PRNGKey(0)
    kL, kR, kP = jax.random.split(key, 3)
    B, H, W = 1, 32, 32
    maxdisp = 16
    left = jax.random.normal(kL, (B, H, W, 3), jnp.float32)    # layout: NHWC
    right = jax.random.normal(kR, (B, H, W, 3), jnp.float32)
    params = init_params(kP)

    fwd = jax.jit(functools.partial(coex_forward, maxdisp=maxdisp))
    pred_up = fwd(params, left, right)
    jax.block_until_ready(pred_up)
    assert pred_up.shape == (B, H, W)
    assert bool(jnp.all(jnp.isfinite(pred_up)))
    print("KERNEL_OK")
</pallas_src>

<mosaic_0001>
module attributes {stable_mosaic.version = 11 : i64} {
  func.func @_matmul_kernel_1k(%arg0: i32, %arg1: i32, %arg2: memref<256x128xbf16, #tpu.memory_space<vmem>>, %arg3: memref<128x128xbf16, #tpu.memory_space<vmem>>, %arg4: memref<1x128xf32, #tpu.memory_space<vmem>>, %arg5: memref<256x128xbf16, #tpu.memory_space<vmem>>) attributes {dimension_semantics = [#tpu.dimension_semantics<parallel>, #tpu.dimension_semantics<parallel>], iteration_bounds = array<i64: 1, 1>, scalar_prefetch = 0 : i64, scratch_operands = 0 : i64, tpu.core_type = #tpu.core_type<tc>, window_params = [{transform_indices = @transform_0, window_bounds = array<i64: 256, 128>}, {transform_indices = @transform_1, window_bounds = array<i64: 128, 128>}, {transform_indices = @transform_2, window_bounds = array<i64: 1, 128>}, {transform_indices = @transform_3, window_bounds = array<i64: 256, 128>}]} {
    %c0 = arith.constant 0 : index
    %c0_0 = arith.constant 0 : index
    %0 = vector.load %arg2[%c0, %c0_0] : memref<256x128xbf16, #tpu.memory_space<vmem>>, vector<256x128xbf16>
    %c0_1 = arith.constant 0 : index
    %c0_2 = arith.constant 0 : index
    %1 = vector.load %arg3[%c0_1, %c0_2] : memref<128x128xbf16, #tpu.memory_space<vmem>>, vector<128x128xbf16>
    %cst = arith.constant dense<0.000000e+00> : vector<256x128xf32>
    %2 = tpu.matmul %0, %1, %cst {dimension_numbers = #tpu.dot_dimension_numbers<[1], [0], [0], [1], [0, 0, 1, 1], [], []>} : vector<256x128xbf16>, vector<128x128xbf16>, vector<256x128xf32> -> vector<256x128xf32>
    %c0_3 = arith.constant 0 : index
    %c0_4 = arith.constant 0 : index
    %3 = vector.load %arg4[%c0_3, %c0_4] : memref<1x128xf32, #tpu.memory_space<vmem>>, vector<1x128xf32>
    %4 = vector.broadcast %3 : vector<1x128xf32> to vector<256x128xf32>
    %5 = arith.addf %2, %4 : vector<256x128xf32>
    %cst_5 = arith.constant 0.000000e+00 : f32
    %6 = vector.broadcast %cst_5 : f32 to vector<256x128xf32>
    %7 = arith.maximumf %5, %6 : vector<256x128xf32>
    %8 = arith.truncf %7 : vector<256x128xf32> to vector<256x128xbf16>
    %c0_6 = arith.constant 0 : index
    %c0_7 = arith.constant 0 : index
    %9 = vector.load %arg5[%c0_6, %c0_7] : memref<256x128xbf16, #tpu.memory_space<vmem>>, vector<256x128xbf16>
    tpu.vector_store %arg5[%c0_6, %c0_7], %8 {strides = array<i32>} : memref<256x128xbf16, #tpu.memory_space<vmem>>, vector<256x128xbf16>,
    return
  }
  func.func @transform_0(%arg0: i32, %arg1: i32) -> (i32, i32) {
    %c0_i32 = arith.constant 0 : i32
    %c0_i32_0 = arith.constant 0 : i32
    return %arg0, %c0_i32 : i32, i32
  }
  func.func @transform_1(%arg0: i32, %arg1: i32) -> (i32, i32) {
    %c0_i32 = arith.constant 0 : i32
    %c0_i32_0 = arith.constant 0 : i32
    return %c0_i32, %arg1 : i32, i32
  }
  func.func @transform_2(%arg0: i32, %arg1: i32) -> (i32, i32) {
    %c0_i32 = arith.constant 0 : i32
    %c0_i32_0 = arith.constant 0 : i32
    return %c0_i32, %arg1 : i32, i32
  }
  func.func @transform_3(%arg0: i32, %arg1: i32) -> (i32, i32) {
    %c0_i32 = arith.constant 0 : i32
    return %arg0, %arg1 : i32, i32
  }
}

module attributes {stable_mosaic.version = 11 : i64} {
  func.func @_matmul_kernel_1k(%arg0: i32, %arg1: i32, %arg2: memref<128x256xbf16, #tpu.memory_space<vmem>>, %arg3: memref<256x128xbf16, #tpu.memory_space<vmem>>, %arg4: memref<1x128xf32, #tpu.memory_space<vmem>>, %arg5: memref<128x128xbf16, #tpu.memory_space<vmem>>) attributes {dimension_semantics = [#tpu.dimension_semantics<parallel>, #tpu.dimension_semantics<parallel>], iteration_bounds = array<i64: 1, 1>, scalar_prefetch = 0 : i64, scratch_operands = 0 : i64, tpu.core_type = #tpu.core_type<tc>, window_params = [{transform_indices = @transform_0, window_bounds = array<i64: 128, 256>}, {transform_indices = @transform_1, window_bounds = array<i64: 256, 128>}, {transform_indices = @transform_2, window_bounds = array<i64: 1, 128>}, {transform_indices = @transform_3, window_bounds = array<i64: 128, 128>}]} {
    %c0 = arith.constant 0 : index
    %c0_0 = arith.constant 0 : index
    %0 = vector.load %arg2[%c0, %c0_0] : memref<128x256xbf16, #tpu.memory_space<vmem>>, vector<128x256xbf16>
    %c0_1 = arith.constant 0 : index
    %c0_2 = arith.constant 0 : index
    %1 = vector.load %arg3[%c0_1, %c0_2] : memref<256x128xbf16, #tpu.memory_space<vmem>>, vector<256x128xbf16>
    %cst = arith.constant dense<0.000000e+00> : vector<128x128xf32>
    %2 = tpu.matmul %0, %1, %cst {dimension_numbers = #tpu.dot_dimension_numbers<[1], [0], [0], [1], [0, 0, 1, 1], [], []>} : vector<128x256xbf16>, vector<256x128xbf16>, vector<128x128xf32> -> vector<128x128xf32>
    %c0_3 = arith.constant 0 : index
    %c0_4 = arith.constant 0 : index
    %3 = vector.load %arg4[%c0_3, %c0_4] : memref<1x128xf32, #tpu.memory_space<vmem>>, vector<1x128xf32>
    %4 = vector.broadcast %3 : vector<1x128xf32> to vector<128x128xf32>
    %5 = arith.addf %2, %4 : vector<128x128xf32>
    %cst_5 = arith.constant 0.000000e+00 : f32
    %6 = vector.broadcast %cst_5 : f32 to vector<128x128xf32>
    %7 = arith.maximumf %5, %6 : vector<128x128xf32>
    %8 = arith.truncf %7 : vector<128x128xf32> to vector<128x128xbf16>
    %c0_6 = arith.constant 0 : index
    %c0_7 = arith.constant 0 : index
    %9 = vector.load %arg5[%c0_6, %c0_7] : memref<128x128xbf16, #tpu.memory_space<vmem>>, vector<128x128xbf16>
    tpu.vector_store %arg5[%c0_6, %c0_7], %8 {strides = array<i32>} : memref<128x128xbf16, #tpu.memory_space<vmem>>, vector<128x128xbf16>,
    return
  }
  func.func @transform_0(%arg0: i32, %arg1: i32) -> (i32, i32) {
    %c0_i32 = arith.constant 0 : i32
    %c0_i32_0 = arith.constant 0 : i32
    return %arg0, %c0_i32 : i32, i32
  }
  func.func @transform_1(%arg0: i32, %arg1: i32) -> (i32, i32) {
    %c0_i32 = arith.constant 0 : i32
    %c0_i32_0 = arith.constant 0 : i32
    return %c0_i32, %arg1 : i32, i32
  }
  func.func @transform_2(%arg0: i32, %arg1: i32) -> (i32, i32) {
    %c0_i32 = arith.constant 0 : i32
    %c0_i32_0 = arith.constant 0 : i32
    return %c0_i32, %arg1 : i32, i32
  }
  func.func @transform_3(%arg0: i32, %arg1: i32) -> (i32, i32) {
    %c0_i32 = arith.constant 0 : i32
    return %arg0, %arg1 : i32, i32
  }
}

module attributes {stable_mosaic.version = 11 : i64} {
  func.func @_matmul_kernel_acc(%arg0: i32, %arg1: i32, %arg2: i32, %arg3: memref<256x128xbf16, #tpu.memory_space<vmem>>, %arg4: memref<128x128xbf16, #tpu.memory_space<vmem>>, %arg5: memref<1x128xf32, #tpu.memory_space<vmem>>, %arg6: memref<256x128xbf16, #tpu.memory_space<vmem>>, %arg7: memref<256x128xf32, #tpu.memory_space<vmem>>) attributes {dimension_semantics = [#tpu.dimension_semantics<parallel>, #tpu.dimension_semantics<parallel>, #tpu.dimension_semantics<arbitrary>], iteration_bounds = array<i64: 1, 1, 3>, scalar_prefetch = 0 : i64, scratch_operands = 1 : i64, tpu.core_type = #tpu.core_type<tc>, window_params = [{transform_indices = @transform_0, window_bounds = array<i64: 256, 128>}, {transform_indices = @transform_1, window_bounds = array<i64: 128, 128>}, {transform_indices = @transform_2, window_bounds = array<i64: 1, 128>}, {transform_indices = @transform_3, window_bounds = array<i64: 256, 128>}]} {
    %c0_i32 = arith.constant 0 : i32
    %0 = arith.cmpi eq, %arg2, %c0_i32 : i32
    %1 = arith.extui %0 : i1 to i32
    %c0_i32_0 = arith.constant 0 : i32
    %2 = arith.cmpi ne, %1, %c0_i32_0 : i32
    scf.if %2 {
      %cst_9 = arith.constant 0.000000e+00 : f32
      %12 = vector.broadcast %cst_9 : f32 to vector<256x128xf32>
      %c0_10 = arith.constant 0 : index
      %c0_11 = arith.constant 0 : index
      %13 = vector.load %arg7[%c0_10, %c0_11] : memref<256x128xf32, #tpu.memory_space<vmem>>, vector<256x128xf32>
      tpu.vector_store %arg7[%c0_10, %c0_11], %12 {strides = array<i32>} : memref<256x128xf32, #tpu.memory_space<vmem>>, vector<256x128xf32>,
    } else {
    }
    %c0 = arith.constant 0 : index
    %c0_1 = arith.constant 0 : index
    %3 = vector.load %arg7[%c0, %c0_1] : memref<256x128xf32, #tpu.memory_space<vmem>>, vector<256x128xf32>
    %c0_2 = arith.constant 0 : index
    %c0_3 = arith.constant 0 : index
    %4 = vector.load %arg3[%c0_2, %c0_3] : memref<256x128xbf16, #tpu.memory_space<vmem>>, vector<256x128xbf16>
    %c0_4 = arith.constant 0 : index
    %c0_5 = arith.constant 0 : index
    %5 = vector.load %arg4[%c0_4, %c0_5] : memref<128x128xbf16, #tpu.memory_space<vmem>>, vector<128x128xbf16>
    %cst = arith.constant dense<0.000000e+00> : vector<256x128xf32>
    %6 = tpu.matmul %4, %5, %cst {dimension_numbers = #tpu.dot_dimension_numbers<[1], [0], [0], [1], [0, 0, 1, 1], [], []>} : vector<256x128xbf16>, vector<128x128xbf16>, vector<256x128xf32> -> vector<256x128xf32>
    %7 = arith.addf %3, %6 : vector<256x128xf32>
    %c0_6 = arith.constant 0 : index
    %c0_7 = arith.constant 0 : index
    %8 = vector.load %arg7[%c0_6, %c0_7] : memref<256x128xf32, #tpu.memory_space<vmem>>, vector<256x128xf32>
    tpu.vector_store %arg7[%c0_6, %c0_7], %7 {strides = array<i32>} : memref<256x128xf32, #tpu.memory_space<vmem>>, vector<256x128xf32>,
    %c2_i32 = arith.constant 2 : i32
    %9 = arith.cmpi eq, %arg2, %c2_i32 : i32
    %10 = arith.extui %9 : i1 to i32
    %c0_i32_8 = arith.constant 0 : i32
    %11 = arith.cmpi ne, %10, %c0_i32_8 : i32
    scf.if %11 {
      %c0_9 = arith.constant 0 : index
      %c0_10 = arith.constant 0 : index
      %12 = vector.load %arg7[%c0_9, %c0_10] : memref<256x128xf32, #tpu.memory_space<vmem>>, vector<256x128xf32>
      %c0_11 = arith.constant 0 : index
      %c0_12 = arith.constant 0 : index
      %13 = vector.load %arg5[%c0_11, %c0_12] : memref<1x128xf32, #tpu.memory_space<vmem>>, vector<1x128xf32>
      %14 = vector.broadcast %13 : vector<1x128xf32> to vector<256x128xf32>
      %15 = arith.addf %12, %14 : vector<256x128xf32>
      %cst_13 = arith.constant 0.000000e+00 : f32
      %16 = vector.broadcast %cst_13 : f32 to vector<256x128xf32>
      %17 = arith.maximumf %15, %16 : vector<256x128xf32>
      %18 = arith.truncf %17 : vector<256x128xf32> to vector<256x128xbf16>
      %c0_14 = arith.constant 0 : index
      %c0_15 = arith.constant 0 : index
      %19 = vector.load %arg6[%c0_14, %c0_15] : memref<256x128xbf16, #tpu.memory_space<vmem>>, vector<256x128xbf16>
      tpu.vector_store %arg6[%c0_14, %c0_15], %18 {strides = array<i32>} : memref<256x128xbf16, #tpu.memory_space<vmem>>, vector<256x128xbf16>,
    } else {
    }
    return
  }
  func.func @transform_0(%arg0: i32, %arg1: i32, %arg2: i32) -> (i32, i32) {
    %c0_i32 = arith.constant 0 : i32
    return %arg0, %arg2 : i32, i32
  }
  func.func @transform_1(%arg0: i32, %arg1: i32, %arg2: i32) -> (i32, i32) {
    %c0_i32 = arith.constant 0 : i32
    return %arg2, %arg1 : i32, i32
  }
  func.func @transform_2(%arg0: i32, %arg1: i32, %arg2: i32) -> (i32, i32) {
    %c0_i32 = arith.constant 0 : i32
    %c0_i32_0 = arith.constant 0 : i32
    return %c0_i32, %arg1 : i32, i32
  }
  func.func @transform_3(%arg0: i32, %arg1: i32, %arg2: i32) -> (i32, i32) {
    %c0_i32 = arith.constant 0 : i32
    return %arg0, %arg1 : i32, i32
  }
}

module attributes {stable_mosaic.version = 11 : i64} {
  func.func @_matmul_kernel_acc(%arg0: i32, %arg1: i32, %arg2: i32, %arg3: memref<128x128xbf16, #tpu.memory_space<vmem>>, %arg4: memref<128x128xbf16, #tpu.memory_space<vmem>>, %arg5: memref<1x128xf32, #tpu.memory_space<vmem>>, %arg6: memref<128x128xbf16, #tpu.memory_space<vmem>>, %arg7: memref<128x128xf32, #tpu.memory_space<vmem>>) attributes {dimension_semantics = [#tpu.dimension_semantics<parallel>, #tpu.dimension_semantics<parallel>, #tpu.dimension_semantics<arbitrary>], iteration_bounds = array<i64: 1, 1, 3>, scalar_prefetch = 0 : i64, scratch_operands = 1 : i64, tpu.core_type = #tpu.core_type<tc>, window_params = [{transform_indices = @transform_0, window_bounds = array<i64: 128, 128>}, {transform_indices = @transform_1, window_bounds = array<i64: 128, 128>}, {transform_indices = @transform_2, window_bounds = array<i64: 1, 128>}, {transform_indices = @transform_3, window_bounds = array<i64: 128, 128>}]} {
    %c0_i32 = arith.constant 0 : i32
    %0 = arith.cmpi eq, %arg2, %c0_i32 : i32
    %1 = arith.extui %0 : i1 to i32
    %c0_i32_0 = arith.constant 0 : i32
    %2 = arith.cmpi ne, %1, %c0_i32_0 : i32
    scf.if %2 {
      %cst_9 = arith.constant 0.000000e+00 : f32
      %12 = vector.broadcast %cst_9 : f32 to vector<128x128xf32>
      %c0_10 = arith.constant 0 : index
      %c0_11 = arith.constant 0 : index
      %13 = vector.load %arg7[%c0_10, %c0_11] : memref<128x128xf32, #tpu.memory_space<vmem>>, vector<128x128xf32>
      tpu.vector_store %arg7[%c0_10, %c0_11], %12 {strides = array<i32>} : memref<128x128xf32, #tpu.memory_space<vmem>>, vector<128x128xf32>,
    } else {
    }
    %c0 = arith.constant 0 : index
    %c0_1 = arith.constant 0 : index
    %3 = vector.load %arg7[%c0, %c0_1] : memref<128x128xf32, #tpu.memory_space<vmem>>, vector<128x128xf32>
    %c0_2 = arith.constant 0 : index
    %c0_3 = arith.constant 0 : index
    %4 = vector.load %arg3[%c0_2, %c0_3] : memref<128x128xbf16, #tpu.memory_space<vmem>>, vector<128x128xbf16>
    %c0_4 = arith.constant 0 : index
    %c0_5 = arith.constant 0 : index
    %5 = vector.load %arg4[%c0_4, %c0_5] : memref<128x128xbf16, #tpu.memory_space<vmem>>, vector<128x128xbf16>
    %cst = arith.constant dense<0.000000e+00> : vector<128x128xf32>
    %6 = tpu.matmul %4, %5, %cst {dimension_numbers = #tpu.dot_dimension_numbers<[1], [0], [0], [1], [0, 0, 1, 1], [], []>} : vector<128x128xbf16>, vector<128x128xbf16>, vector<128x128xf32> -> vector<128x128xf32>
    %7 = arith.addf %3, %6 : vector<128x128xf32>
    %c0_6 = arith.constant 0 : index
    %c0_7 = arith.constant 0 : index
    %8 = vector.load %arg7[%c0_6, %c0_7] : memref<128x128xf32, #tpu.memory_space<vmem>>, vector<128x128xf32>
    tpu.vector_store %arg7[%c0_6, %c0_7], %7 {strides = array<i32>} : memref<128x128xf32, #tpu.memory_space<vmem>>, vector<128x128xf32>,
    %c2_i32 = arith.constant 2 : i32
    %9 = arith.cmpi eq, %arg2, %c2_i32 : i32
    %10 = arith.extui %9 : i1 to i32
    %c0_i32_8 = arith.constant 0 : i32
    %11 = arith.cmpi ne, %10, %c0_i32_8 : i32
    scf.if %11 {
      %c0_9 = arith.constant 0 : index
      %c0_10 = arith.constant 0 : index
      %12 = vector.load %arg7[%c0_9, %c0_10] : memref<128x128xf32, #tpu.memory_space<vmem>>, vector<128x128xf32>
      %c0_11 = arith.constant 0 : index
      %c0_12 = arith.constant 0 : index
      %13 = vector.load %arg5[%c0_11, %c0_12] : memref<1x128xf32, #tpu.memory_space<vmem>>, vector<1x128xf32>
      %14 = vector.broadcast %13 : vector<1x128xf32> to vector<128x128xf32>
      %15 = arith.addf %12, %14 : vector<128x128xf32>
      %cst_13 = arith.constant 0.000000e+00 : f32
      %16 = vector.broadcast %cst_13 : f32 to vector<128x128xf32>
      %17 = arith.maximumf %15, %16 : vector<128x128xf32>
      %18 = arith.truncf %17 : vector<128x128xf32> to vector<128x128xbf16>
      %c0_14 = arith.constant 0 : index
      %c0_15 = arith.constant 0 : index
      %19 = vector.load %arg6[%c0_14, %c0_15] : memref<128x128xbf16, #tpu.memory_space<vmem>>, vector<128x128xbf16>
      tpu.vector_store %arg6[%c0_14, %c0_15], %18 {strides = array<i32>} : memref<128x128xbf16, #tpu.memory_space<vmem>>, vector<128x128xbf16>,
    } else {
    }
    return
  }
  func.func @transform_0(%arg0: i32, %arg1: i32, %arg2: i32) -> (i32, i32) {
    %c0_i32 = arith.constant 0 : i32
    return %arg0, %arg2 : i32, i32
  }
  func.func @transform_1(%arg0: i32, %arg1: i32, %arg2: i32) -> (i32, i32) {
    %c0_i32 = arith.constant 0 : i32
    return %arg2, %arg1 : i32, i32
  }
  func.func @transform_2(%arg0: i32, %arg1: i32, %arg2: i32) -> (i32, i32) {
    %c0_i32 = arith.constant 0 : i32
    %c0_i32_0 = arith.constant 0 : i32
    return %c0_i32, %arg1 : i32, i32
  }
  func.func @transform_3(%arg0: i32, %arg1: i32, %arg2: i32) -> (i32, i32) {
    %c0_i32 = arith.constant 0 : i32
    return %arg0, %arg1 : i32, i32
  }
}

module attributes {stable_mosaic.version = 11 : i64} {
  func.func @_matmul_kernel_1k(%arg0: i32, %arg1: i32, %arg2: memref<128x512xbf16, #tpu.memory_space<vmem>>, %arg3: memref<512x128xbf16, #tpu.memory_space<vmem>>, %arg4: memref<1x128xf32, #tpu.memory_space<vmem>>, %arg5: memref<128x128xbf16, #tpu.memory_space<vmem>>) attributes {dimension_semantics = [#tpu.dimension_semantics<parallel>, #tpu.dimension_semantics<parallel>], iteration_bounds = array<i64: 1, 1>, scalar_prefetch = 0 : i64, scratch_operands = 0 : i64, tpu.core_type = #tpu.core_type<tc>, window_params = [{transform_indices = @transform_0, window_bounds = array<i64: 128, 512>}, {transform_indices = @transform_1, window_bounds = array<i64: 512, 128>}, {transform_indices = @transform_2, window_bounds = array<i64: 1, 128>}, {transform_indices = @transform_3, window_bounds = array<i64: 128, 128>}]} {
    %c0 = arith.constant 0 : index
    %c0_0 = arith.constant 0 : index
    %0 = vector.load %arg2[%c0, %c0_0] : memref<128x512xbf16, #tpu.memory_space<vmem>>, vector<128x512xbf16>
    %c0_1 = arith.constant 0 : index
    %c0_2 = arith.constant 0 : index
    %1 = vector.load %arg3[%c0_1, %c0_2] : memref<512x128xbf16, #tpu.memory_space<vmem>>, vector<512x128xbf16>
    %cst = arith.constant dense<0.000000e+00> : vector<128x128xf32>
    %2 = tpu.matmul %0, %1, %cst {dimension_numbers = #tpu.dot_dimension_numbers<[1], [0], [0], [1], [0, 0, 1, 1], [], []>} : vector<128x512xbf16>, vector<512x128xbf16>, vector<128x128xf32> -> vector<128x128xf32>
    %c0_3 = arith.constant 0 : index
    %c0_4 = arith.constant 0 : index
    %3 = vector.load %arg4[%c0_3, %c0_4] : memref<1x128xf32, #tpu.memory_space<vmem>>, vector<1x128xf32>
    %4 = vector.broadcast %3 : vector<1x128xf32> to vector<128x128xf32>
    %5 = arith.addf %2, %4 : vector<128x128xf32>
    %cst_5 = arith.constant 0.000000e+00 : f32
    %6 = vector.broadcast %cst_5 : f32 to vector<128x128xf32>
    %7 = arith.maximumf %5, %6 : vector<128x128xf32>
    %8 = arith.truncf %7 : vector<128x128xf32> to vector<128x128xbf16>
    %c0_6 = arith.constant 0 : index
    %c0_7 = arith.constant 0 : index
    %9 = vector.load %arg5[%c0_6, %c0_7] : memref<128x128xbf16, #tpu.memory_space<vmem>>, vector<128x128xbf16>
    tpu.vector_store %arg5[%c0_6, %c0_7], %8 {strides = array<i32>} : memref<128x128xbf16, #tpu.memory_space<vmem>>, vector<128x128xbf16>,
    return
  }
  func.func @transform_0(%arg0: i32, %arg1: i32) -> (i32, i32) {
    %c0_i32 = arith.constant 0 : i32
    %c0_i32_0 = arith.constant 0 : i32
    return %arg0, %c0_i32 : i32, i32
  }
  func.func @transform_1(%arg0: i32, %arg1: i32) -> (i32, i32) {
    %c0_i32 = arith.constant 0 : i32
    %c0_i32_0 = arith.constant 0 : i32
    return %c0_i32, %arg1 : i32, i32
  }
  func.func @transform_2(%arg0: i32, %arg1: i32) -> (i32, i32) {
    %c0_i32 = arith.constant 0 : i32
    %c0_i32_0 = arith.constant 0 : i32
    return %c0_i32, %arg1 : i32, i32
  }
  func.func @transform_3(%arg0: i32, %arg1: i32) -> (i32, i32) {
    %c0_i32 = arith.constant 0 : i32
    return %arg0, %arg1 : i32, i32
  }
}

module attributes {stable_mosaic.version = 11 : i64} {
  func.func @_matmul_kernel_acc(%arg0: i32, %arg1: i32, %arg2: i32, %arg3: memref<128x128xbf16, #tpu.memory_space<vmem>>, %arg4: memref<128x128xbf16, #tpu.memory_space<vmem>>, %arg5: memref<1x128xf32, #tpu.memory_space<vmem>>, %arg6: memref<128x128xbf16, #tpu.memory_space<vmem>>, %arg7: memref<128x128xf32, #tpu.memory_space<vmem>>) attributes {dimension_semantics = [#tpu.dimension_semantics<parallel>, #tpu.dimension_semantics<parallel>, #tpu.dimension_semantics<arbitrary>], iteration_bounds = array<i64: 1, 1, 7>, scalar_prefetch = 0 : i64, scratch_operands = 1 : i64, tpu.core_type = #tpu.core_type<tc>, window_params = [{transform_indices = @transform_0, window_bounds = array<i64: 128, 128>}, {transform_indices = @transform_1, window_bounds = array<i64: 128, 128>}, {transform_indices = @transform_2, window_bounds = array<i64: 1, 128>}, {transform_indices = @transform_3, window_bounds = array<i64: 128, 128>}]} {
    %c0_i32 = arith.constant 0 : i32
    %0 = arith.cmpi eq, %arg2, %c0_i32 : i32
    %1 = arith.extui %0 : i1 to i32
    %c0_i32_0 = arith.constant 0 : i32
    %2 = arith.cmpi ne, %1, %c0_i32_0 : i32
    scf.if %2 {
      %cst_9 = arith.constant 0.000000e+00 : f32
      %12 = vector.broadcast %cst_9 : f32 to vector<128x128xf32>
      %c0_10 = arith.constant 0 : index
      %c0_11 = arith.constant 0 : index
      %13 = vector.load %arg7[%c0_10, %c0_11] : memref<128x128xf32, #tpu.memory_space<vmem>>, vector<128x128xf32>
      tpu.vector_store %arg7[%c0_10, %c0_11], %12 {strides = array<i32>} : memref<128x128xf32, #tpu.memory_space<vmem>>, vector<128x128xf32>,
    } else {
    }
    %c0 = arith.constant 0 : index
    %c0_1 = arith.constant 0 : index
    %3 = vector.load %arg7[%c0, %c0_1] : memref<128x128xf32, #tpu.memory_space<vmem>>, vector<128x128xf32>
    %c0_2 = arith.constant 0 : index
    %c0_3 = arith.constant 0 : index
    %4 = vector.load %arg3[%c0_2, %c0_3] : memref<128x128xbf16, #tpu.memory_space<vmem>>, vector<128x128xbf16>
    %c0_4 = arith.constant 0 : index
    %c0_5 = arith.constant 0 : index
    %5 = vector.load %arg4[%c0_4, %c0_5] : memref<128x128xbf16, #tpu.memory_space<vmem>>, vector<128x128xbf16>
    %cst = arith.constant dense<0.000000e+00> : vector<128x128xf32>
    %6 = tpu.matmul %4, %5, %cst {dimension_numbers = #tpu.dot_dimension_numbers<[1], [0], [0], [1], [0, 0, 1, 1], [], []>} : vector<128x128xbf16>, vector<128x128xbf16>, vector<128x128xf32> -> vector<128x128xf32>
    %7 = arith.addf %3, %6 : vector<128x128xf32>
    %c0_6 = arith.constant 0 : index
    %c0_7 = arith.constant 0 : index
    %8 = vector.load %arg7[%c0_6, %c0_7] : memref<128x128xf32, #tpu.memory_space<vmem>>, vector<128x128xf32>
    tpu.vector_store %arg7[%c0_6, %c0_7], %7 {strides = array<i32>} : memref<128x128xf32, #tpu.memory_space<vmem>>, vector<128x128xf32>,
    %c6_i32 = arith.constant 6 : i32
    %9 = arith.cmpi eq, %arg2, %c6_i32 : i32
    %10 = arith.extui %9 : i1 to i32
    %c0_i32_8 = arith.constant 0 : i32
    %11 = arith.cmpi ne, %10, %c0_i32_8 : i32
    scf.if %11 {
      %c0_9 = arith.constant 0 : index
      %c0_10 = arith.constant 0 : index
      %12 = vector.load %arg7[%c0_9, %c0_10] : memref<128x128xf32, #tpu.memory_space<vmem>>, vector<128x128xf32>
      %c0_11 = arith.constant 0 : index
      %c0_12 = arith.constant 0 : index
      %13 = vector.load %arg5[%c0_11, %c0_12] : memref<1x128xf32, #tpu.memory_space<vmem>>, vector<1x128xf32>
      %14 = vector.broadcast %13 : vector<1x128xf32> to vector<128x128xf32>
      %15 = arith.addf %12, %14 : vector<128x128xf32>
      %cst_13 = arith.constant 0.000000e+00 : f32
      %16 = vector.broadcast %cst_13 : f32 to vector<128x128xf32>
      %17 = arith.maximumf %15, %16 : vector<128x128xf32>
      %18 = arith.truncf %17 : vector<128x128xf32> to vector<128x128xbf16>
      %c0_14 = arith.constant 0 : index
      %c0_15 = arith.constant 0 : index
      %19 = vector.load %arg6[%c0_14, %c0_15] : memref<128x128xbf16, #tpu.memory_space<vmem>>, vector<128x128xbf16>
      tpu.vector_store %arg6[%c0_14, %c0_15], %18 {strides = array<i32>} : memref<128x128xbf16, #tpu.memory_space<vmem>>, vector<128x128xbf16>,
    } else {
    }
    return
  }
  func.func @transform_0(%arg0: i32, %arg1: i32, %arg2: i32) -> (i32, i32) {
    %c0_i32 = arith.constant 0 : i32
    return %arg0, %arg2 : i32, i32
  }
  func.func @transform_1(%arg0: i32, %arg1: i32, %arg2: i32) -> (i32, i32) {
    %c0_i32 = arith.constant 0 : i32
    return %arg2, %arg1 : i32, i32
  }
  func.func @transform_2(%arg0: i32, %arg1: i32, %arg2: i32) -> (i32, i32) {
    %c0_i32 = arith.constant 0 : i32
    %c0_i32_0 = arith.constant 0 : i32
    return %c0_i32, %arg1 : i32, i32
  }
  func.func @transform_3(%arg0: i32, %arg1: i32, %arg2: i32) -> (i32, i32) {
    %c0_i32 = arith.constant 0 : i32
    return %arg0, %arg1 : i32, i32
  }
}

module attributes {stable_mosaic.version = 11 : i64} {
  func.func @_matmul_kernel_1k(%arg0: i32, %arg1: i32, %arg2: memref<128x128xbf16, #tpu.memory_space<vmem>>, %arg3: memref<128x128xbf16, #tpu.memory_space<vmem>>, %arg4: memref<1x128xf32, #tpu.memory_space<vmem>>, %arg5: memref<128x128xbf16, #tpu.memory_space<vmem>>) attributes {dimension_semantics = [#tpu.dimension_semantics<parallel>, #tpu.dimension_semantics<parallel>], iteration_bounds = array<i64: 1, 1>, scalar_prefetch = 0 : i64, scratch_operands = 0 : i64, tpu.core_type = #tpu.core_type<tc>, window_params = [{transform_indices = @transform_0, window_bounds = array<i64: 128, 128>}, {transform_indices = @transform_1, window_bounds = array<i64: 128, 128>}, {transform_indices = @transform_2, window_bounds = array<i64: 1, 128>}, {transform_indices = @transform_3, window_bounds = array<i64: 128, 128>}]} {
    %c0 = arith.constant 0 : index
    %c0_0 = arith.constant 0 : index
    %0 = vector.load %arg2[%c0, %c0_0] : memref<128x128xbf16, #tpu.memory_space<vmem>>, vector<128x128xbf16>
    %c0_1 = arith.constant 0 : index
    %c0_2 = arith.constant 0 : index
    %1 = vector.load %arg3[%c0_1, %c0_2] : memref<128x128xbf16, #tpu.memory_space<vmem>>, vector<128x128xbf16>
    %cst = arith.constant dense<0.000000e+00> : vector<128x128xf32>
    %2 = tpu.matmul %0, %1, %cst {dimension_numbers = #tpu.dot_dimension_numbers<[1], [0], [0], [1], [0, 0, 1, 1], [], []>} : vector<128x128xbf16>, vector<128x128xbf16>, vector<128x128xf32> -> vector<128x128xf32>
    %c0_3 = arith.constant 0 : index
    %c0_4 = arith.constant 0 : index
    %3 = vector.load %arg4[%c0_3, %c0_4] : memref<1x128xf32, #tpu.memory_space<vmem>>, vector<1x128xf32>
    %4 = vector.broadcast %3 : vector<1x128xf32> to vector<128x128xf32>
    %5 = arith.addf %2, %4 : vector<128x128xf32>
    %cst_5 = arith.constant 0.000000e+00 : f32
    %6 = vector.broadcast %cst_5 : f32 to vector<128x128xf32>
    %7 = arith.maximumf %5, %6 : vector<128x128xf32>
    %8 = arith.truncf %7 : vector<128x128xf32> to vector<128x128xbf16>
    %c0_6 = arith.constant 0 : index
    %c0_7 = arith.constant 0 : index
    %9 = vector.load %arg5[%c0_6, %c0_7] : memref<128x128xbf16, #tpu.memory_space<vmem>>, vector<128x128xbf16>
    tpu.vector_store %arg5[%c0_6, %c0_7], %8 {strides = array<i32>} : memref<128x128xbf16, #tpu.memory_space<vmem>>, vector<128x128xbf16>,
    return
  }
  func.func @transform_0(%arg0: i32, %arg1: i32) -> (i32, i32) {
    %c0_i32 = arith.constant 0 : i32
    %c0_i32_0 = arith.constant 0 : i32
    return %arg0, %c0_i32 : i32, i32
  }
  func.func @transform_1(%arg0: i32, %arg1: i32) -> (i32, i32) {
    %c0_i32 = arith.constant 0 : i32
    %c0_i32_0 = arith.constant 0 : i32
    return %c0_i32, %arg1 : i32, i32
  }
  func.func @transform_2(%arg0: i32, %arg1: i32) -> (i32, i32) {
    %c0_i32 = arith.constant 0 : i32
    %c0_i32_0 = arith.constant 0 : i32
    return %c0_i32, %arg1 : i32, i32
  }
  func.func @transform_3(%arg0: i32, %arg1: i32) -> (i32, i32) {
    %c0_i32 = arith.constant 0 : i32
    return %arg0, %arg1 : i32, i32
  }
}

module attributes {stable_mosaic.version = 11 : i64} {
  func.func @_matmul_kernel_acc(%arg0: i32, %arg1: i32, %arg2: i32, %arg3: memref<256x128xbf16, #tpu.memory_space<vmem>>, %arg4: memref<128x128xbf16, #tpu.memory_space<vmem>>, %arg5: memref<1x128xf32, #tpu.memory_space<vmem>>, %arg6: memref<256x128xbf16, #tpu.memory_space<vmem>>, %arg7: memref<256x128xf32, #tpu.memory_space<vmem>>) attributes {dimension_semantics = [#tpu.dimension_semantics<parallel>, #tpu.dimension_semantics<parallel>, #tpu.dimension_semantics<arbitrary>], iteration_bounds = array<i64: 1, 1, 5>, scalar_prefetch = 0 : i64, scratch_operands = 1 : i64, tpu.core_type = #tpu.core_type<tc>, window_params = [{transform_indices = @transform_0, window_bounds = array<i64: 256, 128>}, {transform_indices = @transform_1, window_bounds = array<i64: 128, 128>}, {transform_indices = @transform_2, window_bounds = array<i64: 1, 128>}, {transform_indices = @transform_3, window_bounds = array<i64: 256, 128>}]} {
    %c0_i32 = arith.constant 0 : i32
    %0 = arith.cmpi eq, %arg2, %c0_i32 : i32
    %1 = arith.extui %0 : i1 to i32
    %c0_i32_0 = arith.constant 0 : i32
    %2 = arith.cmpi ne, %1, %c0_i32_0 : i32
    scf.if %2 {
      %cst_9 = arith.constant 0.000000e+00 : f32
      %12 = vector.broadcast %cst_9 : f32 to vector<256x128xf32>
      %c0_10 = arith.constant 0 : index
      %c0_11 = arith.constant 0 : index
      %13 = vector.load %arg7[%c0_10, %c0_11] : memref<256x128xf32, #tpu.memory_space<vmem>>, vector<256x128xf32>
      tpu.vector_store %arg7[%c0_10, %c0_11], %12 {strides = array<i32>} : memref<256x128xf32, #tpu.memory_space<vmem>>, vector<256x128xf32>,
    } else {
    }
    %c0 = arith.constant 0 : index
    %c0_1 = arith.constant 0 : index
    %3 = vector.load %arg7[%c0, %c0_1] : memref<256x128xf32, #tpu.memory_space<vmem>>, vector<256x128xf32>
    %c0_2 = arith.constant 0 : index
    %c0_3 = arith.constant 0 : index
    %4 = vector.load %arg3[%c0_2, %c0_3] : memref<256x128xbf16, #tpu.memory_space<vmem>>, vector<256x128xbf16>
    %c0_4 = arith.constant 0 : index
    %c0_5 = arith.constant 0 : index
    %5 = vector.load %arg4[%c0_4, %c0_5] : memref<128x128xbf16, #tpu.memory_space<vmem>>, vector<128x128xbf16>
    %cst = arith.constant dense<0.000000e+00> : vector<256x128xf32>
    %6 = tpu.matmul %4, %5, %cst {dimension_numbers = #tpu.dot_dimension_numbers<[1], [0], [0], [1], [0, 0, 1, 1], [], []>} : vector<256x128xbf16>, vector<128x128xbf16>, vector<256x128xf32> -> vector<256x128xf32>
    %7 = arith.addf %3, %6 : vector<256x128xf32>
    %c0_6 = arith.constant 0 : index
    %c0_7 = arith.constant 0 : index
    %8 = vector.load %arg7[%c0_6, %c0_7] : memref<256x128xf32, #tpu.memory_space<vmem>>, vector<256x128xf32>
    tpu.vector_store %arg7[%c0_6, %c0_7], %7 {strides = array<i32>} : memref<256x128xf32, #tpu.memory_space<vmem>>, vector<256x128xf32>,
    %c4_i32 = arith.constant 4 : i32
    %9 = arith.cmpi eq, %arg2, %c4_i32 : i32
    %10 = arith.extui %9 : i1 to i32
    %c0_i32_8 = arith.constant 0 : i32
    %11 = arith.cmpi ne, %10, %c0_i32_8 : i32
    scf.if %11 {
      %c0_9 = arith.constant 0 : index
      %c0_10 = arith.constant 0 : index
      %12 = vector.load %arg7[%c0_9, %c0_10] : memref<256x128xf32, #tpu.memory_space<vmem>>, vector<256x128xf32>
      %c0_11 = arith.constant 0 : index
      %c0_12 = arith.constant 0 : index
      %13 = vector.load %arg5[%c0_11, %c0_12] : memref<1x128xf32, #tpu.memory_space<vmem>>, vector<1x128xf32>
      %14 = vector.broadcast %13 : vector<1x128xf32> to vector<256x128xf32>
      %15 = arith.addf %12, %14 : vector<256x128xf32>
      %cst_13 = arith.constant 0.000000e+00 : f32
      %16 = vector.broadcast %cst_13 : f32 to vector<256x128xf32>
      %17 = arith.maximumf %15, %16 : vector<256x128xf32>
      %18 = arith.truncf %17 : vector<256x128xf32> to vector<256x128xbf16>
      %c0_14 = arith.constant 0 : index
      %c0_15 = arith.constant 0 : index
      %19 = vector.load %arg6[%c0_14, %c0_15] : memref<256x128xbf16, #tpu.memory_space<vmem>>, vector<256x128xbf16>
      tpu.vector_store %arg6[%c0_14, %c0_15], %18 {strides = array<i32>} : memref<256x128xbf16, #tpu.memory_space<vmem>>, vector<256x128xbf16>,
    } else {
    }
    return
  }
  func.func @transform_0(%arg0: i32, %arg1: i32, %arg2: i32) -> (i32, i32) {
    %c0_i32 = arith.constant 0 : i32
    return %arg0, %arg2 : i32, i32
  }
  func.func @transform_1(%arg0: i32, %arg1: i32, %arg2: i32) -> (i32, i32) {
    %c0_i32 = arith.constant 0 : i32
    return %arg2, %arg1 : i32, i32
  }
  func.func @transform_2(%arg0: i32, %arg1: i32, %arg2: i32) -> (i32, i32) {
    %c0_i32 = arith.constant 0 : i32
    %c0_i32_0 = arith.constant 0 : i32
    return %c0_i32, %arg1 : i32, i32
  }
  func.func @transform_3(%arg0: i32, %arg1: i32, %arg2: i32) -> (i32, i32) {
    %c0_i32 = arith.constant 0 : i32
    return %arg0, %arg1 : i32, i32
  }
}

module attributes {stable_mosaic.version = 11 : i64} {
  func.func @_matmul_kernel_1k(%arg0: i32, %arg1: i32, %arg2: memref<256x256xbf16, #tpu.memory_space<vmem>>, %arg3: memref<256x128xbf16, #tpu.memory_space<vmem>>, %arg4: memref<1x128xf32, #tpu.memory_space<vmem>>, %arg5: memref<256x128xbf16, #tpu.memory_space<vmem>>) attributes {dimension_semantics = [#tpu.dimension_semantics<parallel>, #tpu.dimension_semantics<parallel>], iteration_bounds = array<i64: 1, 1>, scalar_prefetch = 0 : i64, scratch_operands = 0 : i64, tpu.core_type = #tpu.core_type<tc>, window_params = [{transform_indices = @transform_0, window_bounds = array<i64: 256, 256>}, {transform_indices = @transform_1, window_bounds = array<i64: 256, 128>}, {transform_indices = @transform_2, window_bounds = array<i64: 1, 128>}, {transform_indices = @transform_3, window_bounds = array<i64: 256, 128>}]} {
    %c0 = arith.constant 0 : index
    %c0_0 = arith.constant 0 : index
    %0 = vector.load %arg2[%c0, %c0_0] : memref<256x256xbf16, #tpu.memory_space<vmem>>, vector<256x256xbf16>
    %c0_1 = arith.constant 0 : index
    %c0_2 = arith.constant 0 : index
    %1 = vector.load %arg3[%c0_1, %c0_2] : memref<256x128xbf16, #tpu.memory_space<vmem>>, vector<256x128xbf16>
    %cst = arith.constant dense<0.000000e+00> : vector<256x128xf32>
    %2 = tpu.matmul %0, %1, %cst {dimension_numbers = #tpu.dot_dimension_numbers<[1], [0], [0], [1], [0, 0, 1, 1], [], []>} : vector<256x256xbf16>, vector<256x128xbf16>, vector<256x128xf32> -> vector<256x128xf32>
    %c0_3 = arith.constant 0 : index
    %c0_4 = arith.constant 0 : index
    %3 = vector.load %arg4[%c0_3, %c0_4] : memref<1x128xf32, #tpu.memory_space<vmem>>, vector<1x128xf32>
    %4 = vector.broadcast %3 : vector<1x128xf32> to vector<256x128xf32>
    %5 = arith.addf %2, %4 : vector<256x128xf32>
    %6 = arith.truncf %5 : vector<256x128xf32> to vector<256x128xbf16>
    %c0_5 = arith.constant 0 : index
    %c0_6 = arith.constant 0 : index
    %7 = vector.load %arg5[%c0_5, %c0_6] : memref<256x128xbf16, #tpu.memory_space<vmem>>, vector<256x128xbf16>
    tpu.vector_store %arg5[%c0_5, %c0_6], %6 {strides = array<i32>} : memref<256x128xbf16, #tpu.memory_space<vmem>>, vector<256x128xbf16>,
    return
  }
  func.func @transform_0(%arg0: i32, %arg1: i32) -> (i32, i32) {
    %c0_i32 = arith.constant 0 : i32
    %c0_i32_0 = arith.constant 0 : i32
    return %arg0, %c0_i32 : i32, i32
  }
  func.func @transform_1(%arg0: i32, %arg1: i32) -> (i32, i32) {
    %c0_i32 = arith.constant 0 : i32
    %c0_i32_0 = arith.constant 0 : i32
    return %c0_i32, %arg1 : i32, i32
  }
  func.func @transform_2(%arg0: i32, %arg1: i32) -> (i32, i32) {
    %c0_i32 = arith.constant 0 : i32
    %c0_i32_0 = arith.constant 0 : i32
    return %c0_i32, %arg1 : i32, i32
  }
  func.func @transform_3(%arg0: i32, %arg1: i32) -> (i32, i32) {
    %c0_i32 = arith.constant 0 : i32
    return %arg0, %arg1 : i32, i32
  }
}

module attributes {stable_mosaic.version = 11 : i64} {
  func.func @_matmul_kernel_1k(%arg0: i32, %arg1: i32, %arg2: memref<128x128xbf16, #tpu.memory_space<vmem>>, %arg3: memref<128x128xbf16, #tpu.memory_space<vmem>>, %arg4: memref<1x128xf32, #tpu.memory_space<vmem>>, %arg5: memref<128x128xbf16, #tpu.memory_space<vmem>>) attributes {dimension_semantics = [#tpu.dimension_semantics<parallel>, #tpu.dimension_semantics<parallel>], iteration_bounds = array<i64: 1, 1>, scalar_prefetch = 0 : i64, scratch_operands = 0 : i64, tpu.core_type = #tpu.core_type<tc>, window_params = [{transform_indices = @transform_0, window_bounds = array<i64: 128, 128>}, {transform_indices = @transform_1, window_bounds = array<i64: 128, 128>}, {transform_indices = @transform_2, window_bounds = array<i64: 1, 128>}, {transform_indices = @transform_3, window_bounds = array<i64: 128, 128>}]} {
    %c0 = arith.constant 0 : index
    %c0_0 = arith.constant 0 : index
    %0 = vector.load %arg2[%c0, %c0_0] : memref<128x128xbf16, #tpu.memory_space<vmem>>, vector<128x128xbf16>
    %c0_1 = arith.constant 0 : index
    %c0_2 = arith.constant 0 : index
    %1 = vector.load %arg3[%c0_1, %c0_2] : memref<128x128xbf16, #tpu.memory_space<vmem>>, vector<128x128xbf16>
    %cst = arith.constant dense<0.000000e+00> : vector<128x128xf32>
    %2 = tpu.matmul %0, %1, %cst {dimension_numbers = #tpu.dot_dimension_numbers<[1], [0], [0], [1], [0, 0, 1, 1], [], []>} : vector<128x128xbf16>, vector<128x128xbf16>, vector<128x128xf32> -> vector<128x128xf32>
    %c0_3 = arith.constant 0 : index
    %c0_4 = arith.constant 0 : index
    %3 = vector.load %arg4[%c0_3, %c0_4] : memref<1x128xf32, #tpu.memory_space<vmem>>, vector<1x128xf32>
    %4 = vector.broadcast %3 : vector<1x128xf32> to vector<128x128xf32>
    %5 = arith.addf %2, %4 : vector<128x128xf32>
    %6 = arith.truncf %5 : vector<128x128xf32> to vector<128x128xbf16>
    %c0_5 = arith.constant 0 : index
    %c0_6 = arith.constant 0 : index
    %7 = vector.load %arg5[%c0_5, %c0_6] : memref<128x128xbf16, #tpu.memory_space<vmem>>, vector<128x128xbf16>
    tpu.vector_store %arg5[%c0_5, %c0_6], %6 {strides = array<i32>} : memref<128x128xbf16, #tpu.memory_space<vmem>>, vector<128x128xbf16>,
    return
  }
  func.func @transform_0(%arg0: i32, %arg1: i32) -> (i32, i32) {
    %c0_i32 = arith.constant 0 : i32
    %c0_i32_0 = arith.constant 0 : i32
    return %arg0, %c0_i32 : i32, i32
  }
  func.func @transform_1(%arg0: i32, %arg1: i32) -> (i32, i32) {
    %c0_i32 = arith.constant 0 : i32
    %c0_i32_0 = arith.constant 0 : i32
    return %c0_i32, %arg1 : i32, i32
  }
  func.func @transform_2(%arg0: i32, %arg1: i32) -> (i32, i32) {
    %c0_i32 = arith.constant 0 : i32
    %c0_i32_0 = arith.constant 0 : i32
    return %c0_i32, %arg1 : i32, i32
  }
  func.func @transform_3(%arg0: i32, %arg1: i32) -> (i32, i32) {
    %c0_i32 = arith.constant 0 : i32
    return %arg0, %arg1 : i32, i32
  }
}

module attributes {stable_mosaic.version = 11 : i64} {
  func.func @kernel(%arg0: i32, %arg1: i32, %arg2: memref<1x8x8x48xbf16, #tpu.memory_space<vmem>>, %arg3: memref<1x8x11x48xbf16, #tpu.memory_space<vmem>>, %arg4: memref<1x4x8x8xbf16, #tpu.memory_space<vmem>>, %arg5: memref<8x11x48xf32, #tpu.memory_space<vmem>>) attributes {dimension_semantics = [#tpu.dimension_semantics<parallel>, #tpu.dimension_semantics<parallel>], iteration_bounds = array<i64: 1, 1>, scalar_prefetch = 0 : i64, scratch_operands = 1 : i64, tpu.core_type = #tpu.core_type<tc>, window_params = [{transform_indices = @transform_0, window_bounds = array<i64: 1, 8, 8, 48>}, {transform_indices = @transform_1, window_bounds = array<i64: 1, 8, 11, 48>}, {transform_indices = @transform_2, window_bounds = array<i64: 1, 4, 8, 8>}]} {
    %c0 = arith.constant 0 : index
    %c0_0 = arith.constant 0 : index
    %c0_1 = arith.constant 0 : index
    %c0_2 = arith.constant 0 : index
    %0 = vector.load %arg2[%c0, %c0_0, %c0_1, %c0_2] : memref<1x8x8x48xbf16, #tpu.memory_space<vmem>>, vector<1x8x8x48xbf16>
    %1 = vector.shape_cast %0 : vector<1x8x8x48xbf16> to vector<8x8x48xbf16>
    %2 = arith.extf %1 : vector<8x8x48xbf16> to vector<8x8x48xf32>
    %3 = arith.mulf %2, %2 : vector<8x8x48xf32>
    %cst = arith.constant dense<0.000000e+00> : vector<8x8xf32>
    %4 = vector.multi_reduction <add>, %3, %cst [2] : vector<8x8x48xf32> to vector<8x8xf32>
    %5 = vector.shape_cast %4 : vector<8x8xf32> to vector<8x8x1xf32>
    %6 = math.sqrt %5 : vector<8x8x1xf32>
    %cst_3 = arith.constant 9.99999974E-6 : f32
    %7 = vector.broadcast %cst_3 : f32 to vector<8x8x1xf32>
    %8 = arith.addf %6, %7 : vector<8x8x1xf32>
    %9 = tpu.reciprocal %8 {approx = true} : vector<8x8x1xf32> -> vector<8x8x1xf32>
    %10 = vector.broadcast %9 : vector<8x8x1xf32> to vector<8x8x48xf32>
    %11 = arith.mulf %2, %10 : vector<8x8x48xf32>
    %c0_4 = arith.constant 0 : index
    %c0_5 = arith.constant 0 : index
    %c0_6 = arith.constant 0 : index
    %c0_7 = arith.constant 0 : index
    %12 = vector.load %arg3[%c0_4, %c0_5, %c0_6, %c0_7] : memref<1x8x11x48xbf16, #tpu.memory_space<vmem>>, vector<1x8x11x48xbf16>
    %13 = vector.shape_cast %12 : vector<1x8x11x48xbf16> to vector<8x11x48xbf16>
    %14 = arith.extf %13 : vector<8x11x48xbf16> to vector<8x11x48xf32>
    %15 = arith.mulf %14, %14 : vector<8x11x48xf32>
    %cst_8 = arith.constant dense<0.000000e+00> : vector<8x11xf32>
    %16 = vector.multi_reduction <add>, %15, %cst_8 [2] : vector<8x11x48xf32> to vector<8x11xf32>
    %17 = vector.shape_cast %16 : vector<8x11xf32> to vector<8x11x1xf32>
    %18 = math.sqrt %17 : vector<8x11x1xf32>
    %cst_9 = arith.constant 9.99999974E-6 : f32
    %19 = vector.broadcast %cst_9 : f32 to vector<8x11x1xf32>
    %20 = arith.addf %18, %19 : vector<8x11x1xf32>
    %21 = tpu.reciprocal %20 {approx = true} : vector<8x11x1xf32> -> vector<8x11x1xf32>
    %22 = vector.broadcast %21 : vector<8x11x1xf32> to vector<8x11x48xf32>
    %23 = arith.mulf %14, %22 : vector<8x11x48xf32>
    %c0_10 = arith.constant 0 : index
    %c0_11 = arith.constant 0 : index
    %c0_12 = arith.constant 0 : index
    %24 = vector.load %arg5[%c0_10, %c0_11, %c0_12] : memref<8x11x48xf32, #tpu.memory_space<vmem>>, vector<8x11x48xf32>
    tpu.vector_store %arg5[%c0_10, %c0_11, %c0_12], %23 {strides = array<i32>} : memref<8x11x48xf32, #tpu.memory_space<vmem>>, vector<8x11x48xf32>,
    %c0_13 = arith.constant 0 : index
    %c3 = arith.constant 3 : index
    %c0_14 = arith.constant 0 : index
    %25 = vector.load %arg5[%c0_13, %c3, %c0_14] : memref<8x11x48xf32, #tpu.memory_space<vmem>>, vector<8x8x48xf32>
    %26 = arith.mulf %11, %25 : vector<8x8x48xf32>
    %cst_15 = arith.constant dense<0.000000e+00> : vector<8x8xf32>
    %27 = vector.multi_reduction <add>, %26, %cst_15 [2] : vector<8x8x48xf32> to vector<8x8xf32>
    %cst_16 = arith.constant 0.020833334 : f32
    %28 = vector.broadcast %cst_16 : f32 to vector<8x8xf32>
    %29 = arith.mulf %27, %28 : vector<8x8xf32>
    %30 = arith.truncf %29 : vector<8x8xf32> to vector<8x8xbf16>
    %c0_17 = arith.constant 0 : index
    %c0_18 = arith.constant 0 : index
    %c0_19 = arith.constant 0 : index
    %c0_20 = arith.constant 0 : index
    %31 = vector.load %arg4[%c0_17, %c0_18, %c0_19, %c0_20] : memref<1x4x8x8xbf16, #tpu.memory_space<vmem>>, vector<1x1x8x8xbf16>
    %32 = vector.shape_cast %31 : vector<1x1x8x8xbf16> to vector<8x8xbf16>
    %33 = vector.shape_cast %30 : vector<8x8xbf16> to vector<1x1x8x8xbf16>
    tpu.vector_store %arg4[%c0_17, %c0_18, %c0_19, %c0_20], %33 {strides = array<i32>} : memref<1x4x8x8xbf16, #tpu.memory_space<vmem>>, vector<1x1x8x8xbf16>,
    %c0_21 = arith.constant 0 : index
    %c2 = arith.constant 2 : index
    %c0_22 = arith.constant 0 : index
    %34 = vector.load %arg5[%c0_21, %c2, %c0_22] : memref<8x11x48xf32, #tpu.memory_space<vmem>>, vector<8x8x48xf32>
    %35 = arith.mulf %11, %34 : vector<8x8x48xf32>
    %cst_23 = arith.constant dense<0.000000e+00> : vector<8x8xf32>
    %36 = vector.multi_reduction <add>, %35, %cst_23 [2] : vector<8x8x48xf32> to vector<8x8xf32>
    %cst_24 = arith.constant 0.020833334 : f32
    %37 = vector.broadcast %cst_24 : f32 to vector<8x8xf32>
    %38 = arith.mulf %36, %37 : vector<8x8xf32>
    %39 = arith.truncf %38 : vector<8x8xf32> to vector<8x8xbf16>
    %c0_25 = arith.constant 0 : index
    %c1 = arith.constant 1 : index
    %c0_26 = arith.constant 0 : index
    %c0_27 = arith.constant 0 : index
    %40 = vector.load %arg4[%c0_25, %c1, %c0_26, %c0_27] : memref<1x4x8x8xbf16, #tpu.memory_space<vmem>>, vector<1x1x8x8xbf16>
    %41 = vector.shape_cast %40 : vector<1x1x8x8xbf16> to vector<8x8xbf16>
    %42 = vector.shape_cast %39 : vector<8x8xbf16> to vector<1x1x8x8xbf16>
    tpu.vector_store %arg4[%c0_25, %c1, %c0_26, %c0_27], %42 {strides = array<i32>} : memref<1x4x8x8xbf16, #tpu.memory_space<vmem>>, vector<1x1x8x8xbf16>,
    %c0_28 = arith.constant 0 : index
    %c1_29 = arith.constant 1 : index
    %c0_30 = arith.constant 0 : index
    %43 = vector.load %arg5[%c0_28, %c1_29, %c0_30] : memref<8x11x48xf32, #tpu.memory_space<vmem>>, vector<8x8x48xf32>
    %44 = arith.mulf %11, %43 : vector<8x8x48xf32>
    %cst_31 = arith.constant dense<0.000000e+00> : vector<8x8xf32>
    %45 = vector.multi_reduction <add>, %44, %cst_31 [2] : vector<8x8x48xf32> to vector<8x8xf32>
    %cst_32 = arith.constant 0.020833334 : f32
    %46 = vector.broadcast %cst_32 : f32 to vector<8x8xf32>
    %47 = arith.mulf %45, %46 : vector<8x8xf32>
    %48 = arith.truncf %47 : vector<8x8xf32> to vector<8x8xbf16>
    %c0_33 = arith.constant 0 : index
    %c2_34 = arith.constant 2 : index
    %c0_35 = arith.constant 0 : index
    %c0_36 = arith.constant 0 : index
    %49 = vector.load %arg4[%c0_33, %c2_34, %c0_35, %c0_36] : memref<1x4x8x8xbf16, #tpu.memory_space<vmem>>, vector<1x1x8x8xbf16>
    %50 = vector.shape_cast %49 : vector<1x1x8x8xbf16> to vector<8x8xbf16>
    %51 = vector.shape_cast %48 : vector<8x8xbf16> to vector<1x1x8x8xbf16>
    tpu.vector_store %arg4[%c0_33, %c2_34, %c0_35, %c0_36], %51 {strides = array<i32>} : memref<1x4x8x8xbf16, #tpu.memory_space<vmem>>, vector<1x1x8x8xbf16>,
    %c0_37 = arith.constant 0 : index
    %c0_38 = arith.constant 0 : index
    %c0_39 = arith.constant 0 : index
    %52 = vector.load %arg5[%c0_37, %c0_38, %c0_39] : memref<8x11x48xf32, #tpu.memory_space<vmem>>, vector<8x8x48xf32>
    %53 = arith.mulf %11, %52 : vector<8x8x48xf32>
    %cst_40 = arith.constant dense<0.000000e+00> : vector<8x8xf32>
    %54 = vector.multi_reduction <add>, %53, %cst_40 [2] : vector<8x8x48xf32> to vector<8x8xf32>
    %cst_41 = arith.constant 0.020833334 : f32
    %55 = vector.broadcast %cst_41 : f32 to vector<8x8xf32>
    %56 = arith.mulf %54, %55 : vector<8x8xf32>
    %57 = arith.truncf %56 : vector<8x8xf32> to vector<8x8xbf16>
    %c0_42 = arith.constant 0 : index
    %c3_43 = arith.constant 3 : index
    %c0_44 = arith.constant 0 : index
    %c0_45 = arith.constant 0 : index
    %58 = vector.load %arg4[%c0_42, %c3_43, %c0_44, %c0_45] : memref<1x4x8x8xbf16, #tpu.memory_space<vmem>>, vector<1x1x8x8xbf16>
    %59 = vector.shape_cast %58 : vector<1x1x8x8xbf16> to vector<8x8xbf16>
    %60 = vector.shape_cast %57 : vector<8x8xbf16> to vector<1x1x8x8xbf16>
    tpu.vector_store %arg4[%c0_42, %c3_43, %c0_44, %c0_45], %60 {strides = array<i32>} : memref<1x4x8x8xbf16, #tpu.memory_space<vmem>>, vector<1x1x8x8xbf16>,
    return
  }
  func.func @transform_0(%arg0: i32, %arg1: i32) -> (i32, i32, i32, i32) {
    %c0_i32 = arith.constant 0 : i32
    %c0_i32_0 = arith.constant 0 : i32
    %c0_i32_1 = arith.constant 0 : i32
    return %arg0, %arg1, %c0_i32, %c0_i32_0 : i32, i32, i32, i32
  }
  func.func @transform_1(%arg0: i32, %arg1: i32) -> (i32, i32, i32, i32) {
    %c0_i32 = arith.constant 0 : i32
    %c0_i32_0 = arith.constant 0 : i32
    %c0_i32_1 = arith.constant 0 : i32
    return %arg0, %arg1, %c0_i32, %c0_i32_0 : i32, i32, i32, i32
  }
  func.func @transform_2(%arg0: i32, %arg1: i32) -> (i32, i32, i32, i32) {
    %c0_i32 = arith.constant 0 : i32
    %c0_i32_0 = arith.constant 0 : i32
    %c0_i32_1 = arith.constant 0 : i32
    return %arg0, %c0_i32, %arg1, %c0_i32_0 : i32, i32, i32, i32
  }
}

module attributes {stable_mosaic.version = 11 : i64} {
  func.func @_matmul_kernel_1k(%arg0: i32, %arg1: i32, %arg2: memref<256x256xbf16, #tpu.memory_space<vmem>>, %arg3: memref<256x128xbf16, #tpu.memory_space<vmem>>, %arg4: memref<1x128xf32, #tpu.memory_space<vmem>>, %arg5: memref<256x128xbf16, #tpu.memory_space<vmem>>) attributes {dimension_semantics = [#tpu.dimension_semantics<parallel>, #tpu.dimension_semantics<parallel>], iteration_bounds = array<i64: 1, 1>, scalar_prefetch = 0 : i64, scratch_operands = 0 : i64, tpu.core_type = #tpu.core_type<tc>, window_params = [{transform_indices = @transform_0, window_bounds = array<i64: 256, 256>}, {transform_indices = @transform_1, window_bounds = array<i64: 256, 128>}, {transform_indices = @transform_2, window_bounds = array<i64: 1, 128>}, {transform_indices = @transform_3, window_bounds = array<i64: 256, 128>}]} {
    %c0 = arith.constant 0 : index
    %c0_0 = arith.constant 0 : index
    %0 = vector.load %arg2[%c0, %c0_0] : memref<256x256xbf16, #tpu.memory_space<vmem>>, vector<256x256xbf16>
    %c0_1 = arith.constant 0 : index
    %c0_2 = arith.constant 0 : index
    %1 = vector.load %arg3[%c0_1, %c0_2] : memref<256x128xbf16, #tpu.memory_space<vmem>>, vector<256x128xbf16>
    %cst = arith.constant dense<0.000000e+00> : vector<256x128xf32>
    %2 = tpu.matmul %0, %1, %cst {dimension_numbers = #tpu.dot_dimension_numbers<[1], [0], [0], [1], [0, 0, 1, 1], [], []>} : vector<256x256xbf16>, vector<256x128xbf16>, vector<256x128xf32> -> vector<256x128xf32>
    %c0_3 = arith.constant 0 : index
    %c0_4 = arith.constant 0 : index
    %3 = vector.load %arg4[%c0_3, %c0_4] : memref<1x128xf32, #tpu.memory_space<vmem>>, vector<1x128xf32>
    %4 = vector.broadcast %3 : vector<1x128xf32> to vector<256x128xf32>
    %5 = arith.addf %2, %4 : vector<256x128xf32>
    %cst_5 = arith.constant 0.000000e+00 : f32
    %6 = vector.broadcast %cst_5 : f32 to vector<256x128xf32>
    %7 = arith.maximumf %5, %6 : vector<256x128xf32>
    %8 = arith.truncf %7 : vector<256x128xf32> to vector<256x128xbf16>
    %c0_6 = arith.constant 0 : index
    %c0_7 = arith.constant 0 : index
    %9 = vector.load %arg5[%c0_6, %c0_7] : memref<256x128xbf16, #tpu.memory_space<vmem>>, vector<256x128xbf16>
    tpu.vector_store %arg5[%c0_6, %c0_7], %8 {strides = array<i32>} : memref<256x128xbf16, #tpu.memory_space<vmem>>, vector<256x128xbf16>,
    return
  }
  func.func @transform_0(%arg0: i32, %arg1: i32) -> (i32, i32) {
    %c0_i32 = arith.constant 0 : i32
    %c0_i32_0 = arith.constant 0 : i32
    return %arg0, %c0_i32 : i32, i32
  }
  func.func @transform_1(%arg0: i32, %arg1: i32) -> (i32, i32) {
    %c0_i32 = arith.constant 0 : i32
    %c0_i32_0 = arith.constant 0 : i32
    return %c0_i32, %arg1 : i32, i32
  }
  func.func @transform_2(%arg0: i32, %arg1: i32) -> (i32, i32) {
    %c0_i32 = arith.constant 0 : i32
    %c0_i32_0 = arith.constant 0 : i32
    return %c0_i32, %arg1 : i32, i32
  }
  func.func @transform_3(%arg0: i32, %arg1: i32) -> (i32, i32) {
    %c0_i32 = arith.constant 0 : i32
    return %arg0, %arg1 : i32, i32
  }
}

module attributes {stable_mosaic.version = 11 : i64} {
  func.func @_hg2_regress_kernel(%arg0: i32, %arg1: i32, %arg2: memref<432xf32, #tpu.memory_space<smem>>, %arg3: memref<1x1x16x10x10xbf16, #tpu.memory_space<vmem>>, %arg4: memref<1x1x16x10x10xbf16, #tpu.memory_space<vmem>>, %arg5: memref<1x1x16x10x10xbf16, #tpu.memory_space<vmem>>, %arg6: memref<1x8x8xf32, #tpu.memory_space<vmem>>, %arg7: memref<8x8xf32, #tpu.memory_space<vmem>>, %arg8: memref<8x8xf32, #tpu.memory_space<vmem>>, %arg9: memref<8x8xf32, #tpu.memory_space<vmem>>, %arg10: memref<8x8xf32, #tpu.memory_space<vmem>>) attributes {dimension_semantics = [#tpu.dimension_semantics<parallel>, #tpu.dimension_semantics<arbitrary>], iteration_bounds = array<i64: 1, 4>, scalar_prefetch = 0 : i64, scratch_operands = 4 : i64, tpu.core_type = #tpu.core_type<tc>, window_params = [{transform_indices = @transform_0, window_bounds = array<i64: 432>}, {transform_indices = @transform_1, window_bounds = array<i64: 1, 1, 16, 10, 10>}, {transform_indices = @transform_2, window_bounds = array<i64: 1, 1, 16, 10, 10>}, {transform_indices = @transform_3, window_bounds = array<i64: 1, 1, 16, 10, 10>}, {transform_indices = @transform_4, window_bounds = array<i64: 1, 8, 8>}]} {
    %c0_i32 = arith.constant 0 : i32
    %0 = arith.cmpi eq, %arg1, %c0_i32 : i32
    %1 = arith.extui %0 : i1 to i32
    %c0_i32_0 = arith.constant 0 : i32
    %2 = arith.cmpi ne, %1, %c0_i32_0 : i32
    scf.if %2 {
      %cst_20 = arith.constant -1.000000e+30 : f32
      %30 = vector.broadcast %cst_20 : f32 to vector<8x8xf32>
      %c0_21 = arith.constant 0 : index
      %c0_22 = arith.constant 0 : index
      %31 = vector.load %arg7[%c0_21, %c0_22] : memref<8x8xf32, #tpu.memory_space<vmem>>, vector<8x8xf32>
      tpu.vector_store %arg7[%c0_21, %c0_22], %30 {strides = array<i32>} : memref<8x8xf32, #tpu.memory_space<vmem>>, vector<8x8xf32>,
      %cst_23 = arith.constant -1.000000e+30 : f32
      %32 = vector.broadcast %cst_23 : f32 to vector<8x8xf32>
      %c0_24 = arith.constant 0 : index
      %c0_25 = arith.constant 0 : index
      %33 = vector.load %arg9[%c0_24, %c0_25] : memref<8x8xf32, #tpu.memory_space<vmem>>, vector<8x8xf32>
      tpu.vector_store %arg9[%c0_24, %c0_25], %32 {strides = array<i32>} : memref<8x8xf32, #tpu.memory_space<vmem>>, vector<8x8xf32>,
      %cst_26 = arith.constant 0.000000e+00 : f32
      %34 = vector.broadcast %cst_26 : f32 to vector<8x8xf32>
      %c0_27 = arith.constant 0 : index
      %c0_28 = arith.constant 0 : index
      %35 = vector.load %arg8[%c0_27, %c0_28] : memref<8x8xf32, #tpu.memory_space<vmem>>, vector<8x8xf32>
      tpu.vector_store %arg8[%c0_27, %c0_28], %34 {strides = array<i32>} : memref<8x8xf32, #tpu.memory_space<vmem>>, vector<8x8xf32>,
      %cst_29 = arith.constant 0.000000e+00 : f32
      %36 = vector.broadcast %cst_29 : f32 to vector<8x8xf32>
      %c0_30 = arith.constant 0 : index
      %c0_31 = arith.constant 0 : index
      %37 = vector.load %arg10[%c0_30, %c0_31] : memref<8x8xf32, #tpu.memory_space<vmem>>, vector<8x8xf32>
      tpu.vector_store %arg10[%c0_30, %c0_31], %36 {strides = array<i32>} : memref<8x8xf32, #tpu.memory_space<vmem>>, vector<8x8xf32>,
    } else {
    }
    %cst = arith.constant 0.000000e+00 : f32
    %3 = vector.broadcast %cst : f32 to vector<8x8xf32>
    %c0_i32_1 = arith.constant 0 : i32
    %c16_i32 = arith.constant 16 : i32
    %4 = arith.addi %c0_i32_1, %c16_i32 : i32
    %c1_i32 = arith.constant 1 : i32
    %5 = scf.for %arg11 = %c0_i32_1 to %4 step %c1_i32 iter_args(%arg12 = %3) -> (vector<8x8xf32>)  : i32 {
      %c0_20 = arith.constant 0 : index
      %c0_21 = arith.constant 0 : index
      %30 = arith.index_cast %arg11 : i32 to index
      %c0_22 = arith.constant 0 : index
      %c0_23 = arith.constant 0 : index
      %31 = vector.load %arg3[%c0_20, %c0_21, %30, %c0_22, %c0_23] : memref<1x1x16x10x10xbf16, #tpu.memory_space<vmem>>, vector<1x1x1x10x10xbf16>
      %32 = vector.shape_cast %31 : vector<1x1x1x10x10xbf16> to vector<10x10xbf16>
      %33 = arith.extf %32 : vector<10x10xbf16> to vector<10x10xf32>
      %c0_i32_24 = arith.constant 0 : i32
      %34 = arith.addi %c0_i32_24, %arg11 : i32
      %35 = arith.index_cast %34 : i32 to index
      %36 = memref.load %arg2[%35] : memref<432xf32, #tpu.memory_space<smem>>
      %37 = vector.extract_strided_slice %33 {offsets = [0, 0], sizes = [8, 8], strides = [1, 1]} : vector<10x10xf32> to vector<8x8xf32>
      %38 = vector.broadcast %36 : f32 to vector<8x8xf32>
      %39 = arith.mulf %37, %38 : vector<8x8xf32>
      %40 = arith.addf %arg12, %39 : vector<8x8xf32>
      %c16_i32_25 = arith.constant 16 : i32
      %41 = arith.addi %c16_i32_25, %arg11 : i32
      %42 = arith.index_cast %41 : i32 to index
      %43 = memref.load %arg2[%42] : memref<432xf32, #tpu.memory_space<smem>>
      %44 = vector.extract_strided_slice %33 {offsets = [0, 1], sizes = [8, 8], strides = [1, 1]} : vector<10x10xf32> to vector<8x8xf32>
      %45 = vector.broadcast %43 : f32 to vector<8x8xf32>
      %46 = arith.mulf %44, %45 : vector<8x8xf32>
      %47 = arith.addf %40, %46 : vector<8x8xf32>
      %c32_i32 = arith.constant 32 : i32
      %48 = arith.addi %c32_i32, %arg11 : i32
      %49 = arith.index_cast %48 : i32 to index
      %50 = memref.load %arg2[%49] : memref<432xf32, #tpu.memory_space<smem>>
      %51 = vector.extract_strided_slice %33 {offsets = [0, 2], sizes = [8, 8], strides = [1, 1]} : vector<10x10xf32> to vector<8x8xf32>
      %52 = vector.broadcast %50 : f32 to vector<8x8xf32>
      %53 = arith.mulf %51, %52 : vector<8x8xf32>
      %54 = arith.addf %47, %53 : vector<8x8xf32>
      %c48_i32 = arith.constant 48 : i32
      %55 = arith.addi %c48_i32, %arg11 : i32
      %56 = arith.index_cast %55 : i32 to index
      %57 = memref.load %arg2[%56] : memref<432xf32, #tpu.memory_space<smem>>
      %58 = vector.extract_strided_slice %33 {offsets = [1, 0], sizes = [8, 8], strides = [1, 1]} : vector<10x10xf32> to vector<8x8xf32>
      %59 = vector.broadcast %57 : f32 to vector<8x8xf32>
      %60 = arith.mulf %58, %59 : vector<8x8xf32>
      %61 = arith.addf %54, %60 : vector<8x8xf32>
      %c64_i32 = arith.constant 64 : i32
      %62 = arith.addi %c64_i32, %arg11 : i32
      %63 = arith.index_cast %62 : i32 to index
      %64 = memref.load %arg2[%63] : memref<432xf32, #tpu.memory_space<smem>>
      %65 = vector.extract_strided_slice %33 {offsets = [1, 1], sizes = [8, 8], strides = [1, 1]} : vector<10x10xf32> to vector<8x8xf32>
      %66 = vector.broadcast %64 : f32 to vector<8x8xf32>
      %67 = arith.mulf %65, %66 : vector<8x8xf32>
      %68 = arith.addf %61, %67 : vector<8x8xf32>
      %c80_i32 = arith.constant 80 : i32
      %69 = arith.addi %c80_i32, %arg11 : i32
      %70 = arith.index_cast %69 : i32 to index
      %71 = memref.load %arg2[%70] : memref<432xf32, #tpu.memory_space<smem>>
      %72 = vector.extract_strided_slice %33 {offsets = [1, 2], sizes = [8, 8], strides = [1, 1]} : vector<10x10xf32> to vector<8x8xf32>
      %73 = vector.broadcast %71 : f32 to vector<8x8xf32>
      %74 = arith.mulf %72, %73 : vector<8x8xf32>
      %75 = arith.addf %68, %74 : vector<8x8xf32>
      %c96_i32 = arith.constant 96 : i32
      %76 = arith.addi %c96_i32, %arg11 : i32
      %77 = arith.index_cast %76 : i32 to index
      %78 = memref.load %arg2[%77] : memref<432xf32, #tpu.memory_space<smem>>
      %79 = vector.extract_strided_slice %33 {offsets = [2, 0], sizes = [8, 8], strides = [1, 1]} : vector<10x10xf32> to vector<8x8xf32>
      %80 = vector.broadcast %78 : f32 to vector<8x8xf32>
      %81 = arith.mulf %79, %80 : vector<8x8xf32>
      %82 = arith.addf %75, %81 : vector<8x8xf32>
      %c112_i32 = arith.constant 112 : i32
      %83 = arith.addi %c112_i32, %arg11 : i32
      %84 = arith.index_cast %83 : i32 to index
      %85 = memref.load %arg2[%84] : memref<432xf32, #tpu.memory_space<smem>>
      %86 = vector.extract_strided_slice %33 {offsets = [2, 1], sizes = [8, 8], strides = [1, 1]} : vector<10x10xf32> to vector<8x8xf32>
      %87 = vector.broadcast %85 : f32 to vector<8x8xf32>
      %88 = arith.mulf %86, %87 : vector<8x8xf32>
      %89 = arith.addf %82, %88 : vector<8x8xf32>
      %c128_i32 = arith.constant 128 : i32
      %90 = arith.addi %c128_i32, %arg11 : i32
      %91 = arith.index_cast %90 : i32 to index
      %92 = memref.load %arg2[%91] : memref<432xf32, #tpu.memory_space<smem>>
      %93 = vector.extract_strided_slice %33 {offsets = [2, 2], sizes = [8, 8], strides = [1, 1]} : vector<10x10xf32> to vector<8x8xf32>
      %94 = vector.broadcast %92 : f32 to vector<8x8xf32>
      %95 = arith.mulf %93, %94 : vector<8x8xf32>
      %96 = arith.addf %89, %95 : vector<8x8xf32>
      %c0_26 = arith.constant 0 : index
      %c0_27 = arith.constant 0 : index
      %97 = arith.index_cast %arg11 : i32 to index
      %c0_28 = arith.constant 0 : index
      %c0_29 = arith.constant 0 : index
      %98 = vector.load %arg4[%c0_26, %c0_27, %97, %c0_28, %c0_29] : memref<1x1x16x10x10xbf16, #tpu.memory_space<vmem>>, vector<1x1x1x10x10xbf16>
      %99 = vector.shape_cast %98 : vector<1x1x1x10x10xbf16> to vector<10x10xbf16>
      %100 = arith.extf %99 : vector<10x10xbf16> to vector<10x10xf32>
      %c144_i32 = arith.constant 144 : i32
      %101 = arith.addi %c144_i32, %arg11 : i32
      %102 = arith.index_cast %101 : i32 to index
      %103 = memref.load %arg2[%102] : memref<432xf32, #tpu.memory_space<smem>>
      %104 = vector.extract_strided_slice %100 {offsets = [0, 0], sizes = [8, 8], strides = [1, 1]} : vector<10x10xf32> to vector<8x8xf32>
      %105 = vector.broadcast %103 : f32 to vector<8x8xf32>
      %106 = arith.mulf %104, %105 : vector<8x8xf32>
      %107 = arith.addf %96, %106 : vector<8x8xf32>
      %c160_i32 = arith.constant 160 : i32
      %108 = arith.addi %c160_i32, %arg11 : i32
      %109 = arith.index_cast %108 : i32 to index
      %110 = memref.load %arg2[%109] : memref<432xf32, #tpu.memory_space<smem>>
      %111 = vector.extract_strided_slice %100 {offsets = [0, 1], sizes = [8, 8], strides = [1, 1]} : vector<10x10xf32> to vector<8x8xf32>
      %112 = vector.broadcast %110 : f32 to vector<8x8xf32>
      %113 = arith.mulf %111, %112 : vector<8x8xf32>
      %114 = arith.addf %107, %113 : vector<8x8xf32>
      %c176_i32 = arith.constant 176 : i32
      %115 = arith.addi %c176_i32, %arg11 : i32
      %116 = arith.index_cast %115 : i32 to index
      %117 = memref.load %arg2[%116] : memref<432xf32, #tpu.memory_space<smem>>
      %118 = vector.extract_strided_slice %100 {offsets = [0, 2], sizes = [8, 8], strides = [1, 1]} : vector<10x10xf32> to vector<8x8xf32>
      %119 = vector.broadcast %117 : f32 to vector<8x8xf32>
      %120 = arith.mulf %118, %119 : vector<8x8xf32>
      %121 = arith.addf %114, %120 : vector<8x8xf32>
      %c192_i32 = arith.constant 192 : i32
      %122 = arith.addi %c192_i32, %arg11 : i32
      %123 = arith.index_cast %122 : i32 to index
      %124 = memref.load %arg2[%123] : memref<432xf32, #tpu.memory_space<smem>>
      %125 = vector.extract_strided_slice %100 {offsets = [1, 0], sizes = [8, 8], strides = [1, 1]} : vector<10x10xf32> to vector<8x8xf32>
      %126 = vector.broadcast %124 : f32 to vector<8x8xf32>
      %127 = arith.mulf %125, %126 : vector<8x8xf32>
      %128 = arith.addf %121, %127 : vector<8x8xf32>
      %c208_i32 = arith.constant 208 : i32
      %129 = arith.addi %c208_i32, %arg11 : i32
      %130 = arith.index_cast %129 : i32 to index
      %131 = memref.load %arg2[%130] : memref<432xf32, #tpu.memory_space<smem>>
      %132 = vector.extract_strided_slice %100 {offsets = [1, 1], sizes = [8, 8], strides = [1, 1]} : vector<10x10xf32> to vector<8x8xf32>
      %133 = vector.broadcast %131 : f32 to vector<8x8xf32>
      %134 = arith.mulf %132, %133 : vector<8x8xf32>
      %135 = arith.addf %128, %134 : vector<8x8xf32>
      %c224_i32 = arith.constant 224 : i32
      %136 = arith.addi %c224_i32, %arg11 : i32
      %137 = arith.index_cast %136 : i32 to index
      %138 = memref.load %arg2[%137] : memref<432xf32, #tpu.memory_space<smem>>
      %139 = vector.extract_strided_slice %100 {offsets = [1, 2], sizes = [8, 8], strides = [1, 1]} : vector<10x10xf32> to vector<8x8xf32>
      %140 = vector.broadcast %138 : f32 to vector<8x8xf32>
      %141 = arith.mulf %139, %140 : vector<8x8xf32>
      %142 = arith.addf %135, %141 : vector<8x8xf32>
      %c240_i32 = arith.constant 240 : i32
      %143 = arith.addi %c240_i32, %arg11 : i32
      %144 = arith.index_cast %143 : i32 to index
      %145 = memref.load %arg2[%144] : memref<432xf32, #tpu.memory_space<smem>>
      %146 = vector.extract_strided_slice %100 {offsets = [2, 0], sizes = [8, 8], strides = [1, 1]} : vector<10x10xf32> to vector<8x8xf32>
      %147 = vector.broadcast %145 : f32 to vector<8x8xf32>
      %148 = arith.mulf %146, %147 : vector<8x8xf32>
      %149 = arith.addf %142, %148 : vector<8x8xf32>
      %c256_i32 = arith.constant 256 : i32
      %150 = arith.addi %c256_i32, %arg11 : i32
      %151 = arith.index_cast %150 : i32 to index
      %152 = memref.load %arg2[%151] : memref<432xf32, #tpu.memory_space<smem>>
      %153 = vector.extract_strided_slice %100 {offsets = [2, 1], sizes = [8, 8], strides = [1, 1]} : vector<10x10xf32> to vector<8x8xf32>
      %154 = vector.broadcast %152 : f32 to vector<8x8xf32>
      %155 = arith.mulf %153, %154 : vector<8x8xf32>
      %156 = arith.addf %149, %155 : vector<8x8xf32>
      %c272_i32 = arith.constant 272 : i32
      %157 = arith.addi %c272_i32, %arg11 : i32
      %158 = arith.index_cast %157 : i32 to index
      %159 = memref.load %arg2[%158] : memref<432xf32, #tpu.memory_space<smem>>
      %160 = vector.extract_strided_slice %100 {offsets = [2, 2], sizes = [8, 8], strides = [1, 1]} : vector<10x10xf32> to vector<8x8xf32>
      %161 = vector.broadcast %159 : f32 to vector<8x8xf32>
      %162 = arith.mulf %160, %161 : vector<8x8xf32>
      %163 = arith.addf %156, %162 : vector<8x8xf32>
      %c0_30 = arith.constant 0 : index
      %c0_31 = arith.constant 0 : index
      %164 = arith.index_cast %arg11 : i32 to index
      %c0_32 = arith.constant 0 : index
      %c0_33 = arith.constant 0 : index
      %165 = vector.load %arg5[%c0_30, %c0_31, %164, %c0_32, %c0_33] : memref<1x1x16x10x10xbf16, #tpu.memory_space<vmem>>, vector<1x1x1x10x10xbf16>
      %166 = vector.shape_cast %165 : vector<1x1x1x10x10xbf16> to vector<10x10xbf16>
      %167 = arith.extf %166 : vector<10x10xbf16> to vector<10x10xf32>
      %c288_i32 = arith.constant 288 : i32
      %168 = arith.addi %c288_i32, %arg11 : i32
      %169 = arith.index_cast %168 : i32 to index
      %170 = memref.load %arg2[%169] : memref<432xf32, #tpu.memory_space<smem>>
      %171 = vector.extract_strided_slice %167 {offsets = [0, 0], sizes = [8, 8], strides = [1, 1]} : vector<10x10xf32> to vector<8x8xf32>
      %172 = vector.broadcast %170 : f32 to vector<8x8xf32>
      %173 = arith.mulf %171, %172 : vector<8x8xf32>
      %174 = arith.addf %163, %173 : vector<8x8xf32>
      %c304_i32 = arith.constant 304 : i32
      %175 = arith.addi %c304_i32, %arg11 : i32
      %176 = arith.index_cast %175 : i32 to index
      %177 = memref.load %arg2[%176] : memref<432xf32, #tpu.memory_space<smem>>
      %178 = vector.extract_strided_slice %167 {offsets = [0, 1], sizes = [8, 8], strides = [1, 1]} : vector<10x10xf32> to vector<8x8xf32>
      %179 = vector.broadcast %177 : f32 to vector<8x8xf32>
      %180 = arith.mulf %178, %179 : vector<8x8xf32>
      %181 = arith.addf %174, %180 : vector<8x8xf32>
      %c320_i32 = arith.constant 320 : i32
      %182 = arith.addi %c320_i32, %arg11 : i32
      %183 = arith.index_cast %182 : i32 to index
      %184 = memref.load %arg2[%183] : memref<432xf32, #tpu.memory_space<smem>>
      %185 = vector.extract_strided_slice %167 {offsets = [0, 2], sizes = [8, 8], strides = [1, 1]} : vector<10x10xf32> to vector<8x8xf32>
      %186 = vector.broadcast %184 : f32 to vector<8x8xf32>
      %187 = arith.mulf %185, %186 : vector<8x8xf32>
      %188 = arith.addf %181, %187 : vector<8x8xf32>
      %c336_i32 = arith.constant 336 : i32
      %189 = arith.addi %c336_i32, %arg11 : i32
      %190 = arith.index_cast %189 : i32 to index
      %191 = memref.load %arg2[%190] : memref<432xf32, #tpu.memory_space<smem>>
      %192 = vector.extract_strided_slice %167 {offsets = [1, 0], sizes = [8, 8], strides = [1, 1]} : vector<10x10xf32> to vector<8x8xf32>
      %193 = vector.broadcast %191 : f32 to vector<8x8xf32>
      %194 = arith.mulf %192, %193 : vector<8x8xf32>
      %195 = arith.addf %188, %194 : vector<8x8xf32>
      %c352_i32 = arith.constant 352 : i32
      %196 = arith.addi %c352_i32, %arg11 : i32
      %197 = arith.index_cast %196 : i32 to index
      %198 = memref.load %arg2[%197] : memref<432xf32, #tpu.memory_space<smem>>
      %199 = vector.extract_strided_slice %167 {offsets = [1, 1], sizes = [8, 8], strides = [1, 1]} : vector<10x10xf32> to vector<8x8xf32>
      %200 = vector.broadcast %198 : f32 to vector<8x8xf32>
      %201 = arith.mulf %199, %200 : vector<8x8xf32>
      %202 = arith.addf %195, %201 : vector<8x8xf32>
      %c368_i32 = arith.constant 368 : i32
      %203 = arith.addi %c368_i32, %arg11 : i32
      %204 = arith.index_cast %203 : i32 to index
      %205 = memref.load %arg2[%204] : memref<432xf32, #tpu.memory_space<smem>>
      %206 = vector.extract_strided_slice %167 {offsets = [1, 2], sizes = [8, 8], strides = [1, 1]} : vector<10x10xf32> to vector<8x8xf32>
      %207 = vector.broadcast %205 : f32 to vector<8x8xf32>
      %208 = arith.mulf %206, %207 : vector<8x8xf32>
      %209 = arith.addf %202, %208 : vector<8x8xf32>
      %c384_i32 = arith.constant 384 : i32
      %210 = arith.addi %c384_i32, %arg11 : i32
      %211 = arith.index_cast %210 : i32 to index
      %212 = memref.load %arg2[%211] : memref<432xf32, #tpu.memory_space<smem>>
      %213 = vector.extract_strided_slice %167 {offsets = [2, 0], sizes = [8, 8], strides = [1, 1]} : vector<10x10xf32> to vector<8x8xf32>
      %214 = vector.broadcast %212 : f32 to vector<8x8xf32>
      %215 = arith.mulf %213, %214 : vector<8x8xf32>
      %216 = arith.addf %209, %215 : vector<8x8xf32>
      %c400_i32 = arith.constant 400 : i32
      %217 = arith.addi %c400_i32, %arg11 : i32
      %218 = arith.index_cast %217 : i32 to index
      %219 = memref.load %arg2[%218] : memref<432xf32, #tpu.memory_space<smem>>
      %220 = vector.extract_strided_slice %167 {offsets = [2, 1], sizes = [8, 8], strides = [1, 1]} : vector<10x10xf32> to vector<8x8xf32>
      %221 = vector.broadcast %219 : f32 to vector<8x8xf32>
      %222 = arith.mulf %220, %221 : vector<8x8xf32>
      %223 = arith.addf %216, %222 : vector<8x8xf32>
      %c416_i32 = arith.constant 416 : i32
      %224 = arith.addi %c416_i32, %arg11 : i32
      %225 = arith.index_cast %224 : i32 to index
      %226 = memref.load %arg2[%225] : memref<432xf32, #tpu.memory_space<smem>>
      %227 = vector.extract_strided_slice %167 {offsets = [2, 2], sizes = [8, 8], strides = [1, 1]} : vector<10x10xf32> to vector<8x8xf32>
      %228 = vector.broadcast %226 : f32 to vector<8x8xf32>
      %229 = arith.mulf %227, %228 : vector<8x8xf32>
      %230 = arith.addf %223, %229 : vector<8x8xf32>
      scf.yield %230 : vector<8x8xf32>
    }
    %c16_i32_2 = arith.constant 16 : i32
    %c0 = arith.constant 0 : index
    %c0_3 = arith.constant 0 : index
    %6 = vector.load %arg7[%c0, %c0_3] : memref<8x8xf32, #tpu.memory_space<vmem>>, vector<8x8xf32>
    %c0_4 = arith.constant 0 : index
    %c0_5 = arith.constant 0 : index
    %7 = vector.load %arg8[%c0_4, %c0_5] : memref<8x8xf32, #tpu.memory_space<vmem>>, vector<8x8xf32>
    %c0_6 = arith.constant 0 : index
    %c0_7 = arith.constant 0 : index
    %8 = vector.load %arg9[%c0_6, %c0_7] : memref<8x8xf32, #tpu.memory_space<vmem>>, vector<8x8xf32>
    %c0_8 = arith.constant 0 : index
    %c0_9 = arith.constant 0 : index
    %9 = vector.load %arg10[%c0_8, %c0_9] : memref<8x8xf32, #tpu.memory_space<vmem>>, vector<8x8xf32>
    %10 = arith.sitofp %arg1 : i32 to f32
    %11 = arith.cmpf ogt, %5, %6 : vector<8x8xf32>
    %12 = arith.cmpf ogt, %5, %8 : vector<8x8xf32>
    %cst_10 = arith.constant dense<true> : vector<8x8xi1>
    %13 = arith.xori %11, %cst_10 : vector<8x8xi1>
    %14 = arith.andi %12, %13 : vector<8x8xi1>
    %15 = arith.select %14, %5, %8 : vector<8x8xi1>, vector<8x8xf32>
    %16 = arith.select %11, %6, %15 : vector<8x8xi1>, vector<8x8xf32>
    %c0_11 = arith.constant 0 : index
    %c0_12 = arith.constant 0 : index
    %17 = vector.load %arg9[%c0_11, %c0_12] : memref<8x8xf32, #tpu.memory_space<vmem>>, vector<8x8xf32>
    tpu.vector_store %arg9[%c0_11, %c0_12], %16 {strides = array<i32>} : memref<8x8xf32, #tpu.memory_space<vmem>>, vector<8x8xf32>,
    %18 = vector.broadcast %10 : f32 to vector<8x8xf32>
    %19 = arith.select %14, %18, %9 : vector<8x8xi1>, vector<8x8xf32>
    %20 = arith.select %11, %7, %19 : vector<8x8xi1>, vector<8x8xf32>
    %c0_13 = arith.constant 0 : index
    %c0_14 = arith.constant 0 : index
    %21 = vector.load %arg10[%c0_13, %c0_14] : memref<8x8xf32, #tpu.memory_space<vmem>>, vector<8x8xf32>
    tpu.vector_store %arg10[%c0_13, %c0_14], %20 {strides = array<i32>} : memref<8x8xf32, #tpu.memory_space<vmem>>, vector<8x8xf32>,
    %22 = arith.select %11, %5, %6 : vector<8x8xi1>, vector<8x8xf32>
    %c0_15 = arith.constant 0 : index
    %c0_16 = arith.constant 0 : index
    %23 = vector.load %arg7[%c0_15, %c0_16] : memref<8x8xf32, #tpu.memory_space<vmem>>, vector<8x8xf32>
    tpu.vector_store %arg7[%c0_15, %c0_16], %22 {strides = array<i32>} : memref<8x8xf32, #tpu.memory_space<vmem>>, vector<8x8xf32>,
    %24 = vector.broadcast %10 : f32 to vector<8x8xf32>
    %25 = arith.select %11, %24, %7 : vector<8x8xi1>, vector<8x8xf32>
    %c0_17 = arith.constant 0 : index
    %c0_18 = arith.constant 0 : index
    %26 = vector.load %arg8[%c0_17, %c0_18] : memref<8x8xf32, #tpu.memory_space<vmem>>, vector<8x8xf32>
    tpu.vector_store %arg8[%c0_17, %c0_18], %25 {strides = array<i32>} : memref<8x8xf32, #tpu.memory_space<vmem>>, vector<8x8xf32>,
    %c3_i32 = arith.constant 3 : i32
    %27 = arith.cmpi eq, %arg1, %c3_i32 : i32
    %28 = arith.extui %27 : i1 to i32
    %c0_i32_19 = arith.constant 0 : i32
    %29 = arith.cmpi ne, %28, %c0_i32_19 : i32
    scf.if %29 {
      %c0_20 = arith.constant 0 : index
      %c0_21 = arith.constant 0 : index
      %30 = vector.load %arg9[%c0_20, %c0_21] : memref<8x8xf32, #tpu.memory_space<vmem>>, vector<8x8xf32>
      %c0_22 = arith.constant 0 : index
      %c0_23 = arith.constant 0 : index
      %31 = vector.load %arg7[%c0_22, %c0_23] : memref<8x8xf32, #tpu.memory_space<vmem>>, vector<8x8xf32>
      %32 = arith.subf %30, %31 : vector<8x8xf32>
      %33 = math.exp %32 : vector<8x8xf32>
      %c0_24 = arith.constant 0 : index
      %c0_25 = arith.constant 0 : index
      %34 = vector.load %arg8[%c0_24, %c0_25] : memref<8x8xf32, #tpu.memory_space<vmem>>, vector<8x8xf32>
      %c0_26 = arith.constant 0 : index
      %c0_27 = arith.constant 0 : index
      %35 = vector.load %arg10[%c0_26, %c0_27] : memref<8x8xf32, #tpu.memory_space<vmem>>, vector<8x8xf32>
      %36 = arith.mulf %35, %33 : vector<8x8xf32>
      %37 = arith.addf %34, %36 : vector<8x8xf32>
      %cst_28 = arith.constant 1.000000e+00 : f32
      %38 = vector.broadcast %cst_28 : f32 to vector<8x8xf32>
      %39 = arith.addf %38, %33 : vector<8x8xf32>
      %40 = tpu.reciprocal %39 {approx = true} : vector<8x8xf32> -> vector<8x8xf32>
      %41 = arith.mulf %37, %40 : vector<8x8xf32>
      %c0_29 = arith.constant 0 : index
      %c0_30 = arith.constant 0 : index
      %c0_31 = arith.constant 0 : index
      %42 = vector.load %arg6[%c0_29, %c0_30, %c0_31] : memref<1x8x8xf32, #tpu.memory_space<vmem>>, vector<1x8x8xf32>
      %43 = vector.shape_cast %42 : vector<1x8x8xf32> to vector<8x8xf32>
      %44 = vector.shape_cast %41 : vector<8x8xf32> to vector<1x8x8xf32>
      tpu.vector_store %arg6[%c0_29, %c0_30, %c0_31], %44 {strides = array<i32>} : memref<1x8x8xf32, #tpu.memory_space<vmem>>, vector<1x8x8xf32>,
    } else {
    }
    return
  }
  func.func @transform_0(%arg0: i32, %arg1: i32) -> i32 {
    %c0_i32 = arith.constant 0 : i32
    %c0_i32_0 = arith.constant 0 : i32
    return %c0_i32 : i32
  }
  func.func @transform_1(%arg0: i32, %arg1: i32) -> (i32, i32, i32, i32, i32) {
    %c0_i32 = arith.constant 0 : i32
    %c0_i32_0 = arith.constant 0 : i32
    %c0_i32_1 = arith.constant 0 : i32
    %c0_i32_2 = arith.constant 0 : i32
    return %arg0, %arg1, %c0_i32, %c0_i32_0, %c0_i32_1 : i32, i32, i32, i32, i32
  }
  func.func @transform_2(%arg0: i32, %arg1: i32) -> (i32, i32, i32, i32, i32) {
    %c1_i32 = arith.constant 1 : i32
    %0 = arith.addi %arg1, %c1_i32 : i32
    %c0_i32 = arith.constant 0 : i32
    %c0_i32_0 = arith.constant 0 : i32
    %c0_i32_1 = arith.constant 0 : i32
    %c0_i32_2 = arith.constant 0 : i32
    return %arg0, %0, %c0_i32, %c0_i32_0, %c0_i32_1 : i32, i32, i32, i32, i32
  }
  func.func @transform_3(%arg0: i32, %arg1: i32) -> (i32, i32, i32, i32, i32) {
    %c2_i32 = arith.constant 2 : i32
    %0 = arith.addi %arg1, %c2_i32 : i32
    %c0_i32 = arith.constant 0 : i32
    %c0_i32_0 = arith.constant 0 : i32
    %c0_i32_1 = arith.constant 0 : i32
    %c0_i32_2 = arith.constant 0 : i32
    return %arg0, %0, %c0_i32, %c0_i32_0, %c0_i32_1 : i32, i32, i32, i32, i32
  }
  func.func @transform_4(%arg0: i32, %arg1: i32) -> (i32, i32, i32) {
    %c0_i32 = arith.constant 0 : i32
    %c0_i32_0 = arith.constant 0 : i32
    %c0_i32_1 = arith.constant 0 : i32
    return %arg0, %c0_i32, %c0_i32_0 : i32, i32, i32
  }
}

module attributes {stable_mosaic.version = 11 : i64} {
  func.func @kernel(%arg0: i32, %arg1: i32, %arg2: memref<1x9x32x32xf32, #tpu.memory_space<vmem>>, %arg3: memref<1x9x32x32xbf16, #tpu.memory_space<vmem>>, %arg4: memref<1x32x32xf32, #tpu.memory_space<vmem>>) attributes {dimension_semantics = [#tpu.dimension_semantics<parallel>, #tpu.dimension_semantics<parallel>], iteration_bounds = array<i64: 1, 1>, scalar_prefetch = 0 : i64, scratch_operands = 0 : i64, tpu.core_type = #tpu.core_type<tc>, window_params = [{transform_indices = @transform_0, window_bounds = array<i64: 1, 9, 32, 32>}, {transform_indices = @transform_1, window_bounds = array<i64: 1, 9, 32, 32>}, {transform_indices = @transform_2, window_bounds = array<i64: 1, 32, 32>}]} {
    %c0 = arith.constant 0 : index
    %c0_0 = arith.constant 0 : index
    %c0_1 = arith.constant 0 : index
    %c0_2 = arith.constant 0 : index
    %0 = vector.load %arg3[%c0, %c0_0, %c0_1, %c0_2] : memref<1x9x32x32xbf16, #tpu.memory_space<vmem>>, vector<1x9x32x32xbf16>
    %1 = vector.shape_cast %0 : vector<1x9x32x32xbf16> to vector<9x32x32xbf16>
    %2 = arith.extf %1 : vector<9x32x32xbf16> to vector<9x32x32xf32>
    %cst = arith.constant dense<0xFF800000> : vector<32x32xf32>
    %3 = vector.multi_reduction <maximumf>, %2, %cst [0] : vector<9x32x32xf32> to vector<32x32xf32>
    %4 = vector.shape_cast %3 : vector<32x32xf32> to vector<1x32x32xf32>
    %5 = vector.broadcast %4 : vector<1x32x32xf32> to vector<9x32x32xf32>
    %6 = arith.subf %2, %5 : vector<9x32x32xf32>
    %7 = math.exp %6 : vector<9x32x32xf32>
    %cst_3 = arith.constant dense<0.000000e+00> : vector<32x32xf32>
    %8 = vector.multi_reduction <add>, %7, %cst_3 [0] : vector<9x32x32xf32> to vector<32x32xf32>
    %c0_4 = arith.constant 0 : index
    %c0_5 = arith.constant 0 : index
    %c0_6 = arith.constant 0 : index
    %c0_7 = arith.constant 0 : index
    %9 = vector.load %arg2[%c0_4, %c0_5, %c0_6, %c0_7] : memref<1x9x32x32xf32, #tpu.memory_space<vmem>>, vector<1x9x32x32xf32>
    %10 = vector.shape_cast %9 : vector<1x9x32x32xf32> to vector<9x32x32xf32>
    %11 = arith.mulf %7, %10 : vector<9x32x32xf32>
    %cst_8 = arith.constant dense<0.000000e+00> : vector<32x32xf32>
    %12 = vector.multi_reduction <add>, %11, %cst_8 [0] : vector<9x32x32xf32> to vector<32x32xf32>
    %13 = tpu.reciprocal %8 {approx = true} : vector<32x32xf32> -> vector<32x32xf32>
    %14 = arith.mulf %12, %13 : vector<32x32xf32>
    %c0_9 = arith.constant 0 : index
    %c0_10 = arith.constant 0 : index
    %c0_11 = arith.constant 0 : index
    %15 = vector.load %arg4[%c0_9, %c0_10, %c0_11] : memref<1x32x32xf32, #tpu.memory_space<vmem>>, vector<1x32x32xf32>
    %16 = vector.shape_cast %15 : vector<1x32x32xf32> to vector<32x32xf32>
    %17 = vector.shape_cast %14 : vector<32x32xf32> to vector<1x32x32xf32>
    tpu.vector_store %arg4[%c0_9, %c0_10, %c0_11], %17 {strides = array<i32>} : memref<1x32x32xf32, #tpu.memory_space<vmem>>, vector<1x32x32xf32>,
    return
  }
  func.func @transform_0(%arg0: i32, %arg1: i32) -> (i32, i32, i32, i32) {
    %c0_i32 = arith.constant 0 : i32
    %c0_i32_0 = arith.constant 0 : i32
    %c0_i32_1 = arith.constant 0 : i32
    return %arg0, %c0_i32, %arg1, %c0_i32_0 : i32, i32, i32, i32
  }
  func.func @transform_1(%arg0: i32, %arg1: i32) -> (i32, i32, i32, i32) {
    %c0_i32 = arith.constant 0 : i32
    %c0_i32_0 = arith.constant 0 : i32
    %c0_i32_1 = arith.constant 0 : i32
    return %arg0, %c0_i32, %arg1, %c0_i32_0 : i32, i32, i32, i32
  }
  func.func @transform_2(%arg0: i32, %arg1: i32) -> (i32, i32, i32) {
    %c0_i32 = arith.constant 0 : i32
    %c0_i32_0 = arith.constant 0 : i32
    return %arg0, %arg1, %c0_i32 : i32, i32, i32
  }
}

</mosaic_0001>

<bundles_post_ra>
// kernel: coex_forward.38
= control target key start
LH: loop header
LB: loop body
LE: loop exit
PB: predicated region body
PF: predicated region fallthrough
CT: control target
= control target key end

     0   :  { %s1044_s1 = inlined_call_operand.vmem [shape: bf16[128,128], index: 1, kind: input, shape index: {}]   ;;  %s1045_s0 = inlined_call_operand.vmem [shape: bf16[256,128], index: 0, kind: input, shape index: {}]   ;;  %s1046_s2 = inlined_call_operand.vmem [shape: f32[1,128], index: 2, kind: input, shape index: {}]   ;;  %s1047_s3 = inlined_call_operand.vmem [shape: bf16[256,128], index: 3, kind: output, shape index: {}]  }
   0x1   :  { %v843_v0 = vld [vmem:[%s1044_s1] sm:$0xff]   ;;  %v844_v1 = vld [vmem:[%s1044_s1 + $0x8] sm:$0xff]   ;;  %v845_v2 = vld [vmem:[%s1044_s1 + $0x10] sm:$0xff]  }
   0x2   :  { %779 = vmatprep.subr.bf16.mxu0 %v843_v0  ;;  %827 = vmatprep.subr.bf16.mxu1 %v843_v0  ;;  %v846_v3 = vld [vmem:[%s1044_s1 + $0x18] sm:$0xff]   ;;  %v851_v4 = vld [vmem:[%s1045_s0] sm:$0xff]   ;;  %v848_v7 = vld [vmem:[%s1044_s1 + $0x28] sm:$0xff]  }
   0x3   :  { %780 = vmatpush3.bf16.msra.mxu0 %v843_v0  ;;  %835 = vmatpush3.bf16.msra.mxu1 %v843_v0  ;;  %v852_v5 = vld [vmem:[%s1045_s0 + $0x40] sm:$0xff]   ;;  %v849_v8 = vld [vmem:[%s1044_s1 + $0x30] sm:$0xff]   ;;  %v850_v9 = vld [vmem:[%s1044_s1 + $0x38] sm:$0xff]  }
   0x4   :  { %781 = vmatprep.subr.bf16.mxu0 %v844_v1  ;;  %828 = vmatprep.subr.bf16.mxu1 %v844_v1  ;;  %v847_v6 = vld [vmem:[%s1044_s1 + $0x20] sm:$0xff]   ;;  %v853_v10 = vld [vmem:[%s1045_s0 + $0x8] sm:$0xff]   ;;  %v855_v12 = vld [vmem:[%s1045_s0 + $0x10] sm:$0xff]  }
   0x5   :  { %795 = vmatprep.mubr.bf16.mxu0 %v851_v4  ;;  %811 = vmatprep.mubr.bf16.mxu1 %v852_v5  ;;  %v854_v11 = vld [vmem:[%s1045_s0 + $0x48] sm:$0xff]   ;;  %v856_v13 = vld [vmem:[%s1045_s0 + $0x50] sm:$0xff]   ;;  %v857_v14 = vld [vmem:[%s1045_s0 + $0x18] sm:$0xff]  }
   0x6   :  { %v858_v15 = vld [vmem:[%s1045_s0 + $0x58] sm:$0xff]   ;;  %v859_v16 = vld [vmem:[%s1045_s0 + $0x20] sm:$0xff]   ;;  %v861_v18 = vld [vmem:[%s1045_s0 + $0x28] sm:$0xff]  }
   0x7   :  { %782 = vmatpush3.bf16.msra.mxu0 %v844_v1  ;;  %836 = vmatpush3.bf16.msra.mxu1 %v844_v1  ;;  %v860_v17 = vld [vmem:[%s1045_s0 + $0x60] sm:$0xff]   ;;  %v862_v19 = vld [vmem:[%s1045_s0 + $0x68] sm:$0xff]   ;;  %v863_v20 = vld [vmem:[%s1045_s0 + $0x30] sm:$0xff]  }
   0x8   :  { %783 = vmatprep.subr.bf16.mxu0 %v845_v2  ;;  %829 = vmatprep.subr.bf16.mxu1 %v845_v2  ;;  %v864_v21 = vld [vmem:[%s1045_s0 + $0x70] sm:$0xff]   ;;  %v865_v22 = vld [vmem:[%s1045_s0 + $0x38] sm:$0xff]   ;;  %v962_v24 = vld [vmem:[%s1046_s2] ss:$0 sm:$0xff] }
   0x9   :  { %v866_v23 = vld [vmem:[%s1045_s0 + $0x78] sm:$0xff]  }
   0xb   :  { %784 = vmatpush3.bf16.msra.mxu0 %v845_v2  ;;  %837 = vmatpush3.bf16.msra.mxu1 %v845_v2 }
   0xc   :  { %785 = vmatprep.subr.bf16.mxu0 %v846_v3  ;;  %830 = vmatprep.subr.bf16.mxu1 %v846_v3 }
   0xf   :  { %786 = vmatpush3.bf16.msra.mxu0 %v846_v3  ;;  %838 = vmatpush3.bf16.msra.mxu1 %v846_v3 }
  0x10   :  { %787 = vmatprep.subr.bf16.mxu0 %v847_v6  ;;  %831 = vmatprep.subr.bf16.mxu1 %v847_v6 }
  0x13   :  { %788 = vmatpush3.bf16.msra.mxu0 %v847_v6  ;;  %839 = vmatpush3.bf16.msra.mxu1 %v847_v6 }
  0x14   :  { %789 = vmatprep.subr.bf16.mxu0 %v848_v7  ;;  %832 = vmatprep.subr.bf16.mxu1 %v848_v7 }
  0x17   :  { %790 = vmatpush3.bf16.msra.mxu0 %v848_v7  ;;  %840 = vmatpush3.bf16.msra.mxu1 %v848_v7 }
  0x18   :  { %791 = vmatprep.subr.bf16.mxu0 %v849_v8  ;;  %833 = vmatprep.subr.bf16.mxu1 %v849_v8 }
  0x1b   :  { %792 = vmatpush3.bf16.msra.mxu0 %v849_v8  ;;  %841 = vmatpush3.bf16.msra.mxu1 %v849_v8 }
  0x1c   :  { %793 = vmatprep.subr.bf16.mxu0 %v850_v9  ;;  %834 = vmatprep.subr.bf16.mxu1 %v850_v9 }
  0x1f   :  { %794 = vmatpush3.bf16.msra.mxu0 %v850_v9  ;;  %842 = vmatpush3.bf16.msra.mxu1 %v850_v9 }
  0x22   :  { %796 = vmatmul.mubr.bf16.vlgmr.msra.gmra.mrb[0].mxu0 %v853_v10  ;;  %812 = vmatmul.mubr.bf16.vlgmr.msra.gmra.mrb[0].mxu1 %v854_v11 }
  0x23   :  { %799 = vmatprep.mubr.bf16.mxu0 %v855_v12  ;;  %815 = vmatprep.mubr.bf16.mxu1 %v856_v13 }
  0x2a   :  { %800 = vmatmul.mubr.bf16.gmra.mrb[4].mxu0 %v857_v14  ;;  %816 = vmatmul.mubr.bf16.gmra.mrb[4].mxu1 %v858_v15 }
  0x2b   :  { %803 = vmatprep.mubr.bf16.mxu0 %v859_v16  ;;  %819 = vmatprep.mubr.bf16.mxu1 %v860_v17 }
  0x32   :  { %804 = vmatmul.mubr.bf16.gmra.mrb[8].mxu0 %v861_v18  ;;  %820 = vmatmul.mubr.bf16.gmra.mrb[8].mxu1 %v862_v19 }
  0x33   :  { %807 = vmatprep.mubr.bf16.mxu0 %v863_v20  ;;  %823 = vmatprep.mubr.bf16.mxu1 %v864_v21 }
  0x3a   :  { %808 = vmatmul.mubr.bf16.gmra.mrb[12].mxu0 %v865_v22  ;;  %824 = vmatmul.mubr.bf16.gmra.mrb[12].mxu1 %v866_v23 }
  0xf5   :  { %v797_v25 = vpop.f32.mrb[0].mxu0  ;;  %v813_v26 = vpop.f32.mrb[0].mxu1 }
  0xf6   :  { %v257_v27 = vadd.f32 %v797_v25, %v962_v24  ;;  %v321_v28 = vadd.f32 %v813_v26, %v962_v24  ;;  %v248_v29 = vpop.f32.mrb[1].mxu0  ;;  %v312_v30 = vpop.f32.mrb[1].mxu1 }
  0xf7   :  { %v249_v31 = vadd.f32 %v962_v24, %v248_v29  ;;  %v313_v32 = vadd.f32 %v962_v24, %v312_v30  ;;  %v798_v33 = vpop.f32.mrb[2].mxu0  ;;  %v814_v34 = vpop.f32.mrb[2].mxu1 }
  0xf8   :  { %v260_v35 = vadd.f32 %v798_v33, %v962_v24  ;;  %v324_v36 = vadd.f32 %v814_v34, %v962_v24  ;;  %v251_v37 = vpop.f32.mrb[3].mxu0  ;;  %v315_v38 = vpop.f32.mrb[3].mxu1  ;;  %v377_v41 = vmax.f32 %v257_v27, 0.0  ;;  %v393_v42 = vmax.f32 %v321_v28, 0.0 }
  0xf9   :  { %v252_v39 = vadd.f32 %v962_v24, %v251_v37  ;;  %v316_v40 = vadd.f32 %v962_v24, %v315_v38  ;;  %v375_v45 = vmax.f32 %v249_v31, 0.0  ;;  %v391_v46 = vmax.f32 %v313_v32, 0.0 }
  0xfa   :  { %v378_v43 = vmax.f32 %v260_v35, 0.0  ;;  %v394_v44 = vmax.f32 %v324_v36, 0.0 }
  0xfb   :  { %v376_v47 = vmax.f32 %v252_v39, 0.0  ;;  %v392_v48 = vmax.f32 %v316_v40, 0.0 }
  0xfc   :  { %v668_v49 = vpack.c.bf16 %v378_v43, %v377_v41  ;;  %v708_v50 = vpack.c.bf16 %v394_v44, %v393_v42 }
  0xfd   :  { %v663_v51 = vpack.c.bf16 %v376_v47, %v375_v45  ;;  %v703_v52 = vpack.c.bf16 %v392_v48, %v391_v46  ;;  %v801_v53 = vpop.f32.mrb[4].mxu0  ;;  %v817_v54 = vpop.f32.mrb[4].mxu1 }
  0xfe   :  { %740 = vst [vmem:[%s1047_s3 + $0x8] sm:$0xff] %v668_v49   ;;  %748 = vst [vmem:[%s1047_s3 + $0x48] sm:$0xff] %v708_v50   ;;  %v273_v55 = vadd.f32 %v801_v53, %v962_v24  ;;  %v337_v56 = vadd.f32 %v817_v54, %v962_v24  ;;  %v264_v57 = vpop.f32.mrb[5].mxu0  ;;  %v328_v58 = vpop.f32.mrb[5].mxu1 }
  0xff   :  { %664 = vst [vmem:[%s1047_s3] sm:$0xff] %v663_v51   ;;  %747 = vst [vmem:[%s1047_s3 + $0x40] sm:$0xff] %v703_v52   ;;  %v265_v59 = vadd.f32 %v962_v24, %v264_v57  ;;  %v329_v60 = vadd.f32 %v962_v24, %v328_v58  ;;  %v802_v61 = vpop.f32.mrb[6].mxu0  ;;  %v818_v62 = vpop.f32.mrb[6].mxu1 }
 0x100   :  { %v276_v63 = vadd.f32 %v802_v61, %v962_v24  ;;  %v340_v0 = vadd.f32 %v818_v62, %v962_v24  ;;  %v267_v1 = vpop.f32.mrb[7].mxu0  ;;  %v331_v2 = vpop.f32.mrb[7].mxu1  ;;  %v381_v5 = vmax.f32 %v273_v55, 0.0  ;;  %v397_v6 = vmax.f32 %v337_v56, 0.0 }
 0x101   :  { %v268_v3 = vadd.f32 %v962_v24, %v267_v1  ;;  %v332_v4 = vadd.f32 %v962_v24, %v331_v2  ;;  %v379_v9 = vmax.f32 %v265_v59, 0.0  ;;  %v395_v10 = vmax.f32 %v329_v60, 0.0 }
 0x102   :  { %v382_v7 = vmax.f32 %v276_v63, 0.0  ;;  %v398_v8 = vmax.f32 %v340_v0, 0.0 }
 0x103   :  { %v380_v11 = vmax.f32 %v268_v3, 0.0  ;;  %v396_v12 = vmax.f32 %v332_v4, 0.0 }
 0x104   :  { %v678_v13 = vpack.c.bf16 %v382_v7, %v381_v5  ;;  %v718_v14 = vpack.c.bf16 %v398_v8, %v397_v6 }
 0x105   :  { %v673_v15 = vpack.c.bf16 %v380_v11, %v379_v9  ;;  %v713_v16 = vpack.c.bf16 %v396_v12, %v395_v10  ;;  %v805_v17 = vpop.f32.mrb[8].mxu0  ;;  %v821_v18 = vpop.f32.mrb[8].mxu1 }
 0x106   :  { %742 = vst [vmem:[%s1047_s3 + $0x18] sm:$0xff] %v678_v13   ;;  %750 = vst [vmem:[%s1047_s3 + $0x58] sm:$0xff] %v718_v14   ;;  %v289_v19 = vadd.f32 %v805_v17, %v962_v24  ;;  %v353_v20 = vadd.f32 %v821_v18, %v962_v24  ;;  %v280_v21 = vpop.f32.mrb[9].mxu0  ;;  %v344_v22 = vpop.f32.mrb[9].mxu1 }
 0x107   :  { %741 = vst [vmem:[%s1047_s3 + $0x10] sm:$0xff] %v673_v15   ;;  %749 = vst [vmem:[%s1047_s3 + $0x50] sm:$0xff] %v713_v16   ;;  %v281_v23 = vadd.f32 %v962_v24, %v280_v21  ;;  %v345_v25 = vadd.f32 %v962_v24, %v344_v22  ;;  %v806_v26 = vpop.f32.mrb[10].mxu0  ;;  %v822_v27 = vpop.f32.mrb[10].mxu1 }
 0x108   :  { %v292_v28 = vadd.f32 %v806_v26, %v962_v24  ;;  %v356_v29 = vadd.f32 %v822_v27, %v962_v24  ;;  %v283_v30 = vpop.f32.mrb[11].mxu0  ;;  %v347_v31 = vpop.f32.mrb[11].mxu1  ;;  %v385_v34 = vmax.f32 %v289_v19, 0.0  ;;  %v401_v35 = vmax.f32 %v353_v20, 0.0 }
 0x109   :  { %v284_v32 = vadd.f32 %v962_v24, %v283_v30  ;;  %v348_v33 = vadd.f32 %v962_v24, %v347_v31  ;;  %v383_v38 = vmax.f32 %v281_v23, 0.0  ;;  %v399_v39 = vmax.f32 %v345_v25, 0.0 }
 0x10a   :  { %v386_v36 = vmax.f32 %v292_v28, 0.0  ;;  %v402_v37 = vmax.f32 %v356_v29, 0.0 }
 0x10b   :  { %v384_v40 = vmax.f32 %v284_v32, 0.0  ;;  %v400_v41 = vmax.f32 %v348_v33, 0.0 }
 0x10c   :  { %v688_v42 = vpack.c.bf16 %v386_v36, %v385_v34  ;;  %v728_v43 = vpack.c.bf16 %v402_v37, %v401_v35 }
 0x10d   :  { %v683_v44 = vpack.c.bf16 %v384_v40, %v383_v38  ;;  %v723_v45 = vpack.c.bf16 %v400_v41, %v399_v39  ;;  %v809_v46 = vpop.f32.mrb[12].mxu0  ;;  %v825_v47 = vpop.f32.mrb[12].mxu1 }
 0x10e   :  { %744 = vst [vmem:[%s1047_s3 + $0x28] sm:$0xff] %v688_v42   ;;  %752 = vst [vmem:[%s1047_s3 + $0x68] sm:$0xff] %v728_v43   ;;  %v305_v48 = vadd.f32 %v809_v46, %v962_v24  ;;  %v369_v49 = vadd.f32 %v825_v47, %v962_v24  ;;  %v296_v50 = vpop.f32.mrb[13].mxu0  ;;  %v360_v51 = vpop.f32.mrb[13].mxu1 }
 0x10f   :  { %743 = vst [vmem:[%s1047_s3 + $0x20] sm:$0xff] %v683_v44   ;;  %751 = vst [vmem:[%s1047_s3 + $0x60] sm:$0xff] %v723_v45   ;;  %v297_v52 = vadd.f32 %v962_v24, %v296_v50  ;;  %v361_v53 = vadd.f32 %v962_v24, %v360_v51  ;;  %v810_v54 = vpop.f32.mrb[14].mxu0  ;;  %v826_v55 = vpop.f32.mrb[14].mxu1 }
 0x110   :  { %v308_v56 = vadd.f32 %v810_v54, %v962_v24  ;;  %v372_v57 = vadd.f32 %v826_v55, %v962_v24  ;;  %v299_v58 = vpop.f32.mrb[15].mxu0  ;;  %v363_v59 = vpop.f32.mrb[15].mxu1  ;;  %v389_v62 = vmax.f32 %v305_v48, 0.0  ;;  %v405_v63 = vmax.f32 %v369_v49, 0.0 }
 0x111   :  { %v300_v60 = vadd.f32 %v962_v24, %v299_v58  ;;  %v364_v61 = vadd.f32 %v962_v24, %v363_v59  ;;  %v387_v2 = vmax.f32 %v297_v52, 0.0  ;;  %v403_v3 = vmax.f32 %v361_v53, 0.0 }
 0x112   :  { %v390_v0 = vmax.f32 %v308_v56, 0.0  ;;  %v406_v1 = vmax.f32 %v372_v57, 0.0 }
 0x113   :  { %v388_v4 = vmax.f32 %v300_v60, 0.0  ;;  %v404_v5 = vmax.f32 %v364_v61, 0.0 }
 0x114   :  { %v698_v6 = vpack.c.bf16 %v390_v0, %v389_v62  ;;  %v738_v7 = vpack.c.bf16 %v406_v1, %v405_v63 }
 0x115   :  { %v693_v8 = vpack.c.bf16 %v388_v4, %v387_v2  ;;  %v733_v9 = vpack.c.bf16 %v404_v5, %v403_v3 }
 0x116   :  { %746 = vst [vmem:[%s1047_s3 + $0x38] sm:$0xff] %v698_v6   ;;  %754 = vst [vmem:[%s1047_s3 + $0x78] sm:$0xff] %v738_v7  }
 0x117   :  { %745 = vst [vmem:[%s1047_s3 + $0x30] sm:$0xff] %v693_v8   ;;  %753 = vst [vmem:[%s1047_s3 + $0x70] sm:$0xff] %v733_v9  }

// kernel: coex_forward.39
= control target key start
LH: loop header
LB: loop body
LE: loop exit
PB: predicated region body
PF: predicated region fallthrough
CT: control target
= control target key end

     0   :  { %s836_s1 = inlined_call_operand.vmem [shape: bf16[256,128], index: 1, kind: input, shape index: {}]   ;;  %s837_s0 = inlined_call_operand.vmem [shape: bf16[128,256], index: 0, kind: input, shape index: {}]   ;;  %s838_s2 = inlined_call_operand.vmem [shape: f32[1,128], index: 2, kind: input, shape index: {}]   ;;  %s839_s3 = inlined_call_operand.vmem [shape: bf16[128,128], index: 3, kind: output, shape index: {}]  }
   0x1   :  { %v635_v0 = vld [vmem:[%s836_s1 + $0x40] sm:$0xff]   ;;  %v637_v2 = vld [vmem:[%s836_s1 + $0x48] sm:$0xff]   ;;  %v639_v4 = vld [vmem:[%s836_s1 + $0x50] sm:$0xff]  }
   0x2   :  { %v636_v1 = vld [vmem:[%s836_s1] sm:$0xff]   ;;  %555 = vmatprep.subr.bf16.mxu0 %v635_v0  ;;  %619 = vmatprep.subr.bf16.mxu1 %v635_v0  ;;  %v638_v3 = vld [vmem:[%s836_s1 + $0x8] sm:$0xff]   ;;  %v640_v5 = vld [vmem:[%s836_s1 + $0x10] sm:$0xff]  }
   0x3   :  { %556 = vmatpush3.bf16.msra.mxu0 %v636_v1  ;;  %627 = vmatpush3.bf16.msra.mxu1 %v636_v1  ;;  %v641_v6 = vld [vmem:[%s836_s1 + $0x58] sm:$0xff]   ;;  %v643_v8 = vld [vmem:[%s836_s1 + $0x60] sm:$0xff]   ;;  %v645_v10 = vld [vmem:[%s836_s1 + $0x68] sm:$0xff]  }
   0x4   :  { %557 = vmatprep.subr.bf16.mxu0 %v637_v2  ;;  %620 = vmatprep.subr.bf16.mxu1 %v637_v2  ;;  %v642_v7 = vld [vmem:[%s836_s1 + $0x18] sm:$0xff]   ;;  %v644_v9 = vld [vmem:[%s836_s1 + $0x20] sm:$0xff]   ;;  %v646_v13 = vld [vmem:[%s836_s1 + $0x28] sm:$0xff]  }
   0x5   :  { %v653_v11 = vld [vmem:[%s837_s0 + $0x4] ss:$8 sps:$4 sm:$0xff]   ;;  %v647_v14 = vld [vmem:[%s836_s1 + $0x70] sm:$0xff]   ;;  %v649_v16 = vld [vmem:[%s836_s1 + $0x78] sm:$0xff]  }
   0x6   :  { %v656_v12 = vld [vmem:[%s837_s0 + $0x44] ss:$8 sps:$4 sm:$0xff]   ;;  %278 = vmatprep.mubr.bf16.mxu0 %v653_v11  ;;  %v648_v15 = vld [vmem:[%s836_s1 + $0x30] sm:$0xff]   ;;  %v650_v17 = vld [vmem:[%s836_s1 + $0x38] sm:$0xff]  }
   0x7   :  { %558 = vmatpush3.bf16.msra.mxu0 %v638_v3  ;;  %628 = vmatpush3.bf16.msra.mxu1 %v638_v3  ;;  %v651_v18 = vld [vmem:[%s837_s0] ss:$8 sps:$4 sm:$0xff]   ;;  %v657_v20 = vld [vmem:[%s837_s0 + $0x14] ss:$8 sps:$4 sm:$0xff]   ;;  %v661_v22 = vld [vmem:[%s837_s0 + $0x10] ss:$8 sps:$4 sm:$0xff]  }
   0x8   :  { %559 = vmatprep.subr.bf16.mxu0 %v639_v4  ;;  %621 = vmatprep.subr.bf16.mxu1 %v639_v4  ;;  %v654_v19 = vld [vmem:[%s837_s0 + $0x40] ss:$8 sps:$4 sm:$0xff]   ;;  %v659_v21 = vld [vmem:[%s837_s0 + $0x54] ss:$8 sps:$4 sm:$0xff]   ;;  %v662_v23 = vld [vmem:[%s837_s0 + $0x50] ss:$8 sps:$4 sm:$0xff]  }
   0x9   :  { %310 = vmatprep.mubr.bf16.mxu1 %v656_v12  ;;  %v663_v24 = vld [vmem:[%s837_s0 + $0x24] ss:$8 sps:$4 sm:$0xff]   ;;  %v667_v26 = vld [vmem:[%s837_s0 + $0x20] ss:$8 sps:$4 sm:$0xff]   ;;  %v669_v28 = vld [vmem:[%s837_s0 + $0x34] ss:$8 sps:$4 sm:$0xff]  }
   0xa   :  { %v665_v25 = vld [vmem:[%s837_s0 + $0x64] ss:$8 sps:$4 sm:$0xff]   ;;  %v668_v27 = vld [vmem:[%s837_s0 + $0x60] ss:$8 sps:$4 sm:$0xff]   ;;  %v671_v29 = vld [vmem:[%s837_s0 + $0x74] ss:$8 sps:$4 sm:$0xff]  }
   0xb   :  { %560 = vmatpush3.bf16.msra.mxu0 %v640_v5  ;;  %629 = vmatpush3.bf16.msra.mxu1 %v640_v5  ;;  %v673_v30 = vld [vmem:[%s837_s0 + $0x30] ss:$8 sps:$4 sm:$0xff]   ;;  %v794_v34 = vld [vmem:[%s838_s2] ss:$0 sm:$0xff] }
   0xc   :  { %561 = vmatprep.subr.bf16.mxu0 %v641_v6  ;;  %622 = vmatprep.subr.bf16.mxu1 %v641_v6  ;;  %v674_v31 = vld [vmem:[%s837_s0 + $0x70] ss:$8 sps:$4 sm:$0xff]  }
   0xf   :  { %562 = vmatpush3.bf16.msra.mxu0 %v642_v7  ;;  %630 = vmatpush3.bf16.msra.mxu1 %v642_v7 }
  0x10   :  { %563 = vmatprep.subr.bf16.mxu0 %v643_v8  ;;  %623 = vmatprep.subr.bf16.mxu1 %v643_v8 }
  0x13   :  { %564 = vmatpush3.bf16.msra.mxu0 %v644_v9  ;;  %631 = vmatpush3.bf16.msra.mxu1 %v644_v9 }
  0x14   :  { %565 = vmatprep.subr.bf16.mxu0 %v645_v10  ;;  %624 = vmatprep.subr.bf16.mxu1 %v645_v10 }
  0x17   :  { %566 = vmatpush3.bf16.msra.mxu0 %v646_v13  ;;  %632 = vmatpush3.bf16.msra.mxu1 %v646_v13 }
  0x18   :  { %567 = vmatprep.subr.bf16.mxu0 %v647_v14  ;;  %625 = vmatprep.subr.bf16.mxu1 %v647_v14 }
  0x1b   :  { %568 = vmatpush3.bf16.msra.mxu0 %v648_v15  ;;  %633 = vmatpush3.bf16.msra.mxu1 %v648_v15 }
  0x1c   :  { %569 = vmatprep.subr.bf16.mxu0 %v649_v16  ;;  %626 = vmatprep.subr.bf16.mxu1 %v649_v16 }
  0x1f   :  { %570 = vmatpush3.bf16.msra.mxu0 %v650_v17  ;;  %634 = vmatpush3.bf16.msra.mxu1 %v650_v17 }
  0x22   :  { %279 = vmatmul.mubr.bf16.vlgmr.msra.gmra.mrb[0].mxu0 %v651_v18  ;;  %311 = vmatmul.mubr.bf16.vlgmr.msra.gmra.mrb[0].mxu1 %v654_v19 }
  0x23   :  { %286 = vmatprep.mubr.bf16.mxu0 %v657_v20  ;;  %318 = vmatprep.mubr.bf16.mxu1 %v659_v21 }
  0x2a   :  { %287 = vmatmul.mubr.bf16.gmra.mrb[4].mxu0 %v661_v22  ;;  %319 = vmatmul.mubr.bf16.gmra.mrb[4].mxu1 %v662_v23 }
  0x2b   :  { %294 = vmatprep.mubr.bf16.mxu0 %v663_v24  ;;  %326 = vmatprep.mubr.bf16.mxu1 %v665_v25 }
  0x32   :  { %295 = vmatmul.mubr.bf16.gmra.mrb[8].mxu0 %v667_v26  ;;  %327 = vmatmul.mubr.bf16.gmra.mrb[8].mxu1 %v668_v27 }
  0x33   :  { %302 = vmatprep.mubr.bf16.mxu0 %v669_v28  ;;  %334 = vmatprep.mubr.bf16.mxu1 %v671_v29 }
  0x3a   :  { %303 = vmatmul.mubr.bf16.gmra.mrb[12].mxu0 %v673_v30  ;;  %335 = vmatmul.mubr.bf16.gmra.mrb[12].mxu1 %v674_v31 }
  0xf5   :  { %v571_v32 = vpop.f32.mrb[0].mxu0  ;;  %v595_v33 = vpop.f32.mrb[0].mxu1 }
  0xf6   :  { %v572_v35 = vpop.f32.mrb[1].mxu0  ;;  %v596_v36 = vpop.f32.mrb[1].mxu1 }
  0xf7   :  { %v573_v37 = vadd.f32 %v572_v35, %v571_v32  ;;  %v597_v38 = vadd.f32 %v596_v36, %v595_v33  ;;  %v574_v39 = vpop.f32.mrb[2].mxu0  ;;  %v598_v40 = vpop.f32.mrb[2].mxu1 }
  0xf8   :  { %v575_v41 = vpop.f32.mrb[3].mxu0  ;;  %v599_v42 = vpop.f32.mrb[3].mxu1 }
  0xf9   :  { %v281_v43 = vadd.f32 %v573_v37, %v794_v34  ;;  %v313_v44 = vadd.f32 %v597_v38, %v794_v34  ;;  %v576_v45 = vadd.f32 %v575_v41, %v574_v39  ;;  %v600_v46 = vadd.f32 %v599_v42, %v598_v40 }
  0xfb   :  { %v284_v47 = vadd.f32 %v576_v45, %v794_v34  ;;  %v316_v48 = vadd.f32 %v600_v46, %v794_v34  ;;  %v343_v49 = vmax.f32 %v281_v43, 0.0  ;;  %v351_v50 = vmax.f32 %v313_v44, 0.0 }
  0xfd   :  { %v344_v51 = vmax.f32 %v284_v47, 0.0  ;;  %v352_v52 = vmax.f32 %v316_v48, 0.0  ;;  %v577_v53 = vpop.f32.mrb[4].mxu0  ;;  %v601_v54 = vpop.f32.mrb[4].mxu1 }
  0xfe   :  { %v578_v55 = vpop.f32.mrb[5].mxu0  ;;  %v602_v56 = vpop.f32.mrb[5].mxu1 }
  0xff   :  { %v511_v57 = vpack.c.bf16 %v344_v51, %v343_v49  ;;  %v531_v58 = vpack.c.bf16 %v352_v52, %v351_v50  ;;  %v579_v59 = vadd.f32 %v578_v55, %v577_v53  ;;  %v603_v60 = vadd.f32 %v602_v56, %v601_v54  ;;  %v580_v61 = vpop.f32.mrb[6].mxu0  ;;  %v604_v62 = vpop.f32.mrb[6].mxu1 }
 0x100   :  { %v581_v63 = vpop.f32.mrb[7].mxu0  ;;  %v605_v0 = vpop.f32.mrb[7].mxu1 }
 0x101   :  { %512 = vst [vmem:[%s839_s3] sm:$0xff] %v511_v57   ;;  %551 = vst [vmem:[%s839_s3 + $0x20] sm:$0xff] %v531_v58   ;;  %v289_v1 = vadd.f32 %v579_v59, %v794_v34  ;;  %v321_v2 = vadd.f32 %v603_v60, %v794_v34  ;;  %v582_v3 = vadd.f32 %v581_v63, %v580_v61 }
 0x102   :  { %v606_v4 = vadd.f32 %v605_v0, %v604_v62 }
 0x103   :  { %v292_v5 = vadd.f32 %v582_v3, %v794_v34  ;;  %v345_v7 = vmax.f32 %v289_v1, 0.0  ;;  %v353_v8 = vmax.f32 %v321_v2, 0.0 }
 0x104   :  { %v324_v6 = vadd.f32 %v606_v4, %v794_v34 }
 0x105   :  { %v346_v9 = vmax.f32 %v292_v5, 0.0  ;;  %v583_v11 = vpop.f32.mrb[8].mxu0  ;;  %v607_v12 = vpop.f32.mrb[8].mxu1 }
 0x106   :  { %v354_v10 = vmax.f32 %v324_v6, 0.0  ;;  %v584_v13 = vpop.f32.mrb[9].mxu0  ;;  %v608_v14 = vpop.f32.mrb[9].mxu1 }
 0x107   :  { %v516_v15 = vpack.c.bf16 %v346_v9, %v345_v7  ;;  %v585_v17 = vadd.f32 %v584_v13, %v583_v11  ;;  %v609_v18 = vadd.f32 %v608_v14, %v607_v12  ;;  %v586_v19 = vpop.f32.mrb[10].mxu0  ;;  %v610_v20 = vpop.f32.mrb[10].mxu1 }
 0x108   :  { %v536_v16 = vpack.c.bf16 %v354_v10, %v353_v8  ;;  %v587_v21 = vpop.f32.mrb[11].mxu0  ;;  %v611_v22 = vpop.f32.mrb[11].mxu1 }
 0x109   :  { %548 = vst [vmem:[%s839_s3 + $0x8] sm:$0xff] %v516_v15   ;;  %v297_v23 = vadd.f32 %v585_v17, %v794_v34  ;;  %v329_v24 = vadd.f32 %v609_v18, %v794_v34  ;;  %v588_v25 = vadd.f32 %v587_v21, %v586_v19  ;;  %v612_v26 = vadd.f32 %v611_v22, %v610_v20 }
 0x10a   :  { %552 = vst [vmem:[%s839_s3 + $0x28] sm:$0xff] %v536_v16  }
 0x10b   :  { %v300_v27 = vadd.f32 %v588_v25, %v794_v34  ;;  %v332_v28 = vadd.f32 %v612_v26, %v794_v34  ;;  %v347_v29 = vmax.f32 %v297_v23, 0.0  ;;  %v355_v30 = vmax.f32 %v329_v24, 0.0 }
 0x10d   :  { %v348_v31 = vmax.f32 %v300_v27, 0.0  ;;  %v356_v32 = vmax.f32 %v332_v28, 0.0  ;;  %v589_v33 = vpop.f32.mrb[12].mxu0  ;;  %v613_v35 = vpop.f32.mrb[12].mxu1 }
 0x10e   :  { %v590_v36 = vpop.f32.mrb[13].mxu0  ;;  %v614_v37 = vpop.f32.mrb[13].mxu1 }
 0x10f   :  { %v521_v38 = vpack.c.bf16 %v348_v31, %v347_v29  ;;  %v541_v39 = vpack.c.bf16 %v356_v32, %v355_v30  ;;  %v591_v40 = vadd.f32 %v590_v36, %v589_v33  ;;  %v615_v41 = vadd.f32 %v614_v37, %v613_v35  ;;  %v592_v42 = vpop.f32.mrb[14].mxu0  ;;  %v616_v43 = vpop.f32.mrb[14].mxu1 }
 0x110   :  { %v593_v44 = vpop.f32.mrb[15].mxu0  ;;  %v617_v45 = vpop.f32.mrb[15].mxu1 }
 0x111   :  { %549 = vst [vmem:[%s839_s3 + $0x10] sm:$0xff] %v521_v38   ;;  %553 = vst [vmem:[%s839_s3 + $0x30] sm:$0xff] %v541_v39   ;;  %v305_v46 = vadd.f32 %v591_v40, %v794_v34  ;;  %v337_v47 = vadd.f32 %v615_v41, %v794_v34  ;;  %v594_v48 = vadd.f32 %v593_v44, %v592_v42 }
 0x112   :  { %v618_v49 = vadd.f32 %v617_v45, %v616_v43 }
 0x113   :  { %v308_v50 = vadd.f32 %v594_v48, %v794_v34  ;;  %v349_v52 = vmax.f32 %v305_v46, 0.0  ;;  %v357_v53 = vmax.f32 %v337_v47, 0.0 }
 0x114   :  { %v340_v51 = vadd.f32 %v618_v49, %v794_v34 }
 0x115   :  { %v350_v54 = vmax.f32 %v308_v50, 0.0 }
 0x116   :  { %v358_v55 = vmax.f32 %v340_v51, 0.0 }
 0x117   :  { %v526_v56 = vpack.c.bf16 %v350_v54, %v349_v52 }
 0x118   :  { %v546_v57 = vpack.c.bf16 %v358_v55, %v357_v53 }
 0x119   :  { %550 = vst [vmem:[%s839_s3 + $0x18] sm:$0xff] %v526_v56  }
 0x11a   :  { %554 = vst [vmem:[%s839_s3 + $0x38] sm:$0xff] %v546_v57  }

// kernel: coex_forward.43
= control target key start
LH: loop header
LB: loop body
LE: loop exit
PB: predicated region body
PF: predicated region fallthrough
CT: control target
= control target key end

     0   :  { %s1694_s12 = smov 0   ;;  %s1696_s13 = smov 0   ;;  %s1942_s0 = inlined_call_operand.vmem [shape: bf16[256,384], index: 0, kind: input, shape index: {}]   ;;  %s1943_s1 = inlined_call_operand.vmem [shape: bf16[384,128], index: 1, kind: input, shape index: {}]   ;;  %s1944_s2 = inlined_call_operand.vmem [shape: f32[1,128], index: 2, kind: input, shape index: {}]   ;;  %s1945_s3 = inlined_call_operand.vmem [shape: bf16[256,128], index: 3, kind: output, shape index: {}]  }
   0x1   :  { %s1698_s14 = smov 0   ;;  %s1700_s15 = smov 0  }
   0x2   :  { %s1702_s16 = smov 0  }
   0x3 LB: > { %s25_s17 = sadd.s32 1, %s1667_s15  ;;  %p48_p1 = scmp.ne.s32.totalorder %s1659_s13, %s1655_s12  ;;  %s1671_s16 = sphi %s1702_s16, %s13_s16   ;;  %s1667_s15 = sphi %s1700_s15, %s1949_s15   ;;  %s1663_s14 = sphi %s1698_s14, %s1948_s14   ;;  %s1659_s13 = sphi %s1696_s13, %s1947_s13   ;;  %s1655_s12 = sphi %s1694_s12, %s1946_s12  }
   0x4   : > { %p26_p0 = scmp.ge.s32.totalorder %s25_s17, 3  ;;  %p49_p2 = scmp.eq.s32.totalorder %s1671_s16, 0 }
   0x5   : > { %s41_s19 = sadd.s32 1, %s1659_s13  ;;  %p1283_p5 = scmp.ge.s32.totalorder %s1671_s16, 3 }
   0x6   : > { %s1951_s17 = smov (%p26_p0, %s25_s17), 0  ;;  %p50_p3 = por %p49_p2, %p48_p1 }
   0x7   : > { %s37_s18 = ssub.s32 %s1667_s15, %s1951_s17  ;;  %162 = sbr.rel (%p1283_p5) target bundleno = 39 (0x27), region = 20 }
   0x8   : > { %p39_p4 = scmp.eq.s32.totalorder %s37_s18, 0 }
   0xa   : > { %s1729_s20 = scalar_select %p39_p4, %s1659_s13, %s41_s19  }
   0xe   : > { %165 = sbr.rel (!%p50_p3) target bundleno = 39 (0x27), region = 24  ;;  %s167_s21 = sand.u32 (%p50_p3), 1, %s1659_s13  }
   0xf   : > { %s1285_s22 = sshll.u32 (%p50_p3), %s1667_s15, 2  ;;  %s1284_s23 = sshll.u32 (%p50_p3), %s167_s21, 7 }
  0x10   : > { %s1737_s26 = scalar_lea.vmem (%p50_p3), %s1942_s0, %s1285_s22  ;;  %s1741_s27 = scalar_lea.vmem (%p50_p3), [#allocation3], %s1284_s23 }
  0x11   : > { %v190_v0 = vld [vmem:[%s1737_s26] sm:$0xf] (%p50_p3)  ;;  %v192_v1 = vld [vmem:[%s1737_s26 + $0xc] sm:$0xf] (%p50_p3)  ;;  %v194_v2 = vld [vmem:[%s1737_s26 + $0x18] sm:$0xf] (%p50_p3) }
  0x12   : > { %191 = vst [vmem:[%s1741_s27] sm:$0xf] (%p50_p3), %v190_v0  ;;  %193 = vst [vmem:[%s1741_s27 + $0x4] sm:$0xf] (%p50_p3), %v192_v1  ;;  %v196_v3 = vld [vmem:[%s1737_s26 + $0x24] sm:$0xf] (%p50_p3) }
  0x13   : > { %v198_v4 = vld [vmem:[%s1737_s26 + $0x30] sm:$0xf] (%p50_p3)  ;;  %195 = vst [vmem:[%s1741_s27 + $0x8] sm:$0xf] (%p50_p3), %v194_v2  ;;  %197 = vst [vmem:[%s1741_s27 + $0xc] sm:$0xf] (%p50_p3), %v196_v3 }
  0x14   : > { %199 = vst [vmem:[%s1741_s27 + $0x10] sm:$0xf] (%p50_p3), %v198_v4  ;;  %v200_v5 = vld [vmem:[%s1737_s26 + $0x3c] sm:$0xf] (%p50_p3)  ;;  %v202_v6 = vld [vmem:[%s1737_s26 + $0x48] sm:$0xf] (%p50_p3) }
  0x15   : > { %v204_v7 = vld [vmem:[%s1737_s26 + $0x54] sm:$0xf]  ;;  %201 = vst [vmem:[%s1741_s27 + $0x14] sm:$0xf] %v200_v5  ;;  %203 = vst [vmem:[%s1741_s27 + $0x18] sm:$0xf] %v202_v6 }
  0x16   : > { %205 = vst [vmem:[%s1741_s27 + $0x1c] sm:$0xf] %v204_v7  ;;  %v206_v8 = vld [vmem:[%s1737_s26 + $0x60] sm:$0xf]  ;;  %v208_v9 = vld [vmem:[%s1737_s26 + $0x6c] sm:$0xf] }
  0x17   : > { %v210_v10 = vld [vmem:[%s1737_s26 + $0x78] sm:$0xf]  ;;  %207 = vst [vmem:[%s1741_s27 + $0x20] sm:$0xf] %v206_v8  ;;  %209 = vst [vmem:[%s1741_s27 + $0x24] sm:$0xf] %v208_v9 }
  0x18   : > { %211 = vst [vmem:[%s1741_s27 + $0x28] sm:$0xf] %v210_v10  ;;  %v212_v11 = vld [vmem:[%s1737_s26 + $0x84] sm:$0xf]  ;;  %v214_v12 = vld [vmem:[%s1737_s26 + $0x90] sm:$0xf] }
  0x19   : > { %v216_v13 = vld [vmem:[%s1737_s26 + $0x9c] sm:$0xf]  ;;  %213 = vst [vmem:[%s1741_s27 + $0x2c] sm:$0xf] %v212_v11  ;;  %215 = vst [vmem:[%s1741_s27 + $0x30] sm:$0xf] %v214_v12 }
  0x1a   : > { %217 = vst [vmem:[%s1741_s27 + $0x34] sm:$0xf] %v216_v13  ;;  %v218_v14 = vld [vmem:[%s1737_s26 + $0xa8] sm:$0xf]  ;;  %v220_v15 = vld [vmem:[%s1737_s26 + $0xb4] sm:$0xf] }
  0x1b   : > { %v222_v16 = vld [vmem:[%s1737_s26 + $0xc0] sm:$0xf]  ;;  %219 = vst [vmem:[%s1741_s27 + $0x38] sm:$0xf] %v218_v14  ;;  %221 = vst [vmem:[%s1741_s27 + $0x3c] sm:$0xf] %v220_v15 }
  0x1c   : > { %223 = vst [vmem:[%s1741_s27 + $0x40] sm:$0xf] %v222_v16  ;;  %v224_v17 = vld [vmem:[%s1737_s26 + $0xcc] sm:$0xf]  ;;  %v226_v18 = vld [vmem:[%s1737_s26 + $0xd8] sm:$0xf] }
  0x1d   : > { %v228_v19 = vld [vmem:[%s1737_s26 + $0xe4] sm:$0xf]  ;;  %225 = vst [vmem:[%s1741_s27 + $0x44] sm:$0xf] %v224_v17  ;;  %227 = vst [vmem:[%s1741_s27 + $0x48] sm:$0xf] %v226_v18 }
  0x1e   : > { %229 = vst [vmem:[%s1741_s27 + $0x4c] sm:$0xf] %v228_v19  ;;  %v230_v20 = vld [vmem:[%s1737_s26 + $0xf0] sm:$0xf]  ;;  %v232_v21 = vld [vmem:[%s1737_s26 + $0xfc] sm:$0xf] }
  0x1f   : > { %v234_v22 = vld [vmem:[%s1737_s26 + $0x108] sm:$0xf]  ;;  %231 = vst [vmem:[%s1741_s27 + $0x50] sm:$0xf] %v230_v20  ;;  %233 = vst [vmem:[%s1741_s27 + $0x54] sm:$0xf] %v232_v21 }
  0x20   : > { %235 = vst [vmem:[%s1741_s27 + $0x58] sm:$0xf] %v234_v22  ;;  %v236_v23 = vld [vmem:[%s1737_s26 + $0x114] sm:$0xf]  ;;  %v238_v24 = vld [vmem:[%s1737_s26 + $0x120] sm:$0xf] }
  0x21   : > { %v240_v25 = vld [vmem:[%s1737_s26 + $0x12c] sm:$0xf]  ;;  %237 = vst [vmem:[%s1741_s27 + $0x5c] sm:$0xf] %v236_v23  ;;  %239 = vst [vmem:[%s1741_s27 + $0x60] sm:$0xf] %v238_v24 }
  0x22   : > { %241 = vst [vmem:[%s1741_s27 + $0x64] sm:$0xf] %v240_v25  ;;  %v242_v26 = vld [vmem:[%s1737_s26 + $0x138] sm:$0xf]  ;;  %v244_v27 = vld [vmem:[%s1737_s26 + $0x144] sm:$0xf] }
  0x23   : > { %v246_v28 = vld [vmem:[%s1737_s26 + $0x150] sm:$0xf]  ;;  %243 = vst [vmem:[%s1741_s27 + $0x68] sm:$0xf] %v242_v26  ;;  %245 = vst [vmem:[%s1741_s27 + $0x6c] sm:$0xf] %v244_v27 }
  0x24   : > { %247 = vst [vmem:[%s1741_s27 + $0x70] sm:$0xf] %v246_v28  ;;  %v248_v29 = vld [vmem:[%s1737_s26 + $0x15c] sm:$0xf]  ;;  %v250_v30 = vld [vmem:[%s1737_s26 + $0x168] sm:$0xf] }
  0x25   : > { %v252_v31 = vld [vmem:[%s1737_s26 + $0x174] sm:$0xf]  ;;  %249 = vst [vmem:[%s1741_s27 + $0x74] sm:$0xf] %v248_v29  ;;  %251 = vst [vmem:[%s1741_s27 + $0x78] sm:$0xf] %v250_v30 }
  0x26   : > { %253 = vst [vmem:[%s1741_s27 + $0x7c] sm:$0xf] %v252_v31 }
  0x27 PF: > { %p1286_p6 = scmp.ge.s32.totalorder %s1671_s16, 1  ;;  %p351_p7 = scmp.lt.s32.totalorder %s1671_s16, 4 }
  0x29   : > { %p352_p8 = pnand %p1286_p6, %p351_p7 }
  0x2a   : > { %s358_s28 = sand.u32 (!%p352_p8), 1, %s1655_s12   ;;  %s1288_s29 = sshll.u32 (!%p352_p8), %s1663_s14, 4 }
  0x2b   : > { %355 = sbr.rel (%p352_p8) target bundleno = 359 (0x167), region = 69  ;;  %s1287_s30 = sshll.u32 (!%p352_p8), %s358_s28, 7 }
  0x2c   : > { %p397_p9 = scmp.lt.s32.totalorder (!%p352_p8), %s1288_s29, 47  ;;  %s1814_s8 = scalar_lea.vmem (!%p352_p8), [#allocation3], %s1287_s30 }
  0x2d   : > { %p1290_p10 = scmp.ne.s32.totalorder (!%p352_p8), %s1663_s14, 0 }
  0x32   : > { %s1953_s29 = smov (!%p397_p9, %s1288_s29), 47  ;;  %421 = sbr.rel (%p1290_p10) target bundleno = 68 (0x44), region = 77 }
  0x33   : > { %s1289_s4 = sshll.u32 %s1953_s29, 2  ;;  %v1673_v32 = vmov (!%p1290_p10), 0.0  }
  0x34   : > { %s1812_s7 = scalar_lea.vmem %s1943_s1, %s1289_s4  ;;  %422 = vst [vmem:[#allocation2] sm:$0xff] (!%p1290_p10), %v1673_v32  ;;  %423 = vst [vmem:[#allocation2 + $0x8] sm:$0xff] (!%p1290_p10), %v1673_v32 }
  0x35   : > { %424 = vst [vmem:[#allocation2 + $0x10] sm:$0xff] (!%p1290_p10), %v1673_v32  ;;  %425 = vst [vmem:[#allocation2 + $0x18] sm:$0xff] (!%p1290_p10), %v1673_v32 }
  0x36   : > { %426 = vst [vmem:[#allocation2 + $0x20] sm:$0xff] (!%p1290_p10), %v1673_v32  ;;  %427 = vst [vmem:[#allocation2 + $0x28] sm:$0xff] (!%p1290_p10), %v1673_v32 }
  0x37   : > { %428 = vst [vmem:[#allocation2 + $0x30] sm:$0xff] (!%p1290_p10), %v1673_v32  ;;  %429 = vst [vmem:[#allocation2 + $0x38] sm:$0xff] (!%p1290_p10), %v1673_v32 }
  0x38   : > { %430 = vst [vmem:[#allocation2 + $0x40] sm:$0xff] (!%p1290_p10), %v1673_v32  ;;  %431 = vst [vmem:[#allocation2 + $0x48] sm:$0xff] (!%p1290_p10), %v1673_v32 }
  0x39   : > { %432 = vst [vmem:[#allocation2 + $0x50] sm:$0xff] %v1673_v32  ;;  %433 = vst [vmem:[#allocation2 + $0x58] sm:$0xff] %v1673_v32 }
  0x3a   : > { %434 = vst [vmem:[#allocation2 + $0x60] sm:$0xff] %v1673_v32  ;;  %435 = vst [vmem:[#allocation2 + $0x68] sm:$0xff] %v1673_v32 }
  0x3b   : > { %436 = vst [vmem:[#allocation2 + $0x70] sm:$0xff] %v1673_v32  ;;  %437 = vst [vmem:[#allocation2 + $0x78] sm:$0xff] %v1673_v32 }
  0x3c   : > { %438 = vst [vmem:[#allocation2 + $0x80] sm:$0xff] %v1673_v32  ;;  %439 = vst [vmem:[#allocation2 + $0x88] sm:$0xff] %v1673_v32 }
  0x3d   : > { %440 = vst [vmem:[#allocation2 + $0x90] sm:$0xff] %v1673_v32  ;;  %441 = vst [vmem:[#allocation2 + $0x98] sm:$0xff] %v1673_v32 }
  0x3e   : > { %442 = vst [vmem:[#allocation2 + $0xa0] sm:$0xff] %v1673_v32  ;;  %443 = vst [vmem:[#allocation2 + $0xa8] sm:$0xff] %v1673_v32 }
  0x3f   : > { %444 = vst [vmem:[#allocation2 + $0xb0] sm:$0xff] %v1673_v32  ;;  %445 = vst [vmem:[#allocation2 + $0xb8] sm:$0xff] %v1673_v32 }
  0x40   : > { %446 = vst [vmem:[#allocation2 + $0xc0] sm:$0xff] %v1673_v32  ;;  %447 = vst [vmem:[#allocation2 + $0xc8] sm:$0xff] %v1673_v32 }
  0x41   : > { %448 = vst [vmem:[#allocation2 + $0xd0] sm:$0xff] %v1673_v32  ;;  %449 = vst [vmem:[#allocation2 + $0xd8] sm:$0xff] %v1673_v32 }
  0x42   : > { %450 = vst [vmem:[#allocation2 + $0xe0] sm:$0xff] %v1673_v32  ;;  %451 = vst [vmem:[#allocation2 + $0xe8] sm:$0xff] %v1673_v32 }
  0x43   : > { %452 = vst [vmem:[#allocation2 + $0xf0] sm:$0xff] %v1673_v32  ;;  %453 = vst [vmem:[#allocation2 + $0xf8] sm:$0xff] %v1673_v32 }
  0x44 PF: > { %v1609_v33 = vld [vmem:[%s1812_s7] sm:$0xff]   ;;  %v1610_v34 = vld [vmem:[%s1812_s7 + $0x8] sm:$0xff]   ;;  %v1611_v35 = vld [vmem:[%s1812_s7 + $0x10] sm:$0xff]   ;;  %p1315_p11 = scmp.ne.s32.totalorder %s1663_s14, 2 }
  0x45   : > { %1504 = vmatprep.subr.bf16.mxu0 %v1609_v33  ;;  %1552 = vmatprep.subr.bf16.mxu1 %v1609_v33  ;;  %v1612_v36 = vld [vmem:[%s1812_s7 + $0x18] sm:$0xff]   ;;  %v1617_v37 = vld [vmem:[%s1814_s8] sm:$0xff]   ;;  %v1614_v40 = vld [vmem:[%s1812_s7 + $0x28] sm:$0xff]  }
  0x46   : > { %1505 = vmatpush3.bf16.msra.mxu0 %v1609_v33  ;;  %1560 = vmatpush3.bf16.msra.mxu1 %v1609_v33  ;;  %v1618_v38 = vld [vmem:[%s1814_s8 + $0x40] sm:$0xff]   ;;  %v1615_v41 = vld [vmem:[%s1812_s7 + $0x30] sm:$0xff]   ;;  %v1616_v42 = vld [vmem:[%s1812_s7 + $0x38] sm:$0xff]  }
  0x47   : > { %1506 = vmatprep.subr.bf16.mxu0 %v1610_v34  ;;  %1553 = vmatprep.subr.bf16.mxu1 %v1610_v34  ;;  %v1613_v39 = vld [vmem:[%s1812_s7 + $0x20] sm:$0xff]   ;;  %v1619_v43 = vld [vmem:[%s1814_s8 + $0x8] sm:$0xff]   ;;  %v1621_v45 = vld [vmem:[%s1814_s8 + $0x10] sm:$0xff]  }
  0x48   : > { %1520 = vmatprep.mubr.bf16.mxu0 %v1617_v37  ;;  %1536 = vmatprep.mubr.bf16.mxu1 %v1618_v38  ;;  %v1620_v44 = vld [vmem:[%s1814_s8 + $0x48] sm:$0xff]   ;;  %v1622_v46 = vld [vmem:[%s1814_s8 + $0x50] sm:$0xff]   ;;  %v1623_v47 = vld [vmem:[%s1814_s8 + $0x18] sm:$0xff]  }
  0x49   : > { %v1624_v48 = vld [vmem:[%s1814_s8 + $0x58] sm:$0xff]   ;;  %v1625_v49 = vld [vmem:[%s1814_s8 + $0x20] sm:$0xff]   ;;  %v1627_v51 = vld [vmem:[%s1814_s8 + $0x28] sm:$0xff]  }
  0x4a   : > { %1507 = vmatpush3.bf16.msra.mxu0 %v1610_v34  ;;  %1561 = vmatpush3.bf16.msra.mxu1 %v1610_v34  ;;  %v1626_v50 = vld [vmem:[%s1814_s8 + $0x60] sm:$0xff]   ;;  %v1628_v52 = vld [vmem:[%s1814_s8 + $0x68] sm:$0xff]   ;;  %v1629_v53 = vld [vmem:[%s1814_s8 + $0x30] sm:$0xff]  }
  0x4b   : > { %1508 = vmatprep.subr.bf16.mxu0 %v1611_v35  ;;  %1554 = vmatprep.subr.bf16.mxu1 %v1611_v35  ;;  %v1630_v54 = vld [vmem:[%s1814_s8 + $0x70] sm:$0xff]   ;;  %v1631_v55 = vld [vmem:[%s1814_s8 + $0x38] sm:$0xff]   ;;  %v454_v59 = vld [vmem:[#allocation2] sm:$0xff] }
  0x4c   : > { %v1632_v56 = vld [vmem:[%s1814_s8 + $0x78] sm:$0xff]   ;;  %v456_v57 = vld [vmem:[#allocation2 + $0x10] sm:$0xff]  ;;  %v470_v60 = vld [vmem:[#allocation2 + $0x80] sm:$0xff] }
  0x4d   : > { %v472_v58 = vld [vmem:[#allocation2 + $0x90] sm:$0xff]  ;;  %v457_v63 = vld [vmem:[#allocation2 + $0x18] sm:$0xff]  ;;  %v455_v5 = vld [vmem:[#allocation2 + $0x8] sm:$0xff] }
  0x4e   : > { %1509 = vmatpush3.bf16.msra.mxu0 %v1611_v35  ;;  %1562 = vmatpush3.bf16.msra.mxu1 %v1611_v35  ;;  %v473_v0 = vld [vmem:[#allocation2 + $0x98] sm:$0xff]  ;;  %v471_v6 = vld [vmem:[#allocation2 + $0x88] sm:$0xff]  ;;  %v460_v17 = vld [vmem:[#allocation2 + $0x30] sm:$0xff] }
  0x4f   : > { %1510 = vmatprep.subr.bf16.mxu0 %v1612_v36  ;;  %1555 = vmatprep.subr.bf16.mxu1 %v1612_v36  ;;  %v476_v18 = vld [vmem:[#allocation2 + $0xb0] sm:$0xff]  ;;  %v458_v19 = vld [vmem:[#allocation2 + $0x20] sm:$0xff]  ;;  %v461_v23 = vld [vmem:[#allocation2 + $0x38] sm:$0xff] }
  0x50   : > { %v474_v20 = vld [vmem:[#allocation2 + $0xa0] sm:$0xff]  ;;  %v477_v24 = vld [vmem:[#allocation2 + $0xb8] sm:$0xff]  ;;  %v459_v29 = vld [vmem:[#allocation2 + $0x28] sm:$0xff] }
  0x51   : > { %v475_v30 = vld [vmem:[#allocation2 + $0xa8] sm:$0xff] }
  0x52   : > { %1511 = vmatpush3.bf16.msra.mxu0 %v1612_v36  ;;  %1563 = vmatpush3.bf16.msra.mxu1 %v1612_v36 }
  0x53   : > { %1512 = vmatprep.subr.bf16.mxu0 %v1613_v39  ;;  %1556 = vmatprep.subr.bf16.mxu1 %v1613_v39 }
  0x56   : > { %1513 = vmatpush3.bf16.msra.mxu0 %v1613_v39  ;;  %1564 = vmatpush3.bf16.msra.mxu1 %v1613_v39 }
  0x57   : > { %1514 = vmatprep.subr.bf16.mxu0 %v1614_v40  ;;  %1557 = vmatprep.subr.bf16.mxu1 %v1614_v40 }
  0x5a   : > { %1515 = vmatpush3.bf16.msra.mxu0 %v1614_v40  ;;  %1565 = vmatpush3.bf16.msra.mxu1 %v1614_v40 }
  0x5b   : > { %1516 = vmatprep.subr.bf16.mxu0 %v1615_v41  ;;  %1558 = vmatprep.subr.bf16.mxu1 %v1615_v41 }
  0x5e   : > { %1517 = vmatpush3.bf16.msra.mxu0 %v1615_v41  ;;  %1566 = vmatpush3.bf16.msra.mxu1 %v1615_v41  ;;  %v464_v41 = vld [vmem:[#allocation2 + $0x50] sm:$0xff] }
  0x5f   : > { %1518 = vmatprep.subr.bf16.mxu0 %v1616_v42  ;;  %1559 = vmatprep.subr.bf16.mxu1 %v1616_v42 }
  0x62   : > { %1519 = vmatpush3.bf16.msra.mxu0 %v1616_v42  ;;  %1567 = vmatpush3.bf16.msra.mxu1 %v1616_v42  ;;  %v480_v42 = vld [vmem:[#allocation2 + $0xd0] sm:$0xff] }
  0x65   : > { %1521 = vmatmul.mubr.bf16.vlgmr.msra.gmra.mrb[0].mxu0 %v1619_v43  ;;  %1537 = vmatmul.mubr.bf16.vlgmr.msra.gmra.mrb[0].mxu1 %v1620_v44  ;;  %v462_v43 = vld [vmem:[#allocation2 + $0x40] sm:$0xff] }
  0x66   : > { %1524 = vmatprep.mubr.bf16.mxu0 %v1621_v45  ;;  %1540 = vmatprep.mubr.bf16.mxu1 %v1622_v46  ;;  %v478_v44 = vld [vmem:[#allocation2 + $0xc0] sm:$0xff] }
  0x6d   : > { %1525 = vmatmul.mubr.bf16.gmra.mrb[4].mxu0 %v1623_v47  ;;  %1541 = vmatmul.mubr.bf16.gmra.mrb[4].mxu1 %v1624_v48  ;;  %v465_v47 = vld [vmem:[#allocation2 + $0x58] sm:$0xff] }
  0x6e   : > { %1528 = vmatprep.mubr.bf16.mxu0 %v1625_v49  ;;  %1544 = vmatprep.mubr.bf16.mxu1 %v1626_v50  ;;  %v481_v48 = vld [vmem:[#allocation2 + $0xd8] sm:$0xff] }
  0x75   : > { %1529 = vmatmul.mubr.bf16.gmra.mrb[8].mxu0 %v1627_v51  ;;  %1545 = vmatmul.mubr.bf16.gmra.mrb[8].mxu1 %v1628_v52 }
  0x76   : > { %1532 = vmatprep.mubr.bf16.mxu0 %v1629_v53  ;;  %1548 = vmatprep.mubr.bf16.mxu1 %v1630_v54  ;;  %v463_v53 = vld [vmem:[#allocation2 + $0x48] sm:$0xff] }
  0x77   : > { %v479_v54 = vld [vmem:[#allocation2 + $0xc8] sm:$0xff] }
  0x7d   : > { %1533 = vmatmul.mubr.bf16.gmra.mrb[12].mxu0 %v1631_v55  ;;  %1549 = vmatmul.mubr.bf16.gmra.mrb[12].mxu1 %v1632_v56 }
 0x138   : > { %v1522_v61 = vpop.f32.mrb[0].mxu0  ;;  %v1538_v62 = vpop.f32.mrb[0].mxu1 }
 0x139   : > { %v841_v1 = vadd.f32 %v1522_v61, %v456_v57  ;;  %v857_v2 = vadd.f32 %v1538_v62, %v472_v58  ;;  %v712_v3 = vpop.f32.mrb[1].mxu0  ;;  %v776_v4 = vpop.f32.mrb[1].mxu1 }
 0x13a   : > { %v839_v7 = vadd.f32 %v712_v3, %v454_v59  ;;  %v855_v8 = vadd.f32 %v776_v4, %v470_v60  ;;  %v1523_v9 = vpop.f32.mrb[2].mxu0  ;;  %v1539_v10 = vpop.f32.mrb[2].mxu1  ;;  %v466_v3 = vld [vmem:[#allocation2 + $0x60] sm:$0xff] }
 0x13b   : > { %873 = vst [vmem:[#allocation2 + $0x10] sm:$0xff] %v841_v1  ;;  %889 = vst [vmem:[#allocation2 + $0x90] sm:$0xff] %v857_v2  ;;  %v842_v11 = vadd.f32 %v1523_v9, %v457_v63  ;;  %v858_v12 = vadd.f32 %v1539_v10, %v473_v0  ;;  %v715_v13 = vpop.f32.mrb[3].mxu0  ;;  %v779_v14 = vpop.f32.mrb[3].mxu1  ;;  %v468_v1 = vld [vmem:[#allocation2 + $0x70] sm:$0xff]  ;;  %v482_v4 = vld [vmem:[#allocation2 + $0xe0] sm:$0xff] }
 0x13c   : > { %871 = vst [vmem:[#allocation2] sm:$0xff] %v839_v7  ;;  %887 = vst [vmem:[#allocation2 + $0x80] sm:$0xff] %v855_v8  ;;  %v840_v15 = vadd.f32 %v715_v13, %v455_v5  ;;  %v856_v16 = vadd.f32 %v779_v14, %v471_v6  ;;  %v484_v2 = vld [vmem:[#allocation2 + $0xf0] sm:$0xff]  ;;  %v469_v7 = vld [vmem:[#allocation2 + $0x78] sm:$0xff] }
 0x13d   : > { %874 = vst [vmem:[#allocation2 + $0x18] sm:$0xff] %v842_v11  ;;  %890 = vst [vmem:[#allocation2 + $0x98] sm:$0xff] %v858_v12  ;;  %v485_v8 = vld [vmem:[#allocation2 + $0xf8] sm:$0xff]  ;;  %v467_v13 = vld [vmem:[#allocation2 + $0x68] sm:$0xff] }
 0x13e   : > { %872 = vst [vmem:[#allocation2 + $0x8] sm:$0xff] %v840_v15  ;;  %888 = vst [vmem:[#allocation2 + $0x88] sm:$0xff] %v856_v16  ;;  %v483_v14 = vld [vmem:[#allocation2 + $0xe8] sm:$0xff] }
 0x140   : > { %v1526_v21 = vpop.f32.mrb[4].mxu0  ;;  %v1542_v22 = vpop.f32.mrb[4].mxu1 }
 0x141   : > { %v845_v25 = vadd.f32 %v1526_v21, %v460_v17  ;;  %v861_v26 = vadd.f32 %v1542_v22, %v476_v18  ;;  %v728_v27 = vpop.f32.mrb[5].mxu0  ;;  %v792_v28 = vpop.f32.mrb[5].mxu1 }
 0x142   : > { %v843_v31 = vadd.f32 %v728_v27, %v458_v19  ;;  %v859_v32 = vadd.f32 %v792_v28, %v474_v20  ;;  %v1527_v33 = vpop.f32.mrb[6].mxu0  ;;  %v1543_v34 = vpop.f32.mrb[6].mxu1  ;;  %v1845_v27 = vld [vmem:[%s1944_s2] ss:$0 sm:$0xff] (!%p1315_p11) }
 0x143   : > { %877 = vst [vmem:[#allocation2 + $0x30] sm:$0xff] %v845_v25  ;;  %893 = vst [vmem:[#allocation2 + $0xb0] sm:$0xff] %v861_v26  ;;  %v846_v35 = vadd.f32 %v1527_v33, %v461_v23  ;;  %v862_v36 = vadd.f32 %v1543_v34, %v477_v24  ;;  %v731_v37 = vpop.f32.mrb[7].mxu0  ;;  %v795_v38 = vpop.f32.mrb[7].mxu1  ;;  %v907_v25 = vld [vmem:[#allocation2] sm:$0xff] (!%p1315_p11) }
 0x144   : > { %875 = vst [vmem:[#allocation2 + $0x20] sm:$0xff] %v843_v31  ;;  %891 = vst [vmem:[#allocation2 + $0xa0] sm:$0xff] %v859_v32  ;;  %v844_v39 = vadd.f32 %v731_v37, %v459_v29  ;;  %v860_v40 = vadd.f32 %v795_v38, %v475_v30  ;;  %v946_v28 = vadd.f32 (!%p1315_p11), %v1845_v27, %v907_v25  ;;  %v909_v30 = vld [vmem:[#allocation2 + $0x10] sm:$0xff] (!%p1315_p11)  ;;  %v910_v31 = vld [vmem:[#allocation2 + $0x18] sm:$0xff] (!%p1315_p11) }
 0x145   : > { %878 = vst [vmem:[#allocation2 + $0x38] sm:$0xff] %v846_v35  ;;  %894 = vst [vmem:[#allocation2 + $0xb8] sm:$0xff] %v862_v36  ;;  %v908_v26 = vld [vmem:[#allocation2 + $0x8] sm:$0xff] (!%p1315_p11)  ;;  %v948_v33 = vadd.f32 (!%p1315_p11), %v1845_v27, %v909_v30  ;;  %v949_v34 = vadd.f32 (!%p1315_p11), %v1845_v27, %v910_v31 }
 0x146   : > { %876 = vst [vmem:[#allocation2 + $0x28] sm:$0xff] %v844_v39  ;;  %892 = vst [vmem:[#allocation2 + $0xa8] sm:$0xff] %v860_v40  ;;  %v947_v29 = vadd.f32 (!%p1315_p11), %v1845_v27, %v908_v26  ;;  %v978_v39 = vmax.f32 (!%p1315_p11), %v946_v28, 0.0 }
 0x148   : > { %v1530_v45 = vpop.f32.mrb[8].mxu0  ;;  %v1546_v46 = vpop.f32.mrb[8].mxu1  ;;  %v979_v40 = vmax.f32 (!%p1315_p11), %v947_v29, 0.0 }
 0x149   : > { %v849_v49 = vadd.f32 %v1530_v45, %v464_v41  ;;  %v865_v50 = vadd.f32 %v1546_v46, %v480_v42  ;;  %v744_v51 = vpop.f32.mrb[9].mxu0  ;;  %v808_v52 = vpop.f32.mrb[9].mxu1  ;;  %v980_v46 = vmax.f32 (!%p1315_p11), %v948_v33, 0.0 }
 0x14a   : > { %v847_v55 = vadd.f32 %v744_v51, %v462_v43  ;;  %v863_v56 = vadd.f32 %v808_v52, %v478_v44  ;;  %v1531_v57 = vpop.f32.mrb[10].mxu0  ;;  %v1547_v58 = vpop.f32.mrb[10].mxu1  ;;  %v913_v37 = vld [vmem:[#allocation2 + $0x30] sm:$0xff] (!%p1315_p11)  ;;  %v1388_v52 = vpack.c.bf16 (!%p1315_p11), %v979_v40, %v978_v39 }
 0x14b   : > { %881 = vst [vmem:[#allocation2 + $0x50] sm:$0xff] %v849_v49  ;;  %897 = vst [vmem:[#allocation2 + $0xd0] sm:$0xff] %v865_v50  ;;  %v850_v59 = vadd.f32 %v1531_v57, %v465_v47  ;;  %v866_v60 = vadd.f32 %v1547_v58, %v481_v48  ;;  %v747_v61 = vpop.f32.mrb[11].mxu0  ;;  %v811_v62 = vpop.f32.mrb[11].mxu1  ;;  %v911_v32 = vld [vmem:[#allocation2 + $0x20] sm:$0xff] (!%p1315_p11)  ;;  %v952_v42 = vadd.f32 (!%p1315_p11), %v1845_v27, %v913_v37  ;;  %v981_v47 = vmax.f32 (!%p1315_p11), %v949_v34, 0.0 }
 0x14c   : > { %879 = vst [vmem:[#allocation2 + $0x40] sm:$0xff] %v847_v55  ;;  %895 = vst [vmem:[#allocation2 + $0xc0] sm:$0xff] %v863_v56  ;;  %v848_v63 = vadd.f32 %v747_v61, %v463_v53  ;;  %v864_v0 = vadd.f32 %v811_v62, %v479_v54  ;;  %v950_v36 = vadd.f32 (!%p1315_p11), %v1845_v27, %v911_v32  ;;  %v914_v38 = vld [vmem:[#allocation2 + $0x38] sm:$0xff] (!%p1315_p11)  ;;  %v929_v25 = vld [vmem:[#allocation2 + $0xb0] sm:$0xff] (!%p1315_p11) }
 0x14d   : > { %882 = vst [vmem:[#allocation2 + $0x58] sm:$0xff] %v850_v59  ;;  %898 = vst [vmem:[#allocation2 + $0xd8] sm:$0xff] %v866_v60  ;;  %v912_v35 = vld [vmem:[#allocation2 + $0x28] sm:$0xff] (!%p1315_p11)  ;;  %v953_v49 = vadd.f32 (!%p1315_p11), %v1845_v27, %v914_v38  ;;  %v984_v54 = vmax.f32 (!%p1315_p11), %v952_v42, 0.0  ;;  %v1393_v57 = vpack.c.bf16 (!%p1315_p11), %v981_v47, %v980_v46  ;;  %v930_v26 = vld [vmem:[#allocation2 + $0xb8] sm:$0xff] (!%p1315_p11) }
 0x14e   : > { %880 = vst [vmem:[#allocation2 + $0x48] sm:$0xff] %v848_v63  ;;  %896 = vst [vmem:[#allocation2 + $0xc8] sm:$0xff] %v864_v0  ;;  %v951_v41 = vadd.f32 (!%p1315_p11), %v1845_v27, %v912_v35  ;;  %v982_v48 = vmax.f32 (!%p1315_p11), %v950_v36, 0.0  ;;  %v969_v42 = vadd.f32 (!%p1315_p11), %v1845_v27, %v930_v26 }
 0x14f   : > { %v985_v58 = vmax.f32 (!%p1315_p11), %v953_v49, 0.0  ;;  %1389 = vst [vmem:[%s1945_s3] sm:$0xff] (!%p1315_p11), %v1388_v52   ;;  %1465 = vst [vmem:[%s1945_s3 + $0x8] sm:$0xff] (!%p1315_p11), %v1393_v57  }
 0x150   : > { %v1534_v5 = vpop.f32.mrb[12].mxu0  ;;  %v1550_v6 = vpop.f32.mrb[12].mxu1  ;;  %906 = sbr.rel (%p1315_p11) target bundleno = 359 (0x167), region = 81  ;;  %v983_v53 = vmax.f32 (!%p1315_p11), %v951_v41, 0.0  ;;  %v968_v41 = vadd.f32 (!%p1315_p11), %v1845_v27, %v929_v25  ;;  %v1001_v52 = vmax.f32 (!%p1315_p11), %v969_v42, 0.0 }
 0x151   : > { %v853_v9 = vadd.f32 %v1534_v5, %v468_v1  ;;  %v869_v10 = vadd.f32 %v1550_v6, %v484_v2  ;;  %v760_v11 = vpop.f32.mrb[13].mxu0  ;;  %v824_v12 = vpop.f32.mrb[13].mxu1  ;;  %v1403_v5 = vpack.c.bf16 (!%p1315_p11), %v985_v58, %v984_v54 }
 0x152   : > { %v851_v15 = vadd.f32 %v760_v11, %v466_v3  ;;  %v867_v16 = vadd.f32 %v824_v12, %v482_v4  ;;  %v1535_v17 = vpop.f32.mrb[14].mxu0  ;;  %v1551_v18 = vpop.f32.mrb[14].mxu1  ;;  %v917_v45 = vld [vmem:[#allocation2 + $0x50] sm:$0xff] (!%p1315_p11)  ;;  %v1398_v63 = vpack.c.bf16 (!%p1315_p11), %v983_v53, %v982_v48  ;;  %v923_v3 = vld [vmem:[#allocation2 + $0x80] sm:$0xff] (!%p1315_p11)  ;;  %v924_v4 = vld [vmem:[#allocation2 + $0x88] sm:$0xff] (!%p1315_p11) }
 0x153   : > { %885 = vst [vmem:[#allocation2 + $0x70] sm:$0xff] %v853_v9  ;;  %901 = vst [vmem:[#allocation2 + $0xf0] sm:$0xff] %v869_v10  ;;  %v854_v19 = vadd.f32 %v1535_v17, %v469_v7  ;;  %v870_v20 = vadd.f32 %v1551_v18, %v485_v8  ;;  %v763_v21 = vpop.f32.mrb[15].mxu0  ;;  %v827_v22 = vpop.f32.mrb[15].mxu1  ;;  %v915_v43 = vld [vmem:[#allocation2 + $0x40] sm:$0xff] (!%p1315_p11)  ;;  %v956_v60 = vadd.f32 (!%p1315_p11), %v1845_v27, %v917_v45  ;;  %v925_v9 = vld [vmem:[#allocation2 + $0x90] sm:$0xff] (!%p1315_p11) }
 0x154   : > { %883 = vst [vmem:[#allocation2 + $0x60] sm:$0xff] %v851_v15  ;;  %899 = vst [vmem:[#allocation2 + $0xe0] sm:$0xff] %v867_v16  ;;  %v852_v23 = vadd.f32 %v763_v21, %v467_v13  ;;  %v868_v24 = vadd.f32 %v827_v22, %v483_v14  ;;  %v918_v50 = vld [vmem:[#allocation2 + $0x58] sm:$0xff] (!%p1315_p11)  ;;  %v954_v55 = vadd.f32 (!%p1315_p11), %v1845_v27, %v915_v43  ;;  %v931_v32 = vld [vmem:[#allocation2 + $0xc0] sm:$0xff] (!%p1315_p11) }
 0x155   : > { %886 = vst [vmem:[#allocation2 + $0x78] sm:$0xff] %v854_v19  ;;  %902 = vst [vmem:[#allocation2 + $0xf8] sm:$0xff] %v870_v20  ;;  %v916_v44 = vld [vmem:[#allocation2 + $0x48] sm:$0xff] (!%p1315_p11)  ;;  %v957_v1 = vadd.f32 (!%p1315_p11), %v1845_v27, %v918_v50  ;;  %v988_v7 = vmax.f32 (!%p1315_p11), %v956_v60, 0.0  ;;  %v926_v14 = vld [vmem:[#allocation2 + $0x98] sm:$0xff] (!%p1315_p11)  ;;  %v962_v17 = vadd.f32 (!%p1315_p11), %v1845_v27, %v923_v3  ;;  %v963_v18 = vadd.f32 (!%p1315_p11), %v1845_v27, %v924_v4 }
 0x156   : > { %884 = vst [vmem:[#allocation2 + $0x68] sm:$0xff] %v852_v23  ;;  %900 = vst [vmem:[#allocation2 + $0xe8] sm:$0xff] %v868_v24  ;;  %v955_v59 = vadd.f32 (!%p1315_p11), %v1845_v27, %v916_v44  ;;  %v986_v0 = vmax.f32 (!%p1315_p11), %v954_v55, 0.0  ;;  %v927_v19 = vld [vmem:[#allocation2 + $0xa0] sm:$0xff] (!%p1315_p11)  ;;  %v928_v20 = vld [vmem:[#allocation2 + $0xa8] sm:$0xff] (!%p1315_p11)  ;;  %v964_v24 = vadd.f32 (!%p1315_p11), %v1845_v27, %v925_v9  ;;  %v965_v31 = vadd.f32 (!%p1315_p11), %v1845_v27, %v926_v14 }
 0x157   : > { %1466 = vst [vmem:[%s1945_s3 + $0x10] sm:$0xff] %v1398_v63   ;;  %v989_v10 = vmax.f32 %v957_v1, 0.0  ;;  %1467 = vst [vmem:[%s1945_s3 + $0x18] sm:$0xff] %v1403_v5   ;;  %v994_v29 = vmax.f32 %v962_v17, 0.0  ;;  %v995_v30 = vmax.f32 %v963_v18, 0.0  ;;  %v932_v33 = vld [vmem:[#allocation2 + $0xc8] sm:$0xff]  ;;  %v966_v36 = vadd.f32 %v1845_v27, %v927_v19 }
 0x158   : > { %v987_v6 = vmax.f32 %v955_v59, 0.0  ;;  %v996_v35 = vmax.f32 %v964_v24, 0.0  ;;  %v967_v37 = vadd.f32 %v1845_v27, %v928_v20  ;;  %v933_v38 = vld [vmem:[#allocation2 + $0xd0] sm:$0xff]  ;;  %v997_v40 = vmax.f32 %v965_v31, 0.0  ;;  %v934_v43 = vld [vmem:[#allocation2 + $0xd8] sm:$0xff] }
 0x159   : > { %v1413_v21 = vpack.c.bf16 %v989_v10, %v988_v7  ;;  %v1428_v39 = vpack.c.bf16 %v995_v30, %v994_v29  ;;  %v998_v44 = vmax.f32 %v966_v36, 0.0  ;;  %v970_v46 = vadd.f32 %v1845_v27, %v931_v32 }
 0x15a   : > { %v921_v61 = vld [vmem:[#allocation2 + $0x70] sm:$0xff]  ;;  %v1408_v15 = vpack.c.bf16 %v987_v6, %v986_v0  ;;  %v999_v45 = vmax.f32 %v967_v37, 0.0  ;;  %v971_v47 = vadd.f32 %v1845_v27, %v932_v33  ;;  %v1433_v50 = vpack.c.bf16 %v997_v40, %v996_v35 }
 0x15b   : > { %v919_v51 = vld [vmem:[#allocation2 + $0x60] sm:$0xff]  ;;  %v960_v12 = vadd.f32 %v1845_v27, %v921_v61  ;;  %1469 = vst [vmem:[%s1945_s3 + $0x28] sm:$0xff] %v1413_v21   ;;  %1472 = vst [vmem:[%s1945_s3 + $0x40] sm:$0xff] %v1428_v39   ;;  %v972_v53 = vadd.f32 %v1845_v27, %v933_v38  ;;  %v937_v54 = vld [vmem:[#allocation2 + $0xf0] sm:$0xff]  ;;  %v1002_v57 = vmax.f32 %v970_v46, 0.0  ;;  %v973_v59 = vadd.f32 %v1845_v27, %v934_v43 }
 0x15c   : > { %v922_v62 = vld [vmem:[#allocation2 + $0x78] sm:$0xff]  ;;  %v958_v2 = vadd.f32 %v1845_v27, %v919_v51  ;;  %1468 = vst [vmem:[%s1945_s3 + $0x20] sm:$0xff] %v1408_v15   ;;  %v935_v48 = vld [vmem:[#allocation2 + $0xe0] sm:$0xff]  ;;  %v1000_v51 = vmax.f32 %v968_v41, 0.0  ;;  %v1003_v58 = vmax.f32 %v971_v47, 0.0  ;;  %1473 = vst [vmem:[%s1945_s3 + $0x48] sm:$0xff] %v1433_v50  }
 0x15d   : > { %v920_v56 = vld [vmem:[#allocation2 + $0x68] sm:$0xff]  ;;  %v961_v13 = vadd.f32 %v1845_v27, %v922_v62  ;;  %v992_v22 = vmax.f32 %v960_v12, 0.0  ;;  %v938_v55 = vld [vmem:[#allocation2 + $0xf8] sm:$0xff]  ;;  %v1004_v61 = vmax.f32 %v972_v53, 0.0  ;;  %v974_v62 = vadd.f32 %v1845_v27, %v935_v48 }
 0x15e   : > { %v959_v8 = vadd.f32 %v1845_v27, %v920_v56  ;;  %v990_v11 = vmax.f32 %v958_v2, 0.0  ;;  %v936_v49 = vld [vmem:[#allocation2 + $0xe8] sm:$0xff]  ;;  %v1438_v56 = vpack.c.bf16 %v999_v45, %v998_v44  ;;  %v1443_v60 = vpack.c.bf16 %v1001_v52, %v1000_v51 }
 0x15f   : > { %v993_v23 = vmax.f32 %v961_v13, 0.0  ;;  %v975_v63 = vadd.f32 %v1845_v27, %v936_v49  ;;  %v1448_v0 = vpack.c.bf16 %v1003_v58, %v1002_v57  ;;  %v1005_v1 = vmax.f32 %v973_v59, 0.0 }
 0x160   : > { %v991_v16 = vmax.f32 %v959_v8, 0.0  ;;  %1474 = vst [vmem:[%s1945_s3 + $0x50] sm:$0xff] %v1438_v56   ;;  %v976_v2 = vadd.f32 %v1845_v27, %v937_v54  ;;  %v977_v3 = vadd.f32 %v1845_v27, %v938_v55  ;;  %1475 = vst [vmem:[%s1945_s3 + $0x58] sm:$0xff] %v1443_v60   ;;  %v1006_v4 = vmax.f32 %v974_v62, 0.0 }
 0x161   : > { %v1423_v34 = vpack.c.bf16 %v993_v23, %v992_v22  ;;  %v1007_v5 = vmax.f32 %v975_v63, 0.0  ;;  %1476 = vst [vmem:[%s1945_s3 + $0x60] sm:$0xff] %v1448_v0   ;;  %v1453_v6 = vpack.c.bf16 %v1005_v1, %v1004_v61 }
 0x162   : > { %v1418_v28 = vpack.c.bf16 %v991_v16, %v990_v11  ;;  %v1008_v7 = vmax.f32 %v976_v2, 0.0  ;;  %v1009_v8 = vmax.f32 %v977_v3, 0.0 }
 0x163   : > { %1471 = vst [vmem:[%s1945_s3 + $0x38] sm:$0xff] %v1423_v34   ;;  %v1458_v9 = vpack.c.bf16 %v1007_v5, %v1006_v4  ;;  %1477 = vst [vmem:[%s1945_s3 + $0x68] sm:$0xff] %v1453_v6  }
 0x164   : > { %1470 = vst [vmem:[%s1945_s3 + $0x30] sm:$0xff] %v1418_v28   ;;  %v1463_v10 = vpack.c.bf16 %v1009_v8, %v1008_v7 }
 0x165   : > { %1478 = vst [vmem:[%s1945_s3 + $0x70] sm:$0xff] %v1458_v9  }
 0x166   : > { %1479 = vst [vmem:[%s1945_s3 + $0x78] sm:$0xff] %v1463_v10  }
 0x167 PF: > { %s13_s16 = sadd.s32 1, %s1671_s16   ;;  %s1946_s12 = smov %s1659_s13 }
 0x168   : > { %p10_p12 = scmp.ge.s32.totalorder %s13_s16, 5   ;;  %s1947_s13 = smov %s1729_s20 }
 0x169   : > { %s1948_s14 = smov %s1667_s15  ;;  %s1949_s15 = smov %s1951_s17 }
 0x16a   :  { %12 = sbr.rel (!%p10_p12) target bundleno = 3 (0x3), region = 122 }

// kernel: coex_forward.44
= control target key start
LH: loop header
LB: loop body
LE: loop exit
PB: predicated region body
PF: predicated region fallthrough
CT: control target
= control target key end

     0   :  { %s1190_s12 = smov 0   ;;  %s1192_s13 = smov 0   ;;  %s1322_s0 = inlined_call_operand.vmem [shape: bf16[128,384], index: 0, kind: input, shape index: {}]   ;;  %s1323_s1 = inlined_call_operand.vmem [shape: bf16[384,128], index: 1, kind: input, shape index: {}]   ;;  %s1324_s2 = inlined_call_operand.vmem [shape: f32[1,128], index: 2, kind: input, shape index: {}]   ;;  %s1325_s3 = inlined_call_operand.vmem [shape: bf16[128,128], index: 3, kind: output, shape index: {}]  }
   0x1   :  { %s1194_s14 = smov 0   ;;  %s1196_s15 = smov 0  }
   0x2   :  { %s1198_s16 = smov 0  }
   0x3 LB: > { %s25_s17 = sadd.s32 1, %s1163_s15  ;;  %p48_p1 = scmp.ne.s32.totalorder %s1155_s13, %s1151_s12  ;;  %s1167_s16 = sphi %s1198_s16, %s13_s16   ;;  %s1163_s15 = sphi %s1196_s15, %s1329_s15   ;;  %s1159_s14 = sphi %s1194_s14, %s1328_s14   ;;  %s1155_s13 = sphi %s1192_s13, %s1327_s13   ;;  %s1151_s12 = sphi %s1190_s12, %s1326_s12  }
   0x4   : > { %p26_p0 = scmp.ge.s32.totalorder %s25_s17, 3  ;;  %p49_p2 = scmp.eq.s32.totalorder %s1167_s16, 0 }
   0x5   : > { %s41_s19 = sadd.s32 1, %s1155_s13  ;;  %p899_p5 = scmp.ge.s32.totalorder %s1167_s16, 3 }
   0x6   : > { %s1331_s17 = smov (%p26_p0, %s25_s17), 0  ;;  %p50_p3 = por %p49_p2, %p48_p1 }
   0x7   : > { %s37_s18 = ssub.s32 %s1163_s15, %s1331_s17  ;;  %162 = sbr.rel (%p899_p5) target bundleno = 28 (0x1c), region = 20 }
   0x8   : > { %p39_p4 = scmp.eq.s32.totalorder %s37_s18, 0 }
   0xa   : > { %s1225_s20 = scalar_select %p39_p4, %s1155_s13, %s41_s19  }
   0xe   : > { %165 = sbr.rel (!%p50_p3) target bundleno = 28 (0x1c), region = 24  ;;  %s167_s21 = sand.u32 (%p50_p3), 1, %s1155_s13  }
   0xf   : > { %s901_s22 = sshll.u32 (%p50_p3), %s1163_s15, 2  ;;  %s900_s23 = sshll.u32 (%p50_p3), %s167_s21, 6 }
  0x10   : > { %s1233_s26 = scalar_lea.vmem (%p50_p3), %s1322_s0, %s901_s22  ;;  %s169_s27 = scalar_lea.vmem (%p50_p3), [#allocation3], %s900_s23 }
  0x11   : > { %v190_v0 = vld [vmem:[%s1233_s26] sm:$0xf] (%p50_p3)  ;;  %v192_v1 = vld [vmem:[%s1233_s26 + $0xc] sm:$0xf] (%p50_p3)  ;;  %v194_v2 = vld [vmem:[%s1233_s26 + $0x18] sm:$0xf] (%p50_p3) }
  0x12   : > { %191 = vst [vmem:[%s169_s27] sm:$0xf] (%p50_p3), %v190_v0  ;;  %193 = vst [vmem:[%s169_s27 + $0x4] sm:$0xf] (%p50_p3), %v192_v1  ;;  %v196_v3 = vld [vmem:[%s1233_s26 + $0x24] sm:$0xf] (%p50_p3) }
  0x13   : > { %v198_v4 = vld [vmem:[%s1233_s26 + $0x30] sm:$0xf] (%p50_p3)  ;;  %195 = vst [vmem:[%s169_s27 + $0x8] sm:$0xf] (%p50_p3), %v194_v2  ;;  %197 = vst [vmem:[%s169_s27 + $0xc] sm:$0xf] (%p50_p3), %v196_v3 }
  0x14   : > { %199 = vst [vmem:[%s169_s27 + $0x10] sm:$0xf] (%p50_p3), %v198_v4  ;;  %v200_v5 = vld [vmem:[%s1233_s26 + $0x3c] sm:$0xf] (%p50_p3)  ;;  %v202_v6 = vld [vmem:[%s1233_s26 + $0x48] sm:$0xf] (%p50_p3) }
  0x15   : > { %v204_v7 = vld [vmem:[%s1233_s26 + $0x54] sm:$0xf]  ;;  %201 = vst [vmem:[%s169_s27 + $0x14] sm:$0xf] %v200_v5  ;;  %203 = vst [vmem:[%s169_s27 + $0x18] sm:$0xf] %v202_v6 }
  0x16   : > { %205 = vst [vmem:[%s169_s27 + $0x1c] sm:$0xf] %v204_v7  ;;  %v206_v8 = vld [vmem:[%s1233_s26 + $0x60] sm:$0xf]  ;;  %v208_v9 = vld [vmem:[%s1233_s26 + $0x6c] sm:$0xf] }
  0x17   : > { %v210_v10 = vld [vmem:[%s1233_s26 + $0x78] sm:$0xf]  ;;  %207 = vst [vmem:[%s169_s27 + $0x20] sm:$0xf] %v206_v8  ;;  %209 = vst [vmem:[%s169_s27 + $0x24] sm:$0xf] %v208_v9 }
  0x18   : > { %211 = vst [vmem:[%s169_s27 + $0x28] sm:$0xf] %v210_v10  ;;  %v212_v11 = vld [vmem:[%s1233_s26 + $0x84] sm:$0xf]  ;;  %v214_v12 = vld [vmem:[%s1233_s26 + $0x90] sm:$0xf] }
  0x19   : > { %v216_v13 = vld [vmem:[%s1233_s26 + $0x9c] sm:$0xf]  ;;  %213 = vst [vmem:[%s169_s27 + $0x2c] sm:$0xf] %v212_v11  ;;  %215 = vst [vmem:[%s169_s27 + $0x30] sm:$0xf] %v214_v12 }
  0x1a   : > { %217 = vst [vmem:[%s169_s27 + $0x34] sm:$0xf] %v216_v13  ;;  %v218_v14 = vld [vmem:[%s1233_s26 + $0xa8] sm:$0xf]  ;;  %v220_v15 = vld [vmem:[%s1233_s26 + $0xb4] sm:$0xf] }
  0x1b   : > { %219 = vst [vmem:[%s169_s27 + $0x38] sm:$0xf] %v218_v14  ;;  %221 = vst [vmem:[%s169_s27 + $0x3c] sm:$0xf] %v220_v15 }
  0x1c PF: > { %p902_p6 = scmp.ge.s32.totalorder %s1167_s16, 1  ;;  %p287_p7 = scmp.lt.s32.totalorder %s1167_s16, 4 }
  0x1e   : > { %p288_p8 = pnand %p902_p6, %p287_p7 }
  0x1f   : > { %s294_s28 = sand.u32 (!%p288_p8), 1, %s1151_s12   ;;  %s904_s29 = sshll.u32 (!%p288_p8), %s1159_s14, 4 }
  0x20   : > { %291 = sbr.rel (%p288_p8) target bundleno = 323 (0x143), region = 69  ;;  %s903_s30 = sshll.u32 (!%p288_p8), %s294_s28, 6 }
  0x21   : > { %p333_p9 = scmp.lt.s32.totalorder (!%p288_p8), %s904_s29, 47  ;;  %s1260_s8 = scalar_lea.vmem (!%p288_p8), [#allocation3], %s903_s30 }
  0x22   : > { %p906_p10 = scmp.ne.s32.totalorder (!%p288_p8), %s1159_s14, 0 }
  0x27   : > { %s1333_s29 = smov (!%p333_p9, %s904_s29), 47  ;;  %357 = sbr.rel (%p906_p10) target bundleno = 49 (0x31), region = 77 }
  0x28   : > { %s905_s4 = sshll.u32 %s1333_s29, 2  ;;  %v1169_v16 = vmov (!%p906_p10), 0.0  }
  0x29   : > { %s1258_s7 = scalar_lea.vmem %s1323_s1, %s905_s4  ;;  %358 = vst [vmem:[#allocation2] sm:$0xff] (!%p906_p10), %v1169_v16  ;;  %359 = vst [vmem:[#allocation2 + $0x8] sm:$0xff] (!%p906_p10), %v1169_v16 }
  0x2a   : > { %360 = vst [vmem:[#allocation2 + $0x10] sm:$0xff] (!%p906_p10), %v1169_v16  ;;  %361 = vst [vmem:[#allocation2 + $0x18] sm:$0xff] (!%p906_p10), %v1169_v16 }
  0x2b   : > { %362 = vst [vmem:[#allocation2 + $0x20] sm:$0xff] (!%p906_p10), %v1169_v16  ;;  %363 = vst [vmem:[#allocation2 + $0x28] sm:$0xff] (!%p906_p10), %v1169_v16 }
  0x2c   : > { %364 = vst [vmem:[#allocation2 + $0x30] sm:$0xff] (!%p906_p10), %v1169_v16  ;;  %365 = vst [vmem:[#allocation2 + $0x38] sm:$0xff] (!%p906_p10), %v1169_v16 }
  0x2d   : > { %366 = vst [vmem:[#allocation2 + $0x40] sm:$0xff] (!%p906_p10), %v1169_v16  ;;  %367 = vst [vmem:[#allocation2 + $0x48] sm:$0xff] (!%p906_p10), %v1169_v16 }
  0x2e   : > { %368 = vst [vmem:[#allocation2 + $0x50] sm:$0xff] %v1169_v16  ;;  %369 = vst [vmem:[#allocation2 + $0x58] sm:$0xff] %v1169_v16 }
  0x2f   : > { %370 = vst [vmem:[#allocation2 + $0x60] sm:$0xff] %v1169_v16  ;;  %371 = vst [vmem:[#allocation2 + $0x68] sm:$0xff] %v1169_v16 }
  0x30   : > { %372 = vst [vmem:[#allocation2 + $0x70] sm:$0xff] %v1169_v16  ;;  %373 = vst [vmem:[#allocation2 + $0x78] sm:$0xff] %v1169_v16 }
  0x31 PF: > { %v1113_v17 = vld [vmem:[%s1258_s7] sm:$0xff]   ;;  %v1114_v18 = vld [vmem:[%s1258_s7 + $0x8] sm:$0xff]   ;;  %v1115_v19 = vld [vmem:[%s1258_s7 + $0x10] sm:$0xff]   ;;  %p923_p11 = scmp.ne.s32.totalorder %s1159_s14, 2 }
  0x32   : > { %1024 = vmatprep.subr.bf16.mxu0 %v1113_v17  ;;  %1056 = vmatprep.subr.bf16.mxu1 %v1113_v17  ;;  %v1116_v20 = vld [vmem:[%s1258_s7 + $0x18] sm:$0xff]   ;;  %v1121_v21 = vld [vmem:[%s1260_s8] sm:$0xff]   ;;  %v1118_v24 = vld [vmem:[%s1258_s7 + $0x28] sm:$0xff]  }
  0x33   : > { %1025 = vmatpush3.bf16.msra.mxu0 %v1113_v17  ;;  %1064 = vmatpush3.bf16.msra.mxu1 %v1113_v17  ;;  %v1122_v22 = vld [vmem:[%s1260_s8 + $0x20] sm:$0xff]   ;;  %v1119_v25 = vld [vmem:[%s1258_s7 + $0x30] sm:$0xff]   ;;  %v1120_v26 = vld [vmem:[%s1258_s7 + $0x38] sm:$0xff]  }
  0x34   : > { %1026 = vmatprep.subr.bf16.mxu0 %v1114_v18  ;;  %1057 = vmatprep.subr.bf16.mxu1 %v1114_v18  ;;  %v1117_v23 = vld [vmem:[%s1258_s7 + $0x20] sm:$0xff]   ;;  %v1123_v27 = vld [vmem:[%s1260_s8 + $0x8] sm:$0xff]   ;;  %v1125_v29 = vld [vmem:[%s1260_s8 + $0x10] sm:$0xff]  }
  0x35   : > { %1040 = vmatprep.mubr.bf16.mxu0 %v1121_v21  ;;  %1048 = vmatprep.mubr.bf16.mxu1 %v1122_v22  ;;  %v1124_v28 = vld [vmem:[%s1260_s8 + $0x28] sm:$0xff]   ;;  %v1126_v30 = vld [vmem:[%s1260_s8 + $0x30] sm:$0xff]   ;;  %v1127_v31 = vld [vmem:[%s1260_s8 + $0x18] sm:$0xff]  }
  0x36   : > { %v1128_v32 = vld [vmem:[%s1260_s8 + $0x38] sm:$0xff]   ;;  %v376_v33 = vld [vmem:[#allocation2 + $0x10] sm:$0xff]  ;;  %v374_v35 = vld [vmem:[#allocation2] sm:$0xff] }
  0x37   : > { %1027 = vmatpush3.bf16.msra.mxu0 %v1114_v18  ;;  %1065 = vmatpush3.bf16.msra.mxu1 %v1114_v18  ;;  %v384_v34 = vld [vmem:[#allocation2 + $0x50] sm:$0xff]  ;;  %v382_v36 = vld [vmem:[#allocation2 + $0x40] sm:$0xff]  ;;  %v377_v39 = vld [vmem:[#allocation2 + $0x18] sm:$0xff] }
  0x38   : > { %1028 = vmatprep.subr.bf16.mxu0 %v1115_v19  ;;  %1058 = vmatprep.subr.bf16.mxu1 %v1115_v19  ;;  %v385_v40 = vld [vmem:[#allocation2 + $0x58] sm:$0xff]  ;;  %v375_v45 = vld [vmem:[#allocation2 + $0x8] sm:$0xff]  ;;  %v380_v57 = vld [vmem:[#allocation2 + $0x30] sm:$0xff] }
  0x39   : > { %v383_v46 = vld [vmem:[#allocation2 + $0x48] sm:$0xff]  ;;  %v388_v58 = vld [vmem:[#allocation2 + $0x70] sm:$0xff]  ;;  %v378_v59 = vld [vmem:[#allocation2 + $0x20] sm:$0xff] }
  0x3a   : > { %v386_v60 = vld [vmem:[#allocation2 + $0x60] sm:$0xff]  ;;  %v381_v63 = vld [vmem:[#allocation2 + $0x38] sm:$0xff]  ;;  %v379_v5 = vld [vmem:[#allocation2 + $0x28] sm:$0xff] }
  0x3b   : > { %1029 = vmatpush3.bf16.msra.mxu0 %v1115_v19  ;;  %1066 = vmatpush3.bf16.msra.mxu1 %v1115_v19  ;;  %v389_v0 = vld [vmem:[#allocation2 + $0x78] sm:$0xff]  ;;  %v387_v6 = vld [vmem:[#allocation2 + $0x68] sm:$0xff]  ;;  %v924_v19 = vld [vmem:[%s1324_s2] ss:$0 sm:$0xff] (!%p923_p11) }
  0x3c   : > { %1030 = vmatprep.subr.bf16.mxu0 %v1116_v20  ;;  %1059 = vmatprep.subr.bf16.mxu1 %v1116_v20 }
  0x3f   : > { %1031 = vmatpush3.bf16.msra.mxu0 %v1116_v20  ;;  %1067 = vmatpush3.bf16.msra.mxu1 %v1116_v20 }
  0x40   : > { %1032 = vmatprep.subr.bf16.mxu0 %v1117_v23  ;;  %1060 = vmatprep.subr.bf16.mxu1 %v1117_v23 }
  0x43   : > { %1033 = vmatpush3.bf16.msra.mxu0 %v1117_v23  ;;  %1068 = vmatpush3.bf16.msra.mxu1 %v1117_v23 }
  0x44   : > { %1034 = vmatprep.subr.bf16.mxu0 %v1118_v24  ;;  %1061 = vmatprep.subr.bf16.mxu1 %v1118_v24 }
  0x47   : > { %1035 = vmatpush3.bf16.msra.mxu0 %v1118_v24  ;;  %1069 = vmatpush3.bf16.msra.mxu1 %v1118_v24 }
  0x48   : > { %1036 = vmatprep.subr.bf16.mxu0 %v1119_v25  ;;  %1062 = vmatprep.subr.bf16.mxu1 %v1119_v25 }
  0x4b   : > { %1037 = vmatpush3.bf16.msra.mxu0 %v1119_v25  ;;  %1070 = vmatpush3.bf16.msra.mxu1 %v1119_v25 }
  0x4c   : > { %1038 = vmatprep.subr.bf16.mxu0 %v1120_v26  ;;  %1063 = vmatprep.subr.bf16.mxu1 %v1120_v26 }
  0x4f   : > { %1039 = vmatpush3.bf16.msra.mxu0 %v1120_v26  ;;  %1071 = vmatpush3.bf16.msra.mxu1 %v1120_v26 }
  0x52   : > { %1041 = vmatmul.mubr.bf16.vlgmr.msra.gmra.mrb[0].mxu0 %v1123_v27  ;;  %1049 = vmatmul.mubr.bf16.vlgmr.msra.gmra.mrb[0].mxu1 %v1124_v28 }
  0x53   : > { %1044 = vmatprep.mubr.bf16.mxu0 %v1125_v29  ;;  %1052 = vmatprep.mubr.bf16.mxu1 %v1126_v30 }
  0x5a   : > { %1045 = vmatmul.mubr.bf16.gmra.mrb[4].mxu0 %v1127_v31  ;;  %1053 = vmatmul.mubr.bf16.gmra.mrb[4].mxu1 %v1128_v32 }
 0x125   : > { %v1042_v37 = vpop.f32.mrb[0].mxu0  ;;  %v1050_v38 = vpop.f32.mrb[0].mxu1 }
 0x126   : > { %v617_v41 = vadd.f32 %v1042_v37, %v376_v33  ;;  %v625_v42 = vadd.f32 %v1050_v38, %v384_v34  ;;  %v552_v43 = vpop.f32.mrb[1].mxu0  ;;  %v584_v44 = vpop.f32.mrb[1].mxu1 }
 0x127   : > { %v615_v47 = vadd.f32 %v552_v43, %v374_v35  ;;  %v623_v48 = vadd.f32 %v584_v44, %v382_v36  ;;  %v1043_v49 = vpop.f32.mrb[2].mxu0  ;;  %v1051_v50 = vpop.f32.mrb[2].mxu1 }
 0x128   : > { %633 = vst [vmem:[#allocation2 + $0x10] sm:$0xff] %v617_v41  ;;  %641 = vst [vmem:[#allocation2 + $0x50] sm:$0xff] %v625_v42  ;;  %v618_v51 = vadd.f32 %v1043_v49, %v377_v39  ;;  %v626_v52 = vadd.f32 %v1051_v50, %v385_v40  ;;  %v555_v53 = vpop.f32.mrb[3].mxu0  ;;  %v587_v54 = vpop.f32.mrb[3].mxu1 }
 0x129   : > { %631 = vst [vmem:[#allocation2] sm:$0xff] %v615_v47  ;;  %639 = vst [vmem:[#allocation2 + $0x40] sm:$0xff] %v623_v48  ;;  %v616_v55 = vadd.f32 %v555_v53, %v375_v45  ;;  %v624_v56 = vadd.f32 %v587_v54, %v383_v46 }
 0x12a   : > { %634 = vst [vmem:[#allocation2 + $0x18] sm:$0xff] %v618_v51  ;;  %642 = vst [vmem:[#allocation2 + $0x58] sm:$0xff] %v626_v52 }
 0x12b   : > { %632 = vst [vmem:[#allocation2 + $0x8] sm:$0xff] %v616_v55  ;;  %640 = vst [vmem:[#allocation2 + $0x48] sm:$0xff] %v624_v56 }
 0x12d   : > { %v1046_v61 = vpop.f32.mrb[4].mxu0  ;;  %v1054_v62 = vpop.f32.mrb[4].mxu1  ;;  %650 = sbr.rel (%p923_p11) target bundleno = 323 (0x143), region = 81 }
 0x12e   : > { %v621_v1 = vadd.f32 %v1046_v61, %v380_v57  ;;  %v629_v2 = vadd.f32 %v1054_v62, %v388_v58  ;;  %v568_v3 = vpop.f32.mrb[5].mxu0  ;;  %v600_v4 = vpop.f32.mrb[5].mxu1 }
 0x12f   : > { %v619_v7 = vadd.f32 %v568_v3, %v378_v59  ;;  %v627_v8 = vadd.f32 %v600_v4, %v386_v60  ;;  %v1047_v9 = vpop.f32.mrb[6].mxu0  ;;  %v1055_v10 = vpop.f32.mrb[6].mxu1  ;;  %v653_v22 = vld [vmem:[#allocation2 + $0x10] sm:$0xff] (!%p923_p11) }
 0x130   : > { %637 = vst [vmem:[#allocation2 + $0x30] sm:$0xff] %v621_v1  ;;  %645 = vst [vmem:[#allocation2 + $0x70] sm:$0xff] %v629_v2  ;;  %v622_v11 = vadd.f32 %v1047_v9, %v381_v63  ;;  %v630_v12 = vadd.f32 %v1055_v10, %v389_v0  ;;  %v571_v13 = vpop.f32.mrb[7].mxu0  ;;  %v603_v14 = vpop.f32.mrb[7].mxu1  ;;  %v651_v17 = vld [vmem:[#allocation2] sm:$0xff] (!%p923_p11)  ;;  %v676_v25 = vadd.f32 (!%p923_p11), %v924_v19, %v653_v22  ;;  %v661_v37 = vld [vmem:[#allocation2 + $0x50] sm:$0xff] (!%p923_p11) }
 0x131   : > { %635 = vst [vmem:[#allocation2 + $0x20] sm:$0xff] %v619_v7  ;;  %643 = vst [vmem:[#allocation2 + $0x60] sm:$0xff] %v627_v8  ;;  %v620_v15 = vadd.f32 %v571_v13, %v379_v5  ;;  %v628_v16 = vadd.f32 %v603_v14, %v387_v6  ;;  %v674_v20 = vadd.f32 (!%p923_p11), %v924_v19, %v651_v17  ;;  %v654_v23 = vld [vmem:[#allocation2 + $0x18] sm:$0xff] (!%p923_p11)  ;;  %v659_v35 = vld [vmem:[#allocation2 + $0x40] sm:$0xff] (!%p923_p11) }
 0x132   : > { %638 = vst [vmem:[#allocation2 + $0x38] sm:$0xff] %v622_v11  ;;  %646 = vst [vmem:[#allocation2 + $0x78] sm:$0xff] %v630_v12  ;;  %v652_v18 = vld [vmem:[#allocation2 + $0x8] sm:$0xff] (!%p923_p11)  ;;  %v677_v26 = vadd.f32 (!%p923_p11), %v924_v19, %v654_v23  ;;  %v692_v38 = vmax.f32 (!%p923_p11), %v676_v25, 0.0  ;;  %v662_v42 = vld [vmem:[#allocation2 + $0x58] sm:$0xff] (!%p923_p11)  ;;  %v682_v47 = vadd.f32 (!%p923_p11), %v924_v19, %v659_v35  ;;  %v684_v52 = vadd.f32 (!%p923_p11), %v924_v19, %v661_v37 }
 0x133   : > { %636 = vst [vmem:[#allocation2 + $0x28] sm:$0xff] %v620_v15  ;;  %644 = vst [vmem:[#allocation2 + $0x68] sm:$0xff] %v628_v16  ;;  %v675_v21 = vadd.f32 (!%p923_p11), %v924_v19, %v652_v18  ;;  %v690_v31 = vmax.f32 (!%p923_p11), %v674_v20, 0.0  ;;  %v660_v36 = vld [vmem:[#allocation2 + $0x48] sm:$0xff] (!%p923_p11)  ;;  %v685_v57 = vadd.f32 (!%p923_p11), %v924_v19, %v662_v42 }
 0x134   : > { %v693_v39 = vmax.f32 %v677_v26, 0.0  ;;  %v683_v51 = vadd.f32 %v924_v19, %v660_v36  ;;  %v698_v56 = vmax.f32 %v682_v47, 0.0  ;;  %v700_v61 = vmax.f32 %v684_v52, 0.0 }
 0x135   : > { %v691_v32 = vmax.f32 %v675_v21, 0.0  ;;  %v701_v63 = vmax.f32 %v685_v57, 0.0 }
 0x136   : > { %v969_v49 = vpack.c.bf16 %v693_v39, %v692_v38  ;;  %v699_v60 = vmax.f32 %v683_v51, 0.0 }
 0x137   : > { %v657_v29 = vld [vmem:[#allocation2 + $0x30] sm:$0xff]  ;;  %v964_v44 = vpack.c.bf16 %v691_v32, %v690_v31  ;;  %v989_v5 = vpack.c.bf16 %v701_v63, %v700_v61 }
 0x138   : > { %v655_v24 = vld [vmem:[#allocation2 + $0x20] sm:$0xff]  ;;  %v680_v34 = vadd.f32 %v924_v19, %v657_v29  ;;  %v665_v53 = vld [vmem:[#allocation2 + $0x70] sm:$0xff]  ;;  %1001 = vst [vmem:[%s1325_s3 + $0x8] sm:$0xff] %v969_v49   ;;  %v984_v3 = vpack.c.bf16 %v699_v60, %v698_v56 }
 0x139   : > { %v678_v28 = vadd.f32 %v924_v19, %v655_v24  ;;  %v658_v30 = vld [vmem:[#allocation2 + $0x38] sm:$0xff]  ;;  %v663_v43 = vld [vmem:[#allocation2 + $0x60] sm:$0xff]  ;;  %965 = vst [vmem:[%s1325_s3] sm:$0xff] %v964_v44   ;;  %v688_v1 = vadd.f32 %v924_v19, %v665_v53  ;;  %1005 = vst [vmem:[%s1325_s3 + $0x28] sm:$0xff] %v989_v5  }
 0x13a   : > { %v656_v27 = vld [vmem:[#allocation2 + $0x28] sm:$0xff]  ;;  %v681_v41 = vadd.f32 %v924_v19, %v658_v30  ;;  %v696_v46 = vmax.f32 %v680_v34, 0.0  ;;  %v666_v54 = vld [vmem:[#allocation2 + $0x78] sm:$0xff]  ;;  %v686_v58 = vadd.f32 %v924_v19, %v663_v43  ;;  %1004 = vst [vmem:[%s1325_s3 + $0x20] sm:$0xff] %v984_v3  }
 0x13b   : > { %v679_v33 = vadd.f32 %v924_v19, %v656_v27  ;;  %v694_v40 = vmax.f32 %v678_v28, 0.0  ;;  %v664_v48 = vld [vmem:[#allocation2 + $0x68] sm:$0xff]  ;;  %v689_v2 = vadd.f32 %v924_v19, %v666_v54  ;;  %v704_v6 = vmax.f32 %v688_v1, 0.0 }
 0x13c   : > { %v697_v50 = vmax.f32 %v681_v41, 0.0  ;;  %v687_v62 = vadd.f32 %v924_v19, %v664_v48  ;;  %v702_v0 = vmax.f32 %v686_v58, 0.0 }
 0x13d   : > { %v695_v45 = vmax.f32 %v679_v33, 0.0  ;;  %v705_v7 = vmax.f32 %v689_v2, 0.0 }
 0x13e   : > { %v979_v59 = vpack.c.bf16 %v697_v50, %v696_v46  ;;  %v703_v4 = vmax.f32 %v687_v62, 0.0 }
 0x13f   : > { %v974_v55 = vpack.c.bf16 %v695_v45, %v694_v40  ;;  %v999_v9 = vpack.c.bf16 %v705_v7, %v704_v6 }
 0x140   : > { %1003 = vst [vmem:[%s1325_s3 + $0x18] sm:$0xff] %v979_v59   ;;  %v994_v8 = vpack.c.bf16 %v703_v4, %v702_v0 }
 0x141   : > { %1002 = vst [vmem:[%s1325_s3 + $0x10] sm:$0xff] %v974_v55   ;;  %1007 = vst [vmem:[%s1325_s3 + $0x38] sm:$0xff] %v999_v9  }
 0x142   : > { %1006 = vst [vmem:[%s1325_s3 + $0x30] sm:$0xff] %v994_v8  }
 0x143 PF: > { %s13_s16 = sadd.s32 1, %s1167_s16   ;;  %s1326_s12 = smov %s1155_s13 }
 0x144   : > { %p10_p12 = scmp.ge.s32.totalorder %s13_s16, 5   ;;  %s1327_s13 = smov %s1225_s20 }
 0x145   : > { %s1328_s14 = smov %s1163_s15  ;;  %s1329_s15 = smov %s1331_s17 }
 0x146   :  { %12 = sbr.rel (!%p10_p12) target bundleno = 3 (0x3), region = 122 }

// kernel: coex_forward.45
= control target key start
LH: loop header
LB: loop body
LE: loop exit
PB: predicated region body
PF: predicated region fallthrough
CT: control target
= control target key end

     0   :  { %s1373_s1 = inlined_call_operand.vmem [shape: bf16[512,128], index: 1, kind: input, shape index: {}]   ;;  %s1374_s0 = inlined_call_operand.vmem [shape: bf16[128,512], index: 0, kind: input, shape index: {}]   ;;  %s1375_s2 = inlined_call_operand.vmem [shape: f32[1,128], index: 2, kind: input, shape index: {}]   ;;  %s1376_s3 = inlined_call_operand.vmem [shape: bf16[128,128], index: 3, kind: output, shape index: {}]  }
   0x1   :  { %v1036_v0 = vld [vmem:[%s1373_s1 + $0x40] sm:$0xff]   ;;  %v1040_v4 = vld [vmem:[%s1373_s1 + $0x48] sm:$0xff]   ;;  %v1044_v8 = vld [vmem:[%s1373_s1 + $0x50] sm:$0xff]  }
   0x2   :  { %v1037_v1 = vld [vmem:[%s1373_s1 + $0xc0] sm:$0xff]   ;;  %908 = vmatprep.subr.bf16.mxu0 %v1036_v0  ;;  %v1041_v5 = vld [vmem:[%s1373_s1 + $0xc8] sm:$0xff]   ;;  %v1045_v9 = vld [vmem:[%s1373_s1 + $0xd0] sm:$0xff]  }
   0x3   :  { %v1038_v2 = vld [vmem:[%s1373_s1] sm:$0xff]   ;;  %972 = vmatprep.subr.bf16.mxu1 %v1037_v1  ;;  %v1042_v6 = vld [vmem:[%s1373_s1 + $0x8] sm:$0xff]   ;;  %v1046_v10 = vld [vmem:[%s1373_s1 + $0x10] sm:$0xff]  }
   0x4   :  { %v1039_v3 = vld [vmem:[%s1373_s1 + $0x80] sm:$0xff]   ;;  %909 = vmatpush3.bf16.msra.mxu0 %v1038_v2  ;;  %v1043_v7 = vld [vmem:[%s1373_s1 + $0x88] sm:$0xff]   ;;  %v1047_v11 = vld [vmem:[%s1373_s1 + $0x90] sm:$0xff]  }
   0x5   :  { %973 = vmatpush3.bf16.msra.mxu1 %v1039_v3  ;;  %910 = vmatprep.subr.bf16.mxu0 %v1040_v4  ;;  %v1048_v12 = vld [vmem:[%s1373_s1 + $0x58] sm:$0xff]   ;;  %v1052_v16 = vld [vmem:[%s1373_s1 + $0x60] sm:$0xff]   ;;  %v1056_v20 = vld [vmem:[%s1373_s1 + $0x68] sm:$0xff]  }
   0x6   :  { %974 = vmatprep.subr.bf16.mxu1 %v1041_v5  ;;  %v1049_v13 = vld [vmem:[%s1373_s1 + $0xd8] sm:$0xff]   ;;  %v1053_v17 = vld [vmem:[%s1373_s1 + $0xe0] sm:$0xff]   ;;  %v1057_v21 = vld [vmem:[%s1373_s1 + $0xe8] sm:$0xff]  }
   0x7   :  { %v1050_v14 = vld [vmem:[%s1373_s1 + $0x18] sm:$0xff]   ;;  %v1054_v18 = vld [vmem:[%s1373_s1 + $0x20] sm:$0xff]   ;;  %v1058_v22 = vld [vmem:[%s1373_s1 + $0x28] sm:$0xff]  }
   0x8   :  { %911 = vmatpush3.bf16.msra.mxu0 %v1042_v6  ;;  %v1051_v15 = vld [vmem:[%s1373_s1 + $0x98] sm:$0xff]   ;;  %v1055_v19 = vld [vmem:[%s1373_s1 + $0xa0] sm:$0xff]   ;;  %v1059_v23 = vld [vmem:[%s1373_s1 + $0xa8] sm:$0xff]  }
   0x9   :  { %975 = vmatpush3.bf16.msra.mxu1 %v1043_v7  ;;  %912 = vmatprep.subr.bf16.mxu0 %v1044_v8  ;;  %v1060_v24 = vld [vmem:[%s1373_s1 + $0x70] sm:$0xff]   ;;  %v1064_v28 = vld [vmem:[%s1373_s1 + $0x78] sm:$0xff]   ;;  %v1331_v2 = vld [vmem:[%s1375_s2] ss:$0 sm:$0xff] }
   0xa   :  { %976 = vmatprep.subr.bf16.mxu1 %v1045_v9  ;;  %v1061_v25 = vld [vmem:[%s1373_s1 + $0xf0] sm:$0xff]   ;;  %v1065_v29 = vld [vmem:[%s1373_s1 + $0xf8] sm:$0xff]  }
   0xb   :  { %v1062_v26 = vld [vmem:[%s1373_s1 + $0x30] sm:$0xff]   ;;  %v1066_v30 = vld [vmem:[%s1373_s1 + $0x38] sm:$0xff]  }
   0xc   :  { %913 = vmatpush3.bf16.msra.mxu0 %v1046_v10  ;;  %v1063_v27 = vld [vmem:[%s1373_s1 + $0xb0] sm:$0xff]   ;;  %v1067_v31 = vld [vmem:[%s1373_s1 + $0xb8] sm:$0xff]  }
   0xd   :  { %977 = vmatpush3.bf16.msra.mxu1 %v1047_v11  ;;  %914 = vmatprep.subr.bf16.mxu0 %v1048_v12  ;;  %v1068_v32 = vld [vmem:[%s1374_s0] ss:$16 sps:$4 sm:$0xff]   ;;  %v1070_v33 = vld [vmem:[%s1374_s0 + $0x4] ss:$16 sps:$4 sm:$0xff]   ;;  %v1071_v34 = vld [vmem:[%s1374_s0 + $0x8] ss:$16 sps:$4 sm:$0xff]  }
   0xe   :  { %978 = vmatprep.subr.bf16.mxu1 %v1049_v13  ;;  %v1073_v35 = vld [vmem:[%s1374_s0 + $0xc] ss:$16 sps:$4 sm:$0xff]   ;;  %502 = vmatprep.mubr.bf16.mxu0 %v1070_v33  ;;  %v1074_v36 = vld [vmem:[%s1374_s0 + $0x24] ss:$16 sps:$4 sm:$0xff]   ;;  %v1078_v38 = vld [vmem:[%s1374_s0 + $0x20] ss:$16 sps:$4 sm:$0xff]  }
   0xf   :  { %599 = vmatprep.mubr.bf16.mxu1 %v1073_v35  ;;  %v1076_v37 = vld [vmem:[%s1374_s0 + $0x2c] ss:$16 sps:$4 sm:$0xff]   ;;  %v1079_v39 = vld [vmem:[%s1374_s0 + $0x28] ss:$16 sps:$4 sm:$0xff]   ;;  %v1080_v40 = vld [vmem:[%s1374_s0 + $0x44] ss:$16 sps:$4 sm:$0xff]  }
  0x10   :  { %915 = vmatpush3.bf16.msra.mxu0 %v1050_v14  ;;  %v1082_v41 = vld [vmem:[%s1374_s0 + $0x4c] ss:$16 sps:$4 sm:$0xff]   ;;  %v1084_v42 = vld [vmem:[%s1374_s0 + $0x40] ss:$16 sps:$4 sm:$0xff]   ;;  %v1085_v43 = vld [vmem:[%s1374_s0 + $0x48] ss:$16 sps:$4 sm:$0xff]  }
  0x11   :  { %979 = vmatpush3.bf16.msra.mxu1 %v1051_v15  ;;  %916 = vmatprep.subr.bf16.mxu0 %v1052_v16  ;;  %v1086_v44 = vld [vmem:[%s1374_s0 + $0x64] ss:$16 sps:$4 sm:$0xff]   ;;  %v1088_v45 = vld [vmem:[%s1374_s0 + $0x6c] ss:$16 sps:$4 sm:$0xff]   ;;  %v1090_v46 = vld [vmem:[%s1374_s0 + $0x60] ss:$16 sps:$4 sm:$0xff]  }
  0x12   :  { %980 = vmatprep.subr.bf16.mxu1 %v1053_v17  ;;  %v1091_v47 = vld [vmem:[%s1374_s0 + $0x68] ss:$16 sps:$4 sm:$0xff]   ;;  %v1092_v48 = vld [vmem:[%s1374_s0 + $0x84] ss:$16 sps:$4 sm:$0xff]   ;;  %v1094_v49 = vld [vmem:[%s1374_s0 + $0x8c] ss:$16 sps:$4 sm:$0xff]  }
  0x13   :  { %v1096_v50 = vld [vmem:[%s1374_s0 + $0x80] ss:$16 sps:$4 sm:$0xff]   ;;  %v1097_v51 = vld [vmem:[%s1374_s0 + $0x88] ss:$16 sps:$4 sm:$0xff]   ;;  %v1098_v52 = vld [vmem:[%s1374_s0 + $0xa4] ss:$16 sps:$4 sm:$0xff]  }
  0x14   :  { %917 = vmatpush3.bf16.msra.mxu0 %v1054_v18  ;;  %v1100_v53 = vld [vmem:[%s1374_s0 + $0xac] ss:$16 sps:$4 sm:$0xff]   ;;  %v1102_v54 = vld [vmem:[%s1374_s0 + $0xa0] ss:$16 sps:$4 sm:$0xff]   ;;  %v1103_v55 = vld [vmem:[%s1374_s0 + $0xa8] ss:$16 sps:$4 sm:$0xff]  }
  0x15   :  { %981 = vmatpush3.bf16.msra.mxu1 %v1055_v19  ;;  %918 = vmatprep.subr.bf16.mxu0 %v1056_v20  ;;  %v1104_v56 = vld [vmem:[%s1374_s0 + $0xc4] ss:$16 sps:$4 sm:$0xff]   ;;  %v1106_v57 = vld [vmem:[%s1374_s0 + $0xcc] ss:$16 sps:$4 sm:$0xff]   ;;  %v1108_v58 = vld [vmem:[%s1374_s0 + $0xc0] ss:$16 sps:$4 sm:$0xff]  }
  0x16   :  { %982 = vmatprep.subr.bf16.mxu1 %v1057_v21  ;;  %v1109_v59 = vld [vmem:[%s1374_s0 + $0xc8] ss:$16 sps:$4 sm:$0xff]   ;;  %v1110_v60 = vld [vmem:[%s1374_s0 + $0xe4] ss:$16 sps:$4 sm:$0xff]   ;;  %v1112_v61 = vld [vmem:[%s1374_s0 + $0xec] ss:$16 sps:$4 sm:$0xff]  }
  0x17   :  { %v1114_v62 = vld [vmem:[%s1374_s0 + $0xe0] ss:$16 sps:$4 sm:$0xff]   ;;  %v1115_v63 = vld [vmem:[%s1374_s0 + $0xe8] ss:$16 sps:$4 sm:$0xff]  }
  0x18   :  { %919 = vmatpush3.bf16.msra.mxu0 %v1058_v22 }
  0x19   :  { %983 = vmatpush3.bf16.msra.mxu1 %v1059_v23  ;;  %920 = vmatprep.subr.bf16.mxu0 %v1060_v24 }
  0x1a   :  { %984 = vmatprep.subr.bf16.mxu1 %v1061_v25 }
  0x1c   :  { %921 = vmatpush3.bf16.msra.mxu0 %v1062_v26 }
  0x1d   :  { %985 = vmatpush3.bf16.msra.mxu1 %v1063_v27  ;;  %922 = vmatprep.subr.bf16.mxu0 %v1064_v28 }
  0x1e   :  { %986 = vmatprep.subr.bf16.mxu1 %v1065_v29 }
  0x20   :  { %923 = vmatpush3.bf16.msra.mxu0 %v1066_v30 }
  0x21   :  { %987 = vmatpush3.bf16.msra.mxu1 %v1067_v31 }
  0x23   :  { %503 = vmatmul.mubr.bf16.vlgmr.msra.gmra.mrb[0].mxu0 %v1068_v32 }
  0x24   :  { %600 = vmatmul.mubr.bf16.vlgmr.msra.gmra.mrb[0].mxu1 %v1071_v34  ;;  %510 = vmatprep.mubr.bf16.mxu0 %v1074_v36 }
  0x25   :  { %607 = vmatprep.mubr.bf16.mxu1 %v1076_v37 }
  0x2b   :  { %511 = vmatmul.mubr.bf16.gmra.mrb[4].mxu0 %v1078_v38 }
  0x2c   :  { %608 = vmatmul.mubr.bf16.gmra.mrb[4].mxu1 %v1079_v39  ;;  %518 = vmatprep.mubr.bf16.mxu0 %v1080_v40 }
  0x2d   :  { %615 = vmatprep.mubr.bf16.mxu1 %v1082_v41 }
  0x33   :  { %519 = vmatmul.mubr.bf16.gmra.mrb[8].mxu0 %v1084_v42 }
  0x34   :  { %616 = vmatmul.mubr.bf16.gmra.mrb[8].mxu1 %v1085_v43  ;;  %526 = vmatprep.mubr.bf16.mxu0 %v1086_v44 }
  0x35   :  { %623 = vmatprep.mubr.bf16.mxu1 %v1088_v45 }
  0x3b   :  { %527 = vmatmul.mubr.bf16.gmra.mrb[12].mxu0 %v1090_v46 }
  0x3c   :  { %624 = vmatmul.mubr.bf16.gmra.mrb[12].mxu1 %v1091_v47  ;;  %534 = vmatprep.mubr.bf16.mxu0 %v1092_v48 }
  0x3d   :  { %631 = vmatprep.mubr.bf16.mxu1 %v1094_v49 }
  0x43   :  { %535 = vmatmul.mubr.bf16.gmra.mrb[16].mxu0 %v1096_v50 }
  0x44   :  { %632 = vmatmul.mubr.bf16.gmra.mrb[16].mxu1 %v1097_v51  ;;  %542 = vmatprep.mubr.bf16.mxu0 %v1098_v52 }
  0x45   :  { %639 = vmatprep.mubr.bf16.mxu1 %v1100_v53 }
  0x4b   :  { %543 = vmatmul.mubr.bf16.gmra.mrb[20].mxu0 %v1102_v54 }
  0x4c   :  { %640 = vmatmul.mubr.bf16.gmra.mrb[20].mxu1 %v1103_v55  ;;  %550 = vmatprep.mubr.bf16.mxu0 %v1104_v56 }
  0x4d   :  { %647 = vmatprep.mubr.bf16.mxu1 %v1106_v57 }
  0x53   :  { %551 = vmatmul.mubr.bf16.gmra.mrb[24].mxu0 %v1108_v58 }
  0x54   :  { %648 = vmatmul.mubr.bf16.gmra.mrb[24].mxu1 %v1109_v59  ;;  %558 = vmatprep.mubr.bf16.mxu0 %v1110_v60 }
  0x55   :  { %655 = vmatprep.mubr.bf16.mxu1 %v1112_v61 }
  0x5b   :  { %559 = vmatmul.mubr.bf16.gmra.mrb[28].mxu0 %v1114_v62 }
  0x5c   :  { %656 = vmatmul.mubr.bf16.gmra.mrb[28].mxu1 %v1115_v63 }
  0xf6   :  { %v924_v0 = vpop.f32.mrb[0].mxu0 }
  0xf7   :  { %v988_v1 = vpop.f32.mrb[0].mxu1  ;;  %v925_v3 = vpop.f32.mrb[1].mxu0 }
  0xf8   :  { %v926_v4 = vadd.f32 %v925_v3, %v924_v0  ;;  %v989_v5 = vpop.f32.mrb[1].mxu1  ;;  %v927_v6 = vpop.f32.mrb[2].mxu0 }
  0xf9   :  { %v990_v7 = vadd.f32 %v989_v5, %v988_v1  ;;  %v991_v8 = vpop.f32.mrb[2].mxu1  ;;  %v928_v9 = vpop.f32.mrb[3].mxu0 }
  0xfa   :  { %v505_v10 = vadd.f32 %v926_v4, %v1331_v2  ;;  %v929_v11 = vadd.f32 %v928_v9, %v927_v6  ;;  %v992_v12 = vpop.f32.mrb[3].mxu1 }
  0xfb   :  { %v993_v13 = vadd.f32 %v992_v12, %v991_v8 }
  0xfc   :  { %v602_v14 = vadd.f32 %v990_v7, %v505_v10  ;;  %v508_v15 = vadd.f32 %v929_v11, %v1331_v2 }
  0xfe   :  { %v605_v16 = vadd.f32 %v993_v13, %v508_v15  ;;  %v930_v17 = vpop.f32.mrb[4].mxu0  ;;  %v664_v20 = vmax.f32 %v602_v14, 0.0 }
  0xff   :  { %v994_v18 = vpop.f32.mrb[4].mxu1  ;;  %v931_v19 = vpop.f32.mrb[5].mxu0 }
 0x100   :  { %v665_v21 = vmax.f32 %v605_v16, 0.0  ;;  %v932_v22 = vadd.f32 %v931_v19, %v930_v17  ;;  %v995_v23 = vpop.f32.mrb[5].mxu1  ;;  %v933_v24 = vpop.f32.mrb[6].mxu0 }
 0x101   :  { %v996_v25 = vadd.f32 %v995_v23, %v994_v18  ;;  %v997_v26 = vpop.f32.mrb[6].mxu1  ;;  %v934_v27 = vpop.f32.mrb[7].mxu0 }
 0x102   :  { %v864_v28 = vpack.c.bf16 %v665_v21, %v664_v20  ;;  %v513_v29 = vadd.f32 %v932_v22, %v1331_v2  ;;  %v935_v30 = vadd.f32 %v934_v27, %v933_v24  ;;  %v998_v31 = vpop.f32.mrb[7].mxu1 }
 0x103   :  { %v999_v32 = vadd.f32 %v998_v31, %v997_v26 }
 0x104   :  { %865 = vst [vmem:[%s1376_s3] sm:$0xff] %v864_v28   ;;  %v610_v33 = vadd.f32 %v996_v25, %v513_v29  ;;  %v516_v34 = vadd.f32 %v935_v30, %v1331_v2 }
 0x106   :  { %v613_v35 = vadd.f32 %v999_v32, %v516_v34  ;;  %v936_v36 = vpop.f32.mrb[8].mxu0  ;;  %v666_v39 = vmax.f32 %v610_v33, 0.0 }
 0x107   :  { %v1000_v37 = vpop.f32.mrb[8].mxu1  ;;  %v937_v38 = vpop.f32.mrb[9].mxu0 }
 0x108   :  { %v667_v40 = vmax.f32 %v613_v35, 0.0  ;;  %v938_v41 = vadd.f32 %v937_v38, %v936_v36  ;;  %v1001_v42 = vpop.f32.mrb[9].mxu1  ;;  %v939_v43 = vpop.f32.mrb[10].mxu0 }
 0x109   :  { %v1002_v44 = vadd.f32 %v1001_v42, %v1000_v37  ;;  %v1003_v45 = vpop.f32.mrb[10].mxu1  ;;  %v940_v46 = vpop.f32.mrb[11].mxu0 }
 0x10a   :  { %v869_v47 = vpack.c.bf16 %v667_v40, %v666_v39  ;;  %v521_v48 = vadd.f32 %v938_v41, %v1331_v2  ;;  %v941_v49 = vadd.f32 %v940_v46, %v939_v43  ;;  %v1004_v50 = vpop.f32.mrb[11].mxu1 }
 0x10b   :  { %v1005_v51 = vadd.f32 %v1004_v50, %v1003_v45 }
 0x10c   :  { %901 = vst [vmem:[%s1376_s3 + $0x8] sm:$0xff] %v869_v47   ;;  %v618_v52 = vadd.f32 %v1002_v44, %v521_v48  ;;  %v524_v53 = vadd.f32 %v941_v49, %v1331_v2 }
 0x10e   :  { %v621_v54 = vadd.f32 %v1005_v51, %v524_v53  ;;  %v942_v55 = vpop.f32.mrb[12].mxu0  ;;  %v668_v58 = vmax.f32 %v618_v52, 0.0 }
 0x10f   :  { %v1006_v56 = vpop.f32.mrb[12].mxu1  ;;  %v943_v57 = vpop.f32.mrb[13].mxu0 }
 0x110   :  { %v669_v59 = vmax.f32 %v621_v54, 0.0  ;;  %v944_v60 = vadd.f32 %v943_v57, %v942_v55  ;;  %v1007_v61 = vpop.f32.mrb[13].mxu1  ;;  %v945_v62 = vpop.f32.mrb[14].mxu0 }
 0x111   :  { %v1008_v63 = vadd.f32 %v1007_v61, %v1006_v56  ;;  %v1009_v0 = vpop.f32.mrb[14].mxu1  ;;  %v946_v1 = vpop.f32.mrb[15].mxu0 }
 0x112   :  { %v874_v3 = vpack.c.bf16 %v669_v59, %v668_v58  ;;  %v529_v4 = vadd.f32 %v944_v60, %v1331_v2  ;;  %v947_v5 = vadd.f32 %v946_v1, %v945_v62  ;;  %v1010_v6 = vpop.f32.mrb[15].mxu1 }
 0x113   :  { %v1011_v7 = vadd.f32 %v1010_v6, %v1009_v0 }
 0x114   :  { %902 = vst [vmem:[%s1376_s3 + $0x10] sm:$0xff] %v874_v3   ;;  %v626_v8 = vadd.f32 %v1008_v63, %v529_v4  ;;  %v532_v9 = vadd.f32 %v947_v5, %v1331_v2 }
 0x116   :  { %v629_v10 = vadd.f32 %v1011_v7, %v532_v9  ;;  %v948_v11 = vpop.f32.mrb[16].mxu0  ;;  %v670_v14 = vmax.f32 %v626_v8, 0.0 }
 0x117   :  { %v1012_v12 = vpop.f32.mrb[16].mxu1  ;;  %v949_v13 = vpop.f32.mrb[17].mxu0 }
 0x118   :  { %v671_v15 = vmax.f32 %v629_v10, 0.0  ;;  %v950_v16 = vadd.f32 %v949_v13, %v948_v11  ;;  %v1013_v17 = vpop.f32.mrb[17].mxu1  ;;  %v951_v18 = vpop.f32.mrb[18].mxu0 }
 0x119   :  { %v1014_v19 = vadd.f32 %v1013_v17, %v1012_v12  ;;  %v1015_v20 = vpop.f32.mrb[18].mxu1  ;;  %v952_v21 = vpop.f32.mrb[19].mxu0 }
 0x11a   :  { %v879_v22 = vpack.c.bf16 %v671_v15, %v670_v14  ;;  %v537_v23 = vadd.f32 %v950_v16, %v1331_v2  ;;  %v953_v24 = vadd.f32 %v952_v21, %v951_v18  ;;  %v1016_v25 = vpop.f32.mrb[19].mxu1 }
 0x11b   :  { %v1017_v26 = vadd.f32 %v1016_v25, %v1015_v20 }
 0x11c   :  { %903 = vst [vmem:[%s1376_s3 + $0x18] sm:$0xff] %v879_v22   ;;  %v634_v27 = vadd.f32 %v1014_v19, %v537_v23  ;;  %v540_v28 = vadd.f32 %v953_v24, %v1331_v2 }
 0x11e   :  { %v637_v29 = vadd.f32 %v1017_v26, %v540_v28  ;;  %v954_v30 = vpop.f32.mrb[20].mxu0  ;;  %v672_v33 = vmax.f32 %v634_v27, 0.0 }
 0x11f   :  { %v1018_v31 = vpop.f32.mrb[20].mxu1  ;;  %v955_v32 = vpop.f32.mrb[21].mxu0 }
 0x120   :  { %v673_v34 = vmax.f32 %v637_v29, 0.0  ;;  %v956_v35 = vadd.f32 %v955_v32, %v954_v30  ;;  %v1019_v36 = vpop.f32.mrb[21].mxu1  ;;  %v957_v37 = vpop.f32.mrb[22].mxu0 }
 0x121   :  { %v1020_v38 = vadd.f32 %v1019_v36, %v1018_v31  ;;  %v1021_v39 = vpop.f32.mrb[22].mxu1  ;;  %v958_v40 = vpop.f32.mrb[23].mxu0 }
 0x122   :  { %v884_v41 = vpack.c.bf16 %v673_v34, %v672_v33  ;;  %v545_v42 = vadd.f32 %v956_v35, %v1331_v2  ;;  %v959_v43 = vadd.f32 %v958_v40, %v957_v37  ;;  %v1022_v44 = vpop.f32.mrb[23].mxu1 }
 0x123   :  { %v1023_v45 = vadd.f32 %v1022_v44, %v1021_v39 }
 0x124   :  { %904 = vst [vmem:[%s1376_s3 + $0x20] sm:$0xff] %v884_v41   ;;  %v642_v46 = vadd.f32 %v1020_v38, %v545_v42  ;;  %v548_v47 = vadd.f32 %v959_v43, %v1331_v2 }
 0x126   :  { %v645_v48 = vadd.f32 %v1023_v45, %v548_v47  ;;  %v960_v49 = vpop.f32.mrb[24].mxu0  ;;  %v674_v52 = vmax.f32 %v642_v46, 0.0 }
 0x127   :  { %v1024_v50 = vpop.f32.mrb[24].mxu1  ;;  %v961_v51 = vpop.f32.mrb[25].mxu0 }
 0x128   :  { %v675_v53 = vmax.f32 %v645_v48, 0.0  ;;  %v962_v54 = vadd.f32 %v961_v51, %v960_v49  ;;  %v1025_v55 = vpop.f32.mrb[25].mxu1  ;;  %v963_v56 = vpop.f32.mrb[26].mxu0 }
 0x129   :  { %v1026_v57 = vadd.f32 %v1025_v55, %v1024_v50  ;;  %v1027_v58 = vpop.f32.mrb[26].mxu1  ;;  %v964_v59 = vpop.f32.mrb[27].mxu0 }
 0x12a   :  { %v889_v60 = vpack.c.bf16 %v675_v53, %v674_v52  ;;  %v553_v61 = vadd.f32 %v962_v54, %v1331_v2  ;;  %v965_v62 = vadd.f32 %v964_v59, %v963_v56  ;;  %v1028_v63 = vpop.f32.mrb[27].mxu1 }
 0x12b   :  { %v1029_v0 = vadd.f32 %v1028_v63, %v1027_v58 }
 0x12c   :  { %905 = vst [vmem:[%s1376_s3 + $0x28] sm:$0xff] %v889_v60   ;;  %v650_v1 = vadd.f32 %v1026_v57, %v553_v61  ;;  %v556_v3 = vadd.f32 %v965_v62, %v1331_v2 }
 0x12e   :  { %v653_v4 = vadd.f32 %v1029_v0, %v556_v3  ;;  %v966_v5 = vpop.f32.mrb[28].mxu0  ;;  %v676_v8 = vmax.f32 %v650_v1, 0.0 }
 0x12f   :  { %v1030_v6 = vpop.f32.mrb[28].mxu1  ;;  %v967_v7 = vpop.f32.mrb[29].mxu0 }
 0x130   :  { %v677_v9 = vmax.f32 %v653_v4, 0.0  ;;  %v968_v10 = vadd.f32 %v967_v7, %v966_v5  ;;  %v1031_v11 = vpop.f32.mrb[29].mxu1  ;;  %v969_v12 = vpop.f32.mrb[30].mxu0 }
 0x131   :  { %v1032_v13 = vadd.f32 %v1031_v11, %v1030_v6  ;;  %v1033_v14 = vpop.f32.mrb[30].mxu1  ;;  %v970_v15 = vpop.f32.mrb[31].mxu0 }
 0x132   :  { %v894_v16 = vpack.c.bf16 %v677_v9, %v676_v8  ;;  %v561_v17 = vadd.f32 %v968_v10, %v1331_v2  ;;  %v971_v18 = vadd.f32 %v970_v15, %v969_v12  ;;  %v1034_v19 = vpop.f32.mrb[31].mxu1 }
 0x133   :  { %v1035_v20 = vadd.f32 %v1034_v19, %v1033_v14 }
 0x134   :  { %906 = vst [vmem:[%s1376_s3 + $0x30] sm:$0xff] %v894_v16   ;;  %v658_v21 = vadd.f32 %v1032_v13, %v561_v17  ;;  %v564_v22 = vadd.f32 %v971_v18, %v1331_v2 }
 0x136   :  { %v661_v23 = vadd.f32 %v1035_v20, %v564_v22  ;;  %v678_v24 = vmax.f32 %v658_v21, 0.0 }
 0x138   :  { %v679_v25 = vmax.f32 %v661_v23, 0.0 }
 0x13a   :  { %v899_v26 = vpack.c.bf16 %v679_v25, %v678_v24 }
 0x13c   :  { %907 = vst [vmem:[%s1376_s3 + $0x38] sm:$0xff] %v899_v26  }

// kernel: coex_forward.51
= control target key start
LH: loop header
LB: loop body
LE: loop exit
PB: predicated region body
PF: predicated region fallthrough
CT: control target
= control target key end

     0   :  { %s1190_s12 = smov 0   ;;  %s1192_s13 = smov 0   ;;  %s1322_s0 = inlined_call_operand.vmem [shape: bf16[128,896], index: 0, kind: input, shape index: {}]   ;;  %s1323_s1 = inlined_call_operand.vmem [shape: bf16[896,128], index: 1, kind: input, shape index: {}]   ;;  %s1324_s2 = inlined_call_operand.vmem [shape: f32[1,128], index: 2, kind: input, shape index: {}]   ;;  %s1325_s3 = inlined_call_operand.vmem [shape: bf16[128,128], index: 3, kind: output, shape index: {}]  }
   0x1   :  { %s1194_s14 = smov 0   ;;  %s1196_s15 = smov 0  }
   0x2   :  { %s1198_s16 = smov 0  }
   0x3 LB: > { %s25_s17 = sadd.s32 1, %s1163_s15  ;;  %p48_p1 = scmp.ne.s32.totalorder %s1155_s13, %s1151_s12  ;;  %s1167_s16 = sphi %s1198_s16, %s13_s16   ;;  %s1163_s15 = sphi %s1196_s15, %s1329_s15   ;;  %s1159_s14 = sphi %s1194_s14, %s1328_s14   ;;  %s1155_s13 = sphi %s1192_s13, %s1327_s13   ;;  %s1151_s12 = sphi %s1190_s12, %s1326_s12  }
   0x4   : > { %p26_p0 = scmp.ge.s32.totalorder %s25_s17, 7  ;;  %p49_p2 = scmp.eq.s32.totalorder %s1167_s16, 0 }
   0x5   : > { %s41_s19 = sadd.s32 1, %s1155_s13  ;;  %p899_p5 = scmp.ge.s32.totalorder %s1167_s16, 7 }
   0x6   : > { %s1331_s17 = smov (%p26_p0, %s25_s17), 0  ;;  %p50_p3 = por %p49_p2, %p48_p1 }
   0x7   : > { %s37_s18 = ssub.s32 %s1163_s15, %s1331_s17  ;;  %162 = sbr.rel (%p899_p5) target bundleno = 28 (0x1c), region = 20 }
   0x8   : > { %p39_p4 = scmp.eq.s32.totalorder %s37_s18, 0 }
   0xa   : > { %s1225_s20 = scalar_select %p39_p4, %s1155_s13, %s41_s19  }
   0xe   : > { %165 = sbr.rel (!%p50_p3) target bundleno = 28 (0x1c), region = 24  ;;  %s167_s21 = sand.u32 (%p50_p3), 1, %s1155_s13  }
   0xf   : > { %s901_s22 = sshll.u32 (%p50_p3), %s1163_s15, 2  ;;  %s900_s23 = sshll.u32 (%p50_p3), %s167_s21, 6 }
  0x10   : > { %s1233_s26 = scalar_lea.vmem (%p50_p3), %s1322_s0, %s901_s22  ;;  %s169_s27 = scalar_lea.vmem (%p50_p3), [#allocation3], %s900_s23 }
  0x11   : > { %v190_v0 = vld [vmem:[%s1233_s26] sm:$0xf] (%p50_p3)  ;;  %v192_v1 = vld [vmem:[%s1233_s26 + $0x1c] sm:$0xf] (%p50_p3)  ;;  %v194_v2 = vld [vmem:[%s1233_s26 + $0x38] sm:$0xf] (%p50_p3) }
  0x12   : > { %191 = vst [vmem:[%s169_s27] sm:$0xf] (%p50_p3), %v190_v0  ;;  %193 = vst [vmem:[%s169_s27 + $0x4] sm:$0xf] (%p50_p3), %v192_v1  ;;  %v196_v3 = vld [vmem:[%s1233_s26 + $0x54] sm:$0xf] (%p50_p3) }
  0x13   : > { %v198_v4 = vld [vmem:[%s1233_s26 + $0x70] sm:$0xf] (%p50_p3)  ;;  %195 = vst [vmem:[%s169_s27 + $0x8] sm:$0xf] (%p50_p3), %v194_v2  ;;  %197 = vst [vmem:[%s169_s27 + $0xc] sm:$0xf] (%p50_p3), %v196_v3 }
  0x14   : > { %199 = vst [vmem:[%s169_s27 + $0x10] sm:$0xf] (%p50_p3), %v198_v4  ;;  %v200_v5 = vld [vmem:[%s1233_s26 + $0x8c] sm:$0xf] (%p50_p3)  ;;  %v202_v6 = vld [vmem:[%s1233_s26 + $0xa8] sm:$0xf] (%p50_p3) }
  0x15   : > { %v204_v7 = vld [vmem:[%s1233_s26 + $0xc4] sm:$0xf]  ;;  %201 = vst [vmem:[%s169_s27 + $0x14] sm:$0xf] %v200_v5  ;;  %203 = vst [vmem:[%s169_s27 + $0x18] sm:$0xf] %v202_v6 }
  0x16   : > { %205 = vst [vmem:[%s169_s27 + $0x1c] sm:$0xf] %v204_v7  ;;  %v206_v8 = vld [vmem:[%s1233_s26 + $0xe0] sm:$0xf]  ;;  %v208_v9 = vld [vmem:[%s1233_s26 + $0xfc] sm:$0xf] }
  0x17   : > { %v210_v10 = vld [vmem:[%s1233_s26 + $0x118] sm:$0xf]  ;;  %207 = vst [vmem:[%s169_s27 + $0x20] sm:$0xf] %v206_v8  ;;  %209 = vst [vmem:[%s169_s27 + $0x24] sm:$0xf] %v208_v9 }
  0x18   : > { %211 = vst [vmem:[%s169_s27 + $0x28] sm:$0xf] %v210_v10  ;;  %v212_v11 = vld [vmem:[%s1233_s26 + $0x134] sm:$0xf]  ;;  %v214_v12 = vld [vmem:[%s1233_s26 + $0x150] sm:$0xf] }
  0x19   : > { %v216_v13 = vld [vmem:[%s1233_s26 + $0x16c] sm:$0xf]  ;;  %213 = vst [vmem:[%s169_s27 + $0x2c] sm:$0xf] %v212_v11  ;;  %215 = vst [vmem:[%s169_s27 + $0x30] sm:$0xf] %v214_v12 }
  0x1a   : > { %217 = vst [vmem:[%s169_s27 + $0x34] sm:$0xf] %v216_v13  ;;  %v218_v14 = vld [vmem:[%s1233_s26 + $0x188] sm:$0xf]  ;;  %v220_v15 = vld [vmem:[%s1233_s26 + $0x1a4] sm:$0xf] }
  0x1b   : > { %219 = vst [vmem:[%s169_s27 + $0x38] sm:$0xf] %v218_v14  ;;  %221 = vst [vmem:[%s169_s27 + $0x3c] sm:$0xf] %v220_v15 }
  0x1c PF: > { %p902_p6 = scmp.ge.s32.totalorder %s1167_s16, 1  ;;  %p287_p7 = scmp.lt.s32.totalorder %s1167_s16, 8 }
  0x1e   : > { %p288_p8 = pnand %p902_p6, %p287_p7 }
  0x1f   : > { %s294_s28 = sand.u32 (!%p288_p8), 1, %s1151_s12   ;;  %s904_s29 = sshll.u32 (!%p288_p8), %s1159_s14, 4 }
  0x20   : > { %291 = sbr.rel (%p288_p8) target bundleno = 323 (0x143), region = 69  ;;  %s903_s30 = sshll.u32 (!%p288_p8), %s294_s28, 6 }
  0x21   : > { %p333_p9 = scmp.lt.s32.totalorder (!%p288_p8), %s904_s29, 111  ;;  %s1260_s8 = scalar_lea.vmem (!%p288_p8), [#allocation3], %s903_s30 }
  0x22   : > { %p906_p10 = scmp.ne.s32.totalorder (!%p288_p8), %s1159_s14, 0 }
  0x27   : > { %s1333_s29 = smov (!%p333_p9, %s904_s29), 111  ;;  %357 = sbr.rel (%p906_p10) target bundleno = 49 (0x31), region = 77 }
  0x28   : > { %s905_s4 = sshll.u32 %s1333_s29, 2  ;;  %v1169_v16 = vmov (!%p906_p10), 0.0  }
  0x29   : > { %s1258_s7 = scalar_lea.vmem %s1323_s1, %s905_s4  ;;  %358 = vst [vmem:[#allocation2] sm:$0xff] (!%p906_p10), %v1169_v16  ;;  %359 = vst [vmem:[#allocation2 + $0x8] sm:$0xff] (!%p906_p10), %v1169_v16 }
  0x2a   : > { %360 = vst [vmem:[#allocation2 + $0x10] sm:$0xff] (!%p906_p10), %v1169_v16  ;;  %361 = vst [vmem:[#allocation2 + $0x18] sm:$0xff] (!%p906_p10), %v1169_v16 }
  0x2b   : > { %362 = vst [vmem:[#allocation2 + $0x20] sm:$0xff] (!%p906_p10), %v1169_v16  ;;  %363 = vst [vmem:[#allocation2 + $0x28] sm:$0xff] (!%p906_p10), %v1169_v16 }
  0x2c   : > { %364 = vst [vmem:[#allocation2 + $0x30] sm:$0xff] (!%p906_p10), %v1169_v16  ;;  %365 = vst [vmem:[#allocation2 + $0x38] sm:$0xff] (!%p906_p10), %v1169_v16 }
  0x2d   : > { %366 = vst [vmem:[#allocation2 + $0x40] sm:$0xff] (!%p906_p10), %v1169_v16  ;;  %367 = vst [vmem:[#allocation2 + $0x48] sm:$0xff] (!%p906_p10), %v1169_v16 }
  0x2e   : > { %368 = vst [vmem:[#allocation2 + $0x50] sm:$0xff] %v1169_v16  ;;  %369 = vst [vmem:[#allocation2 + $0x58] sm:$0xff] %v1169_v16 }
  0x2f   : > { %370 = vst [vmem:[#allocation2 + $0x60] sm:$0xff] %v1169_v16  ;;  %371 = vst [vmem:[#allocation2 + $0x68] sm:$0xff] %v1169_v16 }
  0x30   : > { %372 = vst [vmem:[#allocation2 + $0x70] sm:$0xff] %v1169_v16  ;;  %373 = vst [vmem:[#allocation2 + $0x78] sm:$0xff] %v1169_v16 }
  0x31 PF: > { %v1113_v17 = vld [vmem:[%s1258_s7] sm:$0xff]   ;;  %v1114_v18 = vld [vmem:[%s1258_s7 + $0x8] sm:$0xff]   ;;  %v1115_v19 = vld [vmem:[%s1258_s7 + $0x10] sm:$0xff]   ;;  %p923_p11 = scmp.ne.s32.totalorder %s1159_s14, 6 }
  0x32   : > { %1024 = vmatprep.subr.bf16.mxu0 %v1113_v17  ;;  %1056 = vmatprep.subr.bf16.mxu1 %v1113_v17  ;;  %v1116_v20 = vld [vmem:[%s1258_s7 + $0x18] sm:$0xff]   ;;  %v1121_v21 = vld [vmem:[%s1260_s8] sm:$0xff]   ;;  %v1118_v24 = vld [vmem:[%s1258_s7 + $0x28] sm:$0xff]  }
  0x33   : > { %1025 = vmatpush3.bf16.msra.mxu0 %v1113_v17  ;;  %1064 = vmatpush3.bf16.msra.mxu1 %v1113_v17  ;;  %v1122_v22 = vld [vmem:[%s1260_s8 + $0x20] sm:$0xff]   ;;  %v1119_v25 = vld [vmem:[%s1258_s7 + $0x30] sm:$0xff]   ;;  %v1120_v26 = vld [vmem:[%s1258_s7 + $0x38] sm:$0xff]  }
  0x34   : > { %1026 = vmatprep.subr.bf16.mxu0 %v1114_v18  ;;  %1057 = vmatprep.subr.bf16.mxu1 %v1114_v18  ;;  %v1117_v23 = vld [vmem:[%s1258_s7 + $0x20] sm:$0xff]   ;;  %v1123_v27 = vld [vmem:[%s1260_s8 + $0x8] sm:$0xff]   ;;  %v1125_v29 = vld [vmem:[%s1260_s8 + $0x10] sm:$0xff]  }
  0x35   : > { %1040 = vmatprep.mubr.bf16.mxu0 %v1121_v21  ;;  %1048 = vmatprep.mubr.bf16.mxu1 %v1122_v22  ;;  %v1124_v28 = vld [vmem:[%s1260_s8 + $0x28] sm:$0xff]   ;;  %v1126_v30 = vld [vmem:[%s1260_s8 + $0x30] sm:$0xff]   ;;  %v1127_v31 = vld [vmem:[%s1260_s8 + $0x18] sm:$0xff]  }
  0x36   : > { %v1128_v32 = vld [vmem:[%s1260_s8 + $0x38] sm:$0xff]   ;;  %v376_v33 = vld [vmem:[#allocation2 + $0x10] sm:$0xff]  ;;  %v374_v35 = vld [vmem:[#allocation2] sm:$0xff] }
  0x37   : > { %1027 = vmatpush3.bf16.msra.mxu0 %v1114_v18  ;;  %1065 = vmatpush3.bf16.msra.mxu1 %v1114_v18  ;;  %v384_v34 = vld [vmem:[#allocation2 + $0x50] sm:$0xff]  ;;  %v382_v36 = vld [vmem:[#allocation2 + $0x40] sm:$0xff]  ;;  %v377_v39 = vld [vmem:[#allocation2 + $0x18] sm:$0xff] }
  0x38   : > { %1028 = vmatprep.subr.bf16.mxu0 %v1115_v19  ;;  %1058 = vmatprep.subr.bf16.mxu1 %v1115_v19  ;;  %v385_v40 = vld [vmem:[#allocation2 + $0x58] sm:$0xff]  ;;  %v375_v45 = vld [vmem:[#allocation2 + $0x8] sm:$0xff]  ;;  %v380_v57 = vld [vmem:[#allocation2 + $0x30] sm:$0xff] }
  0x39   : > { %v383_v46 = vld [vmem:[#allocation2 + $0x48] sm:$0xff]  ;;  %v388_v58 = vld [vmem:[#allocation2 + $0x70] sm:$0xff]  ;;  %v378_v59 = vld [vmem:[#allocation2 + $0x20] sm:$0xff] }
  0x3a   : > { %v386_v60 = vld [vmem:[#allocation2 + $0x60] sm:$0xff]  ;;  %v381_v63 = vld [vmem:[#allocation2 + $0x38] sm:$0xff]  ;;  %v379_v5 = vld [vmem:[#allocation2 + $0x28] sm:$0xff] }
  0x3b   : > { %1029 = vmatpush3.bf16.msra.mxu0 %v1115_v19  ;;  %1066 = vmatpush3.bf16.msra.mxu1 %v1115_v19  ;;  %v389_v0 = vld [vmem:[#allocation2 + $0x78] sm:$0xff]  ;;  %v387_v6 = vld [vmem:[#allocation2 + $0x68] sm:$0xff]  ;;  %v924_v19 = vld [vmem:[%s1324_s2] ss:$0 sm:$0xff] (!%p923_p11) }
  0x3c   : > { %1030 = vmatprep.subr.bf16.mxu0 %v1116_v20  ;;  %1059 = vmatprep.subr.bf16.mxu1 %v1116_v20 }
  0x3f   : > { %1031 = vmatpush3.bf16.msra.mxu0 %v1116_v20  ;;  %1067 = vmatpush3.bf16.msra.mxu1 %v1116_v20 }
  0x40   : > { %1032 = vmatprep.subr.bf16.mxu0 %v1117_v23  ;;  %1060 = vmatprep.subr.bf16.mxu1 %v1117_v23 }
  0x43   : > { %1033 = vmatpush3.bf16.msra.mxu0 %v1117_v23  ;;  %1068 = vmatpush3.bf16.msra.mxu1 %v1117_v23 }
  0x44   : > { %1034 = vmatprep.subr.bf16.mxu0 %v1118_v24  ;;  %1061 = vmatprep.subr.bf16.mxu1 %v1118_v24 }
  0x47   : > { %1035 = vmatpush3.bf16.msra.mxu0 %v1118_v24  ;;  %1069 = vmatpush3.bf16.msra.mxu1 %v1118_v24 }
  0x48   : > { %1036 = vmatprep.subr.bf16.mxu0 %v1119_v25  ;;  %1062 = vmatprep.subr.bf16.mxu1 %v1119_v25 }
  0x4b   : > { %1037 = vmatpush3.bf16.msra.mxu0 %v1119_v25  ;;  %1070 = vmatpush3.bf16.msra.mxu1 %v1119_v25 }
  0x4c   : > { %1038 = vmatprep.subr.bf16.mxu0 %v1120_v26  ;;  %1063 = vmatprep.subr.bf16.mxu1 %v1120_v26 }
  0x4f   : > { %1039 = vmatpush3.bf16.msra.mxu0 %v1120_v26  ;;  %1071 = vmatpush3.bf16.msra.mxu1 %v1120_v26 }
  0x52   : > { %1041 = vmatmul.mubr.bf16.vlgmr.msra.gmra.mrb[0].mxu0 %v1123_v27  ;;  %1049 = vmatmul.mubr.bf16.vlgmr.msra.gmra.mrb[0].mxu1 %v1124_v28 }
  0x53   : > { %1044 = vmatprep.mubr.bf16.mxu0 %v1125_v29  ;;  %1052 = vmatprep.mubr.bf16.mxu1 %v1126_v30 }
  0x5a   : > { %1045 = vmatmul.mubr.bf16.gmra.mrb[4].mxu0 %v1127_v31  ;;  %1053 = vmatmul.mubr.bf16.gmra.mrb[4].mxu1 %v1128_v32 }
 0x125   : > { %v1042_v37 = vpop.f32.mrb[0].mxu0  ;;  %v1050_v38 = vpop.f32.mrb[0].mxu1 }
 0x126   : > { %v617_v41 = vadd.f32 %v1042_v37, %v376_v33  ;;  %v625_v42 = vadd.f32 %v1050_v38, %v384_v34  ;;  %v552_v43 = vpop.f32.mrb[1].mxu0  ;;  %v584_v44 = vpop.f32.mrb[1].mxu1 }
 0x127   : > { %v615_v47 = vadd.f32 %v552_v43, %v374_v35  ;;  %v623_v48 = vadd.f32 %v584_v44, %v382_v36  ;;  %v1043_v49 = vpop.f32.mrb[2].mxu0  ;;  %v1051_v50 = vpop.f32.mrb[2].mxu1 }
 0x128   : > { %633 = vst [vmem:[#allocation2 + $0x10] sm:$0xff] %v617_v41  ;;  %641 = vst [vmem:[#allocation2 + $0x50] sm:$0xff] %v625_v42  ;;  %v618_v51 = vadd.f32 %v1043_v49, %v377_v39  ;;  %v626_v52 = vadd.f32 %v1051_v50, %v385_v40  ;;  %v555_v53 = vpop.f32.mrb[3].mxu0  ;;  %v587_v54 = vpop.f32.mrb[3].mxu1 }
 0x129   : > { %631 = vst [vmem:[#allocation2] sm:$0xff] %v615_v47  ;;  %639 = vst [vmem:[#allocation2 + $0x40] sm:$0xff] %v623_v48  ;;  %v616_v55 = vadd.f32 %v555_v53, %v375_v45  ;;  %v624_v56 = vadd.f32 %v587_v54, %v383_v46 }
 0x12a   : > { %634 = vst [vmem:[#allocation2 + $0x18] sm:$0xff] %v618_v51  ;;  %642 = vst [vmem:[#allocation2 + $0x58] sm:$0xff] %v626_v52 }
 0x12b   : > { %632 = vst [vmem:[#allocation2 + $0x8] sm:$0xff] %v616_v55  ;;  %640 = vst [vmem:[#allocation2 + $0x48] sm:$0xff] %v624_v56 }
 0x12d   : > { %v1046_v61 = vpop.f32.mrb[4].mxu0  ;;  %v1054_v62 = vpop.f32.mrb[4].mxu1  ;;  %650 = sbr.rel (%p923_p11) target bundleno = 323 (0x143), region = 81 }
 0x12e   : > { %v621_v1 = vadd.f32 %v1046_v61, %v380_v57  ;;  %v629_v2 = vadd.f32 %v1054_v62, %v388_v58  ;;  %v568_v3 = vpop.f32.mrb[5].mxu0  ;;  %v600_v4 = vpop.f32.mrb[5].mxu1 }
 0x12f   : > { %v619_v7 = vadd.f32 %v568_v3, %v378_v59  ;;  %v627_v8 = vadd.f32 %v600_v4, %v386_v60  ;;  %v1047_v9 = vpop.f32.mrb[6].mxu0  ;;  %v1055_v10 = vpop.f32.mrb[6].mxu1  ;;  %v653_v22 = vld [vmem:[#allocation2 + $0x10] sm:$0xff] (!%p923_p11) }
 0x130   : > { %637 = vst [vmem:[#allocation2 + $0x30] sm:$0xff] %v621_v1  ;;  %645 = vst [vmem:[#allocation2 + $0x70] sm:$0xff] %v629_v2  ;;  %v622_v11 = vadd.f32 %v1047_v9, %v381_v63  ;;  %v630_v12 = vadd.f32 %v1055_v10, %v389_v0  ;;  %v571_v13 = vpop.f32.mrb[7].mxu0  ;;  %v603_v14 = vpop.f32.mrb[7].mxu1  ;;  %v651_v17 = vld [vmem:[#allocation2] sm:$0xff] (!%p923_p11)  ;;  %v676_v25 = vadd.f32 (!%p923_p11), %v924_v19, %v653_v22  ;;  %v661_v37 = vld [vmem:[#allocation2 + $0x50] sm:$0xff] (!%p923_p11) }
 0x131   : > { %635 = vst [vmem:[#allocation2 + $0x20] sm:$0xff] %v619_v7  ;;  %643 = vst [vmem:[#allocation2 + $0x60] sm:$0xff] %v627_v8  ;;  %v620_v15 = vadd.f32 %v571_v13, %v379_v5  ;;  %v628_v16 = vadd.f32 %v603_v14, %v387_v6  ;;  %v674_v20 = vadd.f32 (!%p923_p11), %v924_v19, %v651_v17  ;;  %v654_v23 = vld [vmem:[#allocation2 + $0x18] sm:$0xff] (!%p923_p11)  ;;  %v659_v35 = vld [vmem:[#allocation2 + $0x40] sm:$0xff] (!%p923_p11) }
 0x132   : > { %638 = vst [vmem:[#allocation2 + $0x38] sm:$0xff] %v622_v11  ;;  %646 = vst [vmem:[#allocation2 + $0x78] sm:$0xff] %v630_v12  ;;  %v652_v18 = vld [vmem:[#allocation2 + $0x8] sm:$0xff] (!%p923_p11)  ;;  %v677_v26 = vadd.f32 (!%p923_p11), %v924_v19, %v654_v23  ;;  %v692_v38 = vmax.f32 (!%p923_p11), %v676_v25, 0.0  ;;  %v662_v42 = vld [vmem:[#allocation2 + $0x58] sm:$0xff] (!%p923_p11)  ;;  %v682_v47 = vadd.f32 (!%p923_p11), %v924_v19, %v659_v35  ;;  %v684_v52 = vadd.f32 (!%p923_p11), %v924_v19, %v661_v37 }
 0x133   : > { %636 = vst [vmem:[#allocation2 + $0x28] sm:$0xff] %v620_v15  ;;  %644 = vst [vmem:[#allocation2 + $0x68] sm:$0xff] %v628_v16  ;;  %v675_v21 = vadd.f32 (!%p923_p11), %v924_v19, %v652_v18  ;;  %v690_v31 = vmax.f32 (!%p923_p11), %v674_v20, 0.0  ;;  %v660_v36 = vld [vmem:[#allocation2 + $0x48] sm:$0xff] (!%p923_p11)  ;;  %v685_v57 = vadd.f32 (!%p923_p11), %v924_v19, %v662_v42 }
 0x134   : > { %v693_v39 = vmax.f32 %v677_v26, 0.0  ;;  %v683_v51 = vadd.f32 %v924_v19, %v660_v36  ;;  %v698_v56 = vmax.f32 %v682_v47, 0.0  ;;  %v700_v61 = vmax.f32 %v684_v52, 0.0 }
 0x135   : > { %v691_v32 = vmax.f32 %v675_v21, 0.0  ;;  %v701_v63 = vmax.f32 %v685_v57, 0.0 }
 0x136   : > { %v969_v49 = vpack.c.bf16 %v693_v39, %v692_v38  ;;  %v699_v60 = vmax.f32 %v683_v51, 0.0 }
 0x137   : > { %v657_v29 = vld [vmem:[#allocation2 + $0x30] sm:$0xff]  ;;  %v964_v44 = vpack.c.bf16 %v691_v32, %v690_v31  ;;  %v989_v5 = vpack.c.bf16 %v701_v63, %v700_v61 }
 0x138   : > { %v655_v24 = vld [vmem:[#allocation2 + $0x20] sm:$0xff]  ;;  %v680_v34 = vadd.f32 %v924_v19, %v657_v29  ;;  %v665_v53 = vld [vmem:[#allocation2 + $0x70] sm:$0xff]  ;;  %1001 = vst [vmem:[%s1325_s3 + $0x8] sm:$0xff] %v969_v49   ;;  %v984_v3 = vpack.c.bf16 %v699_v60, %v698_v56 }
 0x139   : > { %v678_v28 = vadd.f32 %v924_v19, %v655_v24  ;;  %v658_v30 = vld [vmem:[#allocation2 + $0x38] sm:$0xff]  ;;  %v663_v43 = vld [vmem:[#allocation2 + $0x60] sm:$0xff]  ;;  %965 = vst [vmem:[%s1325_s3] sm:$0xff] %v964_v44   ;;  %v688_v1 = vadd.f32 %v924_v19, %v665_v53  ;;  %1005 = vst [vmem:[%s1325_s3 + $0x28] sm:$0xff] %v989_v5  }
 0x13a   : > { %v656_v27 = vld [vmem:[#allocation2 + $0x28] sm:$0xff]  ;;  %v681_v41 = vadd.f32 %v924_v19, %v658_v30  ;;  %v696_v46 = vmax.f32 %v680_v34, 0.0  ;;  %v666_v54 = vld [vmem:[#allocation2 + $0x78] sm:$0xff]  ;;  %v686_v58 = vadd.f32 %v924_v19, %v663_v43  ;;  %1004 = vst [vmem:[%s1325_s3 + $0x20] sm:$0xff] %v984_v3  }
 0x13b   : > { %v679_v33 = vadd.f32 %v924_v19, %v656_v27  ;;  %v694_v40 = vmax.f32 %v678_v28, 0.0  ;;  %v664_v48 = vld [vmem:[#allocation2 + $0x68] sm:$0xff]  ;;  %v689_v2 = vadd.f32 %v924_v19, %v666_v54  ;;  %v704_v6 = vmax.f32 %v688_v1, 0.0 }
 0x13c   : > { %v697_v50 = vmax.f32 %v681_v41, 0.0  ;;  %v687_v62 = vadd.f32 %v924_v19, %v664_v48  ;;  %v702_v0 = vmax.f32 %v686_v58, 0.0 }
 0x13d   : > { %v695_v45 = vmax.f32 %v679_v33, 0.0  ;;  %v705_v7 = vmax.f32 %v689_v2, 0.0 }
 0x13e   : > { %v979_v59 = vpack.c.bf16 %v697_v50, %v696_v46  ;;  %v703_v4 = vmax.f32 %v687_v62, 0.0 }
 0x13f   : > { %v974_v55 = vpack.c.bf16 %v695_v45, %v694_v40  ;;  %v999_v9 = vpack.c.bf16 %v705_v7, %v704_v6 }
 0x140   : > { %1003 = vst [vmem:[%s1325_s3 + $0x18] sm:$0xff] %v979_v59   ;;  %v994_v8 = vpack.c.bf16 %v703_v4, %v702_v0 }
 0x141   : > { %1002 = vst [vmem:[%s1325_s3 + $0x10] sm:$0xff] %v974_v55   ;;  %1007 = vst [vmem:[%s1325_s3 + $0x38] sm:$0xff] %v999_v9  }
 0x142   : > { %1006 = vst [vmem:[%s1325_s3 + $0x30] sm:$0xff] %v994_v8  }
 0x143 PF: > { %s13_s16 = sadd.s32 1, %s1167_s16   ;;  %s1326_s12 = smov %s1155_s13 }
 0x144   : > { %p10_p12 = scmp.ge.s32.totalorder %s13_s16, 9   ;;  %s1327_s13 = smov %s1225_s20 }
 0x145   : > { %s1328_s14 = smov %s1163_s15  ;;  %s1329_s15 = smov %s1331_s17 }
 0x146   :  { %12 = sbr.rel (!%p10_p12) target bundleno = 3 (0x3), region = 122 }

// kernel: coex_forward.66
= control target key start
LH: loop header
LB: loop body
LE: loop exit
PB: predicated region body
PF: predicated region fallthrough
CT: control target
= control target key end

     0   :  { %s618_s1 = inlined_call_operand.vmem [shape: bf16[128,128], index: 1, kind: input, shape index: {}]   ;;  %s619_s0 = inlined_call_operand.vmem [shape: bf16[128,128], index: 0, kind: input, shape index: {}]   ;;  %s620_s2 = inlined_call_operand.vmem [shape: f32[1,128], index: 2, kind: input, shape index: {}]   ;;  %s621_s3 = inlined_call_operand.vmem [shape: bf16[128,128], index: 3, kind: output, shape index: {}]  }
   0x1   :  { %v507_v0 = vld [vmem:[%s618_s1] sm:$0xff]   ;;  %v508_v1 = vld [vmem:[%s618_s1 + $0x8] sm:$0xff]   ;;  %v509_v2 = vld [vmem:[%s618_s1 + $0x10] sm:$0xff]  }
   0x2   :  { %459 = vmatprep.subr.bf16.mxu0 %v507_v0  ;;  %491 = vmatprep.subr.bf16.mxu1 %v507_v0  ;;  %v510_v3 = vld [vmem:[%s618_s1 + $0x18] sm:$0xff]   ;;  %v515_v4 = vld [vmem:[%s619_s0] sm:$0xff]   ;;  %v512_v7 = vld [vmem:[%s618_s1 + $0x28] sm:$0xff]  }
   0x3   :  { %460 = vmatpush3.bf16.msra.mxu0 %v507_v0  ;;  %499 = vmatpush3.bf16.msra.mxu1 %v507_v0  ;;  %v516_v5 = vld [vmem:[%s619_s0 + $0x20] sm:$0xff]   ;;  %v513_v8 = vld [vmem:[%s618_s1 + $0x30] sm:$0xff]   ;;  %v514_v9 = vld [vmem:[%s618_s1 + $0x38] sm:$0xff]  }
   0x4   :  { %461 = vmatprep.subr.bf16.mxu0 %v508_v1  ;;  %492 = vmatprep.subr.bf16.mxu1 %v508_v1  ;;  %v511_v6 = vld [vmem:[%s618_s1 + $0x20] sm:$0xff]   ;;  %v517_v10 = vld [vmem:[%s619_s0 + $0x8] sm:$0xff]   ;;  %v519_v12 = vld [vmem:[%s619_s0 + $0x10] sm:$0xff]  }
   0x5   :  { %475 = vmatprep.mubr.bf16.mxu0 %v515_v4  ;;  %483 = vmatprep.mubr.bf16.mxu1 %v516_v5  ;;  %v518_v11 = vld [vmem:[%s619_s0 + $0x28] sm:$0xff]   ;;  %v520_v13 = vld [vmem:[%s619_s0 + $0x30] sm:$0xff]   ;;  %v521_v14 = vld [vmem:[%s619_s0 + $0x18] sm:$0xff]  }
   0x6   :  { %v522_v15 = vld [vmem:[%s619_s0 + $0x38] sm:$0xff]   ;;  %v347_v16 = vld [vmem:[%s620_s2] ss:$0 sm:$0xff] }
   0x7   :  { %462 = vmatpush3.bf16.msra.mxu0 %v508_v1  ;;  %500 = vmatpush3.bf16.msra.mxu1 %v508_v1 }
   0x8   :  { %463 = vmatprep.subr.bf16.mxu0 %v509_v2  ;;  %493 = vmatprep.subr.bf16.mxu1 %v509_v2 }
   0xb   :  { %464 = vmatpush3.bf16.msra.mxu0 %v509_v2  ;;  %501 = vmatpush3.bf16.msra.mxu1 %v509_v2 }
   0xc   :  { %465 = vmatprep.subr.bf16.mxu0 %v510_v3  ;;  %494 = vmatprep.subr.bf16.mxu1 %v510_v3 }
   0xf   :  { %466 = vmatpush3.bf16.msra.mxu0 %v510_v3  ;;  %502 = vmatpush3.bf16.msra.mxu1 %v510_v3 }
  0x10   :  { %467 = vmatprep.subr.bf16.mxu0 %v511_v6  ;;  %495 = vmatprep.subr.bf16.mxu1 %v511_v6 }
  0x13   :  { %468 = vmatpush3.bf16.msra.mxu0 %v511_v6  ;;  %503 = vmatpush3.bf16.msra.mxu1 %v511_v6 }
  0x14   :  { %469 = vmatprep.subr.bf16.mxu0 %v512_v7  ;;  %496 = vmatprep.subr.bf16.mxu1 %v512_v7 }
  0x17   :  { %470 = vmatpush3.bf16.msra.mxu0 %v512_v7  ;;  %504 = vmatpush3.bf16.msra.mxu1 %v512_v7 }
  0x18   :  { %471 = vmatprep.subr.bf16.mxu0 %v513_v8  ;;  %497 = vmatprep.subr.bf16.mxu1 %v513_v8 }
  0x1b   :  { %472 = vmatpush3.bf16.msra.mxu0 %v513_v8  ;;  %505 = vmatpush3.bf16.msra.mxu1 %v513_v8 }
  0x1c   :  { %473 = vmatprep.subr.bf16.mxu0 %v514_v9  ;;  %498 = vmatprep.subr.bf16.mxu1 %v514_v9 }
  0x1f   :  { %474 = vmatpush3.bf16.msra.mxu0 %v514_v9  ;;  %506 = vmatpush3.bf16.msra.mxu1 %v514_v9 }
  0x22   :  { %476 = vmatmul.mubr.bf16.vlgmr.msra.gmra.mrb[0].mxu0 %v517_v10  ;;  %484 = vmatmul.mubr.bf16.vlgmr.msra.gmra.mrb[0].mxu1 %v518_v11 }
  0x23   :  { %479 = vmatprep.mubr.bf16.mxu0 %v519_v12  ;;  %487 = vmatprep.mubr.bf16.mxu1 %v520_v13 }
  0x2a   :  { %480 = vmatmul.mubr.bf16.gmra.mrb[4].mxu0 %v521_v14  ;;  %488 = vmatmul.mubr.bf16.gmra.mrb[4].mxu1 %v522_v15 }
  0xf5   :  { %v477_v17 = vpop.f32.mrb[0].mxu0  ;;  %v485_v18 = vpop.f32.mrb[0].mxu1 }
  0xf6   :  { %v193_v19 = vadd.f32 %v477_v17, %v347_v16  ;;  %v225_v20 = vadd.f32 %v485_v18, %v347_v16  ;;  %v184_v21 = vpop.f32.mrb[1].mxu0  ;;  %v216_v22 = vpop.f32.mrb[1].mxu1 }
  0xf7   :  { %v185_v23 = vadd.f32 %v347_v16, %v184_v21  ;;  %v217_v24 = vadd.f32 %v347_v16, %v216_v22  ;;  %v478_v25 = vpop.f32.mrb[2].mxu0  ;;  %v486_v26 = vpop.f32.mrb[2].mxu1 }
  0xf8   :  { %v196_v27 = vadd.f32 %v478_v25, %v347_v16  ;;  %v228_v28 = vadd.f32 %v486_v26, %v347_v16  ;;  %v187_v29 = vpop.f32.mrb[3].mxu0  ;;  %v219_v30 = vpop.f32.mrb[3].mxu1  ;;  %v249_v33 = vmax.f32 %v193_v19, 0.0  ;;  %v257_v34 = vmax.f32 %v225_v20, 0.0 }
  0xf9   :  { %v188_v31 = vadd.f32 %v347_v16, %v187_v29  ;;  %v220_v32 = vadd.f32 %v347_v16, %v219_v30  ;;  %v247_v37 = vmax.f32 %v185_v23, 0.0  ;;  %v255_v38 = vmax.f32 %v217_v24, 0.0 }
  0xfa   :  { %v250_v35 = vmax.f32 %v196_v27, 0.0  ;;  %v258_v36 = vmax.f32 %v228_v28, 0.0 }
  0xfb   :  { %v248_v39 = vmax.f32 %v188_v31, 0.0  ;;  %v256_v40 = vmax.f32 %v220_v32, 0.0 }
  0xfc   :  { %v404_v41 = vpack.c.bf16 %v250_v35, %v249_v33  ;;  %v424_v42 = vpack.c.bf16 %v258_v36, %v257_v34 }
  0xfd   :  { %v399_v43 = vpack.c.bf16 %v248_v39, %v247_v37  ;;  %v419_v44 = vpack.c.bf16 %v256_v40, %v255_v38  ;;  %v481_v45 = vpop.f32.mrb[4].mxu0  ;;  %v489_v46 = vpop.f32.mrb[4].mxu1 }
  0xfe   :  { %436 = vst [vmem:[%s621_s3 + $0x8] sm:$0xff] %v404_v41   ;;  %440 = vst [vmem:[%s621_s3 + $0x28] sm:$0xff] %v424_v42   ;;  %v209_v47 = vadd.f32 %v481_v45, %v347_v16  ;;  %v241_v48 = vadd.f32 %v489_v46, %v347_v16  ;;  %v200_v49 = vpop.f32.mrb[5].mxu0  ;;  %v232_v50 = vpop.f32.mrb[5].mxu1 }
  0xff   :  { %400 = vst [vmem:[%s621_s3] sm:$0xff] %v399_v43   ;;  %439 = vst [vmem:[%s621_s3 + $0x20] sm:$0xff] %v419_v44   ;;  %v201_v51 = vadd.f32 %v347_v16, %v200_v49  ;;  %v233_v52 = vadd.f32 %v347_v16, %v232_v50  ;;  %v482_v53 = vpop.f32.mrb[6].mxu0  ;;  %v490_v54 = vpop.f32.mrb[6].mxu1 }
 0x100   :  { %v212_v55 = vadd.f32 %v482_v53, %v347_v16  ;;  %v244_v56 = vadd.f32 %v490_v54, %v347_v16  ;;  %v203_v57 = vpop.f32.mrb[7].mxu0  ;;  %v235_v58 = vpop.f32.mrb[7].mxu1  ;;  %v253_v61 = vmax.f32 %v209_v47, 0.0  ;;  %v261_v62 = vmax.f32 %v241_v48, 0.0 }
 0x101   :  { %v204_v59 = vadd.f32 %v347_v16, %v203_v57  ;;  %v236_v60 = vadd.f32 %v347_v16, %v235_v58  ;;  %v251_v1 = vmax.f32 %v201_v51, 0.0  ;;  %v259_v2 = vmax.f32 %v233_v52, 0.0 }
 0x102   :  { %v254_v63 = vmax.f32 %v212_v55, 0.0  ;;  %v262_v0 = vmax.f32 %v244_v56, 0.0 }
 0x103   :  { %v252_v3 = vmax.f32 %v204_v59, 0.0  ;;  %v260_v4 = vmax.f32 %v236_v60, 0.0 }
 0x104   :  { %v414_v5 = vpack.c.bf16 %v254_v63, %v253_v61  ;;  %v434_v6 = vpack.c.bf16 %v262_v0, %v261_v62 }
 0x105   :  { %v409_v7 = vpack.c.bf16 %v252_v3, %v251_v1  ;;  %v429_v8 = vpack.c.bf16 %v260_v4, %v259_v2 }
 0x106   :  { %438 = vst [vmem:[%s621_s3 + $0x18] sm:$0xff] %v414_v5   ;;  %442 = vst [vmem:[%s621_s3 + $0x38] sm:$0xff] %v434_v6  }
 0x107   :  { %437 = vst [vmem:[%s621_s3 + $0x10] sm:$0xff] %v409_v7   ;;  %441 = vst [vmem:[%s621_s3 + $0x30] sm:$0xff] %v429_v8  }

// kernel: coex_forward.70
= control target key start
LH: loop header
LB: loop body
LE: loop exit
PB: predicated region body
PF: predicated region fallthrough
CT: control target
= control target key end

     0   :  { %s1694_s12 = smov 0   ;;  %s1696_s13 = smov 0   ;;  %s1942_s0 = inlined_call_operand.vmem [shape: bf16[256,640], index: 0, kind: input, shape index: {}]   ;;  %s1943_s1 = inlined_call_operand.vmem [shape: bf16[640,128], index: 1, kind: input, shape index: {}]   ;;  %s1944_s2 = inlined_call_operand.vmem [shape: f32[1,128], index: 2, kind: input, shape index: {}]   ;;  %s1945_s3 = inlined_call_operand.vmem [shape: bf16[256,128], index: 3, kind: output, shape index: {}]  }
   0x1   :  { %s1698_s14 = smov 0   ;;  %s1700_s15 = smov 0  }
   0x2   :  { %s1702_s16 = smov 0  }
   0x3 LB: > { %s25_s17 = sadd.s32 1, %s1667_s15  ;;  %p48_p1 = scmp.ne.s32.totalorder %s1659_s13, %s1655_s12  ;;  %s1671_s16 = sphi %s1702_s16, %s13_s16   ;;  %s1667_s15 = sphi %s1700_s15, %s1949_s15   ;;  %s1663_s14 = sphi %s1698_s14, %s1948_s14   ;;  %s1659_s13 = sphi %s1696_s13, %s1947_s13   ;;  %s1655_s12 = sphi %s1694_s12, %s1946_s12  }
   0x4   : > { %p26_p0 = scmp.ge.s32.totalorder %s25_s17, 5  ;;  %p49_p2 = scmp.eq.s32.totalorder %s1671_s16, 0 }
   0x5   : > { %s41_s19 = sadd.s32 1, %s1659_s13  ;;  %p1283_p5 = scmp.ge.s32.totalorder %s1671_s16, 5 }
   0x6   : > { %s1951_s17 = smov (%p26_p0, %s25_s17), 0  ;;  %p50_p3 = por %p49_p2, %p48_p1 }
   0x7   : > { %s37_s18 = ssub.s32 %s1667_s15, %s1951_s17  ;;  %162 = sbr.rel (%p1283_p5) target bundleno = 39 (0x27), region = 20 }
   0x8   : > { %p39_p4 = scmp.eq.s32.totalorder %s37_s18, 0 }
   0xa   : > { %s1729_s20 = scalar_select %p39_p4, %s1659_s13, %s41_s19  }
   0xe   : > { %165 = sbr.rel (!%p50_p3) target bundleno = 39 (0x27), region = 24  ;;  %s167_s21 = sand.u32 (%p50_p3), 1, %s1659_s13  }
   0xf   : > { %s1285_s22 = sshll.u32 (%p50_p3), %s1667_s15, 2  ;;  %s1284_s23 = sshll.u32 (%p50_p3), %s167_s21, 7 }
  0x10   : > { %s1737_s26 = scalar_lea.vmem (%p50_p3), %s1942_s0, %s1285_s22  ;;  %s1741_s27 = scalar_lea.vmem (%p50_p3), [#allocation3], %s1284_s23 }
  0x11   : > { %v190_v0 = vld [vmem:[%s1737_s26] sm:$0xf] (%p50_p3)  ;;  %v192_v1 = vld [vmem:[%s1737_s26 + $0x14] sm:$0xf] (%p50_p3)  ;;  %v194_v2 = vld [vmem:[%s1737_s26 + $0x28] sm:$0xf] (%p50_p3) }
  0x12   : > { %191 = vst [vmem:[%s1741_s27] sm:$0xf] (%p50_p3), %v190_v0  ;;  %193 = vst [vmem:[%s1741_s27 + $0x4] sm:$0xf] (%p50_p3), %v192_v1  ;;  %v196_v3 = vld [vmem:[%s1737_s26 + $0x3c] sm:$0xf] (%p50_p3) }
  0x13   : > { %v198_v4 = vld [vmem:[%s1737_s26 + $0x50] sm:$0xf] (%p50_p3)  ;;  %195 = vst [vmem:[%s1741_s27 + $0x8] sm:$0xf] (%p50_p3), %v194_v2  ;;  %197 = vst [vmem:[%s1741_s27 + $0xc] sm:$0xf] (%p50_p3), %v196_v3 }
  0x14   : > { %199 = vst [vmem:[%s1741_s27 + $0x10] sm:$0xf] (%p50_p3), %v198_v4  ;;  %v200_v5 = vld [vmem:[%s1737_s26 + $0x64] sm:$0xf] (%p50_p3)  ;;  %v202_v6 = vld [vmem:[%s1737_s26 + $0x78] sm:$0xf] (%p50_p3) }
  0x15   : > { %v204_v7 = vld [vmem:[%s1737_s26 + $0x8c] sm:$0xf]  ;;  %201 = vst [vmem:[%s1741_s27 + $0x14] sm:$0xf] %v200_v5  ;;  %203 = vst [vmem:[%s1741_s27 + $0x18] sm:$0xf] %v202_v6 }
  0x16   : > { %205 = vst [vmem:[%s1741_s27 + $0x1c] sm:$0xf] %v204_v7  ;;  %v206_v8 = vld [vmem:[%s1737_s26 + $0xa0] sm:$0xf]  ;;  %v208_v9 = vld [vmem:[%s1737_s26 + $0xb4] sm:$0xf] }
  0x17   : > { %v210_v10 = vld [vmem:[%s1737_s26 + $0xc8] sm:$0xf]  ;;  %207 = vst [vmem:[%s1741_s27 + $0x20] sm:$0xf] %v206_v8  ;;  %209 = vst [vmem:[%s1741_s27 + $0x24] sm:$0xf] %v208_v9 }
  0x18   : > { %211 = vst [vmem:[%s1741_s27 + $0x28] sm:$0xf] %v210_v10  ;;  %v212_v11 = vld [vmem:[%s1737_s26 + $0xdc] sm:$0xf]  ;;  %v214_v12 = vld [vmem:[%s1737_s26 + $0xf0] sm:$0xf] }
  0x19   : > { %v216_v13 = vld [vmem:[%s1737_s26 + $0x104] sm:$0xf]  ;;  %213 = vst [vmem:[%s1741_s27 + $0x2c] sm:$0xf] %v212_v11  ;;  %215 = vst [vmem:[%s1741_s27 + $0x30] sm:$0xf] %v214_v12 }
  0x1a   : > { %217 = vst [vmem:[%s1741_s27 + $0x34] sm:$0xf] %v216_v13  ;;  %v218_v14 = vld [vmem:[%s1737_s26 + $0x118] sm:$0xf]  ;;  %v220_v15 = vld [vmem:[%s1737_s26 + $0x12c] sm:$0xf] }
  0x1b   : > { %v222_v16 = vld [vmem:[%s1737_s26 + $0x140] sm:$0xf]  ;;  %219 = vst [vmem:[%s1741_s27 + $0x38] sm:$0xf] %v218_v14  ;;  %221 = vst [vmem:[%s1741_s27 + $0x3c] sm:$0xf] %v220_v15 }
  0x1c   : > { %223 = vst [vmem:[%s1741_s27 + $0x40] sm:$0xf] %v222_v16  ;;  %v224_v17 = vld [vmem:[%s1737_s26 + $0x154] sm:$0xf]  ;;  %v226_v18 = vld [vmem:[%s1737_s26 + $0x168] sm:$0xf] }
  0x1d   : > { %v228_v19 = vld [vmem:[%s1737_s26 + $0x17c] sm:$0xf]  ;;  %225 = vst [vmem:[%s1741_s27 + $0x44] sm:$0xf] %v224_v17  ;;  %227 = vst [vmem:[%s1741_s27 + $0x48] sm:$0xf] %v226_v18 }
  0x1e   : > { %229 = vst [vmem:[%s1741_s27 + $0x4c] sm:$0xf] %v228_v19  ;;  %v230_v20 = vld [vmem:[%s1737_s26 + $0x190] sm:$0xf]  ;;  %v232_v21 = vld [vmem:[%s1737_s26 + $0x1a4] sm:$0xf] }
  0x1f   : > { %v234_v22 = vld [vmem:[%s1737_s26 + $0x1b8] sm:$0xf]  ;;  %231 = vst [vmem:[%s1741_s27 + $0x50] sm:$0xf] %v230_v20  ;;  %233 = vst [vmem:[%s1741_s27 + $0x54] sm:$0xf] %v232_v21 }
  0x20   : > { %235 = vst [vmem:[%s1741_s27 + $0x58] sm:$0xf] %v234_v22  ;;  %v236_v23 = vld [vmem:[%s1737_s26 + $0x1cc] sm:$0xf]  ;;  %v238_v24 = vld [vmem:[%s1737_s26 + $0x1e0] sm:$0xf] }
  0x21   : > { %v240_v25 = vld [vmem:[%s1737_s26 + $0x1f4] sm:$0xf]  ;;  %237 = vst [vmem:[%s1741_s27 + $0x5c] sm:$0xf] %v236_v23  ;;  %239 = vst [vmem:[%s1741_s27 + $0x60] sm:$0xf] %v238_v24 }
  0x22   : > { %241 = vst [vmem:[%s1741_s27 + $0x64] sm:$0xf] %v240_v25  ;;  %v242_v26 = vld [vmem:[%s1737_s26 + $0x208] sm:$0xf]  ;;  %v244_v27 = vld [vmem:[%s1737_s26 + $0x21c] sm:$0xf] }
  0x23   : > { %v246_v28 = vld [vmem:[%s1737_s26 + $0x230] sm:$0xf]  ;;  %243 = vst [vmem:[%s1741_s27 + $0x68] sm:$0xf] %v242_v26  ;;  %245 = vst [vmem:[%s1741_s27 + $0x6c] sm:$0xf] %v244_v27 }
  0x24   : > { %247 = vst [vmem:[%s1741_s27 + $0x70] sm:$0xf] %v246_v28  ;;  %v248_v29 = vld [vmem:[%s1737_s26 + $0x244] sm:$0xf]  ;;  %v250_v30 = vld [vmem:[%s1737_s26 + $0x258] sm:$0xf] }
  0x25   : > { %v252_v31 = vld [vmem:[%s1737_s26 + $0x26c] sm:$0xf]  ;;  %249 = vst [vmem:[%s1741_s27 + $0x74] sm:$0xf] %v248_v29  ;;  %251 = vst [vmem:[%s1741_s27 + $0x78] sm:$0xf] %v250_v30 }
  0x26   : > { %253 = vst [vmem:[%s1741_s27 + $0x7c] sm:$0xf] %v252_v31 }
  0x27 PF: > { %p1286_p6 = scmp.ge.s32.totalorder %s1671_s16, 1  ;;  %p351_p7 = scmp.lt.s32.totalorder %s1671_s16, 6 }
  0x29   : > { %p352_p8 = pnand %p1286_p6, %p351_p7 }
  0x2a   : > { %s358_s28 = sand.u32 (!%p352_p8), 1, %s1655_s12   ;;  %s1288_s29 = sshll.u32 (!%p352_p8), %s1663_s14, 4 }
  0x2b   : > { %355 = sbr.rel (%p352_p8) target bundleno = 359 (0x167), region = 69  ;;  %s1287_s30 = sshll.u32 (!%p352_p8), %s358_s28, 7 }
  0x2c   : > { %p397_p9 = scmp.lt.s32.totalorder (!%p352_p8), %s1288_s29, 79  ;;  %s1814_s8 = scalar_lea.vmem (!%p352_p8), [#allocation3], %s1287_s30 }
  0x2d   : > { %p1290_p10 = scmp.ne.s32.totalorder (!%p352_p8), %s1663_s14, 0 }
  0x32   : > { %s1953_s29 = smov (!%p397_p9, %s1288_s29), 79  ;;  %421 = sbr.rel (%p1290_p10) target bundleno = 68 (0x44), region = 77 }
  0x33   : > { %s1289_s4 = sshll.u32 %s1953_s29, 2  ;;  %v1673_v32 = vmov (!%p1290_p10), 0.0  }
  0x34   : > { %s1812_s7 = scalar_lea.vmem %s1943_s1, %s1289_s4  ;;  %422 = vst [vmem:[#allocation2] sm:$0xff] (!%p1290_p10), %v1673_v32  ;;  %423 = vst [vmem:[#allocation2 + $0x8] sm:$0xff] (!%p1290_p10), %v1673_v32 }
  0x35   : > { %424 = vst [vmem:[#allocation2 + $0x10] sm:$0xff] (!%p1290_p10), %v1673_v32  ;;  %425 = vst [vmem:[#allocation2 + $0x18] sm:$0xff] (!%p1290_p10), %v1673_v32 }
  0x36   : > { %426 = vst [vmem:[#allocation2 + $0x20] sm:$0xff] (!%p1290_p10), %v1673_v32  ;;  %427 = vst [vmem:[#allocation2 + $0x28] sm:$0xff] (!%p1290_p10), %v1673_v32 }
  0x37   : > { %428 = vst [vmem:[#allocation2 + $0x30] sm:$0xff] (!%p1290_p10), %v1673_v32  ;;  %429 = vst [vmem:[#allocation2 + $0x38] sm:$0xff] (!%p1290_p10), %v1673_v32 }
  0x38   : > { %430 = vst [vmem:[#allocation2 + $0x40] sm:$0xff] (!%p1290_p10), %v1673_v32  ;;  %431 = vst [vmem:[#allocation2 + $0x48] sm:$0xff] (!%p1290_p10), %v1673_v32 }
  0x39   : > { %432 = vst [vmem:[#allocation2 + $0x50] sm:$0xff] %v1673_v32  ;;  %433 = vst [vmem:[#allocation2 + $0x58] sm:$0xff] %v1673_v32 }
  0x3a   : > { %434 = vst [vmem:[#allocation2 + $0x60] sm:$0xff] %v1673_v32  ;;  %435 = vst [vmem:[#allocation2 + $0x68] sm:$0xff] %v1673_v32 }
  0x3b   : > { %436 = vst [vmem:[#allocation2 + $0x70] sm:$0xff] %v1673_v32  ;;  %437 = vst [vmem:[#allocation2 + $0x78] sm:$0xff] %v1673_v32 }
  0x3c   : > { %438 = vst [vmem:[#allocation2 + $0x80] sm:$0xff] %v1673_v32  ;;  %439 = vst [vmem:[#allocation2 + $0x88] sm:$0xff] %v1673_v32 }
  0x3d   : > { %440 = vst [vmem:[#allocation2 + $0x90] sm:$0xff] %v1673_v32  ;;  %441 = vst [vmem:[#allocation2 + $0x98] sm:$0xff] %v1673_v32 }
  0x3e   : > { %442 = vst [vmem:[#allocation2 + $0xa0] sm:$0xff] %v1673_v32  ;;  %443 = vst [vmem:[#allocation2 + $0xa8] sm:$0xff] %v1673_v32 }
  0x3f   : > { %444 = vst [vmem:[#allocation2 + $0xb0] sm:$0xff] %v1673_v32  ;;  %445 = vst [vmem:[#allocation2 + $0xb8] sm:$0xff] %v1673_v32 }
  0x40   : > { %446 = vst [vmem:[#allocation2 + $0xc0] sm:$0xff] %v1673_v32  ;;  %447 = vst [vmem:[#allocation2 + $0xc8] sm:$0xff] %v1673_v32 }
  0x41   : > { %448 = vst [vmem:[#allocation2 + $0xd0] sm:$0xff] %v1673_v32  ;;  %449 = vst [vmem:[#allocation2 + $0xd8] sm:$0xff] %v1673_v32 }
  0x42   : > { %450 = vst [vmem:[#allocation2 + $0xe0] sm:$0xff] %v1673_v32  ;;  %451 = vst [vmem:[#allocation2 + $0xe8] sm:$0xff] %v1673_v32 }
  0x43   : > { %452 = vst [vmem:[#allocation2 + $0xf0] sm:$0xff] %v1673_v32  ;;  %453 = vst [vmem:[#allocation2 + $0xf8] sm:$0xff] %v1673_v32 }
  0x44 PF: > { %v1609_v33 = vld [vmem:[%s1812_s7] sm:$0xff]   ;;  %v1610_v34 = vld [vmem:[%s1812_s7 + $0x8] sm:$0xff]   ;;  %v1611_v35 = vld [vmem:[%s1812_s7 + $0x10] sm:$0xff]   ;;  %p1315_p11 = scmp.ne.s32.totalorder %s1663_s14, 4 }
  0x45   : > { %1504 = vmatprep.subr.bf16.mxu0 %v1609_v33  ;;  %1552 = vmatprep.subr.bf16.mxu1 %v1609_v33  ;;  %v1612_v36 = vld [vmem:[%s1812_s7 + $0x18] sm:$0xff]   ;;  %v1617_v37 = vld [vmem:[%s1814_s8] sm:$0xff]   ;;  %v1614_v40 = vld [vmem:[%s1812_s7 + $0x28] sm:$0xff]  }
  0x46   : > { %1505 = vmatpush3.bf16.msra.mxu0 %v1609_v33  ;;  %1560 = vmatpush3.bf16.msra.mxu1 %v1609_v33  ;;  %v1618_v38 = vld [vmem:[%s1814_s8 + $0x40] sm:$0xff]   ;;  %v1615_v41 = vld [vmem:[%s1812_s7 + $0x30] sm:$0xff]   ;;  %v1616_v42 = vld [vmem:[%s1812_s7 + $0x38] sm:$0xff]  }
  0x47   : > { %1506 = vmatprep.subr.bf16.mxu0 %v1610_v34  ;;  %1553 = vmatprep.subr.bf16.mxu1 %v1610_v34  ;;  %v1613_v39 = vld [vmem:[%s1812_s7 + $0x20] sm:$0xff]   ;;  %v1619_v43 = vld [vmem:[%s1814_s8 + $0x8] sm:$0xff]   ;;  %v1621_v45 = vld [vmem:[%s1814_s8 + $0x10] sm:$0xff]  }
  0x48   : > { %1520 = vmatprep.mubr.bf16.mxu0 %v1617_v37  ;;  %1536 = vmatprep.mubr.bf16.mxu1 %v1618_v38  ;;  %v1620_v44 = vld [vmem:[%s1814_s8 + $0x48] sm:$0xff]   ;;  %v1622_v46 = vld [vmem:[%s1814_s8 + $0x50] sm:$0xff]   ;;  %v1623_v47 = vld [vmem:[%s1814_s8 + $0x18] sm:$0xff]  }
  0x49   : > { %v1624_v48 = vld [vmem:[%s1814_s8 + $0x58] sm:$0xff]   ;;  %v1625_v49 = vld [vmem:[%s1814_s8 + $0x20] sm:$0xff]   ;;  %v1627_v51 = vld [vmem:[%s1814_s8 + $0x28] sm:$0xff]  }
  0x4a   : > { %1507 = vmatpush3.bf16.msra.mxu0 %v1610_v34  ;;  %1561 = vmatpush3.bf16.msra.mxu1 %v1610_v34  ;;  %v1626_v50 = vld [vmem:[%s1814_s8 + $0x60] sm:$0xff]   ;;  %v1628_v52 = vld [vmem:[%s1814_s8 + $0x68] sm:$0xff]   ;;  %v1629_v53 = vld [vmem:[%s1814_s8 + $0x30] sm:$0xff]  }
  0x4b   : > { %1508 = vmatprep.subr.bf16.mxu0 %v1611_v35  ;;  %1554 = vmatprep.subr.bf16.mxu1 %v1611_v35  ;;  %v1630_v54 = vld [vmem:[%s1814_s8 + $0x70] sm:$0xff]   ;;  %v1631_v55 = vld [vmem:[%s1814_s8 + $0x38] sm:$0xff]   ;;  %v454_v59 = vld [vmem:[#allocation2] sm:$0xff] }
  0x4c   : > { %v1632_v56 = vld [vmem:[%s1814_s8 + $0x78] sm:$0xff]   ;;  %v456_v57 = vld [vmem:[#allocation2 + $0x10] sm:$0xff]  ;;  %v470_v60 = vld [vmem:[#allocation2 + $0x80] sm:$0xff] }
  0x4d   : > { %v472_v58 = vld [vmem:[#allocation2 + $0x90] sm:$0xff]  ;;  %v457_v63 = vld [vmem:[#allocation2 + $0x18] sm:$0xff]  ;;  %v455_v5 = vld [vmem:[#allocation2 + $0x8] sm:$0xff] }
  0x4e   : > { %1509 = vmatpush3.bf16.msra.mxu0 %v1611_v35  ;;  %1562 = vmatpush3.bf16.msra.mxu1 %v1611_v35  ;;  %v473_v0 = vld [vmem:[#allocation2 + $0x98] sm:$0xff]  ;;  %v471_v6 = vld [vmem:[#allocation2 + $0x88] sm:$0xff]  ;;  %v460_v17 = vld [vmem:[#allocation2 + $0x30] sm:$0xff] }
  0x4f   : > { %1510 = vmatprep.subr.bf16.mxu0 %v1612_v36  ;;  %1555 = vmatprep.subr.bf16.mxu1 %v1612_v36  ;;  %v476_v18 = vld [vmem:[#allocation2 + $0xb0] sm:$0xff]  ;;  %v458_v19 = vld [vmem:[#allocation2 + $0x20] sm:$0xff]  ;;  %v461_v23 = vld [vmem:[#allocation2 + $0x38] sm:$0xff] }
  0x50   : > { %v474_v20 = vld [vmem:[#allocation2 + $0xa0] sm:$0xff]  ;;  %v477_v24 = vld [vmem:[#allocation2 + $0xb8] sm:$0xff]  ;;  %v459_v29 = vld [vmem:[#allocation2 + $0x28] sm:$0xff] }
  0x51   : > { %v475_v30 = vld [vmem:[#allocation2 + $0xa8] sm:$0xff] }
  0x52   : > { %1511 = vmatpush3.bf16.msra.mxu0 %v1612_v36  ;;  %1563 = vmatpush3.bf16.msra.mxu1 %v1612_v36 }
  0x53   : > { %1512 = vmatprep.subr.bf16.mxu0 %v1613_v39  ;;  %1556 = vmatprep.subr.bf16.mxu1 %v1613_v39 }
  0x56   : > { %1513 = vmatpush3.bf16.msra.mxu0 %v1613_v39  ;;  %1564 = vmatpush3.bf16.msra.mxu1 %v1613_v39 }
  0x57   : > { %1514 = vmatprep.subr.bf16.mxu0 %v1614_v40  ;;  %1557 = vmatprep.subr.bf16.mxu1 %v1614_v40 }
  0x5a   : > { %1515 = vmatpush3.bf16.msra.mxu0 %v1614_v40  ;;  %1565 = vmatpush3.bf16.msra.mxu1 %v1614_v40 }
  0x5b   : > { %1516 = vmatprep.subr.bf16.mxu0 %v1615_v41  ;;  %1558 = vmatprep.subr.bf16.mxu1 %v1615_v41 }
  0x5e   : > { %1517 = vmatpush3.bf16.msra.mxu0 %v1615_v41  ;;  %1566 = vmatpush3.bf16.msra.mxu1 %v1615_v41  ;;  %v464_v41 = vld [vmem:[#allocation2 + $0x50] sm:$0xff] }
  0x5f   : > { %1518 = vmatprep.subr.bf16.mxu0 %v1616_v42  ;;  %1559 = vmatprep.subr.bf16.mxu1 %v1616_v42 }
  0x62   : > { %1519 = vmatpush3.bf16.msra.mxu0 %v1616_v42  ;;  %1567 = vmatpush3.bf16.msra.mxu1 %v1616_v42  ;;  %v480_v42 = vld [vmem:[#allocation2 + $0xd0] sm:$0xff] }
  0x65   : > { %1521 = vmatmul.mubr.bf16.vlgmr.msra.gmra.mrb[0].mxu0 %v1619_v43  ;;  %1537 = vmatmul.mubr.bf16.vlgmr.msra.gmra.mrb[0].mxu1 %v1620_v44  ;;  %v462_v43 = vld [vmem:[#allocation2 + $0x40] sm:$0xff] }
  0x66   : > { %1524 = vmatprep.mubr.bf16.mxu0 %v1621_v45  ;;  %1540 = vmatprep.mubr.bf16.mxu1 %v1622_v46  ;;  %v478_v44 = vld [vmem:[#allocation2 + $0xc0] sm:$0xff] }
  0x6d   : > { %1525 = vmatmul.mubr.bf16.gmra.mrb[4].mxu0 %v1623_v47  ;;  %1541 = vmatmul.mubr.bf16.gmra.mrb[4].mxu1 %v1624_v48  ;;  %v465_v47 = vld [vmem:[#allocation2 + $0x58] sm:$0xff] }
  0x6e   : > { %1528 = vmatprep.mubr.bf16.mxu0 %v1625_v49  ;;  %1544 = vmatprep.mubr.bf16.mxu1 %v1626_v50  ;;  %v481_v48 = vld [vmem:[#allocation2 + $0xd8] sm:$0xff] }
  0x75   : > { %1529 = vmatmul.mubr.bf16.gmra.mrb[8].mxu0 %v1627_v51  ;;  %1545 = vmatmul.mubr.bf16.gmra.mrb[8].mxu1 %v1628_v52 }
  0x76   : > { %1532 = vmatprep.mubr.bf16.mxu0 %v1629_v53  ;;  %1548 = vmatprep.mubr.bf16.mxu1 %v1630_v54  ;;  %v463_v53 = vld [vmem:[#allocation2 + $0x48] sm:$0xff] }
  0x77   : > { %v479_v54 = vld [vmem:[#allocation2 + $0xc8] sm:$0xff] }
  0x7d   : > { %1533 = vmatmul.mubr.bf16.gmra.mrb[12].mxu0 %v1631_v55  ;;  %1549 = vmatmul.mubr.bf16.gmra.mrb[12].mxu1 %v1632_v56 }
 0x138   : > { %v1522_v61 = vpop.f32.mrb[0].mxu0  ;;  %v1538_v62 = vpop.f32.mrb[0].mxu1 }
 0x139   : > { %v841_v1 = vadd.f32 %v1522_v61, %v456_v57  ;;  %v857_v2 = vadd.f32 %v1538_v62, %v472_v58  ;;  %v712_v3 = vpop.f32.mrb[1].mxu0  ;;  %v776_v4 = vpop.f32.mrb[1].mxu1 }
 0x13a   : > { %v839_v7 = vadd.f32 %v712_v3, %v454_v59  ;;  %v855_v8 = vadd.f32 %v776_v4, %v470_v60  ;;  %v1523_v9 = vpop.f32.mrb[2].mxu0  ;;  %v1539_v10 = vpop.f32.mrb[2].mxu1  ;;  %v466_v3 = vld [vmem:[#allocation2 + $0x60] sm:$0xff] }
 0x13b   : > { %873 = vst [vmem:[#allocation2 + $0x10] sm:$0xff] %v841_v1  ;;  %889 = vst [vmem:[#allocation2 + $0x90] sm:$0xff] %v857_v2  ;;  %v842_v11 = vadd.f32 %v1523_v9, %v457_v63  ;;  %v858_v12 = vadd.f32 %v1539_v10, %v473_v0  ;;  %v715_v13 = vpop.f32.mrb[3].mxu0  ;;  %v779_v14 = vpop.f32.mrb[3].mxu1  ;;  %v468_v1 = vld [vmem:[#allocation2 + $0x70] sm:$0xff]  ;;  %v482_v4 = vld [vmem:[#allocation2 + $0xe0] sm:$0xff] }
 0x13c   : > { %871 = vst [vmem:[#allocation2] sm:$0xff] %v839_v7  ;;  %887 = vst [vmem:[#allocation2 + $0x80] sm:$0xff] %v855_v8  ;;  %v840_v15 = vadd.f32 %v715_v13, %v455_v5  ;;  %v856_v16 = vadd.f32 %v779_v14, %v471_v6  ;;  %v484_v2 = vld [vmem:[#allocation2 + $0xf0] sm:$0xff]  ;;  %v469_v7 = vld [vmem:[#allocation2 + $0x78] sm:$0xff] }
 0x13d   : > { %874 = vst [vmem:[#allocation2 + $0x18] sm:$0xff] %v842_v11  ;;  %890 = vst [vmem:[#allocation2 + $0x98] sm:$0xff] %v858_v12  ;;  %v485_v8 = vld [vmem:[#allocation2 + $0xf8] sm:$0xff]  ;;  %v467_v13 = vld [vmem:[#allocation2 + $0x68] sm:$0xff] }
 0x13e   : > { %872 = vst [vmem:[#allocation2 + $0x8] sm:$0xff] %v840_v15  ;;  %888 = vst [vmem:[#allocation2 + $0x88] sm:$0xff] %v856_v16  ;;  %v483_v14 = vld [vmem:[#allocation2 + $0xe8] sm:$0xff] }
 0x140   : > { %v1526_v21 = vpop.f32.mrb[4].mxu0  ;;  %v1542_v22 = vpop.f32.mrb[4].mxu1 }
 0x141   : > { %v845_v25 = vadd.f32 %v1526_v21, %v460_v17  ;;  %v861_v26 = vadd.f32 %v1542_v22, %v476_v18  ;;  %v728_v27 = vpop.f32.mrb[5].mxu0  ;;  %v792_v28 = vpop.f32.mrb[5].mxu1 }
 0x142   : > { %v843_v31 = vadd.f32 %v728_v27, %v458_v19  ;;  %v859_v32 = vadd.f32 %v792_v28, %v474_v20  ;;  %v1527_v33 = vpop.f32.mrb[6].mxu0  ;;  %v1543_v34 = vpop.f32.mrb[6].mxu1  ;;  %v1845_v27 = vld [vmem:[%s1944_s2] ss:$0 sm:$0xff] (!%p1315_p11) }
 0x143   : > { %877 = vst [vmem:[#allocation2 + $0x30] sm:$0xff] %v845_v25  ;;  %893 = vst [vmem:[#allocation2 + $0xb0] sm:$0xff] %v861_v26  ;;  %v846_v35 = vadd.f32 %v1527_v33, %v461_v23  ;;  %v862_v36 = vadd.f32 %v1543_v34, %v477_v24  ;;  %v731_v37 = vpop.f32.mrb[7].mxu0  ;;  %v795_v38 = vpop.f32.mrb[7].mxu1  ;;  %v907_v25 = vld [vmem:[#allocation2] sm:$0xff] (!%p1315_p11) }
 0x144   : > { %875 = vst [vmem:[#allocation2 + $0x20] sm:$0xff] %v843_v31  ;;  %891 = vst [vmem:[#allocation2 + $0xa0] sm:$0xff] %v859_v32  ;;  %v844_v39 = vadd.f32 %v731_v37, %v459_v29  ;;  %v860_v40 = vadd.f32 %v795_v38, %v475_v30  ;;  %v946_v28 = vadd.f32 (!%p1315_p11), %v1845_v27, %v907_v25  ;;  %v909_v30 = vld [vmem:[#allocation2 + $0x10] sm:$0xff] (!%p1315_p11)  ;;  %v910_v31 = vld [vmem:[#allocation2 + $0x18] sm:$0xff] (!%p1315_p11) }
 0x145   : > { %878 = vst [vmem:[#allocation2 + $0x38] sm:$0xff] %v846_v35  ;;  %894 = vst [vmem:[#allocation2 + $0xb8] sm:$0xff] %v862_v36  ;;  %v908_v26 = vld [vmem:[#allocation2 + $0x8] sm:$0xff] (!%p1315_p11)  ;;  %v948_v33 = vadd.f32 (!%p1315_p11), %v1845_v27, %v909_v30  ;;  %v949_v34 = vadd.f32 (!%p1315_p11), %v1845_v27, %v910_v31 }
 0x146   : > { %876 = vst [vmem:[#allocation2 + $0x28] sm:$0xff] %v844_v39  ;;  %892 = vst [vmem:[#allocation2 + $0xa8] sm:$0xff] %v860_v40  ;;  %v947_v29 = vadd.f32 (!%p1315_p11), %v1845_v27, %v908_v26  ;;  %v978_v39 = vmax.f32 (!%p1315_p11), %v946_v28, 0.0 }
 0x148   : > { %v1530_v45 = vpop.f32.mrb[8].mxu0  ;;  %v1546_v46 = vpop.f32.mrb[8].mxu1  ;;  %v979_v40 = vmax.f32 (!%p1315_p11), %v947_v29, 0.0 }
 0x149   : > { %v849_v49 = vadd.f32 %v1530_v45, %v464_v41  ;;  %v865_v50 = vadd.f32 %v1546_v46, %v480_v42  ;;  %v744_v51 = vpop.f32.mrb[9].mxu0  ;;  %v808_v52 = vpop.f32.mrb[9].mxu1  ;;  %v980_v46 = vmax.f32 (!%p1315_p11), %v948_v33, 0.0 }
 0x14a   : > { %v847_v55 = vadd.f32 %v744_v51, %v462_v43  ;;  %v863_v56 = vadd.f32 %v808_v52, %v478_v44  ;;  %v1531_v57 = vpop.f32.mrb[10].mxu0  ;;  %v1547_v58 = vpop.f32.mrb[10].mxu1  ;;  %v913_v37 = vld [vmem:[#allocation2 + $0x30] sm:$0xff] (!%p1315_p11)  ;;  %v1388_v52 = vpack.c.bf16 (!%p1315_p11), %v979_v40, %v978_v39 }
 0x14b   : > { %881 = vst [vmem:[#allocation2 + $0x50] sm:$0xff] %v849_v49  ;;  %897 = vst [vmem:[#allocation2 + $0xd0] sm:$0xff] %v865_v50  ;;  %v850_v59 = vadd.f32 %v1531_v57, %v465_v47  ;;  %v866_v60 = vadd.f32 %v1547_v58, %v481_v48  ;;  %v747_v61 = vpop.f32.mrb[11].mxu0  ;;  %v811_v62 = vpop.f32.mrb[11].mxu1  ;;  %v911_v32 = vld [vmem:[#allocation2 + $0x20] sm:$0xff] (!%p1315_p11)  ;;  %v952_v42 = vadd.f32 (!%p1315_p11), %v1845_v27, %v913_v37  ;;  %v981_v47 = vmax.f32 (!%p1315_p11), %v949_v34, 0.0 }
 0x14c   : > { %879 = vst [vmem:[#allocation2 + $0x40] sm:$0xff] %v847_v55  ;;  %895 = vst [vmem:[#allocation2 + $0xc0] sm:$0xff] %v863_v56  ;;  %v848_v63 = vadd.f32 %v747_v61, %v463_v53  ;;  %v864_v0 = vadd.f32 %v811_v62, %v479_v54  ;;  %v950_v36 = vadd.f32 (!%p1315_p11), %v1845_v27, %v911_v32  ;;  %v914_v38 = vld [vmem:[#allocation2 + $0x38] sm:$0xff] (!%p1315_p11)  ;;  %v929_v25 = vld [vmem:[#allocation2 + $0xb0] sm:$0xff] (!%p1315_p11) }
 0x14d   : > { %882 = vst [vmem:[#allocation2 + $0x58] sm:$0xff] %v850_v59  ;;  %898 = vst [vmem:[#allocation2 + $0xd8] sm:$0xff] %v866_v60  ;;  %v912_v35 = vld [vmem:[#allocation2 + $0x28] sm:$0xff] (!%p1315_p11)  ;;  %v953_v49 = vadd.f32 (!%p1315_p11), %v1845_v27, %v914_v38  ;;  %v984_v54 = vmax.f32 (!%p1315_p11), %v952_v42, 0.0  ;;  %v1393_v57 = vpack.c.bf16 (!%p1315_p11), %v981_v47, %v980_v46  ;;  %v930_v26 = vld [vmem:[#allocation2 + $0xb8] sm:$0xff] (!%p1315_p11) }
 0x14e   : > { %880 = vst [vmem:[#allocation2 + $0x48] sm:$0xff] %v848_v63  ;;  %896 = vst [vmem:[#allocation2 + $0xc8] sm:$0xff] %v864_v0  ;;  %v951_v41 = vadd.f32 (!%p1315_p11), %v1845_v27, %v912_v35  ;;  %v982_v48 = vmax.f32 (!%p1315_p11), %v950_v36, 0.0  ;;  %v969_v42 = vadd.f32 (!%p1315_p11), %v1845_v27, %v930_v26 }
 0x14f   : > { %v985_v58 = vmax.f32 (!%p1315_p11), %v953_v49, 0.0  ;;  %1389 = vst [vmem:[%s1945_s3] sm:$0xff] (!%p1315_p11), %v1388_v52   ;;  %1465 = vst [vmem:[%s1945_s3 + $0x8] sm:$0xff] (!%p1315_p11), %v1393_v57  }
 0x150   : > { %v1534_v5 = vpop.f32.mrb[12].mxu0  ;;  %v1550_v6 = vpop.f32.mrb[12].mxu1  ;;  %906 = sbr.rel (%p1315_p11) target bundleno = 359 (0x167), region = 81  ;;  %v983_v53 = vmax.f32 (!%p1315_p11), %v951_v41, 0.0  ;;  %v968_v41 = vadd.f32 (!%p1315_p11), %v1845_v27, %v929_v25  ;;  %v1001_v52 = vmax.f32 (!%p1315_p11), %v969_v42, 0.0 }
 0x151   : > { %v853_v9 = vadd.f32 %v1534_v5, %v468_v1  ;;  %v869_v10 = vadd.f32 %v1550_v6, %v484_v2  ;;  %v760_v11 = vpop.f32.mrb[13].mxu0  ;;  %v824_v12 = vpop.f32.mrb[13].mxu1  ;;  %v1403_v5 = vpack.c.bf16 (!%p1315_p11), %v985_v58, %v984_v54 }
 0x152   : > { %v851_v15 = vadd.f32 %v760_v11, %v466_v3  ;;  %v867_v16 = vadd.f32 %v824_v12, %v482_v4  ;;  %v1535_v17 = vpop.f32.mrb[14].mxu0  ;;  %v1551_v18 = vpop.f32.mrb[14].mxu1  ;;  %v917_v45 = vld [vmem:[#allocation2 + $0x50] sm:$0xff] (!%p1315_p11)  ;;  %v1398_v63 = vpack.c.bf16 (!%p1315_p11), %v983_v53, %v982_v48  ;;  %v923_v3 = vld [vmem:[#allocation2 + $0x80] sm:$0xff] (!%p1315_p11)  ;;  %v924_v4 = vld [vmem:[#allocation2 + $0x88] sm:$0xff] (!%p1315_p11) }
 0x153   : > { %885 = vst [vmem:[#allocation2 + $0x70] sm:$0xff] %v853_v9  ;;  %901 = vst [vmem:[#allocation2 + $0xf0] sm:$0xff] %v869_v10  ;;  %v854_v19 = vadd.f32 %v1535_v17, %v469_v7  ;;  %v870_v20 = vadd.f32 %v1551_v18, %v485_v8  ;;  %v763_v21 = vpop.f32.mrb[15].mxu0  ;;  %v827_v22 = vpop.f32.mrb[15].mxu1  ;;  %v915_v43 = vld [vmem:[#allocation2 + $0x40] sm:$0xff] (!%p1315_p11)  ;;  %v956_v60 = vadd.f32 (!%p1315_p11), %v1845_v27, %v917_v45  ;;  %v925_v9 = vld [vmem:[#allocation2 + $0x90] sm:$0xff] (!%p1315_p11) }
 0x154   : > { %883 = vst [vmem:[#allocation2 + $0x60] sm:$0xff] %v851_v15  ;;  %899 = vst [vmem:[#allocation2 + $0xe0] sm:$0xff] %v867_v16  ;;  %v852_v23 = vadd.f32 %v763_v21, %v467_v13  ;;  %v868_v24 = vadd.f32 %v827_v22, %v483_v14  ;;  %v918_v50 = vld [vmem:[#allocation2 + $0x58] sm:$0xff] (!%p1315_p11)  ;;  %v954_v55 = vadd.f32 (!%p1315_p11), %v1845_v27, %v915_v43  ;;  %v931_v32 = vld [vmem:[#allocation2 + $0xc0] sm:$0xff] (!%p1315_p11) }
 0x155   : > { %886 = vst [vmem:[#allocation2 + $0x78] sm:$0xff] %v854_v19  ;;  %902 = vst [vmem:[#allocation2 + $0xf8] sm:$0xff] %v870_v20  ;;  %v916_v44 = vld [vmem:[#allocation2 + $0x48] sm:$0xff] (!%p1315_p11)  ;;  %v957_v1 = vadd.f32 (!%p1315_p11), %v1845_v27, %v918_v50  ;;  %v988_v7 = vmax.f32 (!%p1315_p11), %v956_v60, 0.0  ;;  %v926_v14 = vld [vmem:[#allocation2 + $0x98] sm:$0xff] (!%p1315_p11)  ;;  %v962_v17 = vadd.f32 (!%p1315_p11), %v1845_v27, %v923_v3  ;;  %v963_v18 = vadd.f32 (!%p1315_p11), %v1845_v27, %v924_v4 }
 0x156   : > { %884 = vst [vmem:[#allocation2 + $0x68] sm:$0xff] %v852_v23  ;;  %900 = vst [vmem:[#allocation2 + $0xe8] sm:$0xff] %v868_v24  ;;  %v955_v59 = vadd.f32 (!%p1315_p11), %v1845_v27, %v916_v44  ;;  %v986_v0 = vmax.f32 (!%p1315_p11), %v954_v55, 0.0  ;;  %v927_v19 = vld [vmem:[#allocation2 + $0xa0] sm:$0xff] (!%p1315_p11)  ;;  %v928_v20 = vld [vmem:[#allocation2 + $0xa8] sm:$0xff] (!%p1315_p11)  ;;  %v964_v24 = vadd.f32 (!%p1315_p11), %v1845_v27, %v925_v9  ;;  %v965_v31 = vadd.f32 (!%p1315_p11), %v1845_v27, %v926_v14 }
 0x157   : > { %1466 = vst [vmem:[%s1945_s3 + $0x10] sm:$0xff] %v1398_v63   ;;  %v989_v10 = vmax.f32 %v957_v1, 0.0  ;;  %1467 = vst [vmem:[%s1945_s3 + $0x18] sm:$0xff] %v1403_v5   ;;  %v994_v29 = vmax.f32 %v962_v17, 0.0  ;;  %v995_v30 = vmax.f32 %v963_v18, 0.0  ;;  %v932_v33 = vld [vmem:[#allocation2 + $0xc8] sm:$0xff]  ;;  %v966_v36 = vadd.f32 %v1845_v27, %v927_v19 }
 0x158   : > { %v987_v6 = vmax.f32 %v955_v59, 0.0  ;;  %v996_v35 = vmax.f32 %v964_v24, 0.0  ;;  %v967_v37 = vadd.f32 %v1845_v27, %v928_v20  ;;  %v933_v38 = vld [vmem:[#allocation2 + $0xd0] sm:$0xff]  ;;  %v997_v40 = vmax.f32 %v965_v31, 0.0  ;;  %v934_v43 = vld [vmem:[#allocation2 + $0xd8] sm:$0xff] }
 0x159   : > { %v1413_v21 = vpack.c.bf16 %v989_v10, %v988_v7  ;;  %v1428_v39 = vpack.c.bf16 %v995_v30, %v994_v29  ;;  %v998_v44 = vmax.f32 %v966_v36, 0.0  ;;  %v970_v46 = vadd.f32 %v1845_v27, %v931_v32 }
 0x15a   : > { %v921_v61 = vld [vmem:[#allocation2 + $0x70] sm:$0xff]  ;;  %v1408_v15 = vpack.c.bf16 %v987_v6, %v986_v0  ;;  %v999_v45 = vmax.f32 %v967_v37, 0.0  ;;  %v971_v47 = vadd.f32 %v1845_v27, %v932_v33  ;;  %v1433_v50 = vpack.c.bf16 %v997_v40, %v996_v35 }
 0x15b   : > { %v919_v51 = vld [vmem:[#allocation2 + $0x60] sm:$0xff]  ;;  %v960_v12 = vadd.f32 %v1845_v27, %v921_v61  ;;  %1469 = vst [vmem:[%s1945_s3 + $0x28] sm:$0xff] %v1413_v21   ;;  %1472 = vst [vmem:[%s1945_s3 + $0x40] sm:$0xff] %v1428_v39   ;;  %v972_v53 = vadd.f32 %v1845_v27, %v933_v38  ;;  %v937_v54 = vld [vmem:[#allocation2 + $0xf0] sm:$0xff]  ;;  %v1002_v57 = vmax.f32 %v970_v46, 0.0  ;;  %v973_v59 = vadd.f32 %v1845_v27, %v934_v43 }
 0x15c   : > { %v922_v62 = vld [vmem:[#allocation2 + $0x78] sm:$0xff]  ;;  %v958_v2 = vadd.f32 %v1845_v27, %v919_v51  ;;  %1468 = vst [vmem:[%s1945_s3 + $0x20] sm:$0xff] %v1408_v15   ;;  %v935_v48 = vld [vmem:[#allocation2 + $0xe0] sm:$0xff]  ;;  %v1000_v51 = vmax.f32 %v968_v41, 0.0  ;;  %v1003_v58 = vmax.f32 %v971_v47, 0.0  ;;  %1473 = vst [vmem:[%s1945_s3 + $0x48] sm:$0xff] %v1433_v50  }
 0x15d   : > { %v920_v56 = vld [vmem:[#allocation2 + $0x68] sm:$0xff]  ;;  %v961_v13 = vadd.f32 %v1845_v27, %v922_v62  ;;  %v992_v22 = vmax.f32 %v960_v12, 0.0  ;;  %v938_v55 = vld [vmem:[#allocation2 + $0xf8] sm:$0xff]  ;;  %v1004_v61 = vmax.f32 %v972_v53, 0.0  ;;  %v974_v62 = vadd.f32 %v1845_v27, %v935_v48 }
 0x15e   : > { %v959_v8 = vadd.f32 %v1845_v27, %v920_v56  ;;  %v990_v11 = vmax.f32 %v958_v2, 0.0  ;;  %v936_v49 = vld [vmem:[#allocation2 + $0xe8] sm:$0xff]  ;;  %v1438_v56 = vpack.c.bf16 %v999_v45, %v998_v44  ;;  %v1443_v60 = vpack.c.bf16 %v1001_v52, %v1000_v51 }
 0x15f   : > { %v993_v23 = vmax.f32 %v961_v13, 0.0  ;;  %v975_v63 = vadd.f32 %v1845_v27, %v936_v49  ;;  %v1448_v0 = vpack.c.bf16 %v1003_v58, %v1002_v57  ;;  %v1005_v1 = vmax.f32 %v973_v59, 0.0 }
 0x160   : > { %v991_v16 = vmax.f32 %v959_v8, 0.0  ;;  %1474 = vst [vmem:[%s1945_s3 + $0x50] sm:$0xff] %v1438_v56   ;;  %v976_v2 = vadd.f32 %v1845_v27, %v937_v54  ;;  %v977_v3 = vadd.f32 %v1845_v27, %v938_v55  ;;  %1475 = vst [vmem:[%s1945_s3 + $0x58] sm:$0xff] %v1443_v60   ;;  %v1006_v4 = vmax.f32 %v974_v62, 0.0 }
 0x161   : > { %v1423_v34 = vpack.c.bf16 %v993_v23, %v992_v22  ;;  %v1007_v5 = vmax.f32 %v975_v63, 0.0  ;;  %1476 = vst [vmem:[%s1945_s3 + $0x60] sm:$0xff] %v1448_v0   ;;  %v1453_v6 = vpack.c.bf16 %v1005_v1, %v1004_v61 }
 0x162   : > { %v1418_v28 = vpack.c.bf16 %v991_v16, %v990_v11  ;;  %v1008_v7 = vmax.f32 %v976_v2, 0.0  ;;  %v1009_v8 = vmax.f32 %v977_v3, 0.0 }
 0x163   : > { %1471 = vst [vmem:[%s1945_s3 + $0x38] sm:$0xff] %v1423_v34   ;;  %v1458_v9 = vpack.c.bf16 %v1007_v5, %v1006_v4  ;;  %1477 = vst [vmem:[%s1945_s3 + $0x68] sm:$0xff] %v1453_v6  }
 0x164   : > { %1470 = vst [vmem:[%s1945_s3 + $0x30] sm:$0xff] %v1418_v28   ;;  %v1463_v10 = vpack.c.bf16 %v1009_v8, %v1008_v7 }
 0x165   : > { %1478 = vst [vmem:[%s1945_s3 + $0x70] sm:$0xff] %v1458_v9  }
 0x166   : > { %1479 = vst [vmem:[%s1945_s3 + $0x78] sm:$0xff] %v1463_v10  }
 0x167 PF: > { %s13_s16 = sadd.s32 1, %s1671_s16   ;;  %s1946_s12 = smov %s1659_s13 }
 0x168   : > { %p10_p12 = scmp.ge.s32.totalorder %s13_s16, 7   ;;  %s1947_s13 = smov %s1729_s20 }
 0x169   : > { %s1948_s14 = smov %s1667_s15  ;;  %s1949_s15 = smov %s1951_s17 }
 0x16a   :  { %12 = sbr.rel (!%p10_p12) target bundleno = 3 (0x3), region = 122 }

// kernel: coex_forward.71
= control target key start
LH: loop header
LB: loop body
LE: loop exit
PB: predicated region body
PF: predicated region fallthrough
CT: control target
= control target key end

     0   :  { %s1316_s1 = inlined_call_operand.vmem [shape: bf16[256,128], index: 1, kind: input, shape index: {}]   ;;  %s1317_s0 = inlined_call_operand.vmem [shape: bf16[256,256], index: 0, kind: input, shape index: {}]   ;;  %s1318_s2 = inlined_call_operand.vmem [shape: f32[1,128], index: 2, kind: input, shape index: {}]   ;;  %s1319_s3 = inlined_call_operand.vmem [shape: bf16[256,128], index: 3, kind: output, shape index: {}]  }
   0x1   :  { %v1003_v0 = vld [vmem:[%s1316_s1 + $0x40] sm:$0xff]   ;;  %v1005_v2 = vld [vmem:[%s1316_s1 + $0x48] sm:$0xff]   ;;  %v1007_v4 = vld [vmem:[%s1316_s1 + $0x50] sm:$0xff]  }
   0x2   :  { %v1004_v1 = vld [vmem:[%s1316_s1] sm:$0xff]   ;;  %875 = vmatprep.subr.bf16.mxu0 %v1003_v0  ;;  %987 = vmatprep.subr.bf16.mxu1 %v1003_v0  ;;  %v1006_v3 = vld [vmem:[%s1316_s1 + $0x8] sm:$0xff]   ;;  %v1008_v5 = vld [vmem:[%s1316_s1 + $0x10] sm:$0xff]  }
   0x3   :  { %876 = vmatpush3.bf16.msra.mxu0 %v1004_v1  ;;  %995 = vmatpush3.bf16.msra.mxu1 %v1004_v1  ;;  %v1009_v6 = vld [vmem:[%s1316_s1 + $0x58] sm:$0xff]   ;;  %v1011_v8 = vld [vmem:[%s1316_s1 + $0x60] sm:$0xff]   ;;  %v1013_v10 = vld [vmem:[%s1316_s1 + $0x68] sm:$0xff]  }
   0x4   :  { %877 = vmatprep.subr.bf16.mxu0 %v1005_v2  ;;  %988 = vmatprep.subr.bf16.mxu1 %v1005_v2  ;;  %v1010_v7 = vld [vmem:[%s1316_s1 + $0x18] sm:$0xff]   ;;  %v1012_v9 = vld [vmem:[%s1316_s1 + $0x20] sm:$0xff]   ;;  %v1014_v13 = vld [vmem:[%s1316_s1 + $0x28] sm:$0xff]  }
   0x5   :  { %v1021_v11 = vld [vmem:[%s1317_s0 + $0x4] ss:$8 sps:$4 sm:$0xff]   ;;  %v1015_v14 = vld [vmem:[%s1316_s1 + $0x70] sm:$0xff]   ;;  %v1017_v16 = vld [vmem:[%s1316_s1 + $0x78] sm:$0xff]  }
   0x6   :  { %v1024_v12 = vld [vmem:[%s1317_s0 + $0x84] ss:$8 sps:$4 sm:$0xff]   ;;  %374 = vmatprep.mubr.bf16.mxu0 %v1021_v11  ;;  %v1016_v15 = vld [vmem:[%s1316_s1 + $0x30] sm:$0xff]   ;;  %v1018_v17 = vld [vmem:[%s1316_s1 + $0x38] sm:$0xff]  }
   0x7   :  { %878 = vmatpush3.bf16.msra.mxu0 %v1006_v3  ;;  %996 = vmatpush3.bf16.msra.mxu1 %v1006_v3  ;;  %v1019_v18 = vld [vmem:[%s1317_s0] ss:$8 sps:$4 sm:$0xff]   ;;  %v1025_v20 = vld [vmem:[%s1317_s0 + $0x14] ss:$8 sps:$4 sm:$0xff]   ;;  %v1029_v22 = vld [vmem:[%s1317_s0 + $0x10] ss:$8 sps:$4 sm:$0xff]  }
   0x8   :  { %879 = vmatprep.subr.bf16.mxu0 %v1007_v4  ;;  %989 = vmatprep.subr.bf16.mxu1 %v1007_v4  ;;  %v1022_v19 = vld [vmem:[%s1317_s0 + $0x80] ss:$8 sps:$4 sm:$0xff]   ;;  %v1027_v21 = vld [vmem:[%s1317_s0 + $0x94] ss:$8 sps:$4 sm:$0xff]   ;;  %v1030_v23 = vld [vmem:[%s1317_s0 + $0x90] ss:$8 sps:$4 sm:$0xff]  }
   0x9   :  { %438 = vmatprep.mubr.bf16.mxu1 %v1024_v12  ;;  %v1031_v24 = vld [vmem:[%s1317_s0 + $0x24] ss:$8 sps:$4 sm:$0xff]   ;;  %v1035_v26 = vld [vmem:[%s1317_s0 + $0x20] ss:$8 sps:$4 sm:$0xff]   ;;  %v1037_v28 = vld [vmem:[%s1317_s0 + $0x34] ss:$8 sps:$4 sm:$0xff]  }
   0xa   :  { %v1033_v25 = vld [vmem:[%s1317_s0 + $0xa4] ss:$8 sps:$4 sm:$0xff]   ;;  %v1036_v27 = vld [vmem:[%s1317_s0 + $0xa0] ss:$8 sps:$4 sm:$0xff]   ;;  %v1039_v29 = vld [vmem:[%s1317_s0 + $0xb4] ss:$8 sps:$4 sm:$0xff]  }
   0xb   :  { %880 = vmatpush3.bf16.msra.mxu0 %v1008_v5  ;;  %997 = vmatpush3.bf16.msra.mxu1 %v1008_v5  ;;  %v1041_v30 = vld [vmem:[%s1317_s0 + $0x30] ss:$8 sps:$4 sm:$0xff]   ;;  %v1043_v32 = vld [vmem:[%s1317_s0 + $0x44] ss:$8 sps:$4 sm:$0xff]   ;;  %v1047_v34 = vld [vmem:[%s1317_s0 + $0x40] ss:$8 sps:$4 sm:$0xff]  }
   0xc   :  { %881 = vmatprep.subr.bf16.mxu0 %v1009_v6  ;;  %990 = vmatprep.subr.bf16.mxu1 %v1009_v6  ;;  %v1042_v31 = vld [vmem:[%s1317_s0 + $0xb0] ss:$8 sps:$4 sm:$0xff]   ;;  %v1045_v33 = vld [vmem:[%s1317_s0 + $0xc4] ss:$8 sps:$4 sm:$0xff]   ;;  %v1048_v35 = vld [vmem:[%s1317_s0 + $0xc0] ss:$8 sps:$4 sm:$0xff]  }
   0xd   :  { %v1049_v36 = vld [vmem:[%s1317_s0 + $0x54] ss:$8 sps:$4 sm:$0xff]   ;;  %v1053_v38 = vld [vmem:[%s1317_s0 + $0x50] ss:$8 sps:$4 sm:$0xff]   ;;  %v1055_v40 = vld [vmem:[%s1317_s0 + $0x64] ss:$8 sps:$4 sm:$0xff]  }
   0xe   :  { %v1051_v37 = vld [vmem:[%s1317_s0 + $0xd4] ss:$8 sps:$4 sm:$0xff]   ;;  %v1054_v39 = vld [vmem:[%s1317_s0 + $0xd0] ss:$8 sps:$4 sm:$0xff]   ;;  %v1057_v41 = vld [vmem:[%s1317_s0 + $0xe4] ss:$8 sps:$4 sm:$0xff]  }
   0xf   :  { %882 = vmatpush3.bf16.msra.mxu0 %v1010_v7  ;;  %998 = vmatpush3.bf16.msra.mxu1 %v1010_v7  ;;  %v1059_v42 = vld [vmem:[%s1317_s0 + $0x60] ss:$8 sps:$4 sm:$0xff]   ;;  %v1061_v44 = vld [vmem:[%s1317_s0 + $0x74] ss:$8 sps:$4 sm:$0xff]   ;;  %v1065_v46 = vld [vmem:[%s1317_s0 + $0x70] ss:$8 sps:$4 sm:$0xff]  }
  0x10   :  { %883 = vmatprep.subr.bf16.mxu0 %v1011_v8  ;;  %991 = vmatprep.subr.bf16.mxu1 %v1011_v8  ;;  %v1060_v43 = vld [vmem:[%s1317_s0 + $0xe0] ss:$8 sps:$4 sm:$0xff]   ;;  %v1063_v45 = vld [vmem:[%s1317_s0 + $0xf4] ss:$8 sps:$4 sm:$0xff]   ;;  %v1066_v47 = vld [vmem:[%s1317_s0 + $0xf0] ss:$8 sps:$4 sm:$0xff]  }
  0x11   :  { %v1234_v56 = vld [vmem:[%s1318_s2] ss:$0 sm:$0xff] }
  0x13   :  { %884 = vmatpush3.bf16.msra.mxu0 %v1012_v9  ;;  %999 = vmatpush3.bf16.msra.mxu1 %v1012_v9 }
  0x14   :  { %885 = vmatprep.subr.bf16.mxu0 %v1013_v10  ;;  %992 = vmatprep.subr.bf16.mxu1 %v1013_v10 }
  0x17   :  { %886 = vmatpush3.bf16.msra.mxu0 %v1014_v13  ;;  %1000 = vmatpush3.bf16.msra.mxu1 %v1014_v13 }
  0x18   :  { %887 = vmatprep.subr.bf16.mxu0 %v1015_v14  ;;  %993 = vmatprep.subr.bf16.mxu1 %v1015_v14 }
  0x1b   :  { %888 = vmatpush3.bf16.msra.mxu0 %v1016_v15  ;;  %1001 = vmatpush3.bf16.msra.mxu1 %v1016_v15 }
  0x1c   :  { %889 = vmatprep.subr.bf16.mxu0 %v1017_v16  ;;  %994 = vmatprep.subr.bf16.mxu1 %v1017_v16 }
  0x1f   :  { %890 = vmatpush3.bf16.msra.mxu0 %v1018_v17  ;;  %1002 = vmatpush3.bf16.msra.mxu1 %v1018_v17 }
  0x22   :  { %375 = vmatmul.mubr.bf16.vlgmr.msra.gmra.mrb[0].mxu0 %v1019_v18  ;;  %439 = vmatmul.mubr.bf16.vlgmr.msra.gmra.mrb[0].mxu1 %v1022_v19 }
  0x23   :  { %382 = vmatprep.mubr.bf16.mxu0 %v1025_v20  ;;  %446 = vmatprep.mubr.bf16.mxu1 %v1027_v21 }
  0x2a   :  { %383 = vmatmul.mubr.bf16.gmra.mrb[4].mxu0 %v1029_v22  ;;  %447 = vmatmul.mubr.bf16.gmra.mrb[4].mxu1 %v1030_v23 }
  0x2b   :  { %390 = vmatprep.mubr.bf16.mxu0 %v1031_v24  ;;  %454 = vmatprep.mubr.bf16.mxu1 %v1033_v25 }
  0x32   :  { %391 = vmatmul.mubr.bf16.gmra.mrb[8].mxu0 %v1035_v26  ;;  %455 = vmatmul.mubr.bf16.gmra.mrb[8].mxu1 %v1036_v27 }
  0x33   :  { %398 = vmatprep.mubr.bf16.mxu0 %v1037_v28  ;;  %462 = vmatprep.mubr.bf16.mxu1 %v1039_v29 }
  0x3a   :  { %399 = vmatmul.mubr.bf16.gmra.mrb[12].mxu0 %v1041_v30  ;;  %463 = vmatmul.mubr.bf16.gmra.mrb[12].mxu1 %v1042_v31 }
  0x3b   :  { %406 = vmatprep.mubr.bf16.mxu0 %v1043_v32  ;;  %470 = vmatprep.mubr.bf16.mxu1 %v1045_v33 }
  0x42   :  { %407 = vmatmul.mubr.bf16.gmra.mrb[16].mxu0 %v1047_v34  ;;  %471 = vmatmul.mubr.bf16.gmra.mrb[16].mxu1 %v1048_v35 }
  0x43   :  { %414 = vmatprep.mubr.bf16.mxu0 %v1049_v36  ;;  %478 = vmatprep.mubr.bf16.mxu1 %v1051_v37 }
  0x4a   :  { %415 = vmatmul.mubr.bf16.gmra.mrb[20].mxu0 %v1053_v38  ;;  %479 = vmatmul.mubr.bf16.gmra.mrb[20].mxu1 %v1054_v39 }
  0x4b   :  { %422 = vmatprep.mubr.bf16.mxu0 %v1055_v40  ;;  %486 = vmatprep.mubr.bf16.mxu1 %v1057_v41 }
  0x52   :  { %423 = vmatmul.mubr.bf16.gmra.mrb[24].mxu0 %v1059_v42  ;;  %487 = vmatmul.mubr.bf16.gmra.mrb[24].mxu1 %v1060_v43 }
  0x53   :  { %430 = vmatprep.mubr.bf16.mxu0 %v1061_v44  ;;  %494 = vmatprep.mubr.bf16.mxu1 %v1063_v45 }
  0x5a   :  { %431 = vmatmul.mubr.bf16.gmra.mrb[28].mxu0 %v1065_v46  ;;  %495 = vmatmul.mubr.bf16.gmra.mrb[28].mxu1 %v1066_v47 }
  0xf5   :  { %v891_v48 = vpop.f32.mrb[0].mxu0  ;;  %v939_v49 = vpop.f32.mrb[0].mxu1 }
  0xf6   :  { %v892_v50 = vpop.f32.mrb[1].mxu0  ;;  %v940_v51 = vpop.f32.mrb[1].mxu1 }
  0xf7   :  { %v893_v52 = vadd.f32 %v892_v50, %v891_v48  ;;  %v941_v53 = vadd.f32 %v940_v51, %v939_v49  ;;  %v894_v54 = vpop.f32.mrb[2].mxu0  ;;  %v942_v55 = vpop.f32.mrb[2].mxu1 }
  0xf8   :  { %v895_v57 = vpop.f32.mrb[3].mxu0  ;;  %v943_v58 = vpop.f32.mrb[3].mxu1 }
  0xf9   :  { %v896_v59 = vadd.f32 %v895_v57, %v894_v54  ;;  %v944_v60 = vadd.f32 %v943_v58, %v942_v55  ;;  %v377_v61 = vadd.f32 %v893_v52, %v1234_v56  ;;  %v441_v62 = vadd.f32 %v941_v53, %v1234_v56 }
  0xfb   :  { %v380_v63 = vadd.f32 %v896_v59, %v1234_v56  ;;  %v444_v0 = vadd.f32 %v944_v60, %v1234_v56 }
  0xfd   :  { %v783_v1 = vpack.c.bf16 %v380_v63, %v377_v61  ;;  %v823_v2 = vpack.c.bf16 %v444_v0, %v441_v62  ;;  %v897_v3 = vpop.f32.mrb[4].mxu0  ;;  %v945_v4 = vpop.f32.mrb[4].mxu1 }
  0xfe   :  { %v898_v5 = vpop.f32.mrb[5].mxu0  ;;  %v946_v6 = vpop.f32.mrb[5].mxu1 }
  0xff   :  { %784 = vst [vmem:[%s1319_s3] sm:$0xff] %v783_v1   ;;  %867 = vst [vmem:[%s1319_s3 + $0x40] sm:$0xff] %v823_v2   ;;  %v899_v7 = vadd.f32 %v898_v5, %v897_v3  ;;  %v947_v8 = vadd.f32 %v946_v6, %v945_v4  ;;  %v900_v9 = vpop.f32.mrb[6].mxu0  ;;  %v948_v10 = vpop.f32.mrb[6].mxu1 }
 0x100   :  { %v901_v11 = vpop.f32.mrb[7].mxu0  ;;  %v949_v12 = vpop.f32.mrb[7].mxu1 }
 0x101   :  { %v902_v13 = vadd.f32 %v901_v11, %v900_v9  ;;  %v950_v14 = vadd.f32 %v949_v12, %v948_v10  ;;  %v385_v15 = vadd.f32 %v899_v7, %v1234_v56  ;;  %v449_v16 = vadd.f32 %v947_v8, %v1234_v56 }
 0x103   :  { %v388_v17 = vadd.f32 %v902_v13, %v1234_v56  ;;  %v452_v18 = vadd.f32 %v950_v14, %v1234_v56 }
 0x105   :  { %v788_v19 = vpack.c.bf16 %v388_v17, %v385_v15  ;;  %v828_v20 = vpack.c.bf16 %v452_v18, %v449_v16  ;;  %v903_v21 = vpop.f32.mrb[8].mxu0  ;;  %v951_v22 = vpop.f32.mrb[8].mxu1 }
 0x106   :  { %v904_v23 = vpop.f32.mrb[9].mxu0  ;;  %v952_v24 = vpop.f32.mrb[9].mxu1 }
 0x107   :  { %860 = vst [vmem:[%s1319_s3 + $0x8] sm:$0xff] %v788_v19   ;;  %868 = vst [vmem:[%s1319_s3 + $0x48] sm:$0xff] %v828_v20   ;;  %v905_v25 = vadd.f32 %v904_v23, %v903_v21  ;;  %v953_v26 = vadd.f32 %v952_v24, %v951_v22  ;;  %v906_v27 = vpop.f32.mrb[10].mxu0  ;;  %v954_v28 = vpop.f32.mrb[10].mxu1 }
 0x108   :  { %v907_v29 = vpop.f32.mrb[11].mxu0  ;;  %v955_v30 = vpop.f32.mrb[11].mxu1 }
 0x109   :  { %v908_v31 = vadd.f32 %v907_v29, %v906_v27  ;;  %v956_v32 = vadd.f32 %v955_v30, %v954_v28  ;;  %v393_v33 = vadd.f32 %v905_v25, %v1234_v56  ;;  %v457_v34 = vadd.f32 %v953_v26, %v1234_v56 }
 0x10b   :  { %v396_v35 = vadd.f32 %v908_v31, %v1234_v56  ;;  %v460_v36 = vadd.f32 %v956_v32, %v1234_v56 }
 0x10d   :  { %v793_v37 = vpack.c.bf16 %v396_v35, %v393_v33  ;;  %v833_v38 = vpack.c.bf16 %v460_v36, %v457_v34  ;;  %v909_v39 = vpop.f32.mrb[12].mxu0  ;;  %v957_v40 = vpop.f32.mrb[12].mxu1 }
 0x10e   :  { %v910_v41 = vpop.f32.mrb[13].mxu0  ;;  %v958_v42 = vpop.f32.mrb[13].mxu1 }
 0x10f   :  { %861 = vst [vmem:[%s1319_s3 + $0x10] sm:$0xff] %v793_v37   ;;  %869 = vst [vmem:[%s1319_s3 + $0x50] sm:$0xff] %v833_v38   ;;  %v911_v43 = vadd.f32 %v910_v41, %v909_v39  ;;  %v959_v44 = vadd.f32 %v958_v42, %v957_v40  ;;  %v912_v45 = vpop.f32.mrb[14].mxu0  ;;  %v960_v46 = vpop.f32.mrb[14].mxu1 }
 0x110   :  { %v913_v47 = vpop.f32.mrb[15].mxu0  ;;  %v961_v48 = vpop.f32.mrb[15].mxu1 }
 0x111   :  { %v914_v49 = vadd.f32 %v913_v47, %v912_v45  ;;  %v962_v50 = vadd.f32 %v961_v48, %v960_v46  ;;  %v401_v51 = vadd.f32 %v911_v43, %v1234_v56  ;;  %v465_v52 = vadd.f32 %v959_v44, %v1234_v56 }
 0x113   :  { %v404_v53 = vadd.f32 %v914_v49, %v1234_v56  ;;  %v468_v54 = vadd.f32 %v962_v50, %v1234_v56 }
 0x115   :  { %v798_v55 = vpack.c.bf16 %v404_v53, %v401_v51  ;;  %v838_v57 = vpack.c.bf16 %v468_v54, %v465_v52  ;;  %v915_v58 = vpop.f32.mrb[16].mxu0  ;;  %v963_v59 = vpop.f32.mrb[16].mxu1 }
 0x116   :  { %v916_v60 = vpop.f32.mrb[17].mxu0  ;;  %v964_v61 = vpop.f32.mrb[17].mxu1 }
 0x117   :  { %862 = vst [vmem:[%s1319_s3 + $0x18] sm:$0xff] %v798_v55   ;;  %870 = vst [vmem:[%s1319_s3 + $0x58] sm:$0xff] %v838_v57   ;;  %v917_v62 = vadd.f32 %v916_v60, %v915_v58  ;;  %v965_v63 = vadd.f32 %v964_v61, %v963_v59  ;;  %v918_v0 = vpop.f32.mrb[18].mxu0  ;;  %v966_v1 = vpop.f32.mrb[18].mxu1 }
 0x118   :  { %v919_v2 = vpop.f32.mrb[19].mxu0  ;;  %v967_v3 = vpop.f32.mrb[19].mxu1 }
 0x119   :  { %v920_v4 = vadd.f32 %v919_v2, %v918_v0  ;;  %v968_v5 = vadd.f32 %v967_v3, %v966_v1  ;;  %v409_v6 = vadd.f32 %v917_v62, %v1234_v56  ;;  %v473_v7 = vadd.f32 %v965_v63, %v1234_v56 }
 0x11b   :  { %v412_v8 = vadd.f32 %v920_v4, %v1234_v56  ;;  %v476_v9 = vadd.f32 %v968_v5, %v1234_v56 }
 0x11d   :  { %v803_v10 = vpack.c.bf16 %v412_v8, %v409_v6  ;;  %v843_v11 = vpack.c.bf16 %v476_v9, %v473_v7  ;;  %v921_v12 = vpop.f32.mrb[20].mxu0  ;;  %v969_v13 = vpop.f32.mrb[20].mxu1 }
 0x11e   :  { %v922_v14 = vpop.f32.mrb[21].mxu0  ;;  %v970_v15 = vpop.f32.mrb[21].mxu1 }
 0x11f   :  { %863 = vst [vmem:[%s1319_s3 + $0x20] sm:$0xff] %v803_v10   ;;  %871 = vst [vmem:[%s1319_s3 + $0x60] sm:$0xff] %v843_v11   ;;  %v923_v16 = vadd.f32 %v922_v14, %v921_v12  ;;  %v971_v17 = vadd.f32 %v970_v15, %v969_v13  ;;  %v924_v18 = vpop.f32.mrb[22].mxu0  ;;  %v972_v19 = vpop.f32.mrb[22].mxu1 }
 0x120   :  { %v925_v20 = vpop.f32.mrb[23].mxu0  ;;  %v973_v21 = vpop.f32.mrb[23].mxu1 }
 0x121   :  { %v926_v22 = vadd.f32 %v925_v20, %v924_v18  ;;  %v974_v23 = vadd.f32 %v973_v21, %v972_v19  ;;  %v417_v24 = vadd.f32 %v923_v16, %v1234_v56  ;;  %v481_v25 = vadd.f32 %v971_v17, %v1234_v56 }
 0x123   :  { %v420_v26 = vadd.f32 %v926_v22, %v1234_v56  ;;  %v484_v27 = vadd.f32 %v974_v23, %v1234_v56 }
 0x125   :  { %v808_v28 = vpack.c.bf16 %v420_v26, %v417_v24  ;;  %v848_v29 = vpack.c.bf16 %v484_v27, %v481_v25  ;;  %v927_v30 = vpop.f32.mrb[24].mxu0  ;;  %v975_v31 = vpop.f32.mrb[24].mxu1 }
 0x126   :  { %v928_v32 = vpop.f32.mrb[25].mxu0  ;;  %v976_v33 = vpop.f32.mrb[25].mxu1 }
 0x127   :  { %864 = vst [vmem:[%s1319_s3 + $0x28] sm:$0xff] %v808_v28   ;;  %872 = vst [vmem:[%s1319_s3 + $0x68] sm:$0xff] %v848_v29   ;;  %v929_v34 = vadd.f32 %v928_v32, %v927_v30  ;;  %v977_v35 = vadd.f32 %v976_v33, %v975_v31  ;;  %v930_v36 = vpop.f32.mrb[26].mxu0  ;;  %v978_v37 = vpop.f32.mrb[26].mxu1 }
 0x128   :  { %v931_v38 = vpop.f32.mrb[27].mxu0  ;;  %v979_v39 = vpop.f32.mrb[27].mxu1 }
 0x129   :  { %v932_v40 = vadd.f32 %v931_v38, %v930_v36  ;;  %v980_v41 = vadd.f32 %v979_v39, %v978_v37  ;;  %v425_v42 = vadd.f32 %v929_v34, %v1234_v56  ;;  %v489_v43 = vadd.f32 %v977_v35, %v1234_v56 }
 0x12b   :  { %v428_v44 = vadd.f32 %v932_v40, %v1234_v56  ;;  %v492_v45 = vadd.f32 %v980_v41, %v1234_v56 }
 0x12d   :  { %v813_v46 = vpack.c.bf16 %v428_v44, %v425_v42  ;;  %v853_v47 = vpack.c.bf16 %v492_v45, %v489_v43  ;;  %v933_v48 = vpop.f32.mrb[28].mxu0  ;;  %v981_v49 = vpop.f32.mrb[28].mxu1 }
 0x12e   :  { %v934_v50 = vpop.f32.mrb[29].mxu0  ;;  %v982_v51 = vpop.f32.mrb[29].mxu1 }
 0x12f   :  { %865 = vst [vmem:[%s1319_s3 + $0x30] sm:$0xff] %v813_v46   ;;  %873 = vst [vmem:[%s1319_s3 + $0x70] sm:$0xff] %v853_v47   ;;  %v935_v52 = vadd.f32 %v934_v50, %v933_v48  ;;  %v983_v53 = vadd.f32 %v982_v51, %v981_v49  ;;  %v936_v54 = vpop.f32.mrb[30].mxu0  ;;  %v984_v55 = vpop.f32.mrb[30].mxu1 }
 0x130   :  { %v937_v57 = vpop.f32.mrb[31].mxu0  ;;  %v985_v58 = vpop.f32.mrb[31].mxu1 }
 0x131   :  { %v938_v59 = vadd.f32 %v937_v57, %v936_v54  ;;  %v986_v60 = vadd.f32 %v985_v58, %v984_v55  ;;  %v433_v61 = vadd.f32 %v935_v52, %v1234_v56  ;;  %v497_v62 = vadd.f32 %v983_v53, %v1234_v56 }
 0x133   :  { %v436_v63 = vadd.f32 %v938_v59, %v1234_v56  ;;  %v500_v0 = vadd.f32 %v986_v60, %v1234_v56 }
 0x135   :  { %v818_v1 = vpack.c.bf16 %v436_v63, %v433_v61  ;;  %v858_v2 = vpack.c.bf16 %v500_v0, %v497_v62 }
 0x137   :  { %866 = vst [vmem:[%s1319_s3 + $0x38] sm:$0xff] %v818_v1   ;;  %874 = vst [vmem:[%s1319_s3 + $0x78] sm:$0xff] %v858_v2  }

// kernel: coex_forward.57
= control target key start
LH: loop header
LB: loop body
LE: loop exit
PB: predicated region body
PF: predicated region fallthrough
CT: control target
= control target key end

     0   :  { %s602_s1 = inlined_call_operand.vmem [shape: bf16[128,128], index: 1, kind: input, shape index: {}]   ;;  %s603_s0 = inlined_call_operand.vmem [shape: bf16[128,128], index: 0, kind: input, shape index: {}]   ;;  %s604_s2 = inlined_call_operand.vmem [shape: f32[1,128], index: 2, kind: input, shape index: {}]   ;;  %s605_s3 = inlined_call_operand.vmem [shape: bf16[128,128], index: 3, kind: output, shape index: {}]  }
   0x1   :  { %v491_v0 = vld [vmem:[%s602_s1] sm:$0xff]   ;;  %v492_v1 = vld [vmem:[%s602_s1 + $0x8] sm:$0xff]   ;;  %v493_v2 = vld [vmem:[%s602_s1 + $0x10] sm:$0xff]  }
   0x2   :  { %443 = vmatprep.subr.bf16.mxu0 %v491_v0  ;;  %475 = vmatprep.subr.bf16.mxu1 %v491_v0  ;;  %v494_v3 = vld [vmem:[%s602_s1 + $0x18] sm:$0xff]   ;;  %v499_v4 = vld [vmem:[%s603_s0] sm:$0xff]   ;;  %v496_v7 = vld [vmem:[%s602_s1 + $0x28] sm:$0xff]  }
   0x3   :  { %444 = vmatpush3.bf16.msra.mxu0 %v491_v0  ;;  %483 = vmatpush3.bf16.msra.mxu1 %v491_v0  ;;  %v500_v5 = vld [vmem:[%s603_s0 + $0x20] sm:$0xff]   ;;  %v497_v8 = vld [vmem:[%s602_s1 + $0x30] sm:$0xff]   ;;  %v498_v9 = vld [vmem:[%s602_s1 + $0x38] sm:$0xff]  }
   0x4   :  { %445 = vmatprep.subr.bf16.mxu0 %v492_v1  ;;  %476 = vmatprep.subr.bf16.mxu1 %v492_v1  ;;  %v495_v6 = vld [vmem:[%s602_s1 + $0x20] sm:$0xff]   ;;  %v501_v10 = vld [vmem:[%s603_s0 + $0x8] sm:$0xff]   ;;  %v503_v12 = vld [vmem:[%s603_s0 + $0x10] sm:$0xff]  }
   0x5   :  { %459 = vmatprep.mubr.bf16.mxu0 %v499_v4  ;;  %467 = vmatprep.mubr.bf16.mxu1 %v500_v5  ;;  %v502_v11 = vld [vmem:[%s603_s0 + $0x28] sm:$0xff]   ;;  %v504_v13 = vld [vmem:[%s603_s0 + $0x30] sm:$0xff]   ;;  %v505_v14 = vld [vmem:[%s603_s0 + $0x18] sm:$0xff]  }
   0x6   :  { %v506_v15 = vld [vmem:[%s603_s0 + $0x38] sm:$0xff]   ;;  %v331_v17 = vld [vmem:[%s604_s2] ss:$0 sm:$0xff] }
   0x7   :  { %446 = vmatpush3.bf16.msra.mxu0 %v492_v1  ;;  %484 = vmatpush3.bf16.msra.mxu1 %v492_v1 }
   0x8   :  { %447 = vmatprep.subr.bf16.mxu0 %v493_v2  ;;  %477 = vmatprep.subr.bf16.mxu1 %v493_v2 }
   0xb   :  { %448 = vmatpush3.bf16.msra.mxu0 %v493_v2  ;;  %485 = vmatpush3.bf16.msra.mxu1 %v493_v2 }
   0xc   :  { %449 = vmatprep.subr.bf16.mxu0 %v494_v3  ;;  %478 = vmatprep.subr.bf16.mxu1 %v494_v3 }
   0xf   :  { %450 = vmatpush3.bf16.msra.mxu0 %v494_v3  ;;  %486 = vmatpush3.bf16.msra.mxu1 %v494_v3 }
  0x10   :  { %451 = vmatprep.subr.bf16.mxu0 %v495_v6  ;;  %479 = vmatprep.subr.bf16.mxu1 %v495_v6 }
  0x13   :  { %452 = vmatpush3.bf16.msra.mxu0 %v495_v6  ;;  %487 = vmatpush3.bf16.msra.mxu1 %v495_v6 }
  0x14   :  { %453 = vmatprep.subr.bf16.mxu0 %v496_v7  ;;  %480 = vmatprep.subr.bf16.mxu1 %v496_v7 }
  0x17   :  { %454 = vmatpush3.bf16.msra.mxu0 %v496_v7  ;;  %488 = vmatpush3.bf16.msra.mxu1 %v496_v7 }
  0x18   :  { %455 = vmatprep.subr.bf16.mxu0 %v497_v8  ;;  %481 = vmatprep.subr.bf16.mxu1 %v497_v8 }
  0x1b   :  { %456 = vmatpush3.bf16.msra.mxu0 %v497_v8  ;;  %489 = vmatpush3.bf16.msra.mxu1 %v497_v8 }
  0x1c   :  { %457 = vmatprep.subr.bf16.mxu0 %v498_v9  ;;  %482 = vmatprep.subr.bf16.mxu1 %v498_v9 }
  0x1f   :  { %458 = vmatpush3.bf16.msra.mxu0 %v498_v9  ;;  %490 = vmatpush3.bf16.msra.mxu1 %v498_v9 }
  0x22   :  { %460 = vmatmul.mubr.bf16.vlgmr.msra.gmra.mrb[0].mxu0 %v501_v10  ;;  %468 = vmatmul.mubr.bf16.vlgmr.msra.gmra.mrb[0].mxu1 %v502_v11 }
  0x23   :  { %463 = vmatprep.mubr.bf16.mxu0 %v503_v12  ;;  %471 = vmatprep.mubr.bf16.mxu1 %v504_v13 }
  0x2a   :  { %464 = vmatmul.mubr.bf16.gmra.mrb[4].mxu0 %v505_v14  ;;  %472 = vmatmul.mubr.bf16.gmra.mrb[4].mxu1 %v506_v15 }
  0xf5   :  { %v461_v16 = vpop.f32.mrb[0].mxu0  ;;  %v469_v18 = vpop.f32.mrb[0].mxu1 }
  0xf6   :  { %v184_v19 = vpop.f32.mrb[1].mxu0  ;;  %v216_v20 = vpop.f32.mrb[1].mxu1  ;;  %v193_v23 = vadd.f32 %v461_v16, %v331_v17  ;;  %v225_v24 = vadd.f32 %v469_v18, %v331_v17 }
  0xf7   :  { %v462_v21 = vpop.f32.mrb[2].mxu0  ;;  %v470_v22 = vpop.f32.mrb[2].mxu1  ;;  %v185_v29 = vadd.f32 %v331_v17, %v184_v19  ;;  %v217_v30 = vadd.f32 %v331_v17, %v216_v20 }
  0xf8   :  { %v196_v25 = vadd.f32 %v462_v21, %v331_v17  ;;  %v228_v26 = vadd.f32 %v470_v22, %v331_v17  ;;  %v187_v27 = vpop.f32.mrb[3].mxu0  ;;  %v219_v28 = vpop.f32.mrb[3].mxu1 }
  0xf9   :  { %v188_v31 = vadd.f32 %v331_v17, %v187_v27  ;;  %v220_v32 = vadd.f32 %v331_v17, %v219_v28 }
  0xfa   :  { %v388_v33 = vpack.c.bf16 %v196_v25, %v193_v23  ;;  %v408_v34 = vpack.c.bf16 %v228_v26, %v225_v24 }
  0xfb   :  { %v383_v35 = vpack.c.bf16 %v188_v31, %v185_v29  ;;  %v403_v36 = vpack.c.bf16 %v220_v32, %v217_v30 }
  0xfc   :  { %420 = vst [vmem:[%s605_s3 + $0x8] sm:$0xff] %v388_v33   ;;  %424 = vst [vmem:[%s605_s3 + $0x28] sm:$0xff] %v408_v34  }
  0xfd   :  { %384 = vst [vmem:[%s605_s3] sm:$0xff] %v383_v35   ;;  %423 = vst [vmem:[%s605_s3 + $0x20] sm:$0xff] %v403_v36   ;;  %v465_v37 = vpop.f32.mrb[4].mxu0  ;;  %v473_v38 = vpop.f32.mrb[4].mxu1 }
  0xfe   :  { %v200_v39 = vpop.f32.mrb[5].mxu0  ;;  %v232_v40 = vpop.f32.mrb[5].mxu1  ;;  %v209_v43 = vadd.f32 %v465_v37, %v331_v17  ;;  %v241_v44 = vadd.f32 %v473_v38, %v331_v17 }
  0xff   :  { %v466_v41 = vpop.f32.mrb[6].mxu0  ;;  %v474_v42 = vpop.f32.mrb[6].mxu1  ;;  %v201_v49 = vadd.f32 %v331_v17, %v200_v39  ;;  %v233_v50 = vadd.f32 %v331_v17, %v232_v40 }
 0x100   :  { %v212_v45 = vadd.f32 %v466_v41, %v331_v17  ;;  %v244_v46 = vadd.f32 %v474_v42, %v331_v17  ;;  %v203_v47 = vpop.f32.mrb[7].mxu0  ;;  %v235_v48 = vpop.f32.mrb[7].mxu1 }
 0x101   :  { %v204_v51 = vadd.f32 %v331_v17, %v203_v47  ;;  %v236_v52 = vadd.f32 %v331_v17, %v235_v48 }
 0x102   :  { %v398_v53 = vpack.c.bf16 %v212_v45, %v209_v43  ;;  %v418_v54 = vpack.c.bf16 %v244_v46, %v241_v44 }
 0x103   :  { %v393_v55 = vpack.c.bf16 %v204_v51, %v201_v49  ;;  %v413_v56 = vpack.c.bf16 %v236_v52, %v233_v50 }
 0x104   :  { %422 = vst [vmem:[%s605_s3 + $0x18] sm:$0xff] %v398_v53   ;;  %426 = vst [vmem:[%s605_s3 + $0x38] sm:$0xff] %v418_v54  }
 0x105   :  { %421 = vst [vmem:[%s605_s3 + $0x10] sm:$0xff] %v393_v55   ;;  %425 = vst [vmem:[%s605_s3 + $0x30] sm:$0xff] %v413_v56  }

// kernel: coex_forward.58
= control target key start
LH: loop header
LB: loop body
LE: loop exit
PB: predicated region body
PF: predicated region fallthrough
CT: control target
= control target key end

     0   :  { %vm35_vm0 = vcmask 392192   ;;  %vm191_vm1 = vcmask 387072   ;;  %s1808_s1 = inlined_call_operand.vmem [shape: bf16[1,8,11,48], index: 1, kind: input, shape index: {}]   ;;  %s1809_s0 = inlined_call_operand.vmem [shape: bf16[1,8,8,48], index: 0, kind: input, shape index: {}]   ;;  %s1810_s2 = inlined_call_operand.vmem [shape: bf16[1,4,8,8], index: 2, kind: output, shape index: {}]  }
   0x1   :  { %v142_v0 = vld [vmem:[%s1808_s1] ss:$8 sps:$4 sm:$0xff]   ;;  %v143_v1 = vld [vmem:[%s1808_s1 + $0xc] sm:$0x3]  ;;  %v141_v2 = vld [vmem:[%s1808_s1 + $0x4] sm:$0x3] }
   0x2   :  { %v1254_v3 = vunpack.c.h.bf16 %v142_v0  ;;  %v1256_v4 = vunpack.c.l.bf16 %v142_v0  ;;  %v1258_v5 = vunpack.c.l.bf16 %v143_v1  ;;  %v1260_v6 = vunpack.c.l.bf16 %v141_v2  ;;  %v145_v7 = vld [vmem:[%s1808_s1 + $0x14] sm:$0x3]  ;;  %v144_v8 = vld [vmem:[%s1808_s1 + $0x10] ss:$8 sps:$4 sm:$0xff]   ;;  %v147_v15 = vld [vmem:[%s1808_s1 + $0x1c] sm:$0x3] }
   0x3   :  { %v1268_v9 = vunpack.c.l.bf16 %v145_v7  ;;  %v1270_v10 = vunpack.c.l.bf16 %v144_v8  ;;  %v1285_v18 = vunpack.c.l.bf16 %v147_v15  ;;  %v1287_v19 = vunpack.c.h.bf16 %v144_v8  ;;  %v149_v24 = vld [vmem:[%s1808_s1 + $0x24] sm:$0x3]  ;;  %v148_v25 = vld [vmem:[%s1808_s1 + $0x20] ss:$8 sps:$4 sm:$0xff]   ;;  %v151_v32 = vld [vmem:[%s1808_s1 + $0x2c] sm:$0x3] }
   0x4   :  { %v174_v11 = vmul.f32 %v1254_v3, %v1254_v3  ;;  %v172_v12 = vmul.f32 %v1256_v4, %v1256_v4  ;;  %v175_v13 = vmul.f32 %v1258_v5, %v1258_v5  ;;  %v173_v14 = vmul.f32 %v1260_v6, %v1260_v6  ;;  %v153_v39 = vld [vmem:[%s1808_s1 + $0x34] sm:$0x3]  ;;  %v152_v40 = vld [vmem:[%s1808_s1 + $0x30] ss:$8 sps:$4 sm:$0xff]   ;;  %v155_v47 = vld [vmem:[%s1808_s1 + $0x3c] sm:$0x3] }
   0x5   :  { %v177_v22 = vmul.f32 %v1268_v9, %v1268_v9  ;;  %v176_v23 = vmul.f32 %v1270_v10, %v1270_v10  ;;  %v179_v26 = vmul.f32 %v1285_v18, %v1285_v18  ;;  %v178_v27 = vmul.f32 %v1287_v19, %v1287_v19  ;;  %v1114_v54 = vld [vmem:[%s1809_s0] sm:$0xff]   ;;  %v1129_v61 = vld [vmem:[%s1809_s0 + $0x8] sm:$0xff]   ;;  %v1130_v8 = vld [vmem:[%s1809_s0 + $0x10] sm:$0xff]  }
   0x6   :  { %v195_v16 = vsel %vm35_vm0, %v174_v11, 0.0  ;;  %v188_v17 = vsel %vm35_vm0, %v172_v12, 0.0  ;;  %v198_v20 = vsel %vm191_vm1, %v175_v13, 0.0  ;;  %v192_v21 = vsel %vm191_vm1, %v173_v14, 0.0 }
   0x7   :  { %196 = vadd.xlane.f32.xlu1 %v195_v16  ;;  %189 = vadd.xlane.f32.xlu0 %v188_v17  ;;  %v204_v28 = vsel %vm191_vm1, %v177_v22, 0.0  ;;  %v201_v29 = vsel %vm35_vm0, %v176_v23, 0.0  ;;  %v1307_v30 = vunpack.c.l.bf16 %v149_v24  ;;  %v1309_v31 = vunpack.c.l.bf16 %v148_v25  ;;  %v1131_v17 = vld [vmem:[%s1809_s0 + $0x18] sm:$0xff]  }
   0x8   :  { %v210_v33 = vsel %vm191_vm1, %v179_v26, 0.0  ;;  %v207_v34 = vsel %vm35_vm0, %v178_v27, 0.0  ;;  %v1320_v37 = vunpack.c.l.bf16 %v151_v32  ;;  %v1322_v38 = vunpack.c.h.bf16 %v148_v25 }
   0x9   :  { %v181_v35 = vmul.f32 %v1307_v30, %v1307_v30  ;;  %v180_v36 = vmul.f32 %v1309_v31, %v1309_v31  ;;  %v1330_v41 = vunpack.c.l.bf16 %v153_v39  ;;  %v1332_v42 = vunpack.c.l.bf16 %v152_v40 }
   0xa   :  { %v183_v45 = vmul.f32 %v1320_v37, %v1320_v37  ;;  %v182_v46 = vmul.f32 %v1322_v38, %v1322_v38  ;;  %v1343_v48 = vunpack.c.l.bf16 %v155_v47  ;;  %v1345_v49 = vunpack.c.h.bf16 %v152_v40 }
   0xb   :  { %199 = vadd.xlane.f32.xlu1 %v198_v20  ;;  %193 = vadd.xlane.f32.xlu0 %v192_v21  ;;  %v216_v43 = vsel %vm191_vm1, %v181_v35, 0.0  ;;  %v213_v44 = vsel %vm35_vm0, %v180_v36, 0.0  ;;  %v185_v52 = vmul.f32 %v1330_v41, %v1330_v41  ;;  %v184_v53 = vmul.f32 %v1332_v42, %v1332_v42 }
   0xc   :  { %v222_v50 = vsel %vm191_vm1, %v183_v45, 0.0  ;;  %v219_v51 = vsel %vm35_vm0, %v182_v46, 0.0  ;;  %v187_v55 = vmul.f32 %v1343_v48, %v1343_v48  ;;  %v1358_v56 = vunpack.c.h.bf16 %v1114_v54 }
   0xd   :  { %v228_v57 = vsel %vm191_vm1, %v185_v52, 0.0  ;;  %v225_v58 = vsel %vm35_vm0, %v184_v53, 0.0  ;;  %v186_v59 = vmul.f32 %v1345_v49, %v1345_v49  ;;  %v1364_v60 = vunpack.c.l.bf16 %v1114_v54 }
   0xe   :  { %v234_v62 = vsel %vm191_vm1, %v187_v55, 0.0  ;;  %v28_v63 = vmul.f32 %v1358_v56, %v1358_v56  ;;  %v1375_v2 = vunpack.c.h.bf16 %v1129_v61  ;;  %v1377_v7 = vunpack.c.l.bf16 %v1129_v61 }
   0xf   :  { %205 = vadd.xlane.f32.xlu1 %v204_v28  ;;  %202 = vadd.xlane.f32.xlu0 %v201_v29  ;;  %v231_v0 = vsel %vm35_vm0, %v186_v59, 0.0  ;;  %v27_v1 = vmul.f32 %v1364_v60, %v1364_v60  ;;  %v1382_v11 = vunpack.c.h.bf16 %v1130_v8  ;;  %v1384_v12 = vunpack.c.l.bf16 %v1130_v8 }
  0x10   :  { %v39_v13 = vsel %vm35_vm0, %v28_v63, 0.0  ;;  %v30_v15 = vmul.f32 %v1375_v2, %v1375_v2  ;;  %v29_v16 = vmul.f32 %v1377_v7, %v1377_v7  ;;  %v1397_v21 = vunpack.c.h.bf16 %v1131_v17 }
  0x11   :  { %v36_v14 = vsel %vm35_vm0, %v27_v1, 0.0  ;;  %v32_v20 = vmul.f32 %v1382_v11, %v1382_v11  ;;  %v31_v24 = vmul.f32 %v1384_v12, %v1384_v12  ;;  %v1403_v25 = vunpack.c.l.bf16 %v1131_v17 }
  0x12   :  { %v45_v22 = vsel %vm35_vm0, %v30_v15, 0.0  ;;  %v42_v23 = vsel %vm35_vm0, %v29_v16, 0.0  ;;  %v34_v28 = vmul.f32 %v1397_v21, %v1397_v21 }
  0x13   :  { %211 = vadd.xlane.f32.xlu1 %v210_v33  ;;  %208 = vadd.xlane.f32.xlu0 %v207_v34  ;;  %v51_v26 = vsel %vm35_vm0, %v32_v20, 0.0  ;;  %v48_v27 = vsel %vm35_vm0, %v31_v24, 0.0  ;;  %v33_v29 = vmul.f32 %v1403_v25, %v1403_v25 }
  0x14   :  { %v57_v32 = vsel %vm35_vm0, %v34_v28, 0.0 }
  0x15   :  { %v54_v33 = vsel %vm35_vm0, %v33_v29, 0.0 }
  0x17   :  { %217 = vadd.xlane.f32.xlu1 %v216_v43  ;;  %214 = vadd.xlane.f32.xlu0 %v213_v44 }
  0x1b   :  { %223 = vadd.xlane.f32.xlu1 %v222_v50  ;;  %220 = vadd.xlane.f32.xlu0 %v219_v51 }
  0x1f   :  { %229 = vadd.xlane.f32.xlu1 %v228_v57  ;;  %226 = vadd.xlane.f32.xlu0 %v225_v58 }
  0x23   :  { %235 = vadd.xlane.f32.xlu1 %v234_v62  ;;  %232 = vadd.xlane.f32.xlu0 %v231_v0 }
  0x27   :  { %40 = vadd.xlane.f32.xlu1 %v39_v13  ;;  %37 = vadd.xlane.f32.xlu0 %v36_v14 }
  0x2b   :  { %46 = vadd.xlane.f32.xlu1 %v45_v22  ;;  %43 = vadd.xlane.f32.xlu0 %v42_v23 }
  0x2f   :  { %52 = vadd.xlane.f32.xlu1 %v51_v26  ;;  %49 = vadd.xlane.f32.xlu0 %v48_v27 }
  0x33   :  { %58 = vadd.xlane.f32.xlu1 %v57_v32  ;;  %55 = vadd.xlane.f32.xlu0 %v54_v33 }
  0x94   :  { %v197_v34 = vpop.xlane.xlu1 %196  ;;  %v190_v35 = vpop.xlane.xlu0 %189 }
  0x95   :  { %1133 = vrsqrt.f32 %v197_v34  ;;  %vm253_vm2 = vcmp.eq.f32.partialorder %v197_v34, inf  ;;  %vm255_vm3 = vcmp.eq.f32.partialorder %v197_v34, 0.0  ;;  %v256_v47 = vand.u32 2147483648, %v197_v34 }
  0x96   :  { %1135 = vrsqrt.f32 %v190_v35  ;;  %vm239_vm4 = vcmp.eq.f32.partialorder %v190_v35, inf  ;;  %vm241_vm5 = vcmp.eq.f32.partialorder %v190_v35, 0.0  ;;  %v242_v53 = vand.u32 2147483648, %v190_v35 }
  0x98   :  { %v200_v36 = vpop.xlane.xlu1 %199  ;;  %v194_v39 = vpop.xlane.xlu0 %193 }
  0x99   :  { %1137 = vrsqrt.f32 %v200_v36  ;;  %vm260_vm6 = vcmp.eq.f32.partialorder %v200_v36, inf  ;;  %vm262_vm7 = vcmp.eq.f32.partialorder %v200_v36, 0.0  ;;  %v263_v55 = vand.u32 2147483648, %v200_v36 }
  0x9a   :  { %1139 = vrsqrt.f32 %v194_v39  ;;  %vm246_vm8 = vcmp.eq.f32.partialorder %v194_v39, inf  ;;  %vm248_vm9 = vcmp.eq.f32.partialorder %v194_v39, 0.0  ;;  %v249_v1 = vand.u32 2147483648, %v194_v39 }
  0x9c   :  { %v1413_v40 = vpop.xlane.xlu1 %205  ;;  %v1415_v43 = vpop.xlane.xlu0 %202 }
  0x9d   :  { %1141 = vrsqrt.f32 %v1413_v40  ;;  %vm274_vm10 = vcmp.eq.f32.partialorder %v1413_v40, inf  ;;  %vm276_vm11 = vcmp.eq.f32.partialorder %v1413_v40, 0.0  ;;  %v277_v17 = vand.u32 2147483648, %v1413_v40 }
  0x9e   :  { %1143 = vrsqrt.f32 %v1415_v43  ;;  %vm267_vm12 = vcmp.eq.f32.partialorder %v1415_v43, inf  ;;  %vm269_vm13 = vcmp.eq.f32.partialorder %v1415_v43, 0.0 }
  0x9f   :  { %v1134_v44 = vpop.eup %1133 }
  0xa0   :  { %v1136_v45 = vpop.eup %1135  ;;  %v252_v46 = vmul.f32 %v1134_v44, %v197_v34  ;;  %v1419_v50 = vpop.xlane.xlu1 %211 }
  0xa1   :  { %v1421_v51 = vpop.xlane.xlu0 %208  ;;  %v238_v52 = vmul.f32 %v1136_v45, %v190_v35  ;;  %1145 = vrsqrt.f32 %v1419_v50  ;;  %vm288_vm14 = vcmp.eq.f32.partialorder %v1419_v50, inf  ;;  %vm290_vm15 = vcmp.eq.f32.partialorder %v1419_v50, 0.0 }
  0xa2   :  { %v254_v54 = vsel %vm253_vm2, %v197_v34, %v252_v46  ;;  %1147 = vrsqrt.f32 %v1421_v51  ;;  %v291_v46 = vand.u32 2147483648, %v1419_v50  ;;  %vm281_vm2 = vcmp.eq.f32.partialorder %v1421_v51, inf }
  0xa3   :  { %v1138_v57 = vpop.eup %1137  ;;  %v257_v58 = vsel %vm255_vm3, %v256_v47, %v254_v54  ;;  %v240_v59 = vsel %vm239_vm4, %v190_v35, %v238_v52  ;;  %v270_v35 = vand.u32 2147483648, %v1415_v43  ;;  %vm283_vm3 = vcmp.eq.f32.partialorder %v1421_v51, 0.0 }
  0xa4   :  { %v1140_v61 = vpop.eup %1139  ;;  %v351_v62 = vadd.f32 1e-05, %v257_v58  ;;  %v243_v63 = vsel %vm241_vm5, %v242_v53, %v240_v59  ;;  %v259_v0 = vmul.f32 %v1138_v57, %v200_v36  ;;  %v1427_v8 = vpop.xlane.xlu1 %217  ;;  %v284_v59 = vand.u32 2147483648, %v1421_v51 }
  0xa5   :  { %v1429_v13 = vpop.xlane.xlu0 %214  ;;  %v349_v14 = vadd.f32 1e-05, %v243_v63  ;;  %v245_v15 = vmul.f32 %v1140_v61, %v194_v39  ;;  %1149 = vrsqrt.f32 %v1427_v8  ;;  %vm302_vm4 = vcmp.eq.f32.partialorder %v1427_v8, inf }
  0xa6   :  { %1151 = vrcp.f32 %v351_v62  ;;  %v261_v16 = vsel %vm260_vm6, %v200_v36, %v259_v0  ;;  %vm304_vm5 = vcmp.eq.f32.partialorder %v1427_v8, 0.0  ;;  %vm295_vm6 = vcmp.eq.f32.partialorder %v1429_v13, inf }
  0xa7   :  { %v1142_v20 = vpop.eup %1141  ;;  %1153 = vrcp.f32 %v349_v14  ;;  %v264_v22 = vsel %vm262_vm7, %v263_v55, %v261_v16  ;;  %v247_v23 = vsel %vm246_vm8, %v194_v39, %v245_v15  ;;  %vm297_vm7 = vcmp.eq.f32.partialorder %v1429_v13, 0.0 }
  0xa8   :  { %v1144_v24 = vpop.eup %1143  ;;  %v352_v26 = vadd.f32 1e-05, %v264_v22  ;;  %v250_v27 = vsel %vm248_vm9, %v249_v1, %v247_v23  ;;  %v273_v28 = vmul.f32 %v1142_v20, %v1413_v40  ;;  %1155 = vrsqrt.f32 %v1429_v13  ;;  %v1442_v29 = vpop.xlane.xlu1 %223 }
  0xa9   :  { %v1444_v32 = vpop.xlane.xlu0 %220  ;;  %v350_v33 = vadd.f32 1e-05, %v250_v27  ;;  %v266_v34 = vmul.f32 %v1144_v24, %v1415_v43  ;;  %vm316_vm8 = vcmp.eq.f32.partialorder %v1442_v29, inf  ;;  %vm318_vm9 = vcmp.eq.f32.partialorder %v1442_v29, 0.0 }
  0xaa   :  { %1157 = vrcp.f32 %v352_v26  ;;  %v275_v36 = vsel %vm274_vm10, %v1413_v40, %v273_v28  ;;  %vm309_vm10 = vcmp.eq.f32.partialorder %v1444_v32, inf }
  0xab   :  { %v1146_v39 = vpop.eup %1145  ;;  %1159 = vrcp.f32 %v350_v33  ;;  %v278_v44 = vsel %vm276_vm11, %v277_v17, %v275_v36  ;;  %v268_v45 = vsel %vm267_vm12, %v1415_v43, %v266_v34  ;;  %vm311_vm11 = vcmp.eq.f32.partialorder %v1444_v32, 0.0 }
  0xac   :  { %v1148_v47 = vpop.eup %1147  ;;  %v354_v52 = vadd.f32 1e-05, %v278_v44  ;;  %v271_v53 = vsel %vm269_vm13, %v270_v35, %v268_v45  ;;  %v287_v54 = vmul.f32 %v1146_v39, %v1419_v50  ;;  %1161 = vrsqrt.f32 %v1442_v29  ;;  %v1462_v55 = vpop.xlane.xlu1 %229 }
  0xad   :  { %v1464_v57 = vpop.xlane.xlu0 %226  ;;  %v353_v58 = vadd.f32 1e-05, %v271_v53  ;;  %v280_v40 = vmul.f32 %v1148_v47, %v1421_v51  ;;  %1163 = vrsqrt.f32 %v1444_v32  ;;  %vm330_vm12 = vcmp.eq.f32.partialorder %v1462_v55, inf }
  0xae   :  { %1165 = vrcp.f32 %v354_v52  ;;  %v289_v43 = vsel %vm288_vm14, %v1419_v50, %v287_v54  ;;  %v305_v50 = vand.u32 2147483648, %v1427_v8  ;;  %vm332_vm13 = vcmp.eq.f32.partialorder %v1462_v55, 0.0 }
  0xaf   :  { %v1150_v61 = vpop.eup %1149  ;;  %1167 = vrcp.f32 %v353_v58  ;;  %v292_v62 = vsel %vm290_vm15, %v291_v46, %v289_v43  ;;  %v282_v63 = vsel %vm281_vm2, %v1421_v51, %v280_v40  ;;  %v319_v46 = vand.u32 2147483648, %v1442_v29 }
  0xb0   :  { %v1152_v0 = vpop.eup %1151  ;;  %v356_v1 = vadd.f32 1e-05, %v292_v62  ;;  %v285_v14 = vsel %vm283_vm3, %v284_v59, %v282_v63  ;;  %v301_v15 = vmul.f32 %v1150_v61, %v1427_v8  ;;  %1169 = vrsqrt.f32 %v1462_v55  ;;  %v1480_v16 = vpop.xlane.xlu1 %235 }
  0xb1   :  { %v1154_v17 = vpop.eup %1153  ;;  %v383_v20 = vmul.f32 %v1152_v0, %v1254_v3  ;;  %v355_v22 = vadd.f32 1e-05, %v285_v14  ;;  %v1485_v51 = vpop.xlane.xlu0 %232  ;;  %v333_v14 = vand.u32 2147483648, %v1462_v55  ;;  %vm323_vm14 = vcmp.eq.f32.partialorder %v1464_v57, inf }
  0xb2   :  { %v1156_v23 = vpop.eup %1155  ;;  %v381_v24 = vmul.f32 %v1154_v17, %v1256_v4  ;;  %1171 = vrcp.f32 %v356_v1  ;;  %v303_v26 = vsel %vm302_vm4, %v1427_v8, %v301_v15  ;;  %v298_v4 = vand.u32 2147483648, %v1429_v13 }
  0xb3   :  { %399 = vst.msk [vmem:[#allocation2 + $0x10] sm:$0xff] %vm35_vm0, %v383_v20  ;;  %1173 = vrcp.f32 %v355_v22  ;;  %v306_v3 = vsel %vm304_vm5, %v305_v50, %v303_v26  ;;  %v294_v27 = vmul.f32 %v1156_v23, %v1429_v13  ;;  %vm325_vm15 = vcmp.eq.f32.partialorder %v1464_v57, 0.0 }
  0xb4   :  { %v1158_v28 = vpop.eup %1157  ;;  %397 = vst.msk [vmem:[#allocation2] sm:$0xff] %vm35_vm0, %v381_v24  ;;  %v358_v33 = vadd.f32 1e-05, %v306_v3  ;;  %1175 = vrsqrt.f32 %v1464_v57  ;;  %v1503_v36 = vpop.xlane.xlu1 %40  ;;  %v326_v22 = vand.u32 2147483648, %v1464_v57  ;;  %vm344_vm2 = vcmp.eq.f32.partialorder %v1480_v16, inf }
  0xb5   :  { %v1160_v8 = vpop.eup %1159  ;;  %v384_v34 = vmul.f32 %v1158_v28, %v1258_v5  ;;  %v296_v35 = vsel %vm295_vm6, %v1429_v13, %v294_v27  ;;  %1177 = vrsqrt.f32 %v1480_v16  ;;  %v1513_v53 = vpop.xlane.xlu0 %37  ;;  %v312_v13 = vand.u32 2147483648, %v1444_v32 }
  0xb6   :  { %v1162_v39 = vpop.eup %1161  ;;  %v382_v44 = vmul.f32 %v1160_v8, %v1260_v6  ;;  %1179 = vrcp.f32 %v358_v33  ;;  %v299_v45 = vsel %vm297_vm7, %v298_v4, %v296_v35  ;;  %vm346_vm3 = vcmp.eq.f32.partialorder %v1480_v16, 0.0 }
  0xb7   :  { %v1164_v47 = vpop.eup %1163  ;;  %400 = vst.msk [vmem:[#allocation2 + $0x18] sm:$0x7] %vm191_vm1, %v384_v34  ;;  %v357_v5 = vadd.f32 1e-05, %v299_v45  ;;  %v315_v52 = vmul.f32 %v1162_v39, %v1442_v29  ;;  %1181 = vrsqrt.f32 %v1485_v51  ;;  %vm337_vm4 = vcmp.eq.f32.partialorder %v1485_v51, inf }
  0xb8   :  { %v1166_v54 = vpop.eup %1165  ;;  %398 = vst.msk [vmem:[#allocation2 + $0x8] sm:$0x7] %vm191_vm1, %v382_v44  ;;  %v308_v6 = vmul.f32 %v1164_v47, %v1444_v32  ;;  %1183 = vrsqrt.f32 %v1503_v36  ;;  %vm339_vm5 = vcmp.eq.f32.partialorder %v1485_v51, 0.0  ;;  %v340_v45 = vand.u32 2147483648, %v1485_v51 }
  0xb9   :  { %v1168_v58 = vpop.eup %1167  ;;  %v386_v40 = vmul.f32 %v1166_v54, %v1268_v9  ;;  %1185 = vrcp.f32 %v357_v5  ;;  %v317_v43 = vsel %vm316_vm8, %v1442_v29, %v315_v52  ;;  %v1539_v29 = vpop.xlane.xlu1 %46  ;;  %vm69_vm6 = vcmp.eq.f32.partialorder %v1503_v36, inf }
  0xba   :  { %v1170_v59 = vpop.eup %1169  ;;  %v385_v61 = vmul.f32 %v1168_v58, %v1270_v10  ;;  %v320_v62 = vsel %vm318_vm9, %v319_v46, %v317_v43  ;;  %v310_v63 = vsel %vm309_vm10, %v1444_v32, %v308_v6  ;;  %1187 = vrsqrt.f32 %v1513_v53  ;;  %v1546_v50 = vpop.xlane.xlu0 %43 }
  0xbb   :  { %402 = vst.msk [vmem:[#allocation2 + $0x28] sm:$0x7] %vm191_vm1, %v386_v40  ;;  %v360_v9 = vadd.f32 1e-05, %v320_v62  ;;  %v313_v0 = vsel %vm311_vm11, %v312_v13, %v310_v63  ;;  %v329_v1 = vmul.f32 %v1170_v59, %v1462_v55  ;;  %v72_v6 = vand.u32 2147483648, %v1503_v36 }
  0xbc   :  { %v1172_v15 = vpop.eup %1171  ;;  %401 = vst.msk [vmem:[#allocation2 + $0x20] sm:$0xff] %vm35_vm0, %v385_v61  ;;  %v359_v10 = vadd.f32 1e-05, %v313_v0  ;;  %vm71_vm7 = vcmp.eq.f32.partialorder %v1503_v36, 0.0  ;;  %vm62_vm8 = vcmp.eq.f32.partialorder %v1513_v53, inf  ;;  %vm64_vm9 = vcmp.eq.f32.partialorder %v1513_v53, 0.0 }
  0xbd   :  { %v1174_v32 = vpop.eup %1173  ;;  %v388_v17 = vmul.f32 %v1172_v15, %v1285_v18  ;;  %1189 = vrcp.f32 %v360_v9  ;;  %v331_v20 = vsel %vm330_vm12, %v1462_v55, %v329_v1  ;;  %v347_v55 = vand.u32 2147483648, %v1480_v16 }
  0xbe   :  { %v1176_v23 = vpop.eup %1175  ;;  %v387_v24 = vmul.f32 %v1174_v32, %v1287_v19  ;;  %1191 = vrcp.f32 %v359_v10  ;;  %v334_v26 = vsel %vm332_vm13, %v333_v14, %v331_v20  ;;  %v1583_v13 = vpop.xlane.xlu0 %49  ;;  %vm76_vm10 = vcmp.eq.f32.partialorder %v1546_v50, inf }
  0xbf   :  { %v1178_v3 = vpop.eup %1177  ;;  %404 = vst.msk [vmem:[#allocation2 + $0x38] sm:$0x7] %vm191_vm1, %v388_v17  ;;  %v362_v18 = vadd.f32 1e-05, %v334_v26  ;;  %v322_v27 = vmul.f32 %v1176_v23, %v1464_v57  ;;  %1193 = vrsqrt.f32 %v1539_v29  ;;  %vm78_vm11 = vcmp.eq.f32.partialorder %v1546_v50, 0.0 }
  0xc0   :  { %v1180_v28 = vpop.eup %1179  ;;  %403 = vst.msk [vmem:[#allocation2 + $0x30] sm:$0xff] %vm35_vm0, %v387_v24  ;;  %v343_v19 = vmul.f32 %v1178_v3, %v1480_v16  ;;  %1195 = vrsqrt.f32 %v1546_v50  ;;  %vm83_vm12 = vcmp.eq.f32.partialorder %v1539_v29, inf  ;;  %vm85_vm13 = vcmp.eq.f32.partialorder %v1539_v29, 0.0 }
  0xc1   :  { %v1182_v33 = vpop.eup %1181  ;;  %v390_v4 = vmul.f32 %v1180_v28, %v1307_v30  ;;  %1197 = vrcp.f32 %v362_v18  ;;  %v324_v8 = vsel %vm323_vm14, %v1464_v57, %v322_v27  ;;  %v86_v27 = vand.u32 2147483648, %v1539_v29 }
  0xc2   :  { %v1184_v34 = vpop.eup %1183  ;;  %v327_v35 = vsel %vm325_vm15, %v326_v22, %v324_v8  ;;  %v345_v39 = vsel %vm344_vm2, %v1480_v16, %v343_v19  ;;  %v336_v44 = vmul.f32 %v1182_v33, %v1485_v51  ;;  %v1607_v22 = vpop.xlane.xlu1 %52  ;;  %vm90_vm14 = vcmp.eq.f32.partialorder %v1583_v13, inf }
  0xc3   :  { %v1186_v30 = vpop.eup %1185  ;;  %406 = vst.msk [vmem:[#allocation2 + $0x48] sm:$0x7] %vm191_vm1, %v390_v4  ;;  %v361_v46 = vadd.f32 1e-05, %v327_v35  ;;  %v348_v47 = vsel %vm346_vm3, %v347_v55, %v345_v39  ;;  %v68_v5 = vmul.f32 %v1184_v34, %v1503_v36  ;;  %v1623_v8 = vpop.xlane.xlu0 %55  ;;  %v414_v34 = vld [vmem:[#allocation2 + $0x13] sm:$0xff]  ;;  %vm97_vm15 = vcmp.eq.f32.partialorder %v1607_v22, inf }
  0xc4   :  { %v389_v57 = vmul.f32 %v1186_v30, %v1309_v31  ;;  %v364_v52 = vadd.f32 1e-05, %v348_v47  ;;  %v338_v54 = vsel %vm337_vm4, %v1485_v51, %v336_v44  ;;  %v1188_v40 = vpop.eup %1187  ;;  %v594_v44 = vld [vmem:[#allocation2 + $0x12] sm:$0xff]  ;;  %vm99_vm2 = vcmp.eq.f32.partialorder %v1607_v22, 0.0 }
  0xc5   :  { %1199 = vrcp.f32 %v361_v46  ;;  %v341_v16 = vsel %vm339_vm5, %v340_v45, %v338_v54  ;;  %v70_v58 = vsel %vm69_vm6, %v1503_v36, %v68_v5  ;;  %v61_v62 = vmul.f32 %v1188_v40, %v1513_v53  ;;  %v413_v5 = vld [vmem:[#allocation2 + $0x3] sm:$0xff] }
  0xc6   :  { %405 = vst.msk [vmem:[#allocation2 + $0x40] sm:$0xff] %vm35_vm0, %v389_v57  ;;  %1201 = vrcp.f32 %v364_v52  ;;  %v363_v31 = vadd.f32 1e-05, %v341_v16  ;;  %v73_v43 = vsel %vm71_vm7, %v72_v6, %v70_v58  ;;  %v65_v36 = vand.u32 2147483648, %v1513_v53  ;;  %v765_v52 = vld [vmem:[#allocation2 + $0x11] sm:$0xff]  ;;  %v593_v16 = vld [vmem:[#allocation2 + $0x2] sm:$0xff] }
  0xc7   :  { %v1190_v59 = vpop.eup %1189  ;;  %v117_v61 = vadd.f32 1e-05, %v73_v43  ;;  %1203 = vrsqrt.f32 %v1583_v13  ;;  %v63_v1 = vsel %vm62_vm8, %v1513_v53, %v61_v62  ;;  %v93_v45 = vand.u32 2147483648, %v1583_v13  ;;  %v1634_v43 = vpop.xlane.xlu1 %58  ;;  %v936_v62 = vld [vmem:[#allocation2 + $0x10] sm:$0xff] }
  0xc8   :  { %v1192_v63 = vpop.eup %1191  ;;  %v392_v51 = vmul.f32 %v1190_v59, %v1320_v37  ;;  %1205 = vrcp.f32 %v363_v31  ;;  %v66_v15 = vsel %vm64_vm9, %v65_v36, %v63_v1  ;;  %v79_v37 = vand.u32 2147483648, %v1546_v50 }
  0xc9   :  { %v1194_v9 = vpop.eup %1193  ;;  %v391_v0 = vmul.f32 %v1192_v63, %v1322_v38  ;;  %1207 = vrcp.f32 %v117_v61  ;;  %v116_v32 = vadd.f32 1e-05, %v66_v15  ;;  %vm104_vm3 = vcmp.eq.f32.partialorder %v1623_v8, inf }
  0xca   :  { %v1196_v14 = vpop.eup %1195  ;;  %408 = vst.msk [vmem:[#allocation2 + $0x58] sm:$0x7] %vm191_vm1, %v392_v51  ;;  %v82_v53 = vmul.f32 %v1194_v9, %v1539_v29  ;;  %v764_v51 = vld [vmem:[#allocation2 + $0x1] sm:$0xff]  ;;  %vm106_vm4 = vcmp.eq.f32.partialorder %v1623_v8, 0.0  ;;  %vm111_vm5 = vcmp.eq.f32.partialorder %v1634_v43, inf  ;;  %vm113_vm6 = vcmp.eq.f32.partialorder %v1634_v43, 0.0 }
  0xcb   :  { %v1198_v10 = vpop.eup %1197  ;;  %407 = vst.msk [vmem:[#allocation2 + $0x50] sm:$0xff] %vm35_vm0, %v391_v0  ;;  %v75_v17 = vmul.f32 %v1196_v14, %v1546_v50  ;;  %1209 = vrcp.f32 %v116_v32  ;;  %vm577_vm7 = vcmask 1042434   ;;  %vm579_vm8 = vcmask 1043459  }
  0xcc   :  { %v394_v38 = vmul.f32 %v1198_v10, %v1330_v41  ;;  %1211 = vrsqrt.f32 %v1607_v22  ;;  %vm581_vm9 = vcmask 1044484  }
  0xcd   :  { %v77_v20 = vsel %vm76_vm10, %v1546_v50, %v75_v17  ;;  %v84_v50 = vsel %vm83_vm12, %v1539_v29, %v82_v53  ;;  %v935_v17 = vld [vmem:[#allocation2] sm:$0xff]  ;;  %vm583_vm10 = vcmask 1045509   ;;  %vm587_vm12 = vcmask 1047559  }
  0xce   :  { %410 = vst.msk [vmem:[#allocation2 + $0x68] sm:$0x7] %vm191_vm1, %v394_v38  ;;  %v80_v23 = vsel %vm78_vm11, %v79_v37, %v77_v20  ;;  %v595_v37 = vld [vmem:[#allocation2 + $0x22] sm:$0xff]  ;;  %vm585_vm11 = vcmask 1046534  }
  0xcf   :  { %v1200_v24 = vpop.eup %1199  ;;  %v118_v26 = vadd.f32 1e-05, %v80_v23 }
  0xd0   :  { %v1202_v3 = vpop.eup %1201  ;;  %v393_v18 = vmul.f32 %v1200_v24, %v1332_v42  ;;  %v87_v42 = vsel %vm85_vm13, %v86_v27, %v84_v50  ;;  %v937_v24 = vld [vmem:[#allocation2 + $0x20] sm:$0xff]  ;;  %vm591_vm13 = vcmask 60416  }
  0xd1   :  { %v1204_v41 = vpop.eup %1203  ;;  %v396_v28 = vmul.f32 %v1202_v3, %v1343_v48  ;;  %1213 = vrcp.f32 %v118_v26  ;;  %v119_v39 = vadd.f32 1e-05, %v87_v42  ;;  %v107_v26 = vand.u32 2147483648, %v1623_v8 }
  0xd2   :  { %v1206_v19 = vpop.eup %1205  ;;  %409 = vst.msk [vmem:[#allocation2 + $0x60] sm:$0xff] %vm35_vm0, %v393_v18  ;;  %v89_v48 = vmul.f32 %v1204_v41, %v1583_v13  ;;  %1215 = vrsqrt.f32 %v1623_v8  ;;  %v415_v18 = vld [vmem:[#allocation2 + $0x23] sm:$0xff] }
  0xd3   :  { %v1208_v55 = vpop.eup %1207  ;;  %412 = vst.msk [vmem:[#allocation2 + $0x78] sm:$0x7] %vm191_vm1, %v396_v28  ;;  %v395_v33 = vmul.f32 %v1206_v19, %v1345_v49  ;;  %vm92_vm1 = vcmp.eq.f32.partialorder %v1583_v13, 0.0  ;;  %1217 = vrcp.f32 %v119_v39 }
  0xd4   :  { %v133_v4 = vmul.f32 %v1208_v55, %v1358_v56  ;;  %v91_v30 = vsel %vm90_vm14, %v1583_v13, %v89_v48  ;;  %1219 = vrsqrt.f32 %v1634_v43  ;;  %v766_v48 = vld [vmem:[#allocation2 + $0x21] sm:$0xff] }
  0xd5   :  { %411 = vst.msk [vmem:[#allocation2 + $0x70] sm:$0xff] %vm35_vm0, %v395_v33  ;;  %v1210_v35 = vpop.eup %1209  ;;  %v94_v54 = vsel %vm92_vm1, %v93_v45, %v91_v30  ;;  %v596_v33 = vld [vmem:[#allocation2 + $0x32] sm:$0xff]  ;;  %v114_v45 = vand.u32 2147483648, %v1634_v43 }
  0xd6   :  { %v422_v29 = vmul.f32 %v414_v34, %v133_v4  ;;  %v602_v56 = vmul.f32 %v594_v44, %v133_v4  ;;  %v132_v46 = vmul.f32 %v1210_v35, %v1364_v60  ;;  %v1212_v47 = vpop.eup %1211  ;;  %v773_v58 = vmul.f32 %v765_v52, %v133_v4  ;;  %v938_v44 = vld [vmem:[#allocation2 + $0x30] sm:$0xff]  ;;  %v597_v52 = vld [vmem:[#allocation2 + $0x42] sm:$0xff] }
  0xd7   :  { %v96_v31 = vmul.f32 %v1212_v47, %v1607_v22  ;;  %v100_v60 = vand.u32 2147483648, %v1607_v22  ;;  %v120_v61 = vadd.f32 1e-05, %v94_v54  ;;  %v944_v36 = vmul.f32 %v936_v62, %v133_v4 }
  0xd8   :  { %v432_v49 = vsel %vm35_vm0, %v422_v29, 0.0  ;;  %v421_v57 = vmul.f32 %v413_v5, %v132_v46  ;;  %v612_v6 = vsel %vm35_vm0, %v602_v56, 0.0  ;;  %v601_v59 = vmul.f32 %v593_v16, %v132_v46  ;;  %v416_v56 = vld [vmem:[#allocation2 + $0x33] sm:$0xff] }
  0xd9   :  { %433 = vadd.xlane.f32.xlu1 %v432_v49  ;;  %v783_v63 = vsel %vm35_vm0, %v773_v58, 0.0  ;;  %v98_v0 = vsel %vm97_vm15, %v1607_v22, %v96_v31  ;;  %v772_v14 = vmul.f32 %v764_v51, %v132_v46  ;;  %1221 = vrcp.f32 %v120_v61  ;;  %v767_v16 = vld [vmem:[#allocation2 + $0x31] sm:$0xff] }
  0xda   :  { %v429_v13 = vsel %vm35_vm0, %v421_v57, 0.0  ;;  %v609_v1 = vsel %vm35_vm0, %v601_v59, 0.0  ;;  %v101_v10 = vsel %vm99_vm2, %v100_v60, %v98_v0  ;;  %v954_v32 = vsel %vm35_vm0, %v944_v36, 0.0  ;;  %v417_v60 = vld [vmem:[#allocation2 + $0x43] sm:$0xff]  ;;  %v598_v36 = vld [vmem:[#allocation2 + $0x52] sm:$0xff] }
  0xdb   :  { %v1214_v40 = vpop.eup %1213  ;;  %430 = vadd.xlane.f32.xlu0 %v429_v13  ;;  %v780_v20 = vsel %vm35_vm0, %v772_v14, 0.0  ;;  %v943_v22 = vmul.f32 %v935_v17, %v132_v46  ;;  %v121_v23 = vadd.f32 1e-05, %v101_v10  ;;  %v768_v0 = vld [vmem:[#allocation2 + $0x41] sm:$0xff]  ;;  %v940_v10 = vld [vmem:[#allocation2 + $0x50] sm:$0xff] }
  0xdc   :  { %v134_v9 = vmul.f32 %v1214_v40, %v1377_v7  ;;  %v1216_v15 = vpop.eup %1215 }
  0xdd   :  { %613 = vadd.xlane.f32.xlu1 %v612_v6  ;;  %v1218_v53 = vpop.eup %1217  ;;  %v103_v7 = vmul.f32 %v1216_v15, %v1623_v8  ;;  %v951_v50 = vsel %vm35_vm0, %v943_v22, 0.0  ;;  %1223 = vrcp.f32 %v121_v23  ;;  %v769_v23 = vld [vmem:[#allocation2 + $0x51] sm:$0xff] }
  0xde   :  { %v603_v38 = vmul.f32 %v595_v37, %v134_v9  ;;  %v945_v27 = vmul.f32 %v937_v24, %v134_v9  ;;  %v135_v41 = vmul.f32 %v1218_v53, %v1375_v2  ;;  %v423_v19 = vmul.f32 %v415_v18, %v134_v9  ;;  %v1220_v55 = vpop.eup %1219 }
  0xdf   :  { %610 = vadd.xlane.f32.xlu0 %v609_v1  ;;  %v105_v28 = vsel %vm104_vm3, %v1623_v8, %v103_v7  ;;  %v110_v2 = vmul.f32 %v1220_v55, %v1634_v43  ;;  %v774_v8 = vmul.f32 %v766_v48, %v134_v9 }
  0xe0   :  { %v615_v3 = vsel %vm35_vm0, %v603_v38, 0.0  ;;  %v108_v42 = vsel %vm106_vm4, %v107_v26, %v105_v28  ;;  %v957_v4 = vsel %vm35_vm0, %v945_v27, 0.0  ;;  %v604_v34 = vmul.f32 %v596_v33, %v135_v41  ;;  %v941_v27 = vld [vmem:[#allocation2 + $0x60] sm:$0xff]  ;;  %v600_v33 = vld [vmem:[#allocation2 + $0x72] sm:$0xff] }
  0xe1   :  { %784 = vadd.xlane.f32.xlu1 %v783_v63  ;;  %v435_v35 = vsel %vm35_vm0, %v423_v19, 0.0  ;;  %v122_v39 = vadd.f32 1e-05, %v108_v42  ;;  %v946_v30 = vmul.f32 %v938_v44, %v135_v41  ;;  %v112_v47 = vsel %vm111_vm5, %v1634_v43, %v110_v2  ;;  %v939_v43 = vld [vmem:[#allocation2 + $0x40] sm:$0xff]  ;;  %v942_v2 = vld [vmem:[#allocation2 + $0x70] sm:$0xff] }
  0xe2   :  { %v618_v49 = vsel %vm35_vm0, %v604_v34, 0.0  ;;  %v786_v5 = vsel %vm35_vm0, %v774_v8, 0.0  ;;  %v424_v57 = vmul.f32 %v416_v56, %v135_v41  ;;  %v115_v54 = vsel %vm113_vm6, %v114_v45, %v112_v47  ;;  %v420_v8 = vld [vmem:[#allocation2 + $0x73] sm:$0xff] }
  0xe3   :  { %781 = vadd.xlane.f32.xlu0 %v780_v20  ;;  %v1222_v29 = vpop.eup %1221  ;;  %1225 = vrcp.f32 %v122_v39  ;;  %v960_v6 = vsel %vm35_vm0, %v946_v30, 0.0  ;;  %v123_v13 = vadd.f32 1e-05, %v115_v54  ;;  %v599_v20 = vld [vmem:[#allocation2 + $0x62] sm:$0xff] }
  0xe4   :  { %v136_v46 = vmul.f32 %v1222_v29, %v1384_v12  ;;  %v438_v31 = vsel %vm35_vm0, %v424_v57, 0.0  ;;  %v775_v12 = vmul.f32 %v767_v16, %v135_v41 }
  0xe5   :  { %955 = vadd.xlane.f32.xlu1 %v954_v32  ;;  %1227 = vrcp.f32 %v123_v13  ;;  %v418_v32 = vld [vmem:[#allocation2 + $0x53] sm:$0xff] }
  0xe6   :  { %v605_v58 = vmul.f32 %v597_v52, %v136_v46  ;;  %v947_v61 = vmul.f32 %v939_v43, %v136_v46  ;;  %v789_v63 = vsel %vm35_vm0, %v775_v12, 0.0  ;;  %v425_v51 = vmul.f32 %v417_v60, %v136_v46 }
  0xe7   :  { %952 = vadd.xlane.f32.xlu0 %v951_v50  ;;  %v1224_v40 = vpop.eup %1223  ;;  %v776_v37 = vmul.f32 %v768_v0, %v136_v46 }
  0xe8   :  { %v621_v59 = vsel %vm35_vm0, %v605_v58, 0.0  ;;  %v137_v62 = vmul.f32 %v1224_v40, %v1382_v11  ;;  %v963_v9 = vsel %vm35_vm0, %v947_v61, 0.0  ;;  %v441_v15 = vsel %vm35_vm0, %v425_v51, 0.0 }
  0xe9   :  { %616 = vadd.xlane.f32.xlu1 %v615_v3  ;;  %v792_v53 = vsel %vm35_vm0, %v776_v37, 0.0  ;;  %v1229_v58 = vmov 839922192  }
  0xea   :  { %v606_v1 = vmul.f32 %v598_v36, %v137_v62  ;;  %v948_v17 = vmul.f32 %v940_v10, %v137_v62  ;;  %v426_v7 = vmul.f32 %v418_v32, %v137_v62  ;;  %v777_v18 = vmul.f32 %v769_v23, %v137_v62 }
  0xeb   :  { %436 = vadd.xlane.f32.xlu0 %v435_v35  ;;  %v478_v40 = vunpack.c.l.s4 %v1229_v58 }
  0xec   :  { %v624_v11 = vsel %vm35_vm0, %v606_v1, 0.0  ;;  %v966_v22 = vsel %vm35_vm0, %v948_v17, 0.0  ;;  %v444_v3 = vsel %vm35_vm0, %v426_v7, 0.0  ;;  %v795_v19 = vsel %vm35_vm0, %v777_v18, 0.0 }
  0xed   :  { %958 = vadd.xlane.f32.xlu1 %v957_v4  ;;  %v1226_v14 = vpop.eup %1225  ;;  %v770_v4 = vld [vmem:[#allocation2 + $0x61] sm:$0xff]  ;;  %v479_v43 = vunpack.c.0.s8 %v478_v40 }
  0xee   :  { %v138_v38 = vmul.f32 %v1226_v14, %v1403_v25  ;;  %v419_v25 = vld [vmem:[#allocation2 + $0x63] sm:$0xff] }
  0xef   :  { %787 = vadd.xlane.f32.xlu0 %v786_v5  ;;  %v1228_v26 = vpop.eup %1227 }
  0xf0   :  { %v607_v24 = vmul.f32 %v599_v20, %v138_v38  ;;  %v949_v28 = vmul.f32 %v941_v27, %v138_v38  ;;  %v139_v50 = vmul.f32 %v1228_v26, %v1397_v21  ;;  %v427_v55 = vmul.f32 %v419_v25, %v138_v38 }
  0xf1   :  { %619 = vadd.xlane.f32.xlu1 %v618_v49  ;;  %v778_v29 = vmul.f32 %v770_v4, %v138_v38  ;;  %v771_v49 = vld [vmem:[#allocation2 + $0x71] sm:$0xff] }
  0xf2   :  { %v627_v41 = vsel %vm35_vm0, %v607_v24, 0.0  ;;  %v969_v42 = vsel %vm35_vm0, %v949_v28, 0.0  ;;  %v608_v48 = vmul.f32 %v600_v33, %v139_v50  ;;  %v447_v34 = vsel %vm35_vm0, %v427_v55, 0.0 }
  0xf3   :  { %439 = vadd.xlane.f32.xlu0 %v438_v31  ;;  %v950_v21 = vmul.f32 %v942_v2, %v139_v50  ;;  %v798_v39 = vsel %vm35_vm0, %v778_v29, 0.0  ;;  %v428_v44 = vmul.f32 %v420_v8, %v139_v50  ;;  %v779_v30 = vmul.f32 %v771_v49, %v139_v50 }
  0xf4   :  { %v630_v35 = vsel %vm35_vm0, %v608_v48, 0.0  ;;  %v480_v31 = vlaneseq }
  0xf5   :  { %961 = vadd.xlane.f32.xlu1 %v960_v6  ;;  %v972_v45 = vsel %vm35_vm0, %v950_v21, 0.0  ;;  %v450_v56 = vsel %vm35_vm0, %v428_v44, 0.0  ;;  %v801_v46 = vsel %vm35_vm0, %v779_v30, 0.0  ;;  %vm575_vm0 = vcmask 1041409  }
  0xf6   :  { %v542_v32 = vand.u32 127, %v480_v31 }
  0xf7   :  { %790 = vadd.xlane.f32.xlu0 %v789_v63 }
  0xf9   :  { %622 = vadd.xlane.f32.xlu1 %v621_v59  ;;  %v481_v59 = vshrl.u32 %v480_v31, 7 }
  0xfb   :  { %442 = vadd.xlane.f32.xlu0 %v441_v15  ;;  %v1687_v36 = vsub.s32 %v479_v43, %v481_v59  ;;  %v1692_v25 = vsub.s32 %v542_v32, %v481_v59 }
  0xfd   :  { %964 = vadd.xlane.f32.xlu1 %v963_v9 }
  0xff   :  { %793 = vadd.xlane.f32.xlu0 %v792_v53 }
 0x101   :  { %625 = vadd.xlane.f32.xlu1 %v624_v11 }
 0x103   :  { %445 = vadd.xlane.f32.xlu0 %v444_v3 }
 0x105   :  { %967 = vadd.xlane.f32.xlu1 %v966_v22 }
 0x107   :  { %796 = vadd.xlane.f32.xlu0 %v795_v19 }
 0x109   :  { %628 = vadd.xlane.f32.xlu1 %v627_v41 }
 0x10b   :  { %448 = vadd.xlane.f32.xlu0 %v447_v34 }
 0x10d   :  { %970 = vadd.xlane.f32.xlu1 %v969_v42 }
 0x10f   :  { %799 = vadd.xlane.f32.xlu0 %v798_v39 }
 0x111   :  { %631 = vadd.xlane.f32.xlu1 %v630_v35 }
 0x113   :  { %451 = vadd.xlane.f32.xlu0 %v450_v56 }
 0x115   :  { %973 = vadd.xlane.f32.xlu1 %v972_v45 }
 0x117   :  { %802 = vadd.xlane.f32.xlu0 %v801_v46 }
 0x166   :  { %v434_v47 = vpop.xlane.xlu1 %433 }
 0x167   :  { %v454_v60 = vmul.f32 0.020833334, %v434_v47 }
 0x168   :  { %v431_v57 = vpop.xlane.xlu0 %430 }
 0x169   :  { %v453_v61 = vmul.f32 0.020833334, %v431_v57  ;;  %v462_v9 = vpack.c.bf16 %v454_v60, %v454_v60 }
 0x16a   :  { %v614_v5 = vpop.xlane.xlu1 %613 }
 0x16b   :  { %v634_v51 = vmul.f32 0.020833334, %v614_v5  ;;  %v461_v0 = vpack.c.bf16 %v453_v61, %v453_v61  ;;  %v490_v17 = vrot.slane %v462_v9, %v1687_v36 }
 0x16c   :  { %v611_v54 = vpop.xlane.xlu0 %610 }
 0x16d   :  { %v633_v15 = vmul.f32 0.020833334, %v611_v54  ;;  %v642_v11 = vpack.c.bf16 %v634_v51, %v634_v51  ;;  %v483_v38 = vrot.slane %v461_v0, %v1687_v36  ;;  %v534_v28 = vunpack.c.l.b16 %v490_v17 }
 0x16e   :  { %v785_v52 = vpop.xlane.xlu1 %784 }
 0x16f   :  { %v805_v1 = vmul.f32 0.020833334, %v785_v52  ;;  %v641_v24 = vpack.c.bf16 %v633_v15, %v633_v15  ;;  %v670_v27 = vrot.slane %v642_v11, %v1687_v36  ;;  %v533_v50 = vunpack.c.l.b16 %v483_v38 }
 0x170   :  { %v782_v16 = vpop.xlane.xlu0 %781  ;;  %v550_v45 = vrot.slane %v534_v28, %v1692_v25 }
 0x171   :  { %v804_v37 = vmul.f32 0.020833334, %v782_v16  ;;  %v813_v7 = vpack.c.bf16 %v805_v1, %v805_v1  ;;  %v663_v34 = vrot.slane %v641_v24, %v1687_v36  ;;  %v714_v8 = vunpack.c.l.b16 %v670_v27 }
 0x172   :  { %v956_v6 = vpop.xlane.xlu1 %955  ;;  %v546_v49 = vrot.slane %v533_v50, %v1692_v25 }
 0x173   :  { %v976_v20 = vmul.f32 0.020833334, %v956_v6  ;;  %v812_v26 = vpack.c.bf16 %v804_v37, %v804_v37  ;;  %v841_v55 = vrot.slane %v813_v7, %v1687_v36  ;;  %v713_v54 = vunpack.c.l.b16 %v663_v34 }
 0x174   :  { %v953_v13 = vpop.xlane.xlu0 %952  ;;  %v728_v40 = vrot.slane %v714_v8, %v1692_v25  ;;  %v576_v43 = vsel %vm575_vm0, %v550_v45, %v546_v49 }
 0x175   :  { %v975_v22 = vmul.f32 0.020833334, %v953_v13  ;;  %v984_v33 = vpack.c.bf16 %v976_v20, %v976_v20  ;;  %v834_v29 = vrot.slane %v812_v26, %v1687_v36  ;;  %v885_v46 = vunpack.c.l.b16 %v841_v55 }
 0x176   :  { %v617_v12 = vpop.xlane.xlu1 %616  ;;  %v724_v1 = vrot.slane %v713_v54, %v1692_v25 }
 0x177   :  { %v635_v53 = vmul.f32 0.020833334, %v617_v12  ;;  %v983_v42 = vpack.c.bf16 %v975_v22, %v975_v22  ;;  %v1012_v47 = vrot.slane %v984_v33, %v1687_v36  ;;  %v884_v6 = vunpack.c.l.b16 %v834_v29 }
 0x178   :  { %v437_v63 = vpop.xlane.xlu0 %436  ;;  %v753_v27 = vsel %vm575_vm0, %v728_v40, %v724_v1 }
 0x179   :  { %v455_v41 = vmul.f32 0.020833334, %v437_v63  ;;  %v643_v19 = vpack.c.bf16 %v635_v53, %v635_v53  ;;  %v1005_v5 = vrot.slane %v983_v42, %v1687_v36  ;;  %v1056_v63 = vunpack.c.l.b16 %v1012_v47 }
 0x17a   :  { %v959_v62 = vpop.xlane.xlu1 %958 }
 0x17b   :  { %v977_v3 = vmul.f32 0.020833334, %v959_v62  ;;  %v463_v21 = vpack.c.bf16 %v455_v41, %v455_v41  ;;  %v677_v56 = vrot.slane %v643_v19, %v1687_v36  ;;  %v899_v62 = vrot.slane %v885_v46, %v1692_v25 }
 0x17c   :  { %v788_v10 = vpop.xlane.xlu0 %787  ;;  %v1055_v51 = vunpack.c.l.b16 %v1005_v5 }
 0x17d   :  { %v985_v2 = vpack.c.bf16 %v977_v3, %v977_v3  ;;  %v806_v39 = vmul.f32 0.020833334, %v788_v10  ;;  %v497_v31 = vrot.slane %v463_v21, %v1687_v36  ;;  %v715_v59 = vunpack.c.l.b16 %v677_v56 }
 0x17e   :  { %v620_v14 = vpop.xlane.xlu1 %619  ;;  %v1066_v24 = vrot.slane %v1055_v51, %v1692_v25 }
 0x17f   :  { %v636_v4 = vmul.f32 0.020833334, %v620_v14  ;;  %v1019_v16 = vrot.slane %v985_v2, %v1687_v36  ;;  %v814_v12 = vpack.c.bf16 %v806_v39, %v806_v39  ;;  %v895_v14 = vrot.slane %v884_v6, %v1692_v25 }
 0x180   :  { %v440_v18 = vpop.xlane.xlu0 %439  ;;  %v535_v11 = vunpack.c.l.b16 %v497_v31  ;;  %v732_v53 = vrot.slane %v715_v59, %v1692_v25 }
 0x181   :  { %v456_v30 = vmul.f32 0.020833334, %v440_v18  ;;  %v644_v57 = vpack.c.bf16 %v636_v4, %v636_v4  ;;  %v1057_v15 = vunpack.c.l.b16 %v1019_v16  ;;  %v848_v32 = vrot.slane %v814_v12, %v1687_v36 }
 0x182   :  { %v962_v23 = vpop.xlane.xlu1 %961  ;;  %v1718_v41 = vsel %vm575_vm0, %v899_v62, %v895_v14  ;;  %v554_v55 = vrot.slane %v535_v11, %v1692_v25 }
 0x183   :  { %v978_v44 = vmul.f32 0.020833334, %v962_v23  ;;  %v464_v60 = vpack.c.bf16 %v456_v30, %v456_v30  ;;  %v684_v9 = vrot.slane %v644_v57, %v1687_v36  ;;  %v1070_v23 = vrot.slane %v1056_v63, %v1692_v25 }
 0x184   :  { %v791_v35 = vpop.xlane.xlu0 %790  ;;  %v1074_v28 = vrot.slane %v1057_v15, %v1692_v25  ;;  %v886_v33 = vunpack.c.l.b16 %v848_v32  ;;  %v578_v47 = vsel %vm577_vm7, %v554_v55, %v576_v43 }
 0x185   :  { %v986_v13 = vpack.c.bf16 %v978_v44, %v978_v44  ;;  %v807_v37 = vmul.f32 0.020833334, %v791_v35  ;;  %v504_v7 = vrot.slane %v464_v60, %v1687_v36  ;;  %v716_v26 = vunpack.c.l.b16 %v684_v9 }
 0x186   :  { %v623_v48 = vpop.xlane.xlu1 %622  ;;  %v1095_v35 = vsel %vm575_vm0, %v1070_v23, %v1066_v24  ;;  %v1730_v5 = vrot.slane %v886_v33, %v1692_v25 }
 0x187   :  { %v637_v61 = vmul.f32 0.020833334, %v623_v48  ;;  %v1026_v17 = vrot.slane %v986_v13, %v1687_v36  ;;  %v815_v50 = vpack.c.bf16 %v807_v37, %v807_v37  ;;  %v754_v48 = vsel %vm577_vm7, %v732_v53, %v753_v27 }
 0x188   :  { %v443_v58 = vpop.xlane.xlu0 %442  ;;  %v536_v34 = vunpack.c.l.b16 %v504_v7  ;;  %v736_v8 = vrot.slane %v716_v26, %v1692_v25  ;;  %v1096_v45 = vsel %vm577_vm7, %v1074_v28, %v1095_v35 }
 0x189   :  { %v645_v20 = vpack.c.bf16 %v637_v61, %v637_v61  ;;  %v457_v22 = vmul.f32 0.020833334, %v443_v58  ;;  %v1058_v42 = vunpack.c.l.b16 %v1026_v17  ;;  %v855_v49 = vrot.slane %v815_v50, %v1687_v36 }
 0x18a   :  { %v965_v52 = vpop.xlane.xlu1 %964  ;;  %v558_v54 = vrot.slane %v536_v34, %v1692_v25  ;;  %v755_v40 = vsel %vm579_vm8, %v736_v8, %v754_v48 }
 0x18b   :  { %v979_v38 = vmul.f32 0.020833334, %v965_v52  ;;  %v691_v29 = vrot.slane %v645_v20, %v1687_v36  ;;  %v465_v2 = vpack.c.bf16 %v457_v22, %v457_v22  ;;  %v1078_v57 = vrot.slane %v1058_v42, %v1692_v25 }
 0x18c   :  { %v794_v10 = vpop.xlane.xlu0 %793  ;;  %v887_v59 = vunpack.c.l.b16 %v855_v49  ;;  %v580_v14 = vsel %vm579_vm8, %v558_v54, %v578_v47 }
 0x18d   :  { %v987_v4 = vpack.c.bf16 %v979_v38, %v979_v38  ;;  %v717_v6 = vunpack.c.l.b16 %v691_v29  ;;  %v511_v16 = vrot.slane %v465_v2, %v1687_v36  ;;  %v808_v31 = vmul.f32 0.020833334, %v794_v10 }
 0x18e   :  { %v626_v0 = vpop.xlane.xlu1 %625  ;;  %v1097_v51 = vsel %vm579_vm8, %v1078_v57, %v1096_v45  ;;  %v1744_v7 = vrot.slane %v887_v59, %v1692_v25 }
 0x18f   :  { %v638_v3 = vmul.f32 0.020833334, %v626_v0  ;;  %v1033_v52 = vrot.slane %v987_v4, %v1687_v36  ;;  %v740_v15 = vrot.slane %v717_v6, %v1692_v25  ;;  %v537_v37 = vunpack.c.l.b16 %v511_v16 }
 0x190   :  { %v446_v19 = vpop.xlane.xlu0 %445  ;;  %v816_v11 = vpack.c.bf16 %v808_v31, %v808_v31 }
 0x191   :  { %v646_v21 = vpack.c.bf16 %v638_v3, %v638_v3  ;;  %v458_v56 = vmul.f32 0.020833334, %v446_v19  ;;  %v1059_v9 = vunpack.c.l.b16 %v1033_v52  ;;  %v756_v28 = vsel %vm581_vm9, %v740_v15, %v755_v40 }
 0x192   :  { %v968_v18 = vpop.xlane.xlu1 %967  ;;  %v562_v50 = vrot.slane %v537_v37, %v1692_v25  ;;  %v862_v33 = vrot.slane %v816_v11, %v1687_v36 }
 0x193   :  { %v980_v39 = vmul.f32 0.020833334, %v968_v18  ;;  %v698_v12 = vrot.slane %v646_v21, %v1687_v36  ;;  %v466_v60 = vpack.c.bf16 %v458_v56, %v458_v56  ;;  %v1082_v26 = vrot.slane %v1059_v9, %v1692_v25 }
 0x194   :  { %v797_v30 = vpop.xlane.xlu0 %796  ;;  %v888_v57 = vunpack.c.l.b16 %v862_v33  ;;  %v582_v9 = vsel %vm581_vm9, %v562_v50, %v580_v14 }
 0x195   :  { %v988_v13 = vpack.c.bf16 %v980_v39, %v980_v39  ;;  %v809_v61 = vmul.f32 0.020833334, %v797_v30  ;;  %v718_v32 = vunpack.c.l.b16 %v698_v12  ;;  %v518_v20 = vrot.slane %v466_v60, %v1687_v36 }
 0x196   :  { %v629_v44 = vpop.xlane.xlu1 %628  ;;  %v1098_v39 = vsel %vm581_vm9, %v1082_v26, %v1097_v51  ;;  %v911_v37 = vrot.slane %v888_v57, %v1692_v25 }
 0x197   :  { %v639_v46 = vmul.f32 0.020833334, %v629_v44  ;;  %v1040_v17 = vrot.slane %v988_v13, %v1687_v36  ;;  %v817_v22 = vpack.c.bf16 %v809_v61, %v809_v61  ;;  %v744_v42 = vrot.slane %v718_v32, %v1692_v25 }
 0x198   :  { %v449_v62 = vpop.xlane.xlu0 %448  ;;  %v538_v29 = vunpack.c.l.b16 %v518_v20  ;;  %v925_v20 = vsel %vm577_vm7, %v1730_v5, %v1718_v41 }
 0x199   :  { %v647_v58 = vpack.c.bf16 %v639_v46, %v639_v46  ;;  %v459_v1 = vmul.f32 0.020833334, %v449_v62  ;;  %v1060_v4 = vunpack.c.l.b16 %v1040_v17  ;;  %v869_v2 = vrot.slane %v817_v22, %v1687_v36 }
 0x19a   :  { %v971_v43 = vpop.xlane.xlu1 %970  ;;  %v757_v52 = vsel %vm583_vm10, %v744_v42, %v756_v28  ;;  %v566_v16 = vrot.slane %v538_v29, %v1692_v25  ;;  %v926_v26 = vsel %vm579_vm8, %v1744_v7, %v925_v20 }
 0x19b   :  { %v981_v63 = vmul.f32 0.020833334, %v971_v43  ;;  %v705_v0 = vrot.slane %v647_v58, %v1687_v36  ;;  %v467_v38 = vpack.c.bf16 %v459_v1, %v459_v1  ;;  %v1086_v54 = vrot.slane %v1060_v4, %v1692_v25 }
 0x19c   :  { %v800_v23 = vpop.xlane.xlu0 %799  ;;  %v889_v58 = vunpack.c.l.b16 %v869_v2  ;;  %v927_v28 = vsel %vm581_vm9, %v911_v37, %v926_v26 }
 0x19d   :  { %v989_v10 = vpack.c.bf16 %v981_v63, %v981_v63  ;;  %v719_v3 = vunpack.c.l.b16 %v705_v0  ;;  %v810_v27 = vmul.f32 0.020833334, %v800_v23  ;;  %v525_v19 = vrot.slane %v467_v38, %v1687_v36 }
 0x19e   :  { %v632_v53 = vpop.xlane.xlu1 %631  ;;  %v1099_v11 = vsel %vm583_vm10, %v1086_v54, %v1098_v39  ;;  %v915_v17 = vrot.slane %v889_v58, %v1692_v25 }
 0x19f   :  { %v640_v24 = vmul.f32 0.020833334, %v632_v53  ;;  %v1047_v18 = vrot.slane %v989_v10, %v1687_v36  ;;  %v818_v48 = vpack.c.bf16 %v810_v27, %v810_v27  ;;  %v748_v44 = vrot.slane %v719_v3, %v1692_v25 }
 0x1a0   :  { %v452_v8 = vpop.xlane.xlu0 %451  ;;  %v539_v56 = vunpack.c.l.b16 %v525_v19  ;;  %v584_v10 = vsel %vm583_vm10, %v566_v16, %v582_v9  ;;  %v928_v50 = vsel %vm583_vm10, %v915_v17, %v927_v28 }
 0x1a1   :  { %v648_v55 = vpack.c.bf16 %v640_v24, %v640_v24  ;;  %v1061_v45 = vunpack.c.l.b16 %v1047_v18  ;;  %v460_v49 = vmul.f32 0.020833334, %v452_v8  ;;  %v876_v30 = vrot.slane %v818_v48, %v1687_v36 }
 0x1a2   :  { %v974_v34 = vpop.xlane.xlu1 %973  ;;  %v758_v13 = vsel %vm585_vm11, %v748_v44, %v757_v52  ;;  %v570_v61 = vrot.slane %v539_v56, %v1692_v25 }
 0x1a3   :  { %v712_v35 = vrot.slane %v648_v55, %v1687_v36  ;;  %v982_v21 = vmul.f32 0.020833334, %v974_v34  ;;  %v468_v6 = vpack.c.bf16 %v460_v49, %v460_v49  ;;  %v1090_v43 = vrot.slane %v1061_v45, %v1692_v25 }
 0x1a4   :  { %v803_v12 = vpop.xlane.xlu0 %802  ;;  %v890_v62 = vunpack.c.l.b16 %v876_v30  ;;  %v586_v22 = vsel %vm585_vm11, %v570_v61, %v584_v10 }
 0x1a5   :  { %v720_v46 = vunpack.c.l.b16 %v712_v35  ;;  %v990_v47 = vpack.c.bf16 %v982_v21, %v982_v21  ;;  %v532_v59 = vrot.slane %v468_v6, %v1687_v36  ;;  %v811_v60 = vmul.f32 0.020833334, %v803_v12 }
 0x1a6   :  { %v1100_v38 = vsel %vm585_vm11, %v1090_v43, %v1099_v11  ;;  %v919_v23 = vrot.slane %v890_v62, %v1692_v25 }
 0x1a7   :  { %v752_v40 = vrot.slane %v720_v46, %v1692_v25  ;;  %v1054_v31 = vrot.slane %v990_v47, %v1687_v36  ;;  %v540_v1 = vunpack.c.l.b16 %v532_v59  ;;  %v819_v15 = vpack.c.bf16 %v811_v60, %v811_v60 }
 0x1a8   :  { %v929_v5 = vsel %vm585_vm11, %v919_v23, %v928_v50 }
 0x1a9   :  { %v759_v63 = vsel %vm587_vm12, %v752_v40, %v758_v13  ;;  %v1062_v51 = vunpack.c.l.b16 %v1054_v31  ;;  %v574_v14 = vrot.slane %v540_v1, %v1692_v25  ;;  %v883_v53 = vrot.slane %v819_v15, %v1687_v36 }
 0x1aa   :  { %v760_v0 = vpack.c.b16 %v759_v63, %v759_v63 }
 0x1ab   :  { %v1094_v32 = vrot.slane %v1062_v51, %v1692_v25  ;;  %v588_v3 = vsel %vm587_vm12, %v574_v14, %v586_v22  ;;  %v891_v27 = vunpack.c.l.b16 %v883_v53 }
 0x1ac   :  { %1110 = vst.msk [vmem:[%s1810_s2 + $0x4] sm:$0xf] %vm591_vm13, %v760_v0  ;;  %v589_v36 = vpack.c.b16 %v588_v3, %v588_v3 }
 0x1ad   :  { %v1101_v24 = vsel %vm587_vm12, %v1094_v32, %v1100_v38  ;;  %v923_v41 = vrot.slane %v891_v27, %v1692_v25 }
 0x1ae   :  { %v1102_v18 = vpack.c.b16 %v1101_v24, %v1101_v24  ;;  %592 = vst.msk [vmem:[%s1810_s2] sm:$0xf] %vm591_vm13, %v589_v36 }
 0x1af   :  { %v930_v7 = vsel %vm587_vm12, %v923_v41, %v929_v5 }
 0x1b0   :  { %1112 = vst.msk [vmem:[%s1810_s2 + $0xc] sm:$0xf] %vm591_vm13, %v1102_v18  ;;  %v931_v19 = vpack.c.b16 %v930_v7, %v930_v7 }
 0x1b2   :  { %1111 = vst.msk [vmem:[%s1810_s2 + $0x8] sm:$0xf] %vm591_vm13, %v931_v19 }

// kernel: coex_forward.62
= control target key start
LH: loop header
LB: loop body
LE: loop exit
PB: predicated region body
PF: predicated region fallthrough
CT: control target
= control target key end

     0   :  { %s1348_s1 = inlined_call_operand.vmem [shape: bf16[256,128], index: 1, kind: input, shape index: {}]   ;;  %s1349_s0 = inlined_call_operand.vmem [shape: bf16[256,256], index: 0, kind: input, shape index: {}]   ;;  %s1350_s2 = inlined_call_operand.vmem [shape: f32[1,128], index: 2, kind: input, shape index: {}]   ;;  %s1351_s3 = inlined_call_operand.vmem [shape: bf16[256,128], index: 3, kind: output, shape index: {}]  }
   0x1   :  { %v1035_v0 = vld [vmem:[%s1348_s1 + $0x40] sm:$0xff]   ;;  %v1037_v2 = vld [vmem:[%s1348_s1 + $0x48] sm:$0xff]   ;;  %v1039_v4 = vld [vmem:[%s1348_s1 + $0x50] sm:$0xff]  }
   0x2   :  { %v1036_v1 = vld [vmem:[%s1348_s1] sm:$0xff]   ;;  %907 = vmatprep.subr.bf16.mxu0 %v1035_v0  ;;  %1019 = vmatprep.subr.bf16.mxu1 %v1035_v0  ;;  %v1038_v3 = vld [vmem:[%s1348_s1 + $0x8] sm:$0xff]   ;;  %v1040_v5 = vld [vmem:[%s1348_s1 + $0x10] sm:$0xff]  }
   0x3   :  { %908 = vmatpush3.bf16.msra.mxu0 %v1036_v1  ;;  %1027 = vmatpush3.bf16.msra.mxu1 %v1036_v1  ;;  %v1041_v6 = vld [vmem:[%s1348_s1 + $0x58] sm:$0xff]   ;;  %v1043_v8 = vld [vmem:[%s1348_s1 + $0x60] sm:$0xff]   ;;  %v1045_v10 = vld [vmem:[%s1348_s1 + $0x68] sm:$0xff]  }
   0x4   :  { %909 = vmatprep.subr.bf16.mxu0 %v1037_v2  ;;  %1020 = vmatprep.subr.bf16.mxu1 %v1037_v2  ;;  %v1042_v7 = vld [vmem:[%s1348_s1 + $0x18] sm:$0xff]   ;;  %v1044_v9 = vld [vmem:[%s1348_s1 + $0x20] sm:$0xff]   ;;  %v1046_v13 = vld [vmem:[%s1348_s1 + $0x28] sm:$0xff]  }
   0x5   :  { %v1053_v11 = vld [vmem:[%s1349_s0 + $0x4] ss:$8 sps:$4 sm:$0xff]   ;;  %v1047_v14 = vld [vmem:[%s1348_s1 + $0x70] sm:$0xff]   ;;  %v1049_v16 = vld [vmem:[%s1348_s1 + $0x78] sm:$0xff]  }
   0x6   :  { %v1056_v12 = vld [vmem:[%s1349_s0 + $0x84] ss:$8 sps:$4 sm:$0xff]   ;;  %374 = vmatprep.mubr.bf16.mxu0 %v1053_v11  ;;  %v1048_v15 = vld [vmem:[%s1348_s1 + $0x30] sm:$0xff]   ;;  %v1050_v17 = vld [vmem:[%s1348_s1 + $0x38] sm:$0xff]  }
   0x7   :  { %910 = vmatpush3.bf16.msra.mxu0 %v1038_v3  ;;  %1028 = vmatpush3.bf16.msra.mxu1 %v1038_v3  ;;  %v1051_v18 = vld [vmem:[%s1349_s0] ss:$8 sps:$4 sm:$0xff]   ;;  %v1057_v20 = vld [vmem:[%s1349_s0 + $0x14] ss:$8 sps:$4 sm:$0xff]   ;;  %v1061_v22 = vld [vmem:[%s1349_s0 + $0x10] ss:$8 sps:$4 sm:$0xff]  }
   0x8   :  { %911 = vmatprep.subr.bf16.mxu0 %v1039_v4  ;;  %1021 = vmatprep.subr.bf16.mxu1 %v1039_v4  ;;  %v1054_v19 = vld [vmem:[%s1349_s0 + $0x80] ss:$8 sps:$4 sm:$0xff]   ;;  %v1059_v21 = vld [vmem:[%s1349_s0 + $0x94] ss:$8 sps:$4 sm:$0xff]   ;;  %v1062_v23 = vld [vmem:[%s1349_s0 + $0x90] ss:$8 sps:$4 sm:$0xff]  }
   0x9   :  { %438 = vmatprep.mubr.bf16.mxu1 %v1056_v12  ;;  %v1063_v24 = vld [vmem:[%s1349_s0 + $0x24] ss:$8 sps:$4 sm:$0xff]   ;;  %v1067_v26 = vld [vmem:[%s1349_s0 + $0x20] ss:$8 sps:$4 sm:$0xff]   ;;  %v1069_v28 = vld [vmem:[%s1349_s0 + $0x34] ss:$8 sps:$4 sm:$0xff]  }
   0xa   :  { %v1065_v25 = vld [vmem:[%s1349_s0 + $0xa4] ss:$8 sps:$4 sm:$0xff]   ;;  %v1068_v27 = vld [vmem:[%s1349_s0 + $0xa0] ss:$8 sps:$4 sm:$0xff]   ;;  %v1071_v29 = vld [vmem:[%s1349_s0 + $0xb4] ss:$8 sps:$4 sm:$0xff]  }
   0xb   :  { %912 = vmatpush3.bf16.msra.mxu0 %v1040_v5  ;;  %1029 = vmatpush3.bf16.msra.mxu1 %v1040_v5  ;;  %v1073_v30 = vld [vmem:[%s1349_s0 + $0x30] ss:$8 sps:$4 sm:$0xff]   ;;  %v1075_v32 = vld [vmem:[%s1349_s0 + $0x44] ss:$8 sps:$4 sm:$0xff]   ;;  %v1079_v34 = vld [vmem:[%s1349_s0 + $0x40] ss:$8 sps:$4 sm:$0xff]  }
   0xc   :  { %913 = vmatprep.subr.bf16.mxu0 %v1041_v6  ;;  %1022 = vmatprep.subr.bf16.mxu1 %v1041_v6  ;;  %v1074_v31 = vld [vmem:[%s1349_s0 + $0xb0] ss:$8 sps:$4 sm:$0xff]   ;;  %v1077_v33 = vld [vmem:[%s1349_s0 + $0xc4] ss:$8 sps:$4 sm:$0xff]   ;;  %v1080_v35 = vld [vmem:[%s1349_s0 + $0xc0] ss:$8 sps:$4 sm:$0xff]  }
   0xd   :  { %v1081_v36 = vld [vmem:[%s1349_s0 + $0x54] ss:$8 sps:$4 sm:$0xff]   ;;  %v1085_v38 = vld [vmem:[%s1349_s0 + $0x50] ss:$8 sps:$4 sm:$0xff]   ;;  %v1087_v40 = vld [vmem:[%s1349_s0 + $0x64] ss:$8 sps:$4 sm:$0xff]  }
   0xe   :  { %v1083_v37 = vld [vmem:[%s1349_s0 + $0xd4] ss:$8 sps:$4 sm:$0xff]   ;;  %v1086_v39 = vld [vmem:[%s1349_s0 + $0xd0] ss:$8 sps:$4 sm:$0xff]   ;;  %v1089_v41 = vld [vmem:[%s1349_s0 + $0xe4] ss:$8 sps:$4 sm:$0xff]  }
   0xf   :  { %914 = vmatpush3.bf16.msra.mxu0 %v1042_v7  ;;  %1030 = vmatpush3.bf16.msra.mxu1 %v1042_v7  ;;  %v1091_v42 = vld [vmem:[%s1349_s0 + $0x60] ss:$8 sps:$4 sm:$0xff]   ;;  %v1093_v44 = vld [vmem:[%s1349_s0 + $0x74] ss:$8 sps:$4 sm:$0xff]   ;;  %v1097_v46 = vld [vmem:[%s1349_s0 + $0x70] ss:$8 sps:$4 sm:$0xff]  }
  0x10   :  { %915 = vmatprep.subr.bf16.mxu0 %v1043_v8  ;;  %1023 = vmatprep.subr.bf16.mxu1 %v1043_v8  ;;  %v1092_v43 = vld [vmem:[%s1349_s0 + $0xe0] ss:$8 sps:$4 sm:$0xff]   ;;  %v1095_v45 = vld [vmem:[%s1349_s0 + $0xf4] ss:$8 sps:$4 sm:$0xff]   ;;  %v1098_v47 = vld [vmem:[%s1349_s0 + $0xf0] ss:$8 sps:$4 sm:$0xff]  }
  0x11   :  { %v1266_v50 = vld [vmem:[%s1350_s2] ss:$0 sm:$0xff] }
  0x13   :  { %916 = vmatpush3.bf16.msra.mxu0 %v1044_v9  ;;  %1031 = vmatpush3.bf16.msra.mxu1 %v1044_v9 }
  0x14   :  { %917 = vmatprep.subr.bf16.mxu0 %v1045_v10  ;;  %1024 = vmatprep.subr.bf16.mxu1 %v1045_v10 }
  0x17   :  { %918 = vmatpush3.bf16.msra.mxu0 %v1046_v13  ;;  %1032 = vmatpush3.bf16.msra.mxu1 %v1046_v13 }
  0x18   :  { %919 = vmatprep.subr.bf16.mxu0 %v1047_v14  ;;  %1025 = vmatprep.subr.bf16.mxu1 %v1047_v14 }
  0x1b   :  { %920 = vmatpush3.bf16.msra.mxu0 %v1048_v15  ;;  %1033 = vmatpush3.bf16.msra.mxu1 %v1048_v15 }
  0x1c   :  { %921 = vmatprep.subr.bf16.mxu0 %v1049_v16  ;;  %1026 = vmatprep.subr.bf16.mxu1 %v1049_v16 }
  0x1f   :  { %922 = vmatpush3.bf16.msra.mxu0 %v1050_v17  ;;  %1034 = vmatpush3.bf16.msra.mxu1 %v1050_v17 }
  0x22   :  { %375 = vmatmul.mubr.bf16.vlgmr.msra.gmra.mrb[0].mxu0 %v1051_v18  ;;  %439 = vmatmul.mubr.bf16.vlgmr.msra.gmra.mrb[0].mxu1 %v1054_v19 }
  0x23   :  { %382 = vmatprep.mubr.bf16.mxu0 %v1057_v20  ;;  %446 = vmatprep.mubr.bf16.mxu1 %v1059_v21 }
  0x2a   :  { %383 = vmatmul.mubr.bf16.gmra.mrb[4].mxu0 %v1061_v22  ;;  %447 = vmatmul.mubr.bf16.gmra.mrb[4].mxu1 %v1062_v23 }
  0x2b   :  { %390 = vmatprep.mubr.bf16.mxu0 %v1063_v24  ;;  %454 = vmatprep.mubr.bf16.mxu1 %v1065_v25 }
  0x32   :  { %391 = vmatmul.mubr.bf16.gmra.mrb[8].mxu0 %v1067_v26  ;;  %455 = vmatmul.mubr.bf16.gmra.mrb[8].mxu1 %v1068_v27 }
  0x33   :  { %398 = vmatprep.mubr.bf16.mxu0 %v1069_v28  ;;  %462 = vmatprep.mubr.bf16.mxu1 %v1071_v29 }
  0x3a   :  { %399 = vmatmul.mubr.bf16.gmra.mrb[12].mxu0 %v1073_v30  ;;  %463 = vmatmul.mubr.bf16.gmra.mrb[12].mxu1 %v1074_v31 }
  0x3b   :  { %406 = vmatprep.mubr.bf16.mxu0 %v1075_v32  ;;  %470 = vmatprep.mubr.bf16.mxu1 %v1077_v33 }
  0x42   :  { %407 = vmatmul.mubr.bf16.gmra.mrb[16].mxu0 %v1079_v34  ;;  %471 = vmatmul.mubr.bf16.gmra.mrb[16].mxu1 %v1080_v35 }
  0x43   :  { %414 = vmatprep.mubr.bf16.mxu0 %v1081_v36  ;;  %478 = vmatprep.mubr.bf16.mxu1 %v1083_v37 }
  0x4a   :  { %415 = vmatmul.mubr.bf16.gmra.mrb[20].mxu0 %v1085_v38  ;;  %479 = vmatmul.mubr.bf16.gmra.mrb[20].mxu1 %v1086_v39 }
  0x4b   :  { %422 = vmatprep.mubr.bf16.mxu0 %v1087_v40  ;;  %486 = vmatprep.mubr.bf16.mxu1 %v1089_v41 }
  0x52   :  { %423 = vmatmul.mubr.bf16.gmra.mrb[24].mxu0 %v1091_v42  ;;  %487 = vmatmul.mubr.bf16.gmra.mrb[24].mxu1 %v1092_v43 }
  0x53   :  { %430 = vmatprep.mubr.bf16.mxu0 %v1093_v44  ;;  %494 = vmatprep.mubr.bf16.mxu1 %v1095_v45 }
  0x5a   :  { %431 = vmatmul.mubr.bf16.gmra.mrb[28].mxu0 %v1097_v46  ;;  %495 = vmatmul.mubr.bf16.gmra.mrb[28].mxu1 %v1098_v47 }
  0xf5   :  { %v923_v48 = vpop.f32.mrb[0].mxu0  ;;  %v971_v49 = vpop.f32.mrb[0].mxu1 }
  0xf6   :  { %v924_v51 = vpop.f32.mrb[1].mxu0  ;;  %v972_v52 = vpop.f32.mrb[1].mxu1 }
  0xf7   :  { %v925_v53 = vadd.f32 %v924_v51, %v923_v48  ;;  %v973_v54 = vadd.f32 %v972_v52, %v971_v49  ;;  %v926_v55 = vpop.f32.mrb[2].mxu0  ;;  %v974_v56 = vpop.f32.mrb[2].mxu1 }
  0xf8   :  { %v927_v57 = vpop.f32.mrb[3].mxu0  ;;  %v975_v58 = vpop.f32.mrb[3].mxu1 }
  0xf9   :  { %v377_v59 = vadd.f32 %v925_v53, %v1266_v50  ;;  %v441_v60 = vadd.f32 %v973_v54, %v1266_v50  ;;  %v928_v61 = vadd.f32 %v927_v57, %v926_v55  ;;  %v976_v62 = vadd.f32 %v975_v58, %v974_v56 }
  0xfb   :  { %v380_v63 = vadd.f32 %v928_v61, %v1266_v50  ;;  %v444_v0 = vadd.f32 %v976_v62, %v1266_v50  ;;  %v503_v1 = vmax.f32 %v377_v59, 0.0  ;;  %v519_v2 = vmax.f32 %v441_v60, 0.0 }
  0xfd   :  { %v504_v3 = vmax.f32 %v380_v63, 0.0  ;;  %v520_v4 = vmax.f32 %v444_v0, 0.0  ;;  %v929_v5 = vpop.f32.mrb[4].mxu0  ;;  %v977_v6 = vpop.f32.mrb[4].mxu1 }
  0xfe   :  { %v930_v7 = vpop.f32.mrb[5].mxu0  ;;  %v978_v8 = vpop.f32.mrb[5].mxu1 }
  0xff   :  { %v815_v9 = vpack.c.bf16 %v504_v3, %v503_v1  ;;  %v855_v10 = vpack.c.bf16 %v520_v4, %v519_v2  ;;  %v931_v11 = vadd.f32 %v930_v7, %v929_v5  ;;  %v979_v12 = vadd.f32 %v978_v8, %v977_v6  ;;  %v932_v13 = vpop.f32.mrb[6].mxu0  ;;  %v980_v14 = vpop.f32.mrb[6].mxu1 }
 0x100   :  { %v933_v15 = vpop.f32.mrb[7].mxu0  ;;  %v981_v16 = vpop.f32.mrb[7].mxu1 }
 0x101   :  { %816 = vst [vmem:[%s1351_s3] sm:$0xff] %v815_v9   ;;  %899 = vst [vmem:[%s1351_s3 + $0x40] sm:$0xff] %v855_v10   ;;  %v385_v17 = vadd.f32 %v931_v11, %v1266_v50  ;;  %v449_v18 = vadd.f32 %v979_v12, %v1266_v50  ;;  %v934_v19 = vadd.f32 %v933_v15, %v932_v13 }
 0x102   :  { %v982_v20 = vadd.f32 %v981_v16, %v980_v14 }
 0x103   :  { %v388_v21 = vadd.f32 %v934_v19, %v1266_v50  ;;  %v505_v23 = vmax.f32 %v385_v17, 0.0  ;;  %v521_v24 = vmax.f32 %v449_v18, 0.0 }
 0x104   :  { %v452_v22 = vadd.f32 %v982_v20, %v1266_v50 }
 0x105   :  { %v506_v25 = vmax.f32 %v388_v21, 0.0  ;;  %v935_v27 = vpop.f32.mrb[8].mxu0  ;;  %v983_v28 = vpop.f32.mrb[8].mxu1 }
 0x106   :  { %v522_v26 = vmax.f32 %v452_v22, 0.0  ;;  %v936_v29 = vpop.f32.mrb[9].mxu0  ;;  %v984_v30 = vpop.f32.mrb[9].mxu1 }
 0x107   :  { %v820_v31 = vpack.c.bf16 %v506_v25, %v505_v23  ;;  %v937_v33 = vadd.f32 %v936_v29, %v935_v27  ;;  %v985_v34 = vadd.f32 %v984_v30, %v983_v28  ;;  %v938_v35 = vpop.f32.mrb[10].mxu0  ;;  %v986_v36 = vpop.f32.mrb[10].mxu1 }
 0x108   :  { %v860_v32 = vpack.c.bf16 %v522_v26, %v521_v24  ;;  %v939_v37 = vpop.f32.mrb[11].mxu0  ;;  %v987_v38 = vpop.f32.mrb[11].mxu1 }
 0x109   :  { %892 = vst [vmem:[%s1351_s3 + $0x8] sm:$0xff] %v820_v31   ;;  %v393_v39 = vadd.f32 %v937_v33, %v1266_v50  ;;  %v457_v40 = vadd.f32 %v985_v34, %v1266_v50  ;;  %v940_v41 = vadd.f32 %v939_v37, %v938_v35  ;;  %v988_v42 = vadd.f32 %v987_v38, %v986_v36 }
 0x10a   :  { %900 = vst [vmem:[%s1351_s3 + $0x48] sm:$0xff] %v860_v32  }
 0x10b   :  { %v396_v43 = vadd.f32 %v940_v41, %v1266_v50  ;;  %v460_v44 = vadd.f32 %v988_v42, %v1266_v50  ;;  %v507_v45 = vmax.f32 %v393_v39, 0.0  ;;  %v523_v46 = vmax.f32 %v457_v40, 0.0 }
 0x10d   :  { %v508_v47 = vmax.f32 %v396_v43, 0.0  ;;  %v524_v48 = vmax.f32 %v460_v44, 0.0  ;;  %v941_v49 = vpop.f32.mrb[12].mxu0  ;;  %v989_v51 = vpop.f32.mrb[12].mxu1 }
 0x10e   :  { %v942_v52 = vpop.f32.mrb[13].mxu0  ;;  %v990_v53 = vpop.f32.mrb[13].mxu1 }
 0x10f   :  { %v825_v54 = vpack.c.bf16 %v508_v47, %v507_v45  ;;  %v865_v55 = vpack.c.bf16 %v524_v48, %v523_v46  ;;  %v943_v56 = vadd.f32 %v942_v52, %v941_v49  ;;  %v991_v57 = vadd.f32 %v990_v53, %v989_v51  ;;  %v944_v58 = vpop.f32.mrb[14].mxu0  ;;  %v992_v59 = vpop.f32.mrb[14].mxu1 }
 0x110   :  { %v945_v60 = vpop.f32.mrb[15].mxu0  ;;  %v993_v61 = vpop.f32.mrb[15].mxu1 }
 0x111   :  { %893 = vst [vmem:[%s1351_s3 + $0x10] sm:$0xff] %v825_v54   ;;  %901 = vst [vmem:[%s1351_s3 + $0x50] sm:$0xff] %v865_v55   ;;  %v401_v62 = vadd.f32 %v943_v56, %v1266_v50  ;;  %v465_v63 = vadd.f32 %v991_v57, %v1266_v50  ;;  %v946_v0 = vadd.f32 %v945_v60, %v944_v58 }
 0x112   :  { %v994_v1 = vadd.f32 %v993_v61, %v992_v59 }
 0x113   :  { %v404_v2 = vadd.f32 %v946_v0, %v1266_v50  ;;  %v509_v4 = vmax.f32 %v401_v62, 0.0  ;;  %v525_v5 = vmax.f32 %v465_v63, 0.0 }
 0x114   :  { %v468_v3 = vadd.f32 %v994_v1, %v1266_v50 }
 0x115   :  { %v510_v6 = vmax.f32 %v404_v2, 0.0  ;;  %v947_v8 = vpop.f32.mrb[16].mxu0  ;;  %v995_v9 = vpop.f32.mrb[16].mxu1 }
 0x116   :  { %v526_v7 = vmax.f32 %v468_v3, 0.0  ;;  %v948_v10 = vpop.f32.mrb[17].mxu0  ;;  %v996_v11 = vpop.f32.mrb[17].mxu1 }
 0x117   :  { %v830_v12 = vpack.c.bf16 %v510_v6, %v509_v4  ;;  %v949_v14 = vadd.f32 %v948_v10, %v947_v8  ;;  %v997_v15 = vadd.f32 %v996_v11, %v995_v9  ;;  %v950_v16 = vpop.f32.mrb[18].mxu0  ;;  %v998_v17 = vpop.f32.mrb[18].mxu1 }
 0x118   :  { %v870_v13 = vpack.c.bf16 %v526_v7, %v525_v5  ;;  %v951_v18 = vpop.f32.mrb[19].mxu0  ;;  %v999_v19 = vpop.f32.mrb[19].mxu1 }
 0x119   :  { %894 = vst [vmem:[%s1351_s3 + $0x18] sm:$0xff] %v830_v12   ;;  %v409_v20 = vadd.f32 %v949_v14, %v1266_v50  ;;  %v473_v21 = vadd.f32 %v997_v15, %v1266_v50  ;;  %v952_v22 = vadd.f32 %v951_v18, %v950_v16  ;;  %v1000_v23 = vadd.f32 %v999_v19, %v998_v17 }
 0x11a   :  { %902 = vst [vmem:[%s1351_s3 + $0x58] sm:$0xff] %v870_v13  }
 0x11b   :  { %v412_v24 = vadd.f32 %v952_v22, %v1266_v50  ;;  %v476_v25 = vadd.f32 %v1000_v23, %v1266_v50  ;;  %v511_v26 = vmax.f32 %v409_v20, 0.0  ;;  %v527_v27 = vmax.f32 %v473_v21, 0.0 }
 0x11d   :  { %v512_v28 = vmax.f32 %v412_v24, 0.0  ;;  %v528_v29 = vmax.f32 %v476_v25, 0.0  ;;  %v953_v30 = vpop.f32.mrb[20].mxu0  ;;  %v1001_v31 = vpop.f32.mrb[20].mxu1 }
 0x11e   :  { %v954_v32 = vpop.f32.mrb[21].mxu0  ;;  %v1002_v33 = vpop.f32.mrb[21].mxu1 }
 0x11f   :  { %v835_v34 = vpack.c.bf16 %v512_v28, %v511_v26  ;;  %v875_v35 = vpack.c.bf16 %v528_v29, %v527_v27  ;;  %v955_v36 = vadd.f32 %v954_v32, %v953_v30  ;;  %v1003_v37 = vadd.f32 %v1002_v33, %v1001_v31  ;;  %v956_v38 = vpop.f32.mrb[22].mxu0  ;;  %v1004_v39 = vpop.f32.mrb[22].mxu1 }
 0x120   :  { %v957_v40 = vpop.f32.mrb[23].mxu0  ;;  %v1005_v41 = vpop.f32.mrb[23].mxu1 }
 0x121   :  { %895 = vst [vmem:[%s1351_s3 + $0x20] sm:$0xff] %v835_v34   ;;  %903 = vst [vmem:[%s1351_s3 + $0x60] sm:$0xff] %v875_v35   ;;  %v417_v42 = vadd.f32 %v955_v36, %v1266_v50  ;;  %v481_v43 = vadd.f32 %v1003_v37, %v1266_v50  ;;  %v958_v44 = vadd.f32 %v957_v40, %v956_v38 }
 0x122   :  { %v1006_v45 = vadd.f32 %v1005_v41, %v1004_v39 }
 0x123   :  { %v420_v46 = vadd.f32 %v958_v44, %v1266_v50  ;;  %v513_v48 = vmax.f32 %v417_v42, 0.0  ;;  %v529_v49 = vmax.f32 %v481_v43, 0.0 }
 0x124   :  { %v484_v47 = vadd.f32 %v1006_v45, %v1266_v50 }
 0x125   :  { %v514_v51 = vmax.f32 %v420_v46, 0.0  ;;  %v959_v53 = vpop.f32.mrb[24].mxu0  ;;  %v1007_v54 = vpop.f32.mrb[24].mxu1 }
 0x126   :  { %v530_v52 = vmax.f32 %v484_v47, 0.0  ;;  %v960_v55 = vpop.f32.mrb[25].mxu0  ;;  %v1008_v56 = vpop.f32.mrb[25].mxu1 }
 0x127   :  { %v840_v57 = vpack.c.bf16 %v514_v51, %v513_v48  ;;  %v961_v59 = vadd.f32 %v960_v55, %v959_v53  ;;  %v1009_v60 = vadd.f32 %v1008_v56, %v1007_v54  ;;  %v962_v61 = vpop.f32.mrb[26].mxu0  ;;  %v1010_v62 = vpop.f32.mrb[26].mxu1 }
 0x128   :  { %v880_v58 = vpack.c.bf16 %v530_v52, %v529_v49  ;;  %v963_v63 = vpop.f32.mrb[27].mxu0  ;;  %v1011_v0 = vpop.f32.mrb[27].mxu1 }
 0x129   :  { %896 = vst [vmem:[%s1351_s3 + $0x28] sm:$0xff] %v840_v57   ;;  %v425_v1 = vadd.f32 %v961_v59, %v1266_v50  ;;  %v489_v2 = vadd.f32 %v1009_v60, %v1266_v50  ;;  %v964_v3 = vadd.f32 %v963_v63, %v962_v61  ;;  %v1012_v4 = vadd.f32 %v1011_v0, %v1010_v62 }
 0x12a   :  { %904 = vst [vmem:[%s1351_s3 + $0x68] sm:$0xff] %v880_v58  }
 0x12b   :  { %v428_v5 = vadd.f32 %v964_v3, %v1266_v50  ;;  %v492_v6 = vadd.f32 %v1012_v4, %v1266_v50  ;;  %v515_v7 = vmax.f32 %v425_v1, 0.0  ;;  %v531_v8 = vmax.f32 %v489_v2, 0.0 }
 0x12d   :  { %v516_v9 = vmax.f32 %v428_v5, 0.0  ;;  %v532_v10 = vmax.f32 %v492_v6, 0.0  ;;  %v965_v11 = vpop.f32.mrb[28].mxu0  ;;  %v1013_v12 = vpop.f32.mrb[28].mxu1 }
 0x12e   :  { %v966_v13 = vpop.f32.mrb[29].mxu0  ;;  %v1014_v14 = vpop.f32.mrb[29].mxu1 }
 0x12f   :  { %v845_v15 = vpack.c.bf16 %v516_v9, %v515_v7  ;;  %v885_v16 = vpack.c.bf16 %v532_v10, %v531_v8  ;;  %v967_v17 = vadd.f32 %v966_v13, %v965_v11  ;;  %v1015_v18 = vadd.f32 %v1014_v14, %v1013_v12  ;;  %v968_v19 = vpop.f32.mrb[30].mxu0  ;;  %v1016_v20 = vpop.f32.mrb[30].mxu1 }
 0x130   :  { %v969_v21 = vpop.f32.mrb[31].mxu0  ;;  %v1017_v22 = vpop.f32.mrb[31].mxu1 }
 0x131   :  { %897 = vst [vmem:[%s1351_s3 + $0x30] sm:$0xff] %v845_v15   ;;  %905 = vst [vmem:[%s1351_s3 + $0x70] sm:$0xff] %v885_v16   ;;  %v433_v23 = vadd.f32 %v967_v17, %v1266_v50  ;;  %v497_v24 = vadd.f32 %v1015_v18, %v1266_v50  ;;  %v970_v25 = vadd.f32 %v969_v21, %v968_v19 }
 0x132   :  { %v1018_v26 = vadd.f32 %v1017_v22, %v1016_v20 }
 0x133   :  { %v436_v27 = vadd.f32 %v970_v25, %v1266_v50  ;;  %v517_v29 = vmax.f32 %v433_v23, 0.0  ;;  %v533_v30 = vmax.f32 %v497_v24, 0.0 }
 0x134   :  { %v500_v28 = vadd.f32 %v1018_v26, %v1266_v50 }
 0x135   :  { %v518_v31 = vmax.f32 %v436_v27, 0.0 }
 0x136   :  { %v534_v32 = vmax.f32 %v500_v28, 0.0 }
 0x137   :  { %v850_v33 = vpack.c.bf16 %v518_v31, %v517_v29 }
 0x138   :  { %v890_v34 = vpack.c.bf16 %v534_v32, %v533_v30 }
 0x139   :  { %898 = vst [vmem:[%s1351_s3 + $0x38] sm:$0xff] %v850_v33  }
 0x13a   :  { %906 = vst [vmem:[%s1351_s3 + $0x78] sm:$0xff] %v890_v34  }

// kernel: coex_forward.63
= control target key start
LH: loop header
LB: loop body
LE: loop exit
PB: predicated region body
PF: predicated region fallthrough
CT: control target
= control target key end

     0   :  { %9 = vsyncpa [#allocation7], 0  ;;  %s1014_s15 = smov 0   ;;  %s1016_s16 = smov 0   ;;  %s1319_s0 = inlined_call_operand.vmem [shape: f32[432], index: 0, kind: input, shape index: {}]   ;;  %s1320_s1 = inlined_call_operand.vmem [shape: bf16[1,6,16,10,10], index: 1, kind: input, shape index: {}, may-alias: {1,2,3}]   ;;  %s1321_s2 = inlined_call_operand.vmem [shape: bf16[1,6,16,10,10], index: 2, kind: input, shape index: {}, may-alias: {1,2,3}]   ;;  %s1322_s3 = inlined_call_operand.vmem [shape: bf16[1,6,16,10,10], index: 3, kind: input, shape index: {}, may-alias: {1,2,3}]   ;;  %s1323_s4 = inlined_call_operand.vmem [shape: f32[1,8,8], index: 4, kind: output, shape index: {}]  }
   0x1   :  { %s1018_s17 = smov 0  }
   0x2 LB: > { %s837_s18 = sadd.s32 4294967295, %s973_s17   ;;  %s24_s19 = sadd.s32 1, %s969_s16  ;;  %s973_s17 = sphi %s1018_s17, %s15_s17   ;;  %s969_s16 = sphi %s1016_s16, %s1328_s16   ;;  %s965_s15 = sphi %s1014_s15, %s1327_s15  }
   0x3   : > { %p25_p0 = scmp.ge.s32.totalorder %s24_s19, 4  ;;  %p838_p1 = scmp.ge.s32.totalorder %s973_s17, 1 }
   0x4   : > { %p167_p2 = scmp.lt.s32.totalorder %s973_s17, 5  ;;  %p1039_p4 = scmp.eq.s32.totalorder %s837_s18, 0 }
   0x5   : > { %s1330_s19 = smov (%p25_p0, %s24_s19), 0  ;;  %s180_s24 = sshll.u32 %s1319_s0, 4  ;;  %s181_s24 = int_to_ptr.vmem [resolvable:$true] %s180_s24 }
   0x6   : > { %p1035_p3 = pnand %p838_p1, %p167_p2  ;;  %s924_s25 = scalar_lea.vmem %s181_s24, 64 }
   0x7   : > { %p925_p7 = scmp.ne.s32.totalorder %s181_s24, %s924_s25  ;;  %p932_p11 = scmp.lt.s32.totalorder %s181_s24, %s181_s24 }
   0x8   : > { %p868_p5 = pneg %p1035_p3  ;;  %p933_p12 = scmp.lt.s32.totalorder %s924_s25, %s924_s25 }
   0xa   : > { %p869_p6 = pnand %p1039_p4, %p868_p5  ;;  %p934_p13 = por %p933_p12, %p932_p11 }
   0xc   : > { %p926_p8 = pneg %p869_p6 }
   0xe   : > { %p927_p9 = pnand %p926_p8, %p925_p7 }
  0x10   : > { %p928_p10 = pneg %p927_p9 }
  0x12   : > { %p935_p0 = pnand %p934_p13, %p928_p10 }
  0x14   : > { %938 = shalt.err (!%p935_p0)
}
  0x15   : > { %s983_s26 = smov [#allocation6]   ;;  %233 = sbr.rel (%p1035_p3) target bundleno = 271 (0x10f), region = 36 }
  0x16   : > { %871 = dma.vmem_to_smem (!%p869_p6), %s181_s24, 64, %s983_s26, [#allocation7]  }
  0x1c   : > { %960 = dma.done.wait (%p1039_p4), [#allocation7], 64  }
  0x1d   : > { %962 = vsyncadd (%p1039_p4), [#allocation7], 4294967232 }
  0x1e   : > { %239 = sfence }
  0x1f   : > { %p285_p1 = scmp.lt.s32.totalorder %s965_s15, 5  ;;  %s292_s27 = sadd.s32 1, %s965_s15 }
  0x20   : > { %p295_p2 = scmp.lt.s32.totalorder %s292_s27, 5  ;;  %s303_s28 = sadd.s32 2, %s965_s15 }
  0x21   : > { %s286_s29 = scalar_select %p285_p1, %s965_s15, 5 }
  0x22   : > { %s1332_s27 = smov (!%p295_p2, %s292_s27), 5  ;;  %p306_p5 = scmp.lt.s32.totalorder %s303_s28, 5 }
  0x23   : > { %s858_s30 = sshll.u32 %s286_s29, 7  ;;  %s859_s8 = sshll.u32 %s1332_s27, 7 }
  0x24   : > { %s1063_s7 = scalar_lea.vmem %s1320_s1, %s858_s30  ;;  %s1068_s11 = scalar_lea.vmem %s1321_s2, %s859_s8 }
  0x25   : > { %s1334_s28 = smov (!%p306_p5, %s303_s28), 5  ;;  %p849_p3 = scmp.ne.s32.totalorder %s965_s15, 0 }
  0x26   : > { %s860_s12 = sshll.u32 %s1334_s28, 7  ;;  %vm322_vm0 = vcmask (!%p849_p3), 64512   ;;  %v984_v0 = vmov (!%p849_p3), -1e+30   ;;  %v985_v1 = vmov (!%p849_p3), 0.0  }
  0x27   : > { %s1073_s18 = scalar_lea.vmem %s1322_s3, %s860_s12  ;;  %321 = sbr.rel (%p849_p3) target bundleno = 46 (0x2e), region = 44  ;;  %323 = vst.msk [vmem:[#allocation2] sm:$0xff] (!%p849_p3), %vm322_vm0, %v984_v0  ;;  %324 = vst.msk [vmem:[#allocation4] sm:$0xff] (!%p849_p3), %vm322_vm0, %v984_v0 }
  0x28   : > { %325 = vst.msk [vmem:[#allocation3] sm:$0xff] (!%p849_p3), %vm322_vm0, %v985_v1  ;;  %326 = vst.msk [vmem:[#allocation5] sm:$0xff] (!%p849_p3), %vm322_vm0, %v985_v1 }
  0x2e PF: > { %v1076_v2 = vmov 0.0   ;;  %s1078_s20 = smov 0  }
  0x2f LB: >> { %s1087_s21 = sshll.u32 %s981_s20, 3  ;;  %s345_s22 = sadd.s32 16, %s981_s20  ;;  %vm370_vm1 = vcmask 1046528   ;;  %vm411_vm2 = vcmask 1045504   ;;  %s981_s20 = sphi %s1078_s20, %s332_s20   ;;  %v977_v2 = vphi %v1076_v2, %v1326_v2  }
  0x30   : >> { %s336_s23 = scalar_lea.vmem %s1063_s7, %s1087_s21  ;;  %s346_s24 = sld [smem:[#allocation6 + %s345_s22]] }
  0x31   : >> { %v337_v3 = vld [vmem:[%s336_s23] sm:$0xf]  ;;  %s354_s25 = sadd.s32 32, %s981_s20  ;;  %s376_s26 = sadd.s32 64, %s981_s20  ;;  %v338_v4 = vld [vmem:[%s336_s23 + $0x4] sm:$0x1] }
  0x32   : >> { %s355_s27 = sld [smem:[#allocation6 + %s354_s25]]  ;;  %v1094_v5 = vunpack.c.l.bf16 %v337_v3  ;;  %s390_s29 = sadd.s32 80, %s981_s20  ;;  %v1102_v6 = vunpack.c.l.bf16 %v338_v4 }
  0x33   : >> { %s377_s28 = sld [smem:[#allocation6 + %s376_s26]]  ;;  %s417_s30 = sadd.s32 112, %s981_s20 }
  0x34   : >> { %s1098_s5 = sld [smem:[#allocation6 + %s390_s29]]  ;;  %s431_s8 = sadd.s32 128, %s981_s20 }
  0x35   : >> { %s1100_s6 = sld [smem:[#allocation6 + %s417_s30]]  ;;  %s446_s9 = scalar_lea.vmem %s1068_s11, %s1087_s21 }
  0x36   : >> { %v347_v7 = vstv %s346_s24  ;;  %s1107_s10 = sld [smem:[#allocation6 + %s431_s8]]  ;;  %s456_s12 = sadd.s32 160, %s981_s20  ;;  %v447_v9 = vld [vmem:[%s446_s9] sm:$0xf]  ;;  %v448_v15 = vld [vmem:[%s446_s9 + $0x4] sm:$0x1] }
  0x37   : >> { %v348_v8 = vmul.f32 %v347_v7, %v1094_v5  ;;  %s1111_s13 = sld [smem:[#allocation6 + %s456_s12]]  ;;  %s465_s14 = sadd.s32 176, %s981_s20  ;;  %v1126_v18 = vunpack.c.l.bf16 %v447_v9  ;;  %v1139_v26 = vunpack.c.l.bf16 %v448_v15 }
  0x38   : >> { %v356_v10 = vstv %s355_s27  ;;  %s1114_s22 = sld [smem:[#allocation6 + %s465_s14]]  ;;  %s486_s23 = sadd.s32 208, %s981_s20 }
  0x39   : >> { %v378_v11 = vstv %s377_s28  ;;  %s986_s25 = smov 127   ;;  %v357_v12 = vmul.f32 %v356_v10, %v1094_v5  ;;  %s1121_s24 = sld [smem:[#allocation6 + %s486_s23]] }
  0x3a   : >> { %350 = vrot.lane.b32.xlu0 %v348_v8, %s986_s25  ;;  %v379_v13 = vmul.f32 %v378_v11, %v1094_v5  ;;  %v380_v14 = vmul.f32 %v378_v11, %v1102_v6  ;;  %s500_s26 = sadd.s32 224, %s981_s20  ;;  %v392_v16 = vstv %s1098_s5  ;;  %s526_s28 = sadd.s32 256, %s981_s20 }
  0x3b   : >> { %v419_v17 = vstv %s1100_s6  ;;  %s1128_s27 = sld [smem:[#allocation6 + %s500_s26]]  ;;  %v393_v21 = vmul.f32 %v392_v16, %v1094_v5  ;;  %v394_v22 = vmul.f32 %v392_v16, %v1102_v6  ;;  %s540_s30 = sadd.s32 272, %s981_s20 }
  0x3c   : >> { %v383_v19 = vrot.slane %v379_v13, 1  ;;  %v384_v20 = vrot.slane %v380_v14, 1  ;;  %s1133_s29 = sld [smem:[#allocation6 + %s526_s28]]  ;;  %v420_v23 = vmul.f32 %v419_v17, %v1094_v5  ;;  %v421_v24 = vmul.f32 %v419_v17, %v1102_v6  ;;  %s1145_s6 = scalar_lea.vmem %s1073_s18, %s1087_s21 }
  0x3d   : >> { %v433_v25 = vstv %s1107_s10  ;;  %s1141_s5 = sld [smem:[#allocation6 + %s540_s30]]  ;;  %s987_s8 = smov 126   ;;  %v397_v28 = vrot.slane %v393_v21, 1  ;;  %v398_v29 = vrot.slane %v394_v22, 1  ;;  %v458_v34 = vstv %s1111_s13  ;;  %v556_v54 = vld [vmem:[%s1145_s6] sm:$0xf] }
  0x3e   : >> { %359 = vrot.lane.b32.xlu0 %v357_v12, %s987_s8  ;;  %v385_v27 = vsel %vm370_vm1, %v383_v19, %v384_v20  ;;  %v434_v30 = vmul.f32 %v433_v25, %v1094_v5  ;;  %s565_s9 = sadd.s32 304, %s981_s20  ;;  %s574_s10 = sadd.s32 320, %s981_s20  ;;  %v424_v31 = vrot.slane %v420_v23, 2  ;;  %v425_v32 = vrot.slane %v421_v24, 2  ;;  %v557_v61 = vld [vmem:[%s1145_s6 + $0x4] sm:$0x1] }
  0x3f   : >> { %386 = vrot.lane.b32.xlu1 %v385_v27, %s986_s25  ;;  %v435_v33 = vmul.f32 %v433_v25, %v1102_v6  ;;  %s1155_s21 = sld [smem:[#allocation6 + %s565_s9]]  ;;  %v399_v35 = vsel %vm370_vm1, %v397_v28, %v398_v29  ;;  %v459_v37 = vmul.f32 %v458_v34, %v1126_v18  ;;  %s595_s14 = sadd.s32 352, %s981_s20  ;;  %v467_v40 = vstv %s1114_s22 }
  0x40   : >> { %s1157_s12 = sld [smem:[#allocation6 + %s574_s10]]  ;;  %v438_v36 = vrot.slane %v434_v30, 2  ;;  %s609_s23 = sadd.s32 368, %s981_s20  ;;  %v426_v38 = vsel %vm411_vm2, %v424_v31, %v425_v32  ;;  %v488_v41 = vstv %s1121_s24  ;;  %v468_v62 = vmul.f32 %v467_v40, %v1126_v18 }
  0x41   : >> { %v439_v39 = vrot.slane %v435_v33, 2  ;;  %s1166_s13 = sld [smem:[#allocation6 + %s595_s14]]  ;;  %v489_v42 = vmul.f32 %v488_v41, %v1126_v18  ;;  %v490_v43 = vmul.f32 %v488_v41, %v1139_v26  ;;  %v502_v44 = vstv %s1128_s27  ;;  %s635_s28 = sadd.s32 400, %s981_s20 }
  0x42   : >> { %s1168_s26 = sld [smem:[#allocation6 + %s609_s23]]  ;;  %427 = vrot.lane.b32.xlu0 %v426_v38, %s986_s25  ;;  %v528_v45 = vstv %s1133_s29  ;;  %s649_s30 = sadd.s32 416, %s981_s20  ;;  %v503_v47 = vmul.f32 %v502_v44, %v1126_v18  ;;  %v504_v48 = vmul.f32 %v502_v44, %v1139_v26  ;;  %v1207_v1 = vunpack.c.l.bf16 %v556_v54 }
  0x43   : >> { %400 = vrot.lane.b32.xlu1 %v399_v35, %s987_s8  ;;  %v440_v46 = vsel %vm411_vm2, %v438_v36, %v439_v39  ;;  %v529_v49 = vmul.f32 %v528_v45, %v1126_v18  ;;  %s1182_s22 = sld [smem:[#allocation6 + %s635_s28]]  ;;  %v493_v50 = vrot.slane %v489_v42, 1  ;;  %v494_v51 = vrot.slane %v490_v43, 1  ;;  %s363_s29 = sadd.s32 48, %s981_s20 }
  0x44   : >> { %s1184_s24 = sld [smem:[#allocation6 + %s649_s30]]  ;;  %v530_v52 = vmul.f32 %v528_v45, %v1139_v26  ;;  %v542_v53 = vstv %s1141_s5  ;;  %v507_v55 = vrot.slane %v503_v47, 1  ;;  %v508_v56 = vrot.slane %v504_v48, 1  ;;  %s404_s10 = sadd.s32 96, %s981_s20 }
  0x45   : >> { %s1190_s27 = sld [smem:[#allocation6 + %s981_s20]]  ;;  %v533_v57 = vrot.slane %v529_v49, 2  ;;  %v543_v58 = vmul.f32 %v542_v53, %v1126_v18  ;;  %v544_v60 = vmul.f32 %v542_v53, %v1139_v26  ;;  %s451_s14 = sadd.s32 144, %s981_s20  ;;  %v495_v63 = vsel %vm370_vm1, %v493_v50, %v494_v51 }
  0x46   : >> { %s1194_s9 = sld [smem:[#allocation6 + %s363_s29]]  ;;  %461 = vrot.lane.b32.xlu0 %v459_v37, %s986_s25  ;;  %v534_v59 = vrot.slane %v530_v52, 2  ;;  %v509_v0 = vsel %vm370_vm1, %v507_v55, %v508_v56  ;;  %s474_s23 = sadd.s32 192, %s981_s20  ;;  %v567_v7 = vstv %s1155_s21  ;;  %v576_v8 = vstv %s1157_s12 }
  0x47   : >> { %s1200_s5 = sld [smem:[#allocation6 + %s404_s10]]  ;;  %441 = vrot.lane.b32.xlu1 %v440_v46, %s987_s8  ;;  %v547_v4 = vrot.slane %v543_v58, 2  ;;  %s514_s28 = sadd.s32 240, %s981_s20  ;;  %v1216_v9 = vunpack.c.l.bf16 %v557_v61  ;;  %v597_v10 = vstv %s1166_s13  ;;  %v548_v13 = vrot.slane %v544_v60, 2 }
  0x48   : >> { %v535_v3 = vsel %vm411_vm2, %v533_v57, %v534_v59  ;;  %s1213_s6 = sld [smem:[#allocation6 + %s451_s14]]  ;;  %v611_v11 = vstv %s1168_s26  ;;  %s560_s29 = sadd.s32 288, %s981_s20  ;;  %v598_v14 = vmul.f32 %v597_v10, %v1207_v1  ;;  %v568_v22 = vmul.f32 %v567_v7, %v1207_v1 }
  0x49   : >> { %v637_v12 = vstv %s1182_s22  ;;  %s1221_s30 = sld [smem:[#allocation6 + %s474_s23]]  ;;  %v612_v15 = vmul.f32 %v611_v11, %v1207_v1  ;;  %s583_s21 = sadd.s32 336, %s981_s20  ;;  %v599_v17 = vmul.f32 %v597_v10, %v1216_v9  ;;  %v613_v19 = vmul.f32 %v611_v11, %v1216_v9 }
  0x4a   : >> { %496 = vrot.lane.b32.xlu0 %v495_v63, %s986_s25  ;;  %v638_v16 = vmul.f32 %v637_v12, %v1207_v1  ;;  %v639_v20 = vmul.f32 %v637_v12, %v1216_v9  ;;  %v651_v21 = vstv %s1184_s24  ;;  %s1234_s12 = sld [smem:[#allocation6 + %s514_s28]]  ;;  %v577_v23 = vmul.f32 %v576_v8, %v1207_v1  ;;  %s623_s22 = sadd.s32 384, %s981_s20 }
  0x4b   : >> { %470 = vrot.lane.b32.xlu1 %v468_v62, %s987_s8  ;;  %v602_v24 = vrot.slane %v598_v14, 1  ;;  %v1239_v25 = vmul.f32 %v651_v21, %v1207_v1  ;;  %s1241_s13 = sld [smem:[#allocation6 + %s560_s29]]  ;;  %v603_v27 = vrot.slane %v599_v17, 1  ;;  %v616_v28 = vrot.slane %v612_v15, 1  ;;  %s332_s20 = sadd.s32 1, %s981_s20  }
  0x4c   : >> { %s1243_s26 = sld [smem:[#allocation6 + %s583_s21]]  ;;  %v617_v29 = vrot.slane %v613_v19, 1  ;;  %v642_v30 = vrot.slane %v638_v16, 2  ;;  %v643_v31 = vrot.slane %v639_v20, 2  ;;  %v342_v32 = vstv %s1190_s27  ;;  %p329_p4 = scmp.ge.s32.totalorder %s332_s20, 16  }
  0x4d   : >> { %v365_v33 = vstv %s1194_s9  ;;  %v406_v34 = vstv %s1200_s5  ;;  %v549_v35 = vsel %vm411_vm2, %v547_v4, %v548_v13  ;;  %v604_v36 = vsel %vm370_vm1, %v602_v24, %v603_v27  ;;  %s1263_s24 = sld [smem:[#allocation6 + %s623_s22]]  ;;  %p854_p6 = scmp.ne.s32.totalorder (%p329_p4), %s965_s15, 3 }
  0x4e   : >> { %536 = vrot.lane.b32.xlu0 %v535_v3, %s986_s25  ;;  %v653_v37 = vmul.f32 %v651_v21, %v1216_v9  ;;  %v656_v38 = vrot.slane %v1239_v25, 2  ;;  %v343_v39 = vmul.f32 %v342_v32, %v1094_v5  ;;  %v367_v40 = vmul.f32 %v365_v33, %v1102_v6 }
  0x4f   : >> { %510 = vrot.lane.b32.xlu1 %v509_v0, %s987_s8  ;;  %v366_v41 = vmul.f32 %v365_v33, %v1094_v5  ;;  %v407_v42 = vmul.f32 %v406_v34, %v1094_v5  ;;  %v618_v43 = vsel %vm370_vm1, %v616_v28, %v617_v29  ;;  %v408_v44 = vmul.f32 %v406_v34, %v1102_v6 }
  0x50   : >> { %v453_v45 = vstv %s1213_s6  ;;  %v476_v46 = vstv %s1221_s30  ;;  %v644_v47 = vsel %vm411_vm2, %v642_v30, %v643_v31  ;;  %v372_v48 = vrot.slane %v367_v40, 1 }
  0x51   : >> { %v371_v49 = vrot.slane %v366_v41, 1  ;;  %v412_v50 = vrot.slane %v407_v42, 2  ;;  %v413_v5 = vrot.slane %v408_v44, 2  ;;  %v454_v51 = vmul.f32 %v453_v45, %v1126_v18 }
  0x52   : >> { %570 = vrot.lane.b32.xlu0 %v568_v22, %s986_s25  ;;  %v477_v6 = vmul.f32 %v476_v46, %v1126_v18  ;;  %v478_v52 = vmul.f32 %v476_v46, %v1139_v26  ;;  %v516_v54 = vstv %s1234_s12  ;;  %v562_v55 = vstv %s1241_s13 }
  0x53   : >> { %550 = vrot.lane.b32.xlu1 %v549_v35, %s987_s8  ;;  %v373_v53 = vsel %vm370_vm1, %v371_v49, %v372_v48  ;;  %v585_v56 = vstv %s1243_s26  ;;  %v414_v57 = vsel %vm411_vm2, %v412_v50, %v413_v5  ;;  %v517_v60 = vmul.f32 %v516_v54, %v1126_v18 }
  0x54   : >> { %v481_v58 = vrot.slane %v477_v6, 1  ;;  %v482_v59 = vrot.slane %v478_v52, 1  ;;  %v518_v61 = vmul.f32 %v516_v54, %v1139_v26  ;;  %v563_v62 = vmul.f32 %v562_v55, %v1207_v1 }
  0x55   : >> { %v586_v63 = vmul.f32 %v585_v56, %v1207_v1  ;;  %v587_v0 = vmul.f32 %v585_v56, %v1216_v9  ;;  %v657_v3 = vrot.slane %v653_v37, 2  ;;  %v521_v7 = vrot.slane %v517_v60, 2 }
  0x56   : >> { %605 = vrot.lane.b32.xlu0 %v604_v36, %s986_s25  ;;  %v483_v4 = vsel %vm370_vm1, %v481_v58, %v482_v59  ;;  %v625_v8 = vstv %s1263_s24  ;;  %v522_v10 = vrot.slane %v518_v61, 2  ;;  %v663_v61 = vld [vmem:[#allocation2] sm:$0xff] (%p329_p4)  ;;  %vm674_vm3 = vcmask (%p329_p4), 64512  }
  0x57   : >> { %579 = vrot.lane.b32.xlu1 %v577_v23, %s987_s8  ;;  %v590_v11 = vrot.slane %v586_v63, 1  ;;  %v591_v18 = vrot.slane %v587_v0, 1  ;;  %v626_v12 = vmul.f32 %v625_v8, %v1207_v1  ;;  %v627_v26 = vmul.f32 %v625_v8, %v1216_v9  ;;  %v664_v63 = vld [vmem:[#allocation3] sm:$0xff] (%p329_p4)  ;;  %v666_v0 = vld [vmem:[#allocation5] sm:$0xff] (%p329_p4) }
  0x58   : >> { %v523_v13 = vsel %vm411_vm2, %v521_v7, %v522_v10  ;;  %v658_v17 = vsel %vm411_vm2, %v656_v38, %v657_v3  ;;  %v344_v1 = vadd.f32 %v977_v2, %v343_v39  ;;  %vm988_vm6 = vmmov (%p329_p4), 1  }
  0x59   : >> { %v592_v14 = vsel %vm370_vm1, %v590_v11, %v591_v18  ;;  %v630_v15 = vrot.slane %v626_v12, 2  ;;  %v631_v16 = vrot.slane %v627_v26, 2 }
  0x5a   : >> { %645 = vrot.lane.b32.xlu0 %v644_v47, %s986_s25  ;;  %s667_s25 = scvt.s32.f32 (%p329_p4), %s965_s15 }
  0x5b   : >> { %619 = vrot.lane.b32.xlu1 %v618_v43, %s987_s8  ;;  %v632_v19 = vsel %vm411_vm2, %v630_v15, %v631_v16 }
  0x5c   : > { %v676_v3 = vstv (%p329_p4), %s667_s25 }
  0x5f   : >> { %659 = vrot.lane.b32.xlu1 %v658_v17, %s987_s8 }
  0xac   : >> { %v351_v20 = vpop.permute.xlu0 %350 }
  0xad   : >> { %v353_v9 = vadd.f32 %v351_v20, %v344_v1 }
  0xb0   : >> { %v360_v21 = vpop.permute.xlu0 %359 }
  0xb1   : >> { %v362_v22 = vadd.f32 %v360_v21, %v353_v9  ;;  %v387_v23 = vpop.permute.xlu1 %386 }
  0xb3   : >> { %v375_v24 = vadd.f32 %v373_v53, %v362_v22 }
  0xb4   : >> { %v428_v29 = vpop.permute.xlu0 %427 }
  0xb5   : >> { %v389_v25 = vadd.f32 %v387_v23, %v375_v24  ;;  %v401_v27 = vpop.permute.xlu1 %400 }
  0xb7   : >> { %v403_v28 = vadd.f32 %v401_v27, %v389_v25 }
  0xb8   : >> { %v462_v34 = vpop.permute.xlu0 %461 }
  0xb9   : >> { %v416_v30 = vadd.f32 %v414_v57, %v403_v28  ;;  %v442_v31 = vpop.permute.xlu1 %441 }
  0xbb   : >> { %v430_v32 = vadd.f32 %v428_v29, %v416_v30 }
  0xbc   : >> { %v497_v2 = vpop.permute.xlu0 %496 }
  0xbd   : >> { %v444_v33 = vadd.f32 %v442_v31, %v430_v32  ;;  %v471_v36 = vpop.permute.xlu1 %470 }
  0xbf   : >> { %v455_v35 = vadd.f32 %v454_v51, %v444_v33 }
  0xc0   : >> { %v537_v43 = vpop.permute.xlu0 %536 }
  0xc1   : >> { %v464_v37 = vadd.f32 %v462_v34, %v455_v35  ;;  %v511_v40 = vpop.permute.xlu1 %510 }
  0xc3   : >> { %v473_v38 = vadd.f32 %v471_v36, %v464_v37 }
  0xc4   : >> { %v571_v48 = vpop.permute.xlu0 %570 }
  0xc5   : >> { %v485_v39 = vadd.f32 %v483_v4, %v473_v38  ;;  %v551_v45 = vpop.permute.xlu1 %550 }
  0xc7   : >> { %v499_v41 = vadd.f32 %v497_v2, %v485_v39 }
  0xc8   : >> { %v606_v52 = vpop.permute.xlu0 %605 }
  0xc9   : >> { %v513_v42 = vadd.f32 %v511_v40, %v499_v41  ;;  %v580_v50 = vpop.permute.xlu1 %579 }
  0xcb   : >> { %v525_v44 = vadd.f32 %v523_v13, %v513_v42 }
  0xcc   : >> { %v646_v56 = vpop.permute.xlu0 %645 }
  0xcd   : >> { %v539_v46 = vadd.f32 %v537_v43, %v525_v44  ;;  %v620_v53 = vpop.permute.xlu1 %619 }
  0xcf   : >> { %v553_v47 = vadd.f32 %v551_v45, %v539_v46 }
  0xd1   : >> { %v564_v49 = vadd.f32 %v563_v62, %v553_v47  ;;  %v660_v58 = vpop.permute.xlu1 %659  ;;  %v665_v62 = vld [vmem:[#allocation4] sm:$0xff] (%p329_p4) }
  0xd3   : >> { %v573_v5 = vadd.f32 %v571_v48, %v564_v49 }
  0xd5   : >> { %v582_v6 = vadd.f32 %v580_v50, %v573_v5 }
  0xd7   : >> { %v594_v51 = vadd.f32 %v592_v14, %v582_v6 }
  0xd9   : >> { %v608_v54 = vadd.f32 %v606_v52, %v594_v51 }
  0xdb   : >> { %v622_v55 = vadd.f32 %v620_v53, %v608_v54 }
  0xdd   : >> { %v634_v57 = vadd.f32 %v632_v19, %v622_v55  ;;  %331 = sbr.rel (!%p329_p4) target bundleno = 47 (0x2f), region = 95 }
  0xdf   : >> { %v648_v59 = vadd.f32 %v646_v56, %v634_v57 }
  0xe1   : >> { %v662_v60 = vadd.f32 %v660_v58, %v648_v59  }
  0xe3   : >> { %v1326_v2 = vmov %v662_v60  ;;  %vm668_vm4 = vcmp.gt.f32.partialorder (%p329_p4), %v662_v60, %v663_v61  ;;  %vm669_vm5 = vcmp.gt.f32.partialorder (%p329_p4), %v662_v60, %v665_v62 }
  0xe4   : > { %vm670_vm7 = vmxor %vm668_vm4, %vm988_vm6  ;;  %v680_v4 = vsel %vm668_vm4, %v662_v60, %v663_v61  ;;  %v682_v7 = vsel %vm668_vm4, %v676_v3, %v664_v63  ;;  %687 = sbr.rel (%p854_p6) target bundleno = 271 (0x10f), region = 55 }
  0xe5   : > { %vm671_vm8 = vmand %vm669_vm5, %vm670_vm7  ;;  %681 = vst.msk [vmem:[#allocation2] sm:$0xff] %vm674_vm3, %v680_v4 }
  0xe6   : > { %v672_v8 = vsel %vm671_vm8, %v662_v60, %v665_v62  ;;  %v677_v10 = vsel %vm671_vm8, %v676_v3, %v666_v0  ;;  %683 = vst.msk [vmem:[#allocation3] sm:$0xff] %vm674_vm3, %v682_v7 }
  0xe7   : > { %v673_v11 = vsel %vm668_vm4, %v663_v61, %v672_v8  ;;  %v678_v18 = vsel %vm668_vm4, %v664_v63, %v677_v10 }
  0xe8   : > { %675 = vst.msk [vmem:[#allocation4] sm:$0xff] %vm674_vm3, %v673_v11  ;;  %679 = vst.msk [vmem:[#allocation5] sm:$0xff] %vm674_vm3, %v678_v18 }
  0xec   : > { %v689_v26 = vld [vmem:[#allocation2] sm:$0xff] }
  0xed   : > { %v693_v1 = vld [vmem:[#allocation3] sm:$0xff] }
  0xef   : > { %v688_v12 = vld [vmem:[#allocation4] sm:$0xff]  ;;  %v694_v17 = vld [vmem:[#allocation5] sm:$0xff] }
  0xf0   : > { %v690_v13 = vsub.f32 %v688_v12, %v689_v26 }
  0xf2   : > { %v691_v14 = vmul.f32 1.442695, %v690_v13 }
  0xf4   : > { %920 = vpow2.f32 %v691_v14 }
  0xfe   : > { %v921_v15 = vpop.eup %920 }
  0xff   : > { %v697_v16 = vadd.f32 1.0, %v921_v15  ;;  %v695_v19 = vmul.f32 %v921_v15, %v694_v17 }
 0x101   : > { %922 = vrcp.f32 %v697_v16  ;;  %v696_v20 = vadd.f32 %v695_v19, %v693_v1 }
 0x10b   : > { %v923_v9 = vpop.eup %922 }
 0x10c   : > { %v699_v21 = vmul.f32 %v923_v9, %v696_v20 }
 0x10e   : > { %700 = vst.msk [vmem:[%s1323_s4] sm:$0xff] %vm674_vm3, %v699_v21 }
 0x10f PF: > { %s15_s17 = sadd.s32 1, %s973_s17   ;;  %s1327_s15 = smov %s969_s16 }
 0x110   : > { %p12_p7 = scmp.ge.s32.totalorder %s15_s17, 6   ;;  %s1328_s16 = smov %s1330_s19 }
 0x112   :  { %14 = sbr.rel (!%p12_p7) target bundleno = 2 (0x2), region = 106 }
 0x119   :  { %720 = vsyncpa [#allocation7], 1 }
 0x11a   :  { %722 = vsyncpa [#allocation7 + $0x1], 1 }

// kernel: coex_forward.75
= control target key start
LH: loop header
LB: loop body
LE: loop exit
PB: predicated region body
PF: predicated region fallthrough
CT: control target
= control target key end

     0   :  { %vm83_vm0 = vcmask 261120   ;;  %s1293_s1 = inlined_call_operand.vmem [shape: bf16[1,9,32,32], index: 1, kind: input, shape index: {}]   ;;  %s1294_s0 = inlined_call_operand.vmem [shape: f32[1,9,32,32], index: 0, kind: input, shape index: {}]   ;;  %s1295_s2 = inlined_call_operand.vmem [shape: f32[1,32,32], index: 2, kind: output, shape index: {}]  }
   0x1   :  { %v671_v0 = vld [vmem:[%s1293_s1] sm:$0xff]   ;;  %v676_v1 = vld [vmem:[%s1293_s1 + $0x8] sm:$0xff]   ;;  %v681_v2 = vld [vmem:[%s1293_s1 + $0x10] sm:$0xff]  }
   0x2   :  { %v686_v3 = vld [vmem:[%s1293_s1 + $0x18] sm:$0xff]   ;;  %v691_v4 = vld [vmem:[%s1293_s1 + $0x20] sm:$0xff]   ;;  %v696_v5 = vld [vmem:[%s1293_s1 + $0x28] sm:$0xff]   ;;  %v486_v6 = vunpack.c.l.bf16 %v671_v0  ;;  %v487_v7 = vunpack.c.h.bf16 %v671_v0  ;;  %v490_v8 = vunpack.c.l.bf16 %v676_v1  ;;  %v491_v11 = vunpack.c.h.bf16 %v676_v1 }
   0x3   :  { %v704_v9 = vld [vmem:[%s1293_s1 + $0x30] sm:$0xff]   ;;  %v709_v10 = vld [vmem:[%s1293_s1 + $0x38] sm:$0xff]   ;;  %v494_v12 = vunpack.c.l.bf16 %v681_v2  ;;  %v495_v13 = vunpack.c.h.bf16 %v681_v2  ;;  %v1296_v14 = vunpack.c.l.bf16 %v686_v3  ;;  %v718_v15 = vld [vmem:[%s1293_s1 + $0x40] sm:$0xff]   ;;  %v1302_v17 = vunpack.c.h.bf16 %v686_v3 }
   0x4   :  { %v723_v16 = vld [vmem:[%s1293_s1 + $0x48] sm:$0xff]   ;;  %v502_v18 = vunpack.c.l.bf16 %v691_v4  ;;  %v503_v19 = vunpack.c.h.bf16 %v691_v4  ;;  %v1297_v20 = vunpack.c.l.bf16 %v696_v5  ;;  %v732_v21 = vld [vmem:[%s1293_s1 + $0x50] sm:$0xff]   ;;  %v737_v22 = vld [vmem:[%s1293_s1 + $0x58] sm:$0xff]   ;;  %v1300_v23 = vunpack.c.h.bf16 %v696_v5 }
   0x5   :  { %v510_v24 = vunpack.c.l.bf16 %v704_v9  ;;  %v511_v25 = vunpack.c.h.bf16 %v704_v9  ;;  %v1298_v26 = vunpack.c.l.bf16 %v709_v10  ;;  %v515_v27 = vunpack.c.h.bf16 %v709_v10  ;;  %v750_v31 = vld [vmem:[%s1293_s1 + $0x60] sm:$0xff]   ;;  %v755_v32 = vld [vmem:[%s1293_s1 + $0x68] sm:$0xff]   ;;  %v765_v38 = vld [vmem:[%s1293_s1 + $0x70] sm:$0xff]  }
   0x6   :  { %v518_v28 = vunpack.c.l.bf16 %v718_v15  ;;  %v519_v29 = vunpack.c.h.bf16 %v718_v15  ;;  %v1301_v30 = vunpack.c.l.bf16 %v723_v16  ;;  %v523_v33 = vunpack.c.h.bf16 %v723_v16  ;;  %v782_v45 = vld [vmem:[%s1293_s1 + $0x78] sm:$0xff]   ;;  %v788_v48 = vld [vmem:[%s1293_s1 + $0x80] sm:$0xff]  }
   0x7   :  { %v526_v34 = vunpack.c.l.bf16 %v732_v21  ;;  %v527_v35 = vunpack.c.h.bf16 %v732_v21  ;;  %v530_v36 = vunpack.c.l.bf16 %v737_v22  ;;  %v1304_v37 = vunpack.c.h.bf16 %v737_v22 }
   0x8   :  { %v84_v39 = vsel %vm83_vm0, %v486_v6, -inf  ;;  %v85_v40 = vsel %vm83_vm0, %v494_v12, -inf  ;;  %v87_v41 = vsel %vm83_vm0, %v502_v18, -inf  ;;  %v534_v42 = vunpack.c.l.bf16 %v750_v31 }
   0x9   :  { %v535_v43 = vunpack.c.h.bf16 %v750_v31  ;;  %v538_v44 = vunpack.c.l.bf16 %v755_v32  ;;  %v86_v46 = vmax.f32 %v84_v39, %v85_v40  ;;  %v1303_v47 = vunpack.c.h.bf16 %v755_v32 }
   0xa   :  { %v89_v49 = vsel %vm83_vm0, %v510_v24, -inf  ;;  %v101_v50 = vsel %vm83_vm0, %v487_v7, -inf  ;;  %v102_v51 = vsel %vm83_vm0, %v495_v13, -inf  ;;  %v1299_v52 = vunpack.c.l.bf16 %v765_v38 }
   0xb   :  { %v88_v53 = vmax.f32 %v86_v46, %v87_v41  ;;  %v103_v54 = vmax.f32 %v101_v50, %v102_v51  ;;  %v104_v55 = vsel %vm83_vm0, %v503_v19, -inf  ;;  %v543_v56 = vunpack.c.h.bf16 %v765_v38 }
   0xc   :  { %v546_v57 = vunpack.c.l.bf16 %v782_v45  ;;  %v91_v58 = vsel %vm83_vm0, %v518_v28, -inf  ;;  %v106_v59 = vsel %vm83_vm0, %v511_v25, -inf  ;;  %v550_v60 = vunpack.c.l.bf16 %v788_v48 }
   0xd   :  { %v90_v61 = vmax.f32 %v88_v53, %v89_v49  ;;  %v105_v62 = vmax.f32 %v103_v54, %v104_v55  ;;  %v118_v63 = vsel %vm83_vm0, %v490_v8, -inf  ;;  %v93_v39 = vsel %vm83_vm0, %v526_v34, -inf }
   0xe   :  { %v108_v40 = vsel %vm83_vm0, %v519_v29, -inf  ;;  %v119_v41 = vsel %vm83_vm0, %v1296_v14, -inf  ;;  %v121_v46 = vsel %vm83_vm0, %v1297_v20, -inf  ;;  %v95_v50 = vsel %vm83_vm0, %v534_v42, -inf }
   0xf   :  { %v92_v49 = vmax.f32 %v90_v61, %v91_v58  ;;  %v107_v51 = vmax.f32 %v105_v62, %v106_v59  ;;  %v120_v53 = vmax.f32 %v118_v63, %v119_v41  ;;  %v97_v54 = vsel %vm83_vm0, %v1299_v52, -inf }
  0x10   :  { %v110_v55 = vsel %vm83_vm0, %v527_v35, -inf  ;;  %v123_v14 = vsel %vm83_vm0, %v1298_v26, -inf  ;;  %v135_v58 = vsel %vm83_vm0, %v491_v11, -inf  ;;  %v136_v62 = vsel %vm83_vm0, %v1302_v17, -inf }
  0x11   :  { %v94_v61 = vmax.f32 %v92_v49, %v93_v39  ;;  %v109_v20 = vmax.f32 %v107_v51, %v108_v40  ;;  %v122_v59 = vmax.f32 %v120_v53, %v121_v46  ;;  %v112_v63 = vsel %vm83_vm0, %v535_v43, -inf  ;;  %v857_v39 = vld [vmem:[%s1293_s1 + $0x88] sm:$0xff]  }
  0x12   :  { %v125_v41 = vsel %vm83_vm0, %v1301_v30, -inf  ;;  %v137_v26 = vmax.f32 %v135_v58, %v136_v62  ;;  %v138_v52 = vsel %vm83_vm0, %v1300_v23, -inf  ;;  %v140_v51 = vsel %vm83_vm0, %v515_v27, -inf }
  0x13   :  { %v96_v40 = vmax.f32 %v94_v61, %v95_v50  ;;  %v111_v46 = vmax.f32 %v109_v20, %v110_v55  ;;  %v124_v49 = vmax.f32 %v122_v59, %v123_v14  ;;  %v551_v53 = vunpack.c.h.bf16 %v788_v48 }
  0x14   :  { %v114_v58 = vsel %vm83_vm0, %v543_v56, -inf  ;;  %v127_v62 = vsel %vm83_vm0, %v530_v36, -inf  ;;  %v139_v23 = vmax.f32 %v137_v26, %v138_v52  ;;  %v142_v14 = vsel %vm83_vm0, %v523_v33, -inf }
  0x15   :  { %v98_v30 = vmax.f32 %v96_v40, %v97_v54  ;;  %v113_v17 = vmax.f32 %v111_v46, %v112_v63  ;;  %v126_v50 = vmax.f32 %v124_v49, %v125_v41  ;;  %v554_v20 = vunpack.c.l.bf16 %v857_v39 }
  0x16   :  { %v99_v55 = vsel %vm83_vm0, %v550_v60, -inf  ;;  %v129_v61 = vsel %vm83_vm0, %v538_v44, -inf  ;;  %v141_v59 = vmax.f32 %v139_v23, %v140_v51  ;;  %v547_v26 = vunpack.c.h.bf16 %v782_v45  ;;  %v328_v45 = vld [vmem:[%s1294_s0] sm:$0xff] }
  0x17   :  { %v128_v52 = vmax.f32 %v126_v50, %v127_v62  ;;  %v144_v54 = vsel %vm83_vm0, %v1304_v37, -inf  ;;  %v555_v63 = vunpack.c.h.bf16 %v857_v39  ;;  %v115_v41 = vmax.f32 %v113_v17, %v114_v58 }
  0x18   :  { %v131_v40 = vsel %vm83_vm0, %v546_v57, -inf  ;;  %v143_v46 = vmax.f32 %v141_v59, %v142_v14  ;;  %v100_v49 = vmax.f32 %v98_v30, %v99_v55  ;;  %v116_v23 = vsel %vm83_vm0, %v551_v53, -inf }
  0x19   :  { %v130_v51 = vmax.f32 %v128_v52, %v129_v61  ;;  %v146_v62 = vsel %vm83_vm0, %v1303_v47, -inf  ;;  %v133_v50 = vsel %vm83_vm0, %v554_v20, -inf  ;;  %v148_v14 = vsel %vm83_vm0, %v547_v26, -inf }
  0x1a   :  { %v145_v17 = vmax.f32 %v143_v46, %v144_v54  ;;  %v117_v30 = vmax.f32 %v115_v41, %v116_v23  ;;  %v150_v61 = vsel %vm83_vm0, %v555_v63, -inf  ;;  %v152_v52 = vsub.f32 %v486_v6, %v100_v49 }
  0x1b   :  { %v132_v58 = vmax.f32 %v130_v51, %v131_v40  ;;  %v156_v37 = vsub.f32 %v494_v12, %v100_v49  ;;  %v160_v54 = vsub.f32 %v502_v18, %v100_v49  ;;  %v164_v40 = vsub.f32 %v510_v24, %v100_v49 }
  0x1c   :  { %v147_v55 = vmax.f32 %v145_v17, %v146_v62  ;;  %v153_v46 = vsub.f32 %v487_v7, %v117_v30  ;;  %v168_v6 = vsub.f32 %v518_v28, %v100_v49  ;;  %v157_v51 = vsub.f32 %v495_v13, %v117_v30 }
  0x1d   :  { %v134_v59 = vmax.f32 %v132_v58, %v133_v50  ;;  %v161_v12 = vsub.f32 %v503_v19, %v117_v30  ;;  %v165_v18 = vsub.f32 %v511_v25, %v117_v30  ;;  %v188_v24 = vmul.f32 1.442695, %v152_v52 }
  0x1e   :  { %v149_v47 = vmax.f32 %v147_v55, %v148_v14  ;;  %v169_v7 = vsub.f32 %v519_v29, %v117_v30  ;;  %v173_v2 = vsub.f32 %v527_v35, %v117_v30  ;;  %v1305_v13 = vunpack.c.l.bf16 %v686_v3 }
  0x1f   :  { %v154_v23 = vsub.f32 %v490_v8, %v134_v59  ;;  %v172_v8 = vsub.f32 %v526_v34, %v100_v49  ;;  %v176_v9 = vsub.f32 %v534_v42, %v100_v49  ;;  %v177_v19 = vsub.f32 %v535_v43, %v117_v30 }
  0x20   :  { %v151_v41 = vmax.f32 %v149_v47, %v150_v61  ;;  %v158_v4 = vsub.f32 %v1305_v13, %v134_v59  ;;  %v1306_v1 = vunpack.c.l.bf16 %v765_v38  ;;  %v1307_v15 = vunpack.c.h.bf16 %v686_v3 }
  0x21   :  { %v944_v21 = vsub.f32 %v543_v56, %v117_v30  ;;  %v190_v28 = vmul.f32 1.442695, %v153_v46  ;;  %v192_v29 = vmul.f32 1.442695, %v154_v23  ;;  %v948_v34 = vsub.f32 %v550_v60, %v100_v49 }
  0x22   :  { %v155_v0 = vsub.f32 %v491_v11, %v151_v41  ;;  %v938_v11 = vsub.f32 %v1306_v1, %v100_v49  ;;  %v159_v25 = vsub.f32 %v1307_v15, %v151_v41  ;;  %573 = vpow2.f32 %v188_v24 }
  0x23   :  { %v196_v35 = vmul.f32 1.442695, %v156_v37  ;;  %v1308_v42 = vunpack.c.l.bf16 %v696_v5  ;;  %v1309_v47 = vunpack.c.l.bf16 %v709_v10  ;;  %575 = vpow2.f32 %v190_v28 }
  0x24   :  { %v194_v31 = vmul.f32 1.442695, %v155_v0  ;;  %v198_v62 = vmul.f32 1.442695, %v157_v51  ;;  %v1310_v38 = vunpack.c.l.bf16 %v723_v16  ;;  %v174_v50 = vsub.f32 %v530_v36, %v134_v59  ;;  %v329_v0 = vld [vmem:[%s1294_s0 + $0x8] sm:$0xff] }
  0x25   :  { %v162_v43 = vsub.f32 %v1308_v42, %v134_v59  ;;  %v166_v3 = vsub.f32 %v1309_v47, %v134_v59  ;;  %577 = vpow2.f32 %v192_v29  ;;  %v200_v60 = vmul.f32 1.442695, %v158_v4 }
  0x26   :  { %v170_v56 = vsub.f32 %v1310_v38, %v134_v59  ;;  %v1311_v49 = vunpack.c.h.bf16 %v696_v5  ;;  %v178_v37 = vsub.f32 %v538_v44, %v134_v59  ;;  %579 = vpow2.f32 %v194_v31 }
  0x27   :  { %v202_v58 = vmul.f32 1.442695, %v159_v25  ;;  %v182_v14 = vsub.f32 %v546_v57, %v134_v59  ;;  %v185_v55 = vsub.f32 %v551_v53, %v117_v30  ;;  %581 = vpow2.f32 %v196_v35 }
  0x28   :  { %v163_v17 = vsub.f32 %v1311_v49, %v151_v41  ;;  %v204_v61 = vmul.f32 1.442695, %v160_v54  ;;  %v167_v36 = vsub.f32 %v515_v27, %v151_v41  ;;  %v186_v5 = vsub.f32 %v554_v20, %v134_v59 }
  0x29   :  { %583 = vpow2.f32 %v198_v62  ;;  %v206_v52 = vmul.f32 1.442695, %v161_v12  ;;  %v171_v44 = vsub.f32 %v523_v33, %v151_v41  ;;  %v1312_v46 = vunpack.c.h.bf16 %v737_v22 }
  0x2a   :  { %585 = vpow2.f32 %v200_v60  ;;  %v208_v57 = vmul.f32 1.442695, %v162_v43  ;;  %v1313_v48 = vunpack.c.h.bf16 %v755_v32  ;;  %v183_v10 = vsub.f32 %v547_v26, %v151_v41 }
  0x2b   :  { %v175_v23 = vsub.f32 %v1312_v46, %v151_v41  ;;  %587 = vpow2.f32 %v202_v58  ;;  %v210_v27 = vmul.f32 1.442695, %v163_v17  ;;  %v187_v20 = vsub.f32 %v555_v63, %v151_v41  ;;  %v332_v58 = vld [vmem:[%s1294_s0 + $0x20] sm:$0xff] }
  0x2c   :  { %v179_v53 = vsub.f32 %v1313_v48, %v151_v41  ;;  %589 = vpow2.f32 %v204_v61  ;;  %v212_v30 = vmul.f32 1.442695, %v164_v40  ;;  %v214_v16 = vmul.f32 1.442695, %v165_v18  ;;  %v574_v54 = vpop.eup %573 }
  0x2d   :  { %591 = vpow2.f32 %v206_v52  ;;  %v216_v33 = vmul.f32 1.442695, %v166_v3  ;;  %v218_v22 = vmul.f32 1.442695, %v167_v36  ;;  %v220_v59 = vmul.f32 1.442695, %v168_v6  ;;  %v576_v26 = vpop.eup %575 }
  0x2e   :  { %593 = vpow2.f32 %v208_v57  ;;  %v222_v51 = vmul.f32 1.442695, %v169_v7  ;;  %v224_v32 = vmul.f32 1.442695, %v170_v56  ;;  %v226_v12 = vmul.f32 1.442695, %v171_v44 }
  0x2f   :  { %595 = vpow2.f32 %v210_v27  ;;  %v228_v39 = vmul.f32 1.442695, %v172_v8  ;;  %v230_v63 = vmul.f32 1.442695, %v173_v2  ;;  %v232_v41 = vmul.f32 1.442695, %v174_v50  ;;  %v578_v40 = vpop.eup %577 }
  0x30   :  { %597 = vpow2.f32 %v212_v30  ;;  %v234_v18 = vmul.f32 1.442695, %v175_v23  ;;  %v983_v24 = vmul.f32 1.442695, %v176_v9  ;;  %v985_v6 = vmul.f32 1.442695, %v177_v19  ;;  %v580_v7 = vpop.eup %579 }
  0x31   :  { %599 = vpow2.f32 %v214_v16  ;;  %v990_v13 = vmul.f32 1.442695, %v178_v37  ;;  %v992_v4 = vmul.f32 1.442695, %v179_v53  ;;  %v995_v8 = vmul.f32 1.442695, %v938_v11  ;;  %v582_v2 = vpop.eup %581 }
  0x32   :  { %601 = vpow2.f32 %v216_v33  ;;  %v998_v9 = vmul.f32 1.442695, %v944_v21  ;;  %v1000_v19 = vmul.f32 1.442695, %v182_v14  ;;  %v1002_v1 = vmul.f32 1.442695, %v183_v10 }
  0x33   :  { %v584_v15 = vpop.eup %583  ;;  %603 = vpow2.f32 %v218_v22  ;;  %v1005_v25 = vmul.f32 1.442695, %v948_v34  ;;  %v1007_v28 = vmul.f32 1.442695, %v185_v55  ;;  %v330_v11 = vld [vmem:[%s1294_s0 + $0x10] sm:$0xff]  ;;  %v364_v29 = vmul.f32 %v574_v54, %v328_v45  ;;  %v331_v50 = vld [vmem:[%s1294_s0 + $0x18] sm:$0xff] }
  0x34   :  { %v586_v31 = vpop.eup %585  ;;  %605 = vpow2.f32 %v220_v59  ;;  %v1012_v21 = vmul.f32 1.442695, %v186_v5  ;;  %v260_v35 = vsel %vm83_vm0, %v574_v54, 0.0  ;;  %v261_v42 = vsel %vm83_vm0, %v582_v2, 0.0  ;;  %v333_v53 = vld [vmem:[%s1294_s0 + $0x28] sm:$0xff]  ;;  %v334_v10 = vld [vmem:[%s1294_s0 + $0x30] sm:$0xff] }
  0x35   :  { %v588_v43 = vpop.eup %587  ;;  %607 = vpow2.f32 %v222_v51  ;;  %v1016_v47 = vmul.f32 1.442695, %v187_v20  ;;  %v277_v34 = vsel %vm83_vm0, %v576_v26, 0.0  ;;  %v365_v3 = vmul.f32 %v576_v26, %v329_v0  ;;  %v335_v59 = vld [vmem:[%s1294_s0 + $0x38] sm:$0xff]  ;;  %v336_v54 = vld [vmem:[%s1294_s0 + $0x40] sm:$0xff]  ;;  %v338_v0 = vld [vmem:[%s1294_s0 + $0x50] sm:$0xff] }
  0x36   :  { %v590_v62 = vpop.eup %589  ;;  %609 = vpow2.f32 %v224_v32  ;;  %v278_v38 = vsel %vm83_vm0, %v584_v15, 0.0  ;;  %v294_v56 = vsel %vm83_vm0, %v578_v40, 0.0  ;;  %v366_v60 = vmul.f32 %v578_v40, %v330_v11 }
  0x37   :  { %v592_v49 = vpop.eup %591  ;;  %611 = vpow2.f32 %v226_v12  ;;  %v262_v17 = vadd.f32 %v261_v42, %v260_v35  ;;  %v311_v37 = vsel %vm83_vm0, %v580_v7, 0.0  ;;  %v1029_v14 = vsel %vm83_vm0, %v364_v29, 0.0  ;;  %v339_v29 = vld [vmem:[%s1294_s0 + $0x58] sm:$0xff] }
  0x38   :  { %v594_v55 = vpop.eup %593  ;;  %613 = vpow2.f32 %v228_v39  ;;  %v263_v61 = vsel %vm83_vm0, %v590_v62, 0.0  ;;  %v295_v36 = vsel %vm83_vm0, %v586_v31, 0.0  ;;  %v312_v5 = vsel %vm83_vm0, %v588_v43, 0.0 }
  0x39   :  { %v596_v52 = vpop.eup %595  ;;  %615 = vpow2.f32 %v230_v63  ;;  %v279_v44 = vadd.f32 %v278_v38, %v277_v34  ;;  %v1034_v46 = vmul.f32 %v580_v7, %v331_v50  ;;  %v1037_v23 = vsel %vm83_vm0, %v365_v3, 0.0 }
  0x3a   :  { %v598_v57 = vpop.eup %597  ;;  %617 = vpow2.f32 %v232_v41  ;;  %v280_v48 = vsel %vm83_vm0, %v592_v49, 0.0  ;;  %v1046_v27 = vmul.f32 %v582_v2, %v332_v58  ;;  %v1049_v20 = vsel %vm83_vm0, %v366_v60, 0.0  ;;  %v342_v60 = vld [vmem:[%s1294_s0 + $0x70] sm:$0xff] }
  0x3b   :  { %v1051_v30 = vpop.eup %599  ;;  %619 = vpow2.f32 %v234_v18  ;;  %v264_v16 = vadd.f32 %v263_v61, %v262_v17  ;;  %v296_v33 = vadd.f32 %v295_v36, %v294_v56  ;;  %v313_v22 = vadd.f32 %v312_v5, %v311_v37  ;;  %v344_v61 = vld [vmem:[%s1294_s0 + $0x80] sm:$0xff]  ;;  %v345_v36 = vld [vmem:[%s1294_s0 + $0x88] sm:$0xff] }
  0x3c   :  { %v602_v51 = vpop.eup %601  ;;  %621 = vpow2.f32 %v983_v24  ;;  %v265_v32 = vsel %vm83_vm0, %v598_v57, 0.0  ;;  %v297_v12 = vsel %vm83_vm0, %v594_v55, 0.0  ;;  %v314_v45 = vsel %vm83_vm0, %v596_v52, 0.0  ;;  %v337_v24 = vld [vmem:[%s1294_s0 + $0x48] sm:$0xff] }
  0x3d   :  { %v604_v26 = vpop.eup %603  ;;  %623 = vpow2.f32 %v985_v6  ;;  %v281_v39 = vadd.f32 %v280_v48, %v279_v44  ;;  %v1064_v63 = vmul.f32 %v584_v15, %v333_v53  ;;  %v1066_v41 = vmul.f32 %v586_v31, %v334_v10  ;;  %v340_v31 = vld [vmem:[%s1294_s0 + $0x60] sm:$0xff] }
  0x3e   :  { %v606_v40 = vpop.eup %605  ;;  %625 = vpow2.f32 %v990_v13  ;;  %v282_v18 = vsel %vm83_vm0, %v1051_v30, 0.0  ;;  %v1077_v6 = vmul.f32 %v588_v43, %v335_v59  ;;  %v1079_v7 = vmul.f32 %v590_v62, %v336_v54 }
  0x3f   :  { %v608_v2 = vpop.eup %607  ;;  %627 = vpow2.f32 %v992_v4  ;;  %v266_v15 = vadd.f32 %v265_v32, %v264_v16  ;;  %v298_v13 = vadd.f32 %v297_v12, %v296_v33  ;;  %v315_v11 = vadd.f32 %v314_v45, %v313_v22 }
  0x40   :  { %v610_v35 = vpop.eup %609  ;;  %629 = vpow2.f32 %v995_v8  ;;  %v267_v42 = vsel %vm83_vm0, %v606_v40, 0.0  ;;  %v299_v43 = vsel %vm83_vm0, %v602_v51, 0.0  ;;  %v316_v4 = vsel %vm83_vm0, %v604_v26, 0.0  ;;  %v341_v8 = vld [vmem:[%s1294_s0 + $0x68] sm:$0xff] }
  0x41   :  { %v612_v34 = vpop.eup %611  ;;  %631 = vpow2.f32 %v998_v9  ;;  %v283_v3 = vadd.f32 %v282_v18, %v281_v39  ;;  %v1093_v62 = vmul.f32 %v592_v49, %v337_v24  ;;  %v1095_v38 = vmul.f32 %v594_v55, %v338_v0  ;;  %v349_v24 = vld [vmem:[%s1294_s0 + $0xa8] sm:$0xff] }
  0x42   :  { %v614_v56 = vpop.eup %613  ;;  %633 = vpow2.f32 %v1000_v19  ;;  %v284_v50 = vsel %vm83_vm0, %v608_v2, 0.0  ;;  %v1105_v17 = vmul.f32 %v596_v52, %v339_v29  ;;  %v376_v9 = vmul.f32 %v598_v57, %v340_v31  ;;  %v343_v19 = vld [vmem:[%s1294_s0 + $0x78] sm:$0xff]  ;;  %v346_v57 = vld [vmem:[%s1294_s0 + $0x90] sm:$0xff] }
  0x43   :  { %v616_v49 = vpop.eup %615  ;;  %635 = vpow2.f32 %v1002_v1  ;;  %v268_v37 = vadd.f32 %v267_v42, %v266_v15  ;;  %v300_v58 = vadd.f32 %v299_v43, %v298_v13  ;;  %v317_v55 = vadd.f32 %v316_v4, %v315_v11  ;;  %v350_v31 = vld [vmem:[%s1294_s0 + $0xb0] sm:$0xff] }
  0x44   :  { %v618_v5 = vpop.eup %617  ;;  %637 = vpow2.f32 %v1005_v25  ;;  %v269_v1 = vsel %vm83_vm0, %v614_v56, 0.0  ;;  %v301_v52 = vsel %vm83_vm0, %v610_v35, 0.0  ;;  %v318_v44 = vsel %vm83_vm0, %v612_v34, 0.0 }
  0x45   :  { %v620_v48 = vpop.eup %619  ;;  %639 = vpow2.f32 %v1007_v28  ;;  %v285_v53 = vadd.f32 %v284_v50, %v283_v3  ;;  %v1126_v10 = vmul.f32 %v1051_v30, %v341_v8  ;;  %v1128_v16 = vmul.f32 %v602_v51, %v342_v60  ;;  %v347_v28 = vld [vmem:[%s1294_s0 + $0x98] sm:$0xff]  ;;  %v348_v30 = vld [vmem:[%s1294_s0 + $0xa0] sm:$0xff] }
  0x46   :  { %v622_v25 = vpop.eup %621  ;;  %v286_v33 = vsel %vm83_vm0, %v616_v49, 0.0  ;;  %v1131_v22 = vmul.f32 %v604_v26, %v343_v19  ;;  %v380_v59 = vmul.f32 %v606_v40, %v344_v61  ;;  %v1133_v54 = vmul.f32 %v608_v2, %v345_v36  ;;  %v352_v3 = vld [vmem:[%s1294_s0 + $0xc0] sm:$0xff] }
  0x47   :  { %v624_v32 = vpop.eup %623  ;;  %v270_v12 = vadd.f32 %v269_v1, %v268_v37  ;;  %v302_v45 = vadd.f32 %v301_v52, %v300_v58  ;;  %v319_v39 = vadd.f32 %v318_v44, %v317_v55  ;;  %v1141_v51 = vmul.f32 %v610_v35, %v346_v57  ;;  %v353_v37 = vld [vmem:[%s1294_s0 + $0xc8] sm:$0xff]  ;;  %v354_v44 = vld [vmem:[%s1294_s0 + $0xd0] sm:$0xff]  ;;  %v355_v57 = vld [vmem:[%s1294_s0 + $0xd8] sm:$0xff] }
  0x48   :  { %v626_v18 = vpop.eup %625  ;;  %641 = vpow2.f32 %v1012_v21  ;;  %v303_v26 = vsel %vm83_vm0, %v618_v5, 0.0  ;;  %v320_v40 = vsel %vm83_vm0, %v620_v48, 0.0  ;;  %v401_v0 = vsel %vm83_vm0, %v1046_v27, 0.0 }
  0x49   :  { %v628_v2 = vpop.eup %627  ;;  %643 = vpow2.f32 %v1016_v47  ;;  %v271_v15 = vsel %vm83_vm0, %v622_v25, 0.0  ;;  %v287_v13 = vadd.f32 %v286_v33, %v285_v53  ;;  %v402_v11 = vadd.f32 %v401_v0, %v1029_v14  ;;  %v351_v14 = vld [vmem:[%s1294_s0 + $0xb8] sm:$0xff] }
  0x4a   :  { %v630_v21 = vpop.eup %629  ;;  %v288_v29 = vsel %vm83_vm0, %v624_v32, 0.0  ;;  %v1158_v35 = vmul.f32 %v612_v34, %v347_v28  ;;  %v384_v42 = vmul.f32 %v614_v56, %v348_v30  ;;  %v403_v27 = vsel %vm83_vm0, %v1079_v7, 0.0  ;;  %v357_v28 = vld [vmem:[%s1294_s0 + $0xe8] sm:$0xff]  ;;  %v358_v30 = vld [vmem:[%s1294_s0 + $0xf0] sm:$0xff] }
  0x4b   :  { %v632_v43 = vpop.eup %631  ;;  %v304_v47 = vadd.f32 %v303_v26, %v302_v45  ;;  %v321_v4 = vadd.f32 %v320_v40, %v319_v39  ;;  %v1168_v50 = vmul.f32 %v616_v49, %v349_v24  ;;  %v404_v8 = vadd.f32 %v403_v27, %v402_v11  ;;  %v356_v39 = vld [vmem:[%s1294_s0 + $0xe0] sm:$0xff]  ;;  %v361_v27 = vld [vmem:[%s1294_s0 + $0x108] sm:$0xff] }
  0x4c   :  { %v634_v34 = vpop.eup %633  ;;  %v272_v60 = vadd.f32 %v271_v15, %v270_v12  ;;  %v305_v56 = vsel %vm83_vm0, %v626_v18, 0.0  ;;  %v322_v7 = vsel %vm83_vm0, %v628_v2, 0.0  ;;  %v405_v58 = vsel %vm83_vm0, %v376_v9, 0.0  ;;  %v360_v24 = vld [vmem:[%s1294_s0 + $0x100] sm:$0xff] }
  0x4d   :  { %v1176_v55 = vpop.eup %635  ;;  %v273_v19 = vsel %vm83_vm0, %v630_v21, 0.0  ;;  %v289_v61 = vadd.f32 %v288_v29, %v287_v13  ;;  %v1179_v49 = vmul.f32 %v618_v5, %v350_v31  ;;  %v406_v36 = vadd.f32 %v405_v58, %v404_v8 }
  0x4e   :  { %v638_v1 = vpop.eup %637  ;;  %v290_v52 = vsel %vm83_vm0, %v632_v43, 0.0  ;;  %v1188_v9 = vmul.f32 %v620_v48, %v351_v14  ;;  %v388_v53 = vmul.f32 %v622_v25, %v352_v3  ;;  %v407_v33 = vsel %vm83_vm0, %v380_v59, 0.0 }
  0x4f   :  { %v640_v12 = vpop.eup %639  ;;  %v306_v5 = vadd.f32 %v305_v56, %v304_v47  ;;  %v323_v45 = vadd.f32 %v322_v7, %v321_v4  ;;  %v389_v48 = vmul.f32 %v624_v32, %v353_v37  ;;  %v408_v26 = vadd.f32 %v407_v33, %v406_v36 }
  0x50   :  { %v274_v25 = vadd.f32 %v273_v19, %v272_v60  ;;  %v307_v59 = vsel %vm83_vm0, %v634_v34, 0.0  ;;  %v324_v40 = vsel %vm83_vm0, %v1176_v55, 0.0  ;;  %v409_v0 = vsel %vm83_vm0, %v384_v42, 0.0 }
  0x51   :  { %v275_v15 = vsel %vm83_vm0, %v638_v1, 0.0  ;;  %v291_v13 = vadd.f32 %v290_v52, %v289_v61  ;;  %v390_v11 = vmul.f32 %v626_v18, %v354_v44  ;;  %v1208_v29 = vmul.f32 %v628_v2, %v355_v57  ;;  %v362_v18 = vld [vmem:[%s1294_s0 + $0x110] sm:$0xff] }
  0x52   :  { %v642_v32 = vpop.eup %641  ;;  %v292_v31 = vsel %vm83_vm0, %v640_v12, 0.0  ;;  %v392_v47 = vmul.f32 %v630_v21, %v356_v39  ;;  %v393_v4 = vmul.f32 %v632_v43, %v357_v28  ;;  %v394_v14 = vmul.f32 %v634_v34, %v358_v30 }
  0x53   :  { %v1214_v3 = vpop.eup %643  ;;  %v308_v8 = vadd.f32 %v307_v59, %v306_v5  ;;  %v325_v42 = vadd.f32 %v324_v40, %v323_v45  ;;  %v396_v60 = vmul.f32 %v638_v1, %v360_v24  ;;  %v410_v56 = vadd.f32 %v409_v0, %v408_v26 }
  0x54   :  { %v276_v7 = vadd.f32 %v275_v15, %v274_v25  ;;  %v411_v2 = vsel %vm83_vm0, %v388_v53, 0.0  ;;  %v418_v37 = vsel %vm83_vm0, %v1064_v63, 0.0  ;;  %v420_v21 = vsel %vm83_vm0, %v1093_v62, 0.0 }
  0x55   :  { %v293_v43 = vadd.f32 %v292_v31, %v291_v13  ;;  %v309_v34 = vsel %vm83_vm0, %v642_v32, 0.0  ;;  %v397_v58 = vmul.f32 %v640_v12, %v361_v27  ;;  %v419_v19 = vadd.f32 %v418_v37, %v1037_v23 }
  0x56   :  { %v326_v61 = vsel %vm83_vm0, %v1214_v3, 0.0  ;;  %v422_v36 = vsel %vm83_vm0, %v1126_v10, 0.0  ;;  %v435_v1 = vsel %vm83_vm0, %v1066_v41, 0.0  ;;  %v437_v63 = vsel %vm83_vm0, %v1095_v38, 0.0 }
  0x57   :  { %v398_v52 = vmul.f32 %v642_v32, %v362_v18  ;;  %v412_v62 = vadd.f32 %v411_v2, %v410_v56  ;;  %v421_v44 = vadd.f32 %v420_v21, %v419_v19  ;;  %v436_v57 = vadd.f32 %v435_v1, %v1049_v20 }
  0x58   :  { %v310_v53 = vadd.f32 %v309_v34, %v308_v8  ;;  %v413_v23 = vsel %vm83_vm0, %v392_v47, 0.0  ;;  %v424_v33 = vsel %vm83_vm0, %v1133_v54, 0.0  ;;  %v439_v10 = vsel %vm83_vm0, %v1128_v16, 0.0 }
  0x59   :  { %v327_v12 = vadd.f32 %v326_v61, %v325_v42  ;;  %v423_v5 = vadd.f32 %v422_v36, %v421_v44  ;;  %v438_v41 = vadd.f32 %v437_v63, %v436_v57  ;;  %v451_v38 = vsel %vm83_vm0, %v1034_v46, 0.0 }
  0x5a   :  { %v426_v45 = vsel %vm83_vm0, %v1168_v50, 0.0  ;;  %v441_v20 = vsel %vm83_vm0, %v1141_v51, 0.0  ;;  %v452_v39 = vsel %vm83_vm0, %v1077_v6, 0.0  ;;  %v454_v54 = vsel %vm83_vm0, %v1105_v17, 0.0  ;;  %v359_v6 = vld [vmem:[%s1294_s0 + $0xf8] sm:$0xff] }
  0x5b   :  { %v414_v28 = vadd.f32 %v413_v23, %v412_v62  ;;  %v425_v16 = vadd.f32 %v424_v33, %v423_v5  ;;  %v440_v30 = vadd.f32 %v439_v10, %v438_v41  ;;  %v453_v26 = vadd.f32 %v452_v39, %v451_v38 }
  0x5c   :  { %v428_v25 = vsel %vm83_vm0, %v389_v48, 0.0  ;;  %v443_v46 = vsel %vm83_vm0, %v1179_v49, 0.0  ;;  %v456_v50 = vsel %vm83_vm0, %v1131_v22, 0.0  ;;  %645 = vrcp.f32 %v276_v7  ;;  %v363_v22 = vld [vmem:[%s1294_s0 + $0x118] sm:$0xff] }
  0x5d   :  { %v427_v51 = vadd.f32 %v426_v45, %v425_v16  ;;  %v442_v59 = vadd.f32 %v441_v20, %v440_v30  ;;  %v455_v17 = vadd.f32 %v454_v54, %v453_v26  ;;  %647 = vrcp.f32 %v293_v43 }
  0x5e   :  { %v430_v40 = vsel %vm83_vm0, %v393_v4, 0.0  ;;  %v445_v24 = vsel %vm83_vm0, %v390_v11, 0.0  ;;  %v458_v48 = vsel %vm83_vm0, %v1158_v35, 0.0  ;;  %649 = vrcp.f32 %v310_v53 }
  0x5f   :  { %v429_v49 = vadd.f32 %v428_v25, %v427_v51  ;;  %v444_v0 = vadd.f32 %v443_v46, %v442_v59  ;;  %v457_v15 = vadd.f32 %v456_v50, %v455_v17  ;;  %651 = vrcp.f32 %v327_v12 }
  0x60   :  { %v395_v13 = vmul.f32 %v1176_v55, %v359_v6  ;;  %v415_v32 = vsel %vm83_vm0, %v396_v60, 0.0  ;;  %v447_v31 = vsel %vm83_vm0, %v394_v14, 0.0  ;;  %v460_v11 = vsel %vm83_vm0, %v1188_v9, 0.0 }
  0x61   :  { %v431_v27 = vadd.f32 %v430_v40, %v429_v49  ;;  %v432_v35 = vsel %vm83_vm0, %v397_v58, 0.0  ;;  %v446_v47 = vadd.f32 %v445_v24, %v444_v0  ;;  %v459_v4 = vadd.f32 %v458_v48, %v457_v15 }
  0x62   :  { %v399_v8 = vmul.f32 %v1214_v3, %v363_v22  ;;  %v449_v42 = vsel %vm83_vm0, %v398_v52, 0.0  ;;  %v462_v56 = vsel %vm83_vm0, %v1208_v29, 0.0  ;;  %v416_v55 = vadd.f32 %v415_v32, %v414_v28 }
  0x63   :  { %v448_v7 = vadd.f32 %v447_v31, %v446_v47  ;;  %v461_v60 = vadd.f32 %v460_v11, %v459_v4  ;;  %v433_v18 = vadd.f32 %v432_v35, %v431_v27  ;;  %v464_v14 = vsel %vm83_vm0, %v395_v13, 0.0 }
  0x64   :  { %v466_v21 = vsel %vm83_vm0, %v399_v8, 0.0 }
  0x65   :  { %v450_v2 = vadd.f32 %v449_v42, %v448_v7  ;;  %v463_v9 = vadd.f32 %v462_v56, %v461_v60 }
  0x66   :  { %v646_v37 = vpop.eup %645 }
  0x67   :  { %v648_v43 = vpop.eup %647  ;;  %v465_v34 = vadd.f32 %v464_v14, %v463_v9  ;;  %v472_v58 = vmul.f32 %v646_v37, %v416_v55 }
  0x68   :  { %v650_v3 = vpop.eup %649  ;;  %v473_v19 = vmul.f32 %v648_v43, %v433_v18 }
  0x69   :  { %v652_v61 = vpop.eup %651  ;;  %v467_v36 = vadd.f32 %v466_v21, %v465_v34  ;;  %v474_v1 = vmul.f32 %v650_v3, %v450_v2  ;;  %476 = vst.msk [vmem:[%s1295_s2] sm:$0xff] %vm83_vm0, %v472_v58 }
  0x6a   :  { %477 = vst.msk [vmem:[%s1295_s2 + $0x8] sm:$0xff] %vm83_vm0, %v473_v19 }
  0x6b   :  { %v475_v29 = vmul.f32 %v652_v61, %v467_v36  ;;  %478 = vst.msk [vmem:[%s1295_s2 + $0x10] sm:$0xff] %vm83_vm0, %v474_v1 }
  0x6d   :  { %479 = vst.msk [vmem:[%s1295_s2 + $0x18] sm:$0xff] %vm83_vm0, %v475_v29 }

</bundles_post_ra>
